<compile_context>
chip_gen: v7x
topology: tpu7x:2x2x1
jax: 0.10.0
libtpu: 0.0.40
codegen_flags: <defaults>
</compile_context>

<pallas_src>
import functools

import numpy as np
import jax
import jax.numpy as jnp
from jax.experimental import pallas as pl
from jax.experimental.pallas import tpu as pltpu


def _round_up(n, m):
    return ((n + m - 1) // m) * m


def _relative_index(ih, iw):
    """Replicates the PyTorch `relative_index` buffer (host-side, static)."""
    ii, jj = np.meshgrid(np.arange(ih), np.arange(iw), indexing="ij")
    coords = np.stack([ii, jj]).reshape(2, -1)          # (2, N)
    rel = coords[:, :, None] - coords[:, None, :]       # (2, N, N)
    rel[0] += ih - 1
    rel[1] += iw - 1
    rel[0] *= 2 * iw - 1
    return rel.sum(0).reshape(-1)                       # (N*N,)


def _attention_kernel(x_ref, wqkv_ref, bias_ref, wo_ref, bo_ref, o_ref,
                      qkv_ref, ocat_ref, *, bt, heads, dim_head, n_tok):
    # x_ref    : (Bt*N, INP_P)        bf16, lane-padded channels
    # wqkv_ref : (INP_P, 3*inner)     bf16, scale folded into q columns
    # bias_ref : (heads, N, N)        bf16 dense relative position bias
    # wo_ref   : (inner, OUP_P)       bf16, lane-padded columns
    # bo_ref   : (1, OUP_P)           f32
    # o_ref    : (Bt*N, OUP_P)        output (x dtype)
    # qkv_ref  : VMEM (Bt*N, 3*inner) bf16 scratch — fused q|k|v projections
    # ocat_ref : VMEM (Bt*N, inner)   bf16 scratch — head-concatenated attn@v
    inner = heads * dim_head

    # One fused projection matmul for all heads / all Bt batch rows (MXU).
    qkv_ref[...] = jnp.dot(
        x_ref[...], wqkv_ref[...],
        preferred_element_type=jnp.float32).astype(qkv_ref.dtype)

    for b in range(bt):                                  # static unroll
        r0 = b * n_tok
        for h in range(heads):                           # static unroll
            c0 = h * dim_head
            q = qkv_ref[r0:r0 + n_tok, c0:c0 + dim_head]                      # (N, d) bf16
            k = qkv_ref[r0:r0 + n_tok, inner + c0:inner + c0 + dim_head]      # (N, d) bf16
            v = qkv_ref[r0:r0 + n_tok, 2 * inner + c0:2 * inner + c0 + dim_head]

            # q @ k^T (scale already folded into q via the weights)
            dots = jax.lax.dot_general(
                q, k, dimension_numbers=(((1,), (1,)), ((), ())),
                preferred_element_type=jnp.float32)                           # (N, N) f32
            dots = dots + bias_ref[h].astype(jnp.float32)

            # numerically-stable softmax over keys (f32 math, EUP reciprocal)
            m = jnp.max(dots, axis=-1, keepdims=True)
            p = jnp.exp(dots - m)
            inv = pl.reciprocal(jnp.sum(p, axis=-1, keepdims=True), approx=True)
            attn = (p * inv).astype(v.dtype)                                  # bf16 for MXU

            o_h = jnp.dot(attn, v, preferred_element_type=jnp.float32)        # (N, d) f32
            # head-concat via column placement in the VMEM scratch
            ocat_ref[r0:r0 + n_tok, c0:c0 + dim_head] = o_h.astype(ocat_ref.dtype)

    # One K=inner output-projection matmul (replaces 8 tiny K=dim_head matmuls)
    out = jnp.dot(ocat_ref[...], wo_ref[...], preferred_element_type=jnp.float32)
    o_ref[...] = (out + bo_ref[...]).astype(o_ref.dtype)


@functools.partial(jax.jit, static_argnames=("heads", "dim_head", "ih", "iw"))
def coatnet_attention(x, wqkv, rel_bias_table, wo, bo, *, heads, dim_head, ih, iw):
    """Forward pass of Attention(inp, oup, (ih, iw), heads, dim_head)."""
    B, N, inp = x.shape
    assert N == ih * iw
    inner = heads * dim_head
    oup = wo.shape[1]
    scale = float(dim_head) ** -0.5

    # ---- parameter-only preprocessing (independent of x) -------------------
    idx = jnp.asarray(_relative_index(ih, iw))                    # (N*N,)
    bias = jnp.take(rel_bias_table, idx, axis=0)                  # (N*N, heads)
    bias = bias.reshape(N, N, heads).transpose(2, 0, 1)           # (heads, Nq, Nk)
    bias = bias.astype(jnp.bfloat16)

    # ---- lane-dense padding of channel dims (multiples of 128) -------------
    inp_p = _round_up(inp, 128)
    oup_p = _round_up(oup, 128)

    # batch tile: largest of (4, 2, 1) dividing B (for real B >= 8 the grid
    # still has >= 2 "parallel" steps, so v7x's two TensorCores stay busy)
    bt = next(t for t in (4, 2, 1) if B % t == 0)

    x_p = jnp.pad(x, ((0, 0), (0, 0), (0, inp_p - inp)))
    x_p = x_p.reshape(B * N, inp_p).astype(jnp.bfloat16)          # bf16 MXU operand

    # fused qkv weight, scale folded into the q columns (exact rewrite)
    wqkv_s = wqkv.at[:, :inner].multiply(scale)
    wqkv_p = jnp.pad(wqkv_s, ((0, inp_p - inp), (0, 0))).astype(jnp.bfloat16)

    wo_p = jnp.pad(wo, ((0, 0), (0, oup_p - oup))).astype(jnp.bfloat16)
    bo_p = jnp.pad(bo.reshape(1, -1), ((0, 0), (0, oup_p - oup)))  # f32

    kernel = functools.partial(_attention_kernel, bt=bt, heads=heads,
                               dim_head=dim_head, n_tok=N)

    out_p = pl.pallas_call(
        kernel,
        out_shape=jax.ShapeDtypeStruct((B * N, oup_p), x.dtype),
        grid_spec=pltpu.PrefetchScalarGridSpec(
            num_scalar_prefetch=0,
            grid=(B // bt,),
            in_specs=[
                pl.BlockSpec((bt * N, inp_p), lambda b: (b, 0)),      # x rows
                pl.BlockSpec((inp_p, 3 * inner), lambda b: (0, 0)),   # Wqkv
                pl.BlockSpec((heads, N, N), lambda b: (0, 0, 0)),     # bias
                pl.BlockSpec((inner, oup_p), lambda b: (0, 0)),       # Wo
                pl.BlockSpec((1, oup_p), lambda b: (0, 0)),           # bo
            ],
            out_specs=pl.BlockSpec((bt * N, oup_p), lambda b: (b, 0)),
            scratch_shapes=[
                pltpu.VMEM((bt * N, 3 * inner), jnp.bfloat16),        # fused qkv
                pltpu.VMEM((bt * N, inner), jnp.bfloat16),            # concat heads
            ]),
        compiler_params=pltpu.CompilerParams(
            dimension_semantics=("parallel",)),
    )(x_p, wqkv_p, bias, wo_p, bo_p)

    return out_p[:, :oup].reshape(B, N, oup)


def _reference(x, wqkv, rel_bias_table, wo, bo, *, heads, dim_head, ih, iw):
    """Pure-JAX replica of the PyTorch forward (f32, HIGHEST precision)."""
    B, N, _ = x.shape
    hp = jax.lax.Precision.HIGHEST
    inner = heads * dim_head
    qkv = jnp.einsum("bni,io->bno", x, wqkv, precision=hp)
    q, k, v = jnp.split(qkv, 3, axis=-1)
    split = lambda t: t.reshape(B, N, heads, dim_head).transpose(0, 2, 1, 3)
    q, k, v = split(q), split(k), split(v)
    dots = jnp.einsum("bhnd,bhmd->bhnm", q, k, precision=hp) * (dim_head ** -0.5)
    idx = jnp.asarray(_relative_index(ih, iw))
    bias = jnp.take(rel_bias_table, idx, axis=0).reshape(N, N, heads).transpose(2, 0, 1)
    attn = jax.nn.softmax(dots + bias[None], axis=-1)
    out = jnp.einsum("bhnm,bhmd->bhnd", attn, v, precision=hp)
    out = out.transpose(0, 2, 1, 3).reshape(B, N, inner)
    return jnp.einsum("bno,od->bnd", out, wo, precision=hp) + bo


if __name__ == "__main__":
    key = jax.random.PRNGKey(0)
    B = 2
    ih, iw = 8, 8
    N = ih * iw                       # 64 tokens
    inp, oup = 32, 32
    heads, dim_head = 8, 32
    inner = heads * dim_head          # 256

    k_x, k_qkv, k_t, k_o, k_b = jax.random.split(key, 5)
    x = jax.random.normal(k_x, (B, N, inp), jnp.float32)
    # Module parameters (to_qkv has no bias; relative_bias_table is a Parameter).
    wqkv = jax.random.normal(k_qkv, (inp, 3 * inner), jnp.float32) * 0.05
    rel_bias_table = jax.random.normal(
        k_t, ((2 * ih - 1) * (2 * iw - 1), heads), jnp.float32) * 0.02
    wo = jax.random.normal(k_o, (inner, oup), jnp.float32) * 0.05
    bo = jax.random.normal(k_b, (oup,), jnp.float32) * 0.05
    # TODO(synk): nn.Dropout(p=0.0) in to_out is an identity at inference; omitted.

    out = coatnet_attention(x, wqkv, rel_bias_table, wo, bo,
                            heads=heads, dim_head=dim_head, ih=ih, iw=iw)
    out = jax.block_until_ready(out)

    ref = _reference(x, wqkv, rel_bias_table, wo, bo,
                     heads=heads, dim_head=dim_head, ih=ih, iw=iw)
    assert out.shape == (B, N, oup)
    # bf16 MXU operands -> looser tolerance than the pure-f32 variant.
    max_err = float(jnp.max(jnp.abs(out - ref)))
    assert jnp.allclose(out, ref, atol=2e-2, rtol=2e-2), max_err

    print("KERNEL_OK")
</pallas_src>

<mosaic_0001>
module attributes {stable_mosaic.version = 11 : i64} {
  func.func @_attention_kernel(%arg0: i32, %arg1: memref<128x128xbf16, #tpu.memory_space<vmem>>, %arg2: memref<128x768xbf16, #tpu.memory_space<vmem>>, %arg3: memref<8x64x64xbf16, #tpu.memory_space<vmem>>, %arg4: memref<256x128xbf16, #tpu.memory_space<vmem>>, %arg5: memref<1x128xf32, #tpu.memory_space<vmem>>, %arg6: memref<128x128xf32, #tpu.memory_space<vmem>>, %arg7: memref<128x768xbf16, #tpu.memory_space<vmem>>, %arg8: memref<128x256xbf16, #tpu.memory_space<vmem>>) attributes {dimension_semantics = [#tpu.dimension_semantics<parallel>], iteration_bounds = array<i64: 1>, scalar_prefetch = 0 : i64, scratch_operands = 2 : i64, tpu.core_type = #tpu.core_type<tc>, window_params = [{transform_indices = @transform_0, window_bounds = array<i64: 128, 128>}, {pipeline_mode = #tpu.pipeline_mode<synchronous>, transform_indices = @transform_1, window_bounds = array<i64: 128, 768>}, {pipeline_mode = #tpu.pipeline_mode<synchronous>, transform_indices = @transform_2, window_bounds = array<i64: 8, 64, 64>}, {pipeline_mode = #tpu.pipeline_mode<synchronous>, transform_indices = @transform_3, window_bounds = array<i64: 256, 128>}, {pipeline_mode = #tpu.pipeline_mode<synchronous>, transform_indices = @transform_4, window_bounds = array<i64: 1, 128>}, {transform_indices = @transform_5, window_bounds = array<i64: 128, 128>}]} {
    %c0 = arith.constant 0 : index
    %c0_0 = arith.constant 0 : index
    %0 = vector.load %arg1[%c0, %c0_0] : memref<128x128xbf16, #tpu.memory_space<vmem>>, vector<128x128xbf16>
    %c0_1 = arith.constant 0 : index
    %c0_2 = arith.constant 0 : index
    %1 = vector.load %arg2[%c0_1, %c0_2] : memref<128x768xbf16, #tpu.memory_space<vmem>>, vector<128x768xbf16>
    %cst = arith.constant dense<0.000000e+00> : vector<128x768xf32>
    %2 = tpu.matmul %0, %1, %cst {dimension_numbers = #tpu.dot_dimension_numbers<[1], [0], [0], [1], [0, 0, 1, 1], [], []>} : vector<128x128xbf16>, vector<128x768xbf16>, vector<128x768xf32> -> vector<128x768xf32>
    %3 = arith.truncf %2 : vector<128x768xf32> to vector<128x768xbf16>
    %c0_3 = arith.constant 0 : index
    %c0_4 = arith.constant 0 : index
    %4 = vector.load %arg7[%c0_3, %c0_4] : memref<128x768xbf16, #tpu.memory_space<vmem>>, vector<128x768xbf16>
    tpu.vector_store %arg7[%c0_3, %c0_4], %3 {strides = array<i32>} : memref<128x768xbf16, #tpu.memory_space<vmem>>, vector<128x768xbf16>,
    %c0_5 = arith.constant 0 : index
    %c0_6 = arith.constant 0 : index
    %5 = vector.load %arg7[%c0_5, %c0_6] : memref<128x768xbf16, #tpu.memory_space<vmem>>, vector<64x32xbf16>
    %c0_7 = arith.constant 0 : index
    %c256 = arith.constant 256 : index
    %6 = vector.load %arg7[%c0_7, %c256] : memref<128x768xbf16, #tpu.memory_space<vmem>>, vector<64x32xbf16>
    %c0_8 = arith.constant 0 : index
    %c512 = arith.constant 512 : index
    %7 = vector.load %arg7[%c0_8, %c512] : memref<128x768xbf16, #tpu.memory_space<vmem>>, vector<64x32xbf16>
    %cst_9 = arith.constant dense<0.000000e+00> : vector<64x64xf32>
    %8 = tpu.matmul %5, %6, %cst_9 {dimension_numbers = #tpu.dot_dimension_numbers<[1], [1], [0], [0], [0, 0, 1, 0], [], []>} : vector<64x32xbf16>, vector<64x32xbf16>, vector<64x64xf32> -> vector<64x64xf32>
    %c0_10 = arith.constant 0 : index
    %c0_11 = arith.constant 0 : index
    %c0_12 = arith.constant 0 : index
    %9 = vector.load %arg3[%c0_10, %c0_11, %c0_12] : memref<8x64x64xbf16, #tpu.memory_space<vmem>>, vector<1x64x64xbf16>
    %10 = vector.shape_cast %9 : vector<1x64x64xbf16> to vector<64x64xbf16>
    %11 = arith.extf %10 : vector<64x64xbf16> to vector<64x64xf32>
    %12 = arith.addf %8, %11 : vector<64x64xf32>
    %cst_13 = arith.constant dense<0xFF800000> : vector<64xf32>
    %13 = vector.multi_reduction <maximumf>, %12, %cst_13 [1] : vector<64x64xf32> to vector<64xf32>
    %14 = vector.shape_cast %13 : vector<64xf32> to vector<64x1xf32>
    %15 = vector.broadcast %14 : vector<64x1xf32> to vector<64x64xf32>
    %16 = arith.subf %12, %15 : vector<64x64xf32>
    %17 = math.exp %16 : vector<64x64xf32>
    %cst_14 = arith.constant dense<0.000000e+00> : vector<64xf32>
    %18 = vector.multi_reduction <add>, %17, %cst_14 [1] : vector<64x64xf32> to vector<64xf32>
    %19 = vector.shape_cast %18 : vector<64xf32> to vector<64x1xf32>
    %20 = tpu.reciprocal %19 {approx = true} : vector<64x1xf32> -> vector<64x1xf32>
    %21 = vector.broadcast %20 : vector<64x1xf32> to vector<64x64xf32>
    %22 = arith.mulf %17, %21 : vector<64x64xf32>
    %23 = arith.truncf %22 : vector<64x64xf32> to vector<64x64xbf16>
    %cst_15 = arith.constant dense<0.000000e+00> : vector<64x32xf32>
    %24 = tpu.matmul %23, %7, %cst_15 {dimension_numbers = #tpu.dot_dimension_numbers<[1], [0], [0], [1], [0, 0, 1, 1], [], []>} : vector<64x64xbf16>, vector<64x32xbf16>, vector<64x32xf32> -> vector<64x32xf32>
    %25 = arith.truncf %24 : vector<64x32xf32> to vector<64x32xbf16>
    %c0_16 = arith.constant 0 : index
    %c0_17 = arith.constant 0 : index
    %26 = vector.load %arg8[%c0_16, %c0_17] : memref<128x256xbf16, #tpu.memory_space<vmem>>, vector<64x32xbf16>
    tpu.vector_store %arg8[%c0_16, %c0_17], %25 {strides = array<i32>} : memref<128x256xbf16, #tpu.memory_space<vmem>>, vector<64x32xbf16>,
    %c0_18 = arith.constant 0 : index
    %c32 = arith.constant 32 : index
    %27 = vector.load %arg7[%c0_18, %c32] : memref<128x768xbf16, #tpu.memory_space<vmem>>, vector<64x32xbf16>
    %c0_19 = arith.constant 0 : index
    %c288 = arith.constant 288 : index
    %28 = vector.load %arg7[%c0_19, %c288] : memref<128x768xbf16, #tpu.memory_space<vmem>>, vector<64x32xbf16>
    %c0_20 = arith.constant 0 : index
    %c544 = arith.constant 544 : index
    %29 = vector.load %arg7[%c0_20, %c544] : memref<128x768xbf16, #tpu.memory_space<vmem>>, vector<64x32xbf16>
    %cst_21 = arith.constant dense<0.000000e+00> : vector<64x64xf32>
    %30 = tpu.matmul %27, %28, %cst_21 {dimension_numbers = #tpu.dot_dimension_numbers<[1], [1], [0], [0], [0, 0, 1, 0], [], []>} : vector<64x32xbf16>, vector<64x32xbf16>, vector<64x64xf32> -> vector<64x64xf32>
    %c1 = arith.constant 1 : index
    %c0_22 = arith.constant 0 : index
    %c0_23 = arith.constant 0 : index
    %31 = vector.load %arg3[%c1, %c0_22, %c0_23] : memref<8x64x64xbf16, #tpu.memory_space<vmem>>, vector<1x64x64xbf16>
    %32 = vector.shape_cast %31 : vector<1x64x64xbf16> to vector<64x64xbf16>
    %33 = arith.extf %32 : vector<64x64xbf16> to vector<64x64xf32>
    %34 = arith.addf %30, %33 : vector<64x64xf32>
    %cst_24 = arith.constant dense<0xFF800000> : vector<64xf32>
    %35 = vector.multi_reduction <maximumf>, %34, %cst_24 [1] : vector<64x64xf32> to vector<64xf32>
    %36 = vector.shape_cast %35 : vector<64xf32> to vector<64x1xf32>
    %37 = vector.broadcast %36 : vector<64x1xf32> to vector<64x64xf32>
    %38 = arith.subf %34, %37 : vector<64x64xf32>
    %39 = math.exp %38 : vector<64x64xf32>
    %cst_25 = arith.constant dense<0.000000e+00> : vector<64xf32>
    %40 = vector.multi_reduction <add>, %39, %cst_25 [1] : vector<64x64xf32> to vector<64xf32>
    %41 = vector.shape_cast %40 : vector<64xf32> to vector<64x1xf32>
    %42 = tpu.reciprocal %41 {approx = true} : vector<64x1xf32> -> vector<64x1xf32>
    %43 = vector.broadcast %42 : vector<64x1xf32> to vector<64x64xf32>
    %44 = arith.mulf %39, %43 : vector<64x64xf32>
    %45 = arith.truncf %44 : vector<64x64xf32> to vector<64x64xbf16>
    %cst_26 = arith.constant dense<0.000000e+00> : vector<64x32xf32>
    %46 = tpu.matmul %45, %29, %cst_26 {dimension_numbers = #tpu.dot_dimension_numbers<[1], [0], [0], [1], [0, 0, 1, 1], [], []>} : vector<64x64xbf16>, vector<64x32xbf16>, vector<64x32xf32> -> vector<64x32xf32>
    %47 = arith.truncf %46 : vector<64x32xf32> to vector<64x32xbf16>
    %c0_27 = arith.constant 0 : index
    %c32_28 = arith.constant 32 : index
    %48 = vector.load %arg8[%c0_27, %c32_28] : memref<128x256xbf16, #tpu.memory_space<vmem>>, vector<64x32xbf16>
    tpu.vector_store %arg8[%c0_27, %c32_28], %47 {strides = array<i32>} : memref<128x256xbf16, #tpu.memory_space<vmem>>, vector<64x32xbf16>,
    %c0_29 = arith.constant 0 : index
    %c64 = arith.constant 64 : index
    %49 = vector.load %arg7[%c0_29, %c64] : memref<128x768xbf16, #tpu.memory_space<vmem>>, vector<64x32xbf16>
    %c0_30 = arith.constant 0 : index
    %c320 = arith.constant 320 : index
    %50 = vector.load %arg7[%c0_30, %c320] : memref<128x768xbf16, #tpu.memory_space<vmem>>, vector<64x32xbf16>
    %c0_31 = arith.constant 0 : index
    %c576 = arith.constant 576 : index
    %51 = vector.load %arg7[%c0_31, %c576] : memref<128x768xbf16, #tpu.memory_space<vmem>>, vector<64x32xbf16>
    %cst_32 = arith.constant dense<0.000000e+00> : vector<64x64xf32>
    %52 = tpu.matmul %49, %50, %cst_32 {dimension_numbers = #tpu.dot_dimension_numbers<[1], [1], [0], [0], [0, 0, 1, 0], [], []>} : vector<64x32xbf16>, vector<64x32xbf16>, vector<64x64xf32> -> vector<64x64xf32>
    %c2 = arith.constant 2 : index
    %c0_33 = arith.constant 0 : index
    %c0_34 = arith.constant 0 : index
    %53 = vector.load %arg3[%c2, %c0_33, %c0_34] : memref<8x64x64xbf16, #tpu.memory_space<vmem>>, vector<1x64x64xbf16>
    %54 = vector.shape_cast %53 : vector<1x64x64xbf16> to vector<64x64xbf16>
    %55 = arith.extf %54 : vector<64x64xbf16> to vector<64x64xf32>
    %56 = arith.addf %52, %55 : vector<64x64xf32>
    %cst_35 = arith.constant dense<0xFF800000> : vector<64xf32>
    %57 = vector.multi_reduction <maximumf>, %56, %cst_35 [1] : vector<64x64xf32> to vector<64xf32>
    %58 = vector.shape_cast %57 : vector<64xf32> to vector<64x1xf32>
    %59 = vector.broadcast %58 : vector<64x1xf32> to vector<64x64xf32>
    %60 = arith.subf %56, %59 : vector<64x64xf32>
    %61 = math.exp %60 : vector<64x64xf32>
    %cst_36 = arith.constant dense<0.000000e+00> : vector<64xf32>
    %62 = vector.multi_reduction <add>, %61, %cst_36 [1] : vector<64x64xf32> to vector<64xf32>
    %63 = vector.shape_cast %62 : vector<64xf32> to vector<64x1xf32>
    %64 = tpu.reciprocal %63 {approx = true} : vector<64x1xf32> -> vector<64x1xf32>
    %65 = vector.broadcast %64 : vector<64x1xf32> to vector<64x64xf32>
    %66 = arith.mulf %61, %65 : vector<64x64xf32>
    %67 = arith.truncf %66 : vector<64x64xf32> to vector<64x64xbf16>
    %cst_37 = arith.constant dense<0.000000e+00> : vector<64x32xf32>
    %68 = tpu.matmul %67, %51, %cst_37 {dimension_numbers = #tpu.dot_dimension_numbers<[1], [0], [0], [1], [0, 0, 1, 1], [], []>} : vector<64x64xbf16>, vector<64x32xbf16>, vector<64x32xf32> -> vector<64x32xf32>
    %69 = arith.truncf %68 : vector<64x32xf32> to vector<64x32xbf16>
    %c0_38 = arith.constant 0 : index
    %c64_39 = arith.constant 64 : index
    %70 = vector.load %arg8[%c0_38, %c64_39] : memref<128x256xbf16, #tpu.memory_space<vmem>>, vector<64x32xbf16>
    tpu.vector_store %arg8[%c0_38, %c64_39], %69 {strides = array<i32>} : memref<128x256xbf16, #tpu.memory_space<vmem>>, vector<64x32xbf16>,
    %c0_40 = arith.constant 0 : index
    %c96 = arith.constant 96 : index
    %71 = vector.load %arg7[%c0_40, %c96] : memref<128x768xbf16, #tpu.memory_space<vmem>>, vector<64x32xbf16>
    %c0_41 = arith.constant 0 : index
    %c352 = arith.constant 352 : index
    %72 = vector.load %arg7[%c0_41, %c352] : memref<128x768xbf16, #tpu.memory_space<vmem>>, vector<64x32xbf16>
    %c0_42 = arith.constant 0 : index
    %c608 = arith.constant 608 : index
    %73 = vector.load %arg7[%c0_42, %c608] : memref<128x768xbf16, #tpu.memory_space<vmem>>, vector<64x32xbf16>
    %cst_43 = arith.constant dense<0.000000e+00> : vector<64x64xf32>
    %74 = tpu.matmul %71, %72, %cst_43 {dimension_numbers = #tpu.dot_dimension_numbers<[1], [1], [0], [0], [0, 0, 1, 0], [], []>} : vector<64x32xbf16>, vector<64x32xbf16>, vector<64x64xf32> -> vector<64x64xf32>
    %c3 = arith.constant 3 : index
    %c0_44 = arith.constant 0 : index
    %c0_45 = arith.constant 0 : index
    %75 = vector.load %arg3[%c3, %c0_44, %c0_45] : memref<8x64x64xbf16, #tpu.memory_space<vmem>>, vector<1x64x64xbf16>
    %76 = vector.shape_cast %75 : vector<1x64x64xbf16> to vector<64x64xbf16>
    %77 = arith.extf %76 : vector<64x64xbf16> to vector<64x64xf32>
    %78 = arith.addf %74, %77 : vector<64x64xf32>
    %cst_46 = arith.constant dense<0xFF800000> : vector<64xf32>
    %79 = vector.multi_reduction <maximumf>, %78, %cst_46 [1] : vector<64x64xf32> to vector<64xf32>
    %80 = vector.shape_cast %79 : vector<64xf32> to vector<64x1xf32>
    %81 = vector.broadcast %80 : vector<64x1xf32> to vector<64x64xf32>
    %82 = arith.subf %78, %81 : vector<64x64xf32>
    %83 = math.exp %82 : vector<64x64xf32>
    %cst_47 = arith.constant dense<0.000000e+00> : vector<64xf32>
    %84 = vector.multi_reduction <add>, %83, %cst_47 [1] : vector<64x64xf32> to vector<64xf32>
    %85 = vector.shape_cast %84 : vector<64xf32> to vector<64x1xf32>
    %86 = tpu.reciprocal %85 {approx = true} : vector<64x1xf32> -> vector<64x1xf32>
    %87 = vector.broadcast %86 : vector<64x1xf32> to vector<64x64xf32>
    %88 = arith.mulf %83, %87 : vector<64x64xf32>
    %89 = arith.truncf %88 : vector<64x64xf32> to vector<64x64xbf16>
    %cst_48 = arith.constant dense<0.000000e+00> : vector<64x32xf32>
    %90 = tpu.matmul %89, %73, %cst_48 {dimension_numbers = #tpu.dot_dimension_numbers<[1], [0], [0], [1], [0, 0, 1, 1], [], []>} : vector<64x64xbf16>, vector<64x32xbf16>, vector<64x32xf32> -> vector<64x32xf32>
    %91 = arith.truncf %90 : vector<64x32xf32> to vector<64x32xbf16>
    %c0_49 = arith.constant 0 : index
    %c96_50 = arith.constant 96 : index
    %92 = vector.load %arg8[%c0_49, %c96_50] : memref<128x256xbf16, #tpu.memory_space<vmem>>, vector<64x32xbf16>
    tpu.vector_store %arg8[%c0_49, %c96_50], %91 {strides = array<i32>} : memref<128x256xbf16, #tpu.memory_space<vmem>>, vector<64x32xbf16>,
    %c0_51 = arith.constant 0 : index
    %c128 = arith.constant 128 : index
    %93 = vector.load %arg7[%c0_51, %c128] : memref<128x768xbf16, #tpu.memory_space<vmem>>, vector<64x32xbf16>
    %c0_52 = arith.constant 0 : index
    %c384 = arith.constant 384 : index
    %94 = vector.load %arg7[%c0_52, %c384] : memref<128x768xbf16, #tpu.memory_space<vmem>>, vector<64x32xbf16>
    %c0_53 = arith.constant 0 : index
    %c640 = arith.constant 640 : index
    %95 = vector.load %arg7[%c0_53, %c640] : memref<128x768xbf16, #tpu.memory_space<vmem>>, vector<64x32xbf16>
    %cst_54 = arith.constant dense<0.000000e+00> : vector<64x64xf32>
    %96 = tpu.matmul %93, %94, %cst_54 {dimension_numbers = #tpu.dot_dimension_numbers<[1], [1], [0], [0], [0, 0, 1, 0], [], []>} : vector<64x32xbf16>, vector<64x32xbf16>, vector<64x64xf32> -> vector<64x64xf32>
    %c4 = arith.constant 4 : index
    %c0_55 = arith.constant 0 : index
    %c0_56 = arith.constant 0 : index
    %97 = vector.load %arg3[%c4, %c0_55, %c0_56] : memref<8x64x64xbf16, #tpu.memory_space<vmem>>, vector<1x64x64xbf16>
    %98 = vector.shape_cast %97 : vector<1x64x64xbf16> to vector<64x64xbf16>
    %99 = arith.extf %98 : vector<64x64xbf16> to vector<64x64xf32>
    %100 = arith.addf %96, %99 : vector<64x64xf32>
    %cst_57 = arith.constant dense<0xFF800000> : vector<64xf32>
    %101 = vector.multi_reduction <maximumf>, %100, %cst_57 [1] : vector<64x64xf32> to vector<64xf32>
    %102 = vector.shape_cast %101 : vector<64xf32> to vector<64x1xf32>
    %103 = vector.broadcast %102 : vector<64x1xf32> to vector<64x64xf32>
    %104 = arith.subf %100, %103 : vector<64x64xf32>
    %105 = math.exp %104 : vector<64x64xf32>
    %cst_58 = arith.constant dense<0.000000e+00> : vector<64xf32>
    %106 = vector.multi_reduction <add>, %105, %cst_58 [1] : vector<64x64xf32> to vector<64xf32>
    %107 = vector.shape_cast %106 : vector<64xf32> to vector<64x1xf32>
    %108 = tpu.reciprocal %107 {approx = true} : vector<64x1xf32> -> vector<64x1xf32>
    %109 = vector.broadcast %108 : vector<64x1xf32> to vector<64x64xf32>
    %110 = arith.mulf %105, %109 : vector<64x64xf32>
    %111 = arith.truncf %110 : vector<64x64xf32> to vector<64x64xbf16>
    %cst_59 = arith.constant dense<0.000000e+00> : vector<64x32xf32>
    %112 = tpu.matmul %111, %95, %cst_59 {dimension_numbers = #tpu.dot_dimension_numbers<[1], [0], [0], [1], [0, 0, 1, 1], [], []>} : vector<64x64xbf16>, vector<64x32xbf16>, vector<64x32xf32> -> vector<64x32xf32>
    %113 = arith.truncf %112 : vector<64x32xf32> to vector<64x32xbf16>
    %c0_60 = arith.constant 0 : index
    %c128_61 = arith.constant 128 : index
    %114 = vector.load %arg8[%c0_60, %c128_61] : memref<128x256xbf16, #tpu.memory_space<vmem>>, vector<64x32xbf16>
    tpu.vector_store %arg8[%c0_60, %c128_61], %113 {strides = array<i32>} : memref<128x256xbf16, #tpu.memory_space<vmem>>, vector<64x32xbf16>,
    %c0_62 = arith.constant 0 : index
    %c160 = arith.constant 160 : index
    %115 = vector.load %arg7[%c0_62, %c160] : memref<128x768xbf16, #tpu.memory_space<vmem>>, vector<64x32xbf16>
    %c0_63 = arith.constant 0 : index
    %c416 = arith.constant 416 : index
    %116 = vector.load %arg7[%c0_63, %c416] : memref<128x768xbf16, #tpu.memory_space<vmem>>, vector<64x32xbf16>
    %c0_64 = arith.constant 0 : index
    %c672 = arith.constant 672 : index
    %117 = vector.load %arg7[%c0_64, %c672] : memref<128x768xbf16, #tpu.memory_space<vmem>>, vector<64x32xbf16>
    %cst_65 = arith.constant dense<0.000000e+00> : vector<64x64xf32>
    %118 = tpu.matmul %115, %116, %cst_65 {dimension_numbers = #tpu.dot_dimension_numbers<[1], [1], [0], [0], [0, 0, 1, 0], [], []>} : vector<64x32xbf16>, vector<64x32xbf16>, vector<64x64xf32> -> vector<64x64xf32>
    %c5 = arith.constant 5 : index
    %c0_66 = arith.constant 0 : index
    %c0_67 = arith.constant 0 : index
    %119 = vector.load %arg3[%c5, %c0_66, %c0_67] : memref<8x64x64xbf16, #tpu.memory_space<vmem>>, vector<1x64x64xbf16>
    %120 = vector.shape_cast %119 : vector<1x64x64xbf16> to vector<64x64xbf16>
    %121 = arith.extf %120 : vector<64x64xbf16> to vector<64x64xf32>
    %122 = arith.addf %118, %121 : vector<64x64xf32>
    %cst_68 = arith.constant dense<0xFF800000> : vector<64xf32>
    %123 = vector.multi_reduction <maximumf>, %122, %cst_68 [1] : vector<64x64xf32> to vector<64xf32>
    %124 = vector.shape_cast %123 : vector<64xf32> to vector<64x1xf32>
    %125 = vector.broadcast %124 : vector<64x1xf32> to vector<64x64xf32>
    %126 = arith.subf %122, %125 : vector<64x64xf32>
    %127 = math.exp %126 : vector<64x64xf32>
    %cst_69 = arith.constant dense<0.000000e+00> : vector<64xf32>
    %128 = vector.multi_reduction <add>, %127, %cst_69 [1] : vector<64x64xf32> to vector<64xf32>
    %129 = vector.shape_cast %128 : vector<64xf32> to vector<64x1xf32>
    %130 = tpu.reciprocal %129 {approx = true} : vector<64x1xf32> -> vector<64x1xf32>
    %131 = vector.broadcast %130 : vector<64x1xf32> to vector<64x64xf32>
    %132 = arith.mulf %127, %131 : vector<64x64xf32>
    %133 = arith.truncf %132 : vector<64x64xf32> to vector<64x64xbf16>
    %cst_70 = arith.constant dense<0.000000e+00> : vector<64x32xf32>
    %134 = tpu.matmul %133, %117, %cst_70 {dimension_numbers = #tpu.dot_dimension_numbers<[1], [0], [0], [1], [0, 0, 1, 1], [], []>} : vector<64x64xbf16>, vector<64x32xbf16>, vector<64x32xf32> -> vector<64x32xf32>
    %135 = arith.truncf %134 : vector<64x32xf32> to vector<64x32xbf16>
    %c0_71 = arith.constant 0 : index
    %c160_72 = arith.constant 160 : index
    %136 = vector.load %arg8[%c0_71, %c160_72] : memref<128x256xbf16, #tpu.memory_space<vmem>>, vector<64x32xbf16>
    tpu.vector_store %arg8[%c0_71, %c160_72], %135 {strides = array<i32>} : memref<128x256xbf16, #tpu.memory_space<vmem>>, vector<64x32xbf16>,
    %c0_73 = arith.constant 0 : index
    %c192 = arith.constant 192 : index
    %137 = vector.load %arg7[%c0_73, %c192] : memref<128x768xbf16, #tpu.memory_space<vmem>>, vector<64x32xbf16>
    %c0_74 = arith.constant 0 : index
    %c448 = arith.constant 448 : index
    %138 = vector.load %arg7[%c0_74, %c448] : memref<128x768xbf16, #tpu.memory_space<vmem>>, vector<64x32xbf16>
    %c0_75 = arith.constant 0 : index
    %c704 = arith.constant 704 : index
    %139 = vector.load %arg7[%c0_75, %c704] : memref<128x768xbf16, #tpu.memory_space<vmem>>, vector<64x32xbf16>
    %cst_76 = arith.constant dense<0.000000e+00> : vector<64x64xf32>
    %140 = tpu.matmul %137, %138, %cst_76 {dimension_numbers = #tpu.dot_dimension_numbers<[1], [1], [0], [0], [0, 0, 1, 0], [], []>} : vector<64x32xbf16>, vector<64x32xbf16>, vector<64x64xf32> -> vector<64x64xf32>
    %c6 = arith.constant 6 : index
    %c0_77 = arith.constant 0 : index
    %c0_78 = arith.constant 0 : index
    %141 = vector.load %arg3[%c6, %c0_77, %c0_78] : memref<8x64x64xbf16, #tpu.memory_space<vmem>>, vector<1x64x64xbf16>
    %142 = vector.shape_cast %141 : vector<1x64x64xbf16> to vector<64x64xbf16>
    %143 = arith.extf %142 : vector<64x64xbf16> to vector<64x64xf32>
    %144 = arith.addf %140, %143 : vector<64x64xf32>
    %cst_79 = arith.constant dense<0xFF800000> : vector<64xf32>
    %145 = vector.multi_reduction <maximumf>, %144, %cst_79 [1] : vector<64x64xf32> to vector<64xf32>
    %146 = vector.shape_cast %145 : vector<64xf32> to vector<64x1xf32>
    %147 = vector.broadcast %146 : vector<64x1xf32> to vector<64x64xf32>
    %148 = arith.subf %144, %147 : vector<64x64xf32>
    %149 = math.exp %148 : vector<64x64xf32>
    %cst_80 = arith.constant dense<0.000000e+00> : vector<64xf32>
    %150 = vector.multi_reduction <add>, %149, %cst_80 [1] : vector<64x64xf32> to vector<64xf32>
    %151 = vector.shape_cast %150 : vector<64xf32> to vector<64x1xf32>
    %152 = tpu.reciprocal %151 {approx = true} : vector<64x1xf32> -> vector<64x1xf32>
    %153 = vector.broadcast %152 : vector<64x1xf32> to vector<64x64xf32>
    %154 = arith.mulf %149, %153 : vector<64x64xf32>
    %155 = arith.truncf %154 : vector<64x64xf32> to vector<64x64xbf16>
    %cst_81 = arith.constant dense<0.000000e+00> : vector<64x32xf32>
    %156 = tpu.matmul %155, %139, %cst_81 {dimension_numbers = #tpu.dot_dimension_numbers<[1], [0], [0], [1], [0, 0, 1, 1], [], []>} : vector<64x64xbf16>, vector<64x32xbf16>, vector<64x32xf32> -> vector<64x32xf32>
    %157 = arith.truncf %156 : vector<64x32xf32> to vector<64x32xbf16>
    %c0_82 = arith.constant 0 : index
    %c192_83 = arith.constant 192 : index
    %158 = vector.load %arg8[%c0_82, %c192_83] : memref<128x256xbf16, #tpu.memory_space<vmem>>, vector<64x32xbf16>
    tpu.vector_store %arg8[%c0_82, %c192_83], %157 {strides = array<i32>} : memref<128x256xbf16, #tpu.memory_space<vmem>>, vector<64x32xbf16>,
    %c0_84 = arith.constant 0 : index
    %c224 = arith.constant 224 : index
    %159 = vector.load %arg7[%c0_84, %c224] : memref<128x768xbf16, #tpu.memory_space<vmem>>, vector<64x32xbf16>
    %c0_85 = arith.constant 0 : index
    %c480 = arith.constant 480 : index
    %160 = vector.load %arg7[%c0_85, %c480] : memref<128x768xbf16, #tpu.memory_space<vmem>>, vector<64x32xbf16>
    %c0_86 = arith.constant 0 : index
    %c736 = arith.constant 736 : index
    %161 = vector.load %arg7[%c0_86, %c736] : memref<128x768xbf16, #tpu.memory_space<vmem>>, vector<64x32xbf16>
    %cst_87 = arith.constant dense<0.000000e+00> : vector<64x64xf32>
    %162 = tpu.matmul %159, %160, %cst_87 {dimension_numbers = #tpu.dot_dimension_numbers<[1], [1], [0], [0], [0, 0, 1, 0], [], []>} : vector<64x32xbf16>, vector<64x32xbf16>, vector<64x64xf32> -> vector<64x64xf32>
    %c7 = arith.constant 7 : index
    %c0_88 = arith.constant 0 : index
    %c0_89 = arith.constant 0 : index
    %163 = vector.load %arg3[%c7, %c0_88, %c0_89] : memref<8x64x64xbf16, #tpu.memory_space<vmem>>, vector<1x64x64xbf16>
    %164 = vector.shape_cast %163 : vector<1x64x64xbf16> to vector<64x64xbf16>
    %165 = arith.extf %164 : vector<64x64xbf16> to vector<64x64xf32>
    %166 = arith.addf %162, %165 : vector<64x64xf32>
    %cst_90 = arith.constant dense<0xFF800000> : vector<64xf32>
    %167 = vector.multi_reduction <maximumf>, %166, %cst_90 [1] : vector<64x64xf32> to vector<64xf32>
    %168 = vector.shape_cast %167 : vector<64xf32> to vector<64x1xf32>
    %169 = vector.broadcast %168 : vector<64x1xf32> to vector<64x64xf32>
    %170 = arith.subf %166, %169 : vector<64x64xf32>
    %171 = math.exp %170 : vector<64x64xf32>
    %cst_91 = arith.constant dense<0.000000e+00> : vector<64xf32>
    %172 = vector.multi_reduction <add>, %171, %cst_91 [1] : vector<64x64xf32> to vector<64xf32>
    %173 = vector.shape_cast %172 : vector<64xf32> to vector<64x1xf32>
    %174 = tpu.reciprocal %173 {approx = true} : vector<64x1xf32> -> vector<64x1xf32>
    %175 = vector.broadcast %174 : vector<64x1xf32> to vector<64x64xf32>
    %176 = arith.mulf %171, %175 : vector<64x64xf32>
    %177 = arith.truncf %176 : vector<64x64xf32> to vector<64x64xbf16>
    %cst_92 = arith.constant dense<0.000000e+00> : vector<64x32xf32>
    %178 = tpu.matmul %177, %161, %cst_92 {dimension_numbers = #tpu.dot_dimension_numbers<[1], [0], [0], [1], [0, 0, 1, 1], [], []>} : vector<64x64xbf16>, vector<64x32xbf16>, vector<64x32xf32> -> vector<64x32xf32>
    %179 = arith.truncf %178 : vector<64x32xf32> to vector<64x32xbf16>
    %c0_93 = arith.constant 0 : index
    %c224_94 = arith.constant 224 : index
    %180 = vector.load %arg8[%c0_93, %c224_94] : memref<128x256xbf16, #tpu.memory_space<vmem>>, vector<64x32xbf16>
    tpu.vector_store %arg8[%c0_93, %c224_94], %179 {strides = array<i32>} : memref<128x256xbf16, #tpu.memory_space<vmem>>, vector<64x32xbf16>,
    %c64_95 = arith.constant 64 : index
    %c0_96 = arith.constant 0 : index
    %181 = vector.load %arg7[%c64_95, %c0_96] : memref<128x768xbf16, #tpu.memory_space<vmem>>, vector<64x32xbf16>
    %c64_97 = arith.constant 64 : index
    %c256_98 = arith.constant 256 : index
    %182 = vector.load %arg7[%c64_97, %c256_98] : memref<128x768xbf16, #tpu.memory_space<vmem>>, vector<64x32xbf16>
    %c64_99 = arith.constant 64 : index
    %c512_100 = arith.constant 512 : index
    %183 = vector.load %arg7[%c64_99, %c512_100] : memref<128x768xbf16, #tpu.memory_space<vmem>>, vector<64x32xbf16>
    %cst_101 = arith.constant dense<0.000000e+00> : vector<64x64xf32>
    %184 = tpu.matmul %181, %182, %cst_101 {dimension_numbers = #tpu.dot_dimension_numbers<[1], [1], [0], [0], [0, 0, 1, 0], [], []>} : vector<64x32xbf16>, vector<64x32xbf16>, vector<64x64xf32> -> vector<64x64xf32>
    %c0_102 = arith.constant 0 : index
    %c0_103 = arith.constant 0 : index
    %c0_104 = arith.constant 0 : index
    %185 = vector.load %arg3[%c0_102, %c0_103, %c0_104] : memref<8x64x64xbf16, #tpu.memory_space<vmem>>, vector<1x64x64xbf16>
    %186 = vector.shape_cast %185 : vector<1x64x64xbf16> to vector<64x64xbf16>
    %187 = arith.extf %186 : vector<64x64xbf16> to vector<64x64xf32>
    %188 = arith.addf %184, %187 : vector<64x64xf32>
    %cst_105 = arith.constant dense<0xFF800000> : vector<64xf32>
    %189 = vector.multi_reduction <maximumf>, %188, %cst_105 [1] : vector<64x64xf32> to vector<64xf32>
    %190 = vector.shape_cast %189 : vector<64xf32> to vector<64x1xf32>
    %191 = vector.broadcast %190 : vector<64x1xf32> to vector<64x64xf32>
    %192 = arith.subf %188, %191 : vector<64x64xf32>
    %193 = math.exp %192 : vector<64x64xf32>
    %cst_106 = arith.constant dense<0.000000e+00> : vector<64xf32>
    %194 = vector.multi_reduction <add>, %193, %cst_106 [1] : vector<64x64xf32> to vector<64xf32>
    %195 = vector.shape_cast %194 : vector<64xf32> to vector<64x1xf32>
    %196 = tpu.reciprocal %195 {approx = true} : vector<64x1xf32> -> vector<64x1xf32>
    %197 = vector.broadcast %196 : vector<64x1xf32> to vector<64x64xf32>
    %198 = arith.mulf %193, %197 : vector<64x64xf32>
    %199 = arith.truncf %198 : vector<64x64xf32> to vector<64x64xbf16>
    %cst_107 = arith.constant dense<0.000000e+00> : vector<64x32xf32>
    %200 = tpu.matmul %199, %183, %cst_107 {dimension_numbers = #tpu.dot_dimension_numbers<[1], [0], [0], [1], [0, 0, 1, 1], [], []>} : vector<64x64xbf16>, vector<64x32xbf16>, vector<64x32xf32> -> vector<64x32xf32>
    %201 = arith.truncf %200 : vector<64x32xf32> to vector<64x32xbf16>
    %c64_108 = arith.constant 64 : index
    %c0_109 = arith.constant 0 : index
    %202 = vector.load %arg8[%c64_108, %c0_109] : memref<128x256xbf16, #tpu.memory_space<vmem>>, vector<64x32xbf16>
    tpu.vector_store %arg8[%c64_108, %c0_109], %201 {strides = array<i32>} : memref<128x256xbf16, #tpu.memory_space<vmem>>, vector<64x32xbf16>,
    %c64_110 = arith.constant 64 : index
    %c32_111 = arith.constant 32 : index
    %203 = vector.load %arg7[%c64_110, %c32_111] : memref<128x768xbf16, #tpu.memory_space<vmem>>, vector<64x32xbf16>
    %c64_112 = arith.constant 64 : index
    %c288_113 = arith.constant 288 : index
    %204 = vector.load %arg7[%c64_112, %c288_113] : memref<128x768xbf16, #tpu.memory_space<vmem>>, vector<64x32xbf16>
    %c64_114 = arith.constant 64 : index
    %c544_115 = arith.constant 544 : index
    %205 = vector.load %arg7[%c64_114, %c544_115] : memref<128x768xbf16, #tpu.memory_space<vmem>>, vector<64x32xbf16>
    %cst_116 = arith.constant dense<0.000000e+00> : vector<64x64xf32>
    %206 = tpu.matmul %203, %204, %cst_116 {dimension_numbers = #tpu.dot_dimension_numbers<[1], [1], [0], [0], [0, 0, 1, 0], [], []>} : vector<64x32xbf16>, vector<64x32xbf16>, vector<64x64xf32> -> vector<64x64xf32>
    %c1_117 = arith.constant 1 : index
    %c0_118 = arith.constant 0 : index
    %c0_119 = arith.constant 0 : index
    %207 = vector.load %arg3[%c1_117, %c0_118, %c0_119] : memref<8x64x64xbf16, #tpu.memory_space<vmem>>, vector<1x64x64xbf16>
    %208 = vector.shape_cast %207 : vector<1x64x64xbf16> to vector<64x64xbf16>
    %209 = arith.extf %208 : vector<64x64xbf16> to vector<64x64xf32>
    %210 = arith.addf %206, %209 : vector<64x64xf32>
    %cst_120 = arith.constant dense<0xFF800000> : vector<64xf32>
    %211 = vector.multi_reduction <maximumf>, %210, %cst_120 [1] : vector<64x64xf32> to vector<64xf32>
    %212 = vector.shape_cast %211 : vector<64xf32> to vector<64x1xf32>
    %213 = vector.broadcast %212 : vector<64x1xf32> to vector<64x64xf32>
    %214 = arith.subf %210, %213 : vector<64x64xf32>
    %215 = math.exp %214 : vector<64x64xf32>
    %cst_121 = arith.constant dense<0.000000e+00> : vector<64xf32>
    %216 = vector.multi_reduction <add>, %215, %cst_121 [1] : vector<64x64xf32> to vector<64xf32>
    %217 = vector.shape_cast %216 : vector<64xf32> to vector<64x1xf32>
    %218 = tpu.reciprocal %217 {approx = true} : vector<64x1xf32> -> vector<64x1xf32>
    %219 = vector.broadcast %218 : vector<64x1xf32> to vector<64x64xf32>
    %220 = arith.mulf %215, %219 : vector<64x64xf32>
    %221 = arith.truncf %220 : vector<64x64xf32> to vector<64x64xbf16>
    %cst_122 = arith.constant dense<0.000000e+00> : vector<64x32xf32>
    %222 = tpu.matmul %221, %205, %cst_122 {dimension_numbers = #tpu.dot_dimension_numbers<[1], [0], [0], [1], [0, 0, 1, 1], [], []>} : vector<64x64xbf16>, vector<64x32xbf16>, vector<64x32xf32> -> vector<64x32xf32>
    %223 = arith.truncf %222 : vector<64x32xf32> to vector<64x32xbf16>
    %c64_123 = arith.constant 64 : index
    %c32_124 = arith.constant 32 : index
    %224 = vector.load %arg8[%c64_123, %c32_124] : memref<128x256xbf16, #tpu.memory_space<vmem>>, vector<64x32xbf16>
    tpu.vector_store %arg8[%c64_123, %c32_124], %223 {strides = array<i32>} : memref<128x256xbf16, #tpu.memory_space<vmem>>, vector<64x32xbf16>,
    %c64_125 = arith.constant 64 : index
    %c64_126 = arith.constant 64 : index
    %225 = vector.load %arg7[%c64_125, %c64_126] : memref<128x768xbf16, #tpu.memory_space<vmem>>, vector<64x32xbf16>
    %c64_127 = arith.constant 64 : index
    %c320_128 = arith.constant 320 : index
    %226 = vector.load %arg7[%c64_127, %c320_128] : memref<128x768xbf16, #tpu.memory_space<vmem>>, vector<64x32xbf16>
    %c64_129 = arith.constant 64 : index
    %c576_130 = arith.constant 576 : index
    %227 = vector.load %arg7[%c64_129, %c576_130] : memref<128x768xbf16, #tpu.memory_space<vmem>>, vector<64x32xbf16>
    %cst_131 = arith.constant dense<0.000000e+00> : vector<64x64xf32>
    %228 = tpu.matmul %225, %226, %cst_131 {dimension_numbers = #tpu.dot_dimension_numbers<[1], [1], [0], [0], [0, 0, 1, 0], [], []>} : vector<64x32xbf16>, vector<64x32xbf16>, vector<64x64xf32> -> vector<64x64xf32>
    %c2_132 = arith.constant 2 : index
    %c0_133 = arith.constant 0 : index
    %c0_134 = arith.constant 0 : index
    %229 = vector.load %arg3[%c2_132, %c0_133, %c0_134] : memref<8x64x64xbf16, #tpu.memory_space<vmem>>, vector<1x64x64xbf16>
    %230 = vector.shape_cast %229 : vector<1x64x64xbf16> to vector<64x64xbf16>
    %231 = arith.extf %230 : vector<64x64xbf16> to vector<64x64xf32>
    %232 = arith.addf %228, %231 : vector<64x64xf32>
    %cst_135 = arith.constant dense<0xFF800000> : vector<64xf32>
    %233 = vector.multi_reduction <maximumf>, %232, %cst_135 [1] : vector<64x64xf32> to vector<64xf32>
    %234 = vector.shape_cast %233 : vector<64xf32> to vector<64x1xf32>
    %235 = vector.broadcast %234 : vector<64x1xf32> to vector<64x64xf32>
    %236 = arith.subf %232, %235 : vector<64x64xf32>
    %237 = math.exp %236 : vector<64x64xf32>
    %cst_136 = arith.constant dense<0.000000e+00> : vector<64xf32>
    %238 = vector.multi_reduction <add>, %237, %cst_136 [1] : vector<64x64xf32> to vector<64xf32>
    %239 = vector.shape_cast %238 : vector<64xf32> to vector<64x1xf32>
    %240 = tpu.reciprocal %239 {approx = true} : vector<64x1xf32> -> vector<64x1xf32>
    %241 = vector.broadcast %240 : vector<64x1xf32> to vector<64x64xf32>
    %242 = arith.mulf %237, %241 : vector<64x64xf32>
    %243 = arith.truncf %242 : vector<64x64xf32> to vector<64x64xbf16>
    %cst_137 = arith.constant dense<0.000000e+00> : vector<64x32xf32>
    %244 = tpu.matmul %243, %227, %cst_137 {dimension_numbers = #tpu.dot_dimension_numbers<[1], [0], [0], [1], [0, 0, 1, 1], [], []>} : vector<64x64xbf16>, vector<64x32xbf16>, vector<64x32xf32> -> vector<64x32xf32>
    %245 = arith.truncf %244 : vector<64x32xf32> to vector<64x32xbf16>
    %c64_138 = arith.constant 64 : index
    %c64_139 = arith.constant 64 : index
    %246 = vector.load %arg8[%c64_138, %c64_139] : memref<128x256xbf16, #tpu.memory_space<vmem>>, vector<64x32xbf16>
    tpu.vector_store %arg8[%c64_138, %c64_139], %245 {strides = array<i32>} : memref<128x256xbf16, #tpu.memory_space<vmem>>, vector<64x32xbf16>,
    %c64_140 = arith.constant 64 : index
    %c96_141 = arith.constant 96 : index
    %247 = vector.load %arg7[%c64_140, %c96_141] : memref<128x768xbf16, #tpu.memory_space<vmem>>, vector<64x32xbf16>
    %c64_142 = arith.constant 64 : index
    %c352_143 = arith.constant 352 : index
    %248 = vector.load %arg7[%c64_142, %c352_143] : memref<128x768xbf16, #tpu.memory_space<vmem>>, vector<64x32xbf16>
    %c64_144 = arith.constant 64 : index
    %c608_145 = arith.constant 608 : index
    %249 = vector.load %arg7[%c64_144, %c608_145] : memref<128x768xbf16, #tpu.memory_space<vmem>>, vector<64x32xbf16>
    %cst_146 = arith.constant dense<0.000000e+00> : vector<64x64xf32>
    %250 = tpu.matmul %247, %248, %cst_146 {dimension_numbers = #tpu.dot_dimension_numbers<[1], [1], [0], [0], [0, 0, 1, 0], [], []>} : vector<64x32xbf16>, vector<64x32xbf16>, vector<64x64xf32> -> vector<64x64xf32>
    %c3_147 = arith.constant 3 : index
    %c0_148 = arith.constant 0 : index
    %c0_149 = arith.constant 0 : index
    %251 = vector.load %arg3[%c3_147, %c0_148, %c0_149] : memref<8x64x64xbf16, #tpu.memory_space<vmem>>, vector<1x64x64xbf16>
    %252 = vector.shape_cast %251 : vector<1x64x64xbf16> to vector<64x64xbf16>
    %253 = arith.extf %252 : vector<64x64xbf16> to vector<64x64xf32>
    %254 = arith.addf %250, %253 : vector<64x64xf32>
    %cst_150 = arith.constant dense<0xFF800000> : vector<64xf32>
    %255 = vector.multi_reduction <maximumf>, %254, %cst_150 [1] : vector<64x64xf32> to vector<64xf32>
    %256 = vector.shape_cast %255 : vector<64xf32> to vector<64x1xf32>
    %257 = vector.broadcast %256 : vector<64x1xf32> to vector<64x64xf32>
    %258 = arith.subf %254, %257 : vector<64x64xf32>
    %259 = math.exp %258 : vector<64x64xf32>
    %cst_151 = arith.constant dense<0.000000e+00> : vector<64xf32>
    %260 = vector.multi_reduction <add>, %259, %cst_151 [1] : vector<64x64xf32> to vector<64xf32>
    %261 = vector.shape_cast %260 : vector<64xf32> to vector<64x1xf32>
    %262 = tpu.reciprocal %261 {approx = true} : vector<64x1xf32> -> vector<64x1xf32>
    %263 = vector.broadcast %262 : vector<64x1xf32> to vector<64x64xf32>
    %264 = arith.mulf %259, %263 : vector<64x64xf32>
    %265 = arith.truncf %264 : vector<64x64xf32> to vector<64x64xbf16>
    %cst_152 = arith.constant dense<0.000000e+00> : vector<64x32xf32>
    %266 = tpu.matmul %265, %249, %cst_152 {dimension_numbers = #tpu.dot_dimension_numbers<[1], [0], [0], [1], [0, 0, 1, 1], [], []>} : vector<64x64xbf16>, vector<64x32xbf16>, vector<64x32xf32> -> vector<64x32xf32>
    %267 = arith.truncf %266 : vector<64x32xf32> to vector<64x32xbf16>
    %c64_153 = arith.constant 64 : index
    %c96_154 = arith.constant 96 : index
    %268 = vector.load %arg8[%c64_153, %c96_154] : memref<128x256xbf16, #tpu.memory_space<vmem>>, vector<64x32xbf16>
    tpu.vector_store %arg8[%c64_153, %c96_154], %267 {strides = array<i32>} : memref<128x256xbf16, #tpu.memory_space<vmem>>, vector<64x32xbf16>,
    %c64_155 = arith.constant 64 : index
    %c128_156 = arith.constant 128 : index
    %269 = vector.load %arg7[%c64_155, %c128_156] : memref<128x768xbf16, #tpu.memory_space<vmem>>, vector<64x32xbf16>
    %c64_157 = arith.constant 64 : index
    %c384_158 = arith.constant 384 : index
    %270 = vector.load %arg7[%c64_157, %c384_158] : memref<128x768xbf16, #tpu.memory_space<vmem>>, vector<64x32xbf16>
    %c64_159 = arith.constant 64 : index
    %c640_160 = arith.constant 640 : index
    %271 = vector.load %arg7[%c64_159, %c640_160] : memref<128x768xbf16, #tpu.memory_space<vmem>>, vector<64x32xbf16>
    %cst_161 = arith.constant dense<0.000000e+00> : vector<64x64xf32>
    %272 = tpu.matmul %269, %270, %cst_161 {dimension_numbers = #tpu.dot_dimension_numbers<[1], [1], [0], [0], [0, 0, 1, 0], [], []>} : vector<64x32xbf16>, vector<64x32xbf16>, vector<64x64xf32> -> vector<64x64xf32>
    %c4_162 = arith.constant 4 : index
    %c0_163 = arith.constant 0 : index
    %c0_164 = arith.constant 0 : index
    %273 = vector.load %arg3[%c4_162, %c0_163, %c0_164] : memref<8x64x64xbf16, #tpu.memory_space<vmem>>, vector<1x64x64xbf16>
    %274 = vector.shape_cast %273 : vector<1x64x64xbf16> to vector<64x64xbf16>
    %275 = arith.extf %274 : vector<64x64xbf16> to vector<64x64xf32>
    %276 = arith.addf %272, %275 : vector<64x64xf32>
    %cst_165 = arith.constant dense<0xFF800000> : vector<64xf32>
    %277 = vector.multi_reduction <maximumf>, %276, %cst_165 [1] : vector<64x64xf32> to vector<64xf32>
    %278 = vector.shape_cast %277 : vector<64xf32> to vector<64x1xf32>
    %279 = vector.broadcast %278 : vector<64x1xf32> to vector<64x64xf32>
    %280 = arith.subf %276, %279 : vector<64x64xf32>
    %281 = math.exp %280 : vector<64x64xf32>
    %cst_166 = arith.constant dense<0.000000e+00> : vector<64xf32>
    %282 = vector.multi_reduction <add>, %281, %cst_166 [1] : vector<64x64xf32> to vector<64xf32>
    %283 = vector.shape_cast %282 : vector<64xf32> to vector<64x1xf32>
    %284 = tpu.reciprocal %283 {approx = true} : vector<64x1xf32> -> vector<64x1xf32>
    %285 = vector.broadcast %284 : vector<64x1xf32> to vector<64x64xf32>
    %286 = arith.mulf %281, %285 : vector<64x64xf32>
    %287 = arith.truncf %286 : vector<64x64xf32> to vector<64x64xbf16>
    %cst_167 = arith.constant dense<0.000000e+00> : vector<64x32xf32>
    %288 = tpu.matmul %287, %271, %cst_167 {dimension_numbers = #tpu.dot_dimension_numbers<[1], [0], [0], [1], [0, 0, 1, 1], [], []>} : vector<64x64xbf16>, vector<64x32xbf16>, vector<64x32xf32> -> vector<64x32xf32>
    %289 = arith.truncf %288 : vector<64x32xf32> to vector<64x32xbf16>
    %c64_168 = arith.constant 64 : index
    %c128_169 = arith.constant 128 : index
    %290 = vector.load %arg8[%c64_168, %c128_169] : memref<128x256xbf16, #tpu.memory_space<vmem>>, vector<64x32xbf16>
    tpu.vector_store %arg8[%c64_168, %c128_169], %289 {strides = array<i32>} : memref<128x256xbf16, #tpu.memory_space<vmem>>, vector<64x32xbf16>,
    %c64_170 = arith.constant 64 : index
    %c160_171 = arith.constant 160 : index
    %291 = vector.load %arg7[%c64_170, %c160_171] : memref<128x768xbf16, #tpu.memory_space<vmem>>, vector<64x32xbf16>
    %c64_172 = arith.constant 64 : index
    %c416_173 = arith.constant 416 : index
    %292 = vector.load %arg7[%c64_172, %c416_173] : memref<128x768xbf16, #tpu.memory_space<vmem>>, vector<64x32xbf16>
    %c64_174 = arith.constant 64 : index
    %c672_175 = arith.constant 672 : index
    %293 = vector.load %arg7[%c64_174, %c672_175] : memref<128x768xbf16, #tpu.memory_space<vmem>>, vector<64x32xbf16>
    %cst_176 = arith.constant dense<0.000000e+00> : vector<64x64xf32>
    %294 = tpu.matmul %291, %292, %cst_176 {dimension_numbers = #tpu.dot_dimension_numbers<[1], [1], [0], [0], [0, 0, 1, 0], [], []>} : vector<64x32xbf16>, vector<64x32xbf16>, vector<64x64xf32> -> vector<64x64xf32>
    %c5_177 = arith.constant 5 : index
    %c0_178 = arith.constant 0 : index
    %c0_179 = arith.constant 0 : index
    %295 = vector.load %arg3[%c5_177, %c0_178, %c0_179] : memref<8x64x64xbf16, #tpu.memory_space<vmem>>, vector<1x64x64xbf16>
    %296 = vector.shape_cast %295 : vector<1x64x64xbf16> to vector<64x64xbf16>
    %297 = arith.extf %296 : vector<64x64xbf16> to vector<64x64xf32>
    %298 = arith.addf %294, %297 : vector<64x64xf32>
    %cst_180 = arith.constant dense<0xFF800000> : vector<64xf32>
    %299 = vector.multi_reduction <maximumf>, %298, %cst_180 [1] : vector<64x64xf32> to vector<64xf32>
    %300 = vector.shape_cast %299 : vector<64xf32> to vector<64x1xf32>
    %301 = vector.broadcast %300 : vector<64x1xf32> to vector<64x64xf32>
    %302 = arith.subf %298, %301 : vector<64x64xf32>
    %303 = math.exp %302 : vector<64x64xf32>
    %cst_181 = arith.constant dense<0.000000e+00> : vector<64xf32>
    %304 = vector.multi_reduction <add>, %303, %cst_181 [1] : vector<64x64xf32> to vector<64xf32>
    %305 = vector.shape_cast %304 : vector<64xf32> to vector<64x1xf32>
    %306 = tpu.reciprocal %305 {approx = true} : vector<64x1xf32> -> vector<64x1xf32>
    %307 = vector.broadcast %306 : vector<64x1xf32> to vector<64x64xf32>
    %308 = arith.mulf %303, %307 : vector<64x64xf32>
    %309 = arith.truncf %308 : vector<64x64xf32> to vector<64x64xbf16>
    %cst_182 = arith.constant dense<0.000000e+00> : vector<64x32xf32>
    %310 = tpu.matmul %309, %293, %cst_182 {dimension_numbers = #tpu.dot_dimension_numbers<[1], [0], [0], [1], [0, 0, 1, 1], [], []>} : vector<64x64xbf16>, vector<64x32xbf16>, vector<64x32xf32> -> vector<64x32xf32>
    %311 = arith.truncf %310 : vector<64x32xf32> to vector<64x32xbf16>
    %c64_183 = arith.constant 64 : index
    %c160_184 = arith.constant 160 : index
    %312 = vector.load %arg8[%c64_183, %c160_184] : memref<128x256xbf16, #tpu.memory_space<vmem>>, vector<64x32xbf16>
    tpu.vector_store %arg8[%c64_183, %c160_184], %311 {strides = array<i32>} : memref<128x256xbf16, #tpu.memory_space<vmem>>, vector<64x32xbf16>,
    %c64_185 = arith.constant 64 : index
    %c192_186 = arith.constant 192 : index
    %313 = vector.load %arg7[%c64_185, %c192_186] : memref<128x768xbf16, #tpu.memory_space<vmem>>, vector<64x32xbf16>
    %c64_187 = arith.constant 64 : index
    %c448_188 = arith.constant 448 : index
    %314 = vector.load %arg7[%c64_187, %c448_188] : memref<128x768xbf16, #tpu.memory_space<vmem>>, vector<64x32xbf16>
    %c64_189 = arith.constant 64 : index
    %c704_190 = arith.constant 704 : index
    %315 = vector.load %arg7[%c64_189, %c704_190] : memref<128x768xbf16, #tpu.memory_space<vmem>>, vector<64x32xbf16>
    %cst_191 = arith.constant dense<0.000000e+00> : vector<64x64xf32>
    %316 = tpu.matmul %313, %314, %cst_191 {dimension_numbers = #tpu.dot_dimension_numbers<[1], [1], [0], [0], [0, 0, 1, 0], [], []>} : vector<64x32xbf16>, vector<64x32xbf16>, vector<64x64xf32> -> vector<64x64xf32>
    %c6_192 = arith.constant 6 : index
    %c0_193 = arith.constant 0 : index
    %c0_194 = arith.constant 0 : index
    %317 = vector.load %arg3[%c6_192, %c0_193, %c0_194] : memref<8x64x64xbf16, #tpu.memory_space<vmem>>, vector<1x64x64xbf16>
    %318 = vector.shape_cast %317 : vector<1x64x64xbf16> to vector<64x64xbf16>
    %319 = arith.extf %318 : vector<64x64xbf16> to vector<64x64xf32>
    %320 = arith.addf %316, %319 : vector<64x64xf32>
    %cst_195 = arith.constant dense<0xFF800000> : vector<64xf32>
    %321 = vector.multi_reduction <maximumf>, %320, %cst_195 [1] : vector<64x64xf32> to vector<64xf32>
    %322 = vector.shape_cast %321 : vector<64xf32> to vector<64x1xf32>
    %323 = vector.broadcast %322 : vector<64x1xf32> to vector<64x64xf32>
    %324 = arith.subf %320, %323 : vector<64x64xf32>
    %325 = math.exp %324 : vector<64x64xf32>
    %cst_196 = arith.constant dense<0.000000e+00> : vector<64xf32>
    %326 = vector.multi_reduction <add>, %325, %cst_196 [1] : vector<64x64xf32> to vector<64xf32>
    %327 = vector.shape_cast %326 : vector<64xf32> to vector<64x1xf32>
    %328 = tpu.reciprocal %327 {approx = true} : vector<64x1xf32> -> vector<64x1xf32>
    %329 = vector.broadcast %328 : vector<64x1xf32> to vector<64x64xf32>
    %330 = arith.mulf %325, %329 : vector<64x64xf32>
    %331 = arith.truncf %330 : vector<64x64xf32> to vector<64x64xbf16>
    %cst_197 = arith.constant dense<0.000000e+00> : vector<64x32xf32>
    %332 = tpu.matmul %331, %315, %cst_197 {dimension_numbers = #tpu.dot_dimension_numbers<[1], [0], [0], [1], [0, 0, 1, 1], [], []>} : vector<64x64xbf16>, vector<64x32xbf16>, vector<64x32xf32> -> vector<64x32xf32>
    %333 = arith.truncf %332 : vector<64x32xf32> to vector<64x32xbf16>
    %c64_198 = arith.constant 64 : index
    %c192_199 = arith.constant 192 : index
    %334 = vector.load %arg8[%c64_198, %c192_199] : memref<128x256xbf16, #tpu.memory_space<vmem>>, vector<64x32xbf16>
    tpu.vector_store %arg8[%c64_198, %c192_199], %333 {strides = array<i32>} : memref<128x256xbf16, #tpu.memory_space<vmem>>, vector<64x32xbf16>,
    %c64_200 = arith.constant 64 : index
    %c224_201 = arith.constant 224 : index
    %335 = vector.load %arg7[%c64_200, %c224_201] : memref<128x768xbf16, #tpu.memory_space<vmem>>, vector<64x32xbf16>
    %c64_202 = arith.constant 64 : index
    %c480_203 = arith.constant 480 : index
    %336 = vector.load %arg7[%c64_202, %c480_203] : memref<128x768xbf16, #tpu.memory_space<vmem>>, vector<64x32xbf16>
    %c64_204 = arith.constant 64 : index
    %c736_205 = arith.constant 736 : index
    %337 = vector.load %arg7[%c64_204, %c736_205] : memref<128x768xbf16, #tpu.memory_space<vmem>>, vector<64x32xbf16>
    %cst_206 = arith.constant dense<0.000000e+00> : vector<64x64xf32>
    %338 = tpu.matmul %335, %336, %cst_206 {dimension_numbers = #tpu.dot_dimension_numbers<[1], [1], [0], [0], [0, 0, 1, 0], [], []>} : vector<64x32xbf16>, vector<64x32xbf16>, vector<64x64xf32> -> vector<64x64xf32>
    %c7_207 = arith.constant 7 : index
    %c0_208 = arith.constant 0 : index
    %c0_209 = arith.constant 0 : index
    %339 = vector.load %arg3[%c7_207, %c0_208, %c0_209] : memref<8x64x64xbf16, #tpu.memory_space<vmem>>, vector<1x64x64xbf16>
    %340 = vector.shape_cast %339 : vector<1x64x64xbf16> to vector<64x64xbf16>
    %341 = arith.extf %340 : vector<64x64xbf16> to vector<64x64xf32>
    %342 = arith.addf %338, %341 : vector<64x64xf32>
    %cst_210 = arith.constant dense<0xFF800000> : vector<64xf32>
    %343 = vector.multi_reduction <maximumf>, %342, %cst_210 [1] : vector<64x64xf32> to vector<64xf32>
    %344 = vector.shape_cast %343 : vector<64xf32> to vector<64x1xf32>
    %345 = vector.broadcast %344 : vector<64x1xf32> to vector<64x64xf32>
    %346 = arith.subf %342, %345 : vector<64x64xf32>
    %347 = math.exp %346 : vector<64x64xf32>
    %cst_211 = arith.constant dense<0.000000e+00> : vector<64xf32>
    %348 = vector.multi_reduction <add>, %347, %cst_211 [1] : vector<64x64xf32> to vector<64xf32>
    %349 = vector.shape_cast %348 : vector<64xf32> to vector<64x1xf32>
    %350 = tpu.reciprocal %349 {approx = true} : vector<64x1xf32> -> vector<64x1xf32>
    %351 = vector.broadcast %350 : vector<64x1xf32> to vector<64x64xf32>
    %352 = arith.mulf %347, %351 : vector<64x64xf32>
    %353 = arith.truncf %352 : vector<64x64xf32> to vector<64x64xbf16>
    %cst_212 = arith.constant dense<0.000000e+00> : vector<64x32xf32>
    %354 = tpu.matmul %353, %337, %cst_212 {dimension_numbers = #tpu.dot_dimension_numbers<[1], [0], [0], [1], [0, 0, 1, 1], [], []>} : vector<64x64xbf16>, vector<64x32xbf16>, vector<64x32xf32> -> vector<64x32xf32>
    %355 = arith.truncf %354 : vector<64x32xf32> to vector<64x32xbf16>
    %c64_213 = arith.constant 64 : index
    %c224_214 = arith.constant 224 : index
    %356 = vector.load %arg8[%c64_213, %c224_214] : memref<128x256xbf16, #tpu.memory_space<vmem>>, vector<64x32xbf16>
    tpu.vector_store %arg8[%c64_213, %c224_214], %355 {strides = array<i32>} : memref<128x256xbf16, #tpu.memory_space<vmem>>, vector<64x32xbf16>,
    %c0_215 = arith.constant 0 : index
    %c0_216 = arith.constant 0 : index
    %357 = vector.load %arg8[%c0_215, %c0_216] : memref<128x256xbf16, #tpu.memory_space<vmem>>, vector<128x256xbf16>
    %c0_217 = arith.constant 0 : index
    %c0_218 = arith.constant 0 : index
    %358 = vector.load %arg4[%c0_217, %c0_218] : memref<256x128xbf16, #tpu.memory_space<vmem>>, vector<256x128xbf16>
    %cst_219 = arith.constant dense<0.000000e+00> : vector<128x128xf32>
    %359 = tpu.matmul %357, %358, %cst_219 {dimension_numbers = #tpu.dot_dimension_numbers<[1], [0], [0], [1], [0, 0, 1, 1], [], []>} : vector<128x256xbf16>, vector<256x128xbf16>, vector<128x128xf32> -> vector<128x128xf32>
    %c0_220 = arith.constant 0 : index
    %c0_221 = arith.constant 0 : index
    %360 = vector.load %arg5[%c0_220, %c0_221] : memref<1x128xf32, #tpu.memory_space<vmem>>, vector<1x128xf32>
    %361 = vector.broadcast %360 : vector<1x128xf32> to vector<128x128xf32>
    %362 = arith.addf %359, %361 : vector<128x128xf32>
    %c0_222 = arith.constant 0 : index
    %c0_223 = arith.constant 0 : index
    %363 = vector.load %arg6[%c0_222, %c0_223] : memref<128x128xf32, #tpu.memory_space<vmem>>, vector<128x128xf32>
    tpu.vector_store %arg6[%c0_222, %c0_223], %362 {strides = array<i32>} : memref<128x128xf32, #tpu.memory_space<vmem>>, vector<128x128xf32>,
    return
  }
  func.func @transform_0(%arg0: i32) -> (i32, i32) {
    %c0_i32 = arith.constant 0 : i32
    %c0_i32_0 = arith.constant 0 : i32
    return %arg0, %c0_i32 : i32, i32
  }
  func.func @transform_1(%arg0: i32) -> (i32, i32) {
    %c0_i32 = arith.constant 0 : i32
    %c0_i32_0 = arith.constant 0 : i32
    %c0_i32_1 = arith.constant 0 : i32
    return %c0_i32, %c0_i32_0 : i32, i32
  }
  func.func @transform_2(%arg0: i32) -> (i32, i32, i32) {
    %c0_i32 = arith.constant 0 : i32
    %c0_i32_0 = arith.constant 0 : i32
    %c0_i32_1 = arith.constant 0 : i32
    %c0_i32_2 = arith.constant 0 : i32
    return %c0_i32, %c0_i32_0, %c0_i32_1 : i32, i32, i32
  }
  func.func @transform_3(%arg0: i32) -> (i32, i32) {
    %c0_i32 = arith.constant 0 : i32
    %c0_i32_0 = arith.constant 0 : i32
    %c0_i32_1 = arith.constant 0 : i32
    return %c0_i32, %c0_i32_0 : i32, i32
  }
  func.func @transform_4(%arg0: i32) -> (i32, i32) {
    %c0_i32 = arith.constant 0 : i32
    %c0_i32_0 = arith.constant 0 : i32
    %c0_i32_1 = arith.constant 0 : i32
    return %c0_i32, %c0_i32_0 : i32, i32
  }
  func.func @transform_5(%arg0: i32) -> (i32, i32) {
    %c0_i32 = arith.constant 0 : i32
    %c0_i32_0 = arith.constant 0 : i32
    return %arg0, %c0_i32 : i32, i32
  }
}

</mosaic_0001>

<bundles_post_ra>
// kernel: coatnet_attention.1
= control target key start
LH: loop header
LB: loop body
LE: loop exit
PB: predicated region body
PF: predicated region fallthrough
CT: control target
= control target key end

     0   :  { %v8619_v1 = vmov 0   ;;  %vm836_vm0 = vcmask 261120   ;;  %vm926_vm1 = vcmask 523264   ;;  %s8620_s10 = smov 96   ;;  %s8621_s11 = smov 64   ;;  %vm1451_vm2 = vcmask 523520   ;;  %s11134_s1 = inlined_call_operand.vmem [shape: bf16[128,768], index: 1, kind: input, shape index: {}]   ;;  %s11135_s0 = inlined_call_operand.vmem [shape: bf16[128,128], index: 0, kind: input, shape index: {}]   ;;  %s11136_s2 = inlined_call_operand.vmem [shape: bf16[8,64,64], index: 2, kind: input, shape index: {}]   ;;  %s11137_s3 = inlined_call_operand.vmem [shape: bf16[256,128], index: 3, kind: input, shape index: {}]   ;;  %s11138_s4 = inlined_call_operand.vmem [shape: f32[1,128], index: 4, kind: input, shape index: {}]   ;;  %s11139_s5 = inlined_call_operand.vmem [shape: f32[128,128], index: 5, kind: output, shape index: {}]  }
   0x1   :  { %v8011_v0 = vld [vmem:[%s11134_s1 + $0x4] ss:$24 sps:$4 sm:$0xff]   ;;  %405 = vmatprep.mubr.bf16.mxu0 %v8619_v1  ;;  %558 = vmatprep.mubr.bf16.mxu1 %v8619_v1  ;;  %v8013_v2 = vld [vmem:[%s11134_s1] ss:$24 sps:$4 sm:$0xff]   ;;  %v8014_v3 = vld [vmem:[%s11134_s1 + $0x34] ss:$24 sps:$4 sm:$0xff]  }
   0x2   :  { %373 = vmatprep.subr.bf16.mxu0 %v8011_v0  ;;  %v8016_v4 = vld [vmem:[%s11134_s1 + $0x30] ss:$24 sps:$4 sm:$0xff]   ;;  %v8017_v5 = vld [vmem:[%s11134_s1 + $0x64] ss:$24 sps:$4 sm:$0xff]   ;;  %v8019_v6 = vld [vmem:[%s11134_s1 + $0x60] ss:$24 sps:$4 sm:$0xff]  }
   0x3   :  { %374 = vmatpush1.bf16.msra.mxu0 %v8013_v2  ;;  %v8020_v7 = vld [vmem:[%s11134_s1 + $0x94] ss:$24 sps:$4 sm:$0xff]   ;;  %v8022_v8 = vld [vmem:[%s11134_s1 + $0x90] ss:$24 sps:$4 sm:$0xff]   ;;  %v8023_v9 = vld [vmem:[%s11134_s1 + $0xc4] ss:$24 sps:$4 sm:$0xff]  }
   0x4   :  { %375 = vmatprep.subr.bf16.mxu0 %v8014_v3  ;;  %v8038_v10 = vld [vmem:[%s11134_s1 + $0xc] ss:$24 sps:$4 sm:$0xff]   ;;  %v8036_v11 = vld [vmem:[%s11134_s1 + $0x8] ss:$24 sps:$4 sm:$0xff]   ;;  %v8042_v13 = vld [vmem:[%s11134_s1 + $0x3c] ss:$24 sps:$4 sm:$0xff]  }
   0x5   :  { %v8025_v12 = vld [vmem:[%s11134_s1 + $0xc0] ss:$24 sps:$4 sm:$0xff]   ;;  %7927 = vmatprep.subr.bf16.mxu1 %v8038_v10  ;;  %v8026_v14 = vld [vmem:[%s11134_s1 + $0xf4] ss:$24 sps:$4 sm:$0xff]   ;;  %v8028_v17 = vld [vmem:[%s11134_s1 + $0xf0] ss:$24 sps:$4 sm:$0xff]  }
   0x6   :  { %7935 = vmatpush1.bf16.msra.mxu1 %v8036_v11  ;;  %v8040_v15 = vld [vmem:[%s11134_s1 + $0x38] ss:$24 sps:$4 sm:$0xff]   ;;  %v8046_v16 = vld [vmem:[%s11134_s1 + $0x6c] ss:$24 sps:$4 sm:$0xff]   ;;  %v8044_v19 = vld [vmem:[%s11134_s1 + $0x68] ss:$24 sps:$4 sm:$0xff]  }
   0x7   :  { %376 = vmatpush1.bf16.msra.mxu0 %v8016_v4  ;;  %7928 = vmatprep.subr.bf16.mxu1 %v8042_v13  ;;  %v8029_v18 = vld [vmem:[%s11134_s1 + $0x124] ss:$24 sps:$4 sm:$0xff]   ;;  %v8031_v21 = vld [vmem:[%s11134_s1 + $0x120] ss:$24 sps:$4 sm:$0xff]   ;;  %v8032_v22 = vld [vmem:[%s11134_s1 + $0x154] ss:$24 sps:$4 sm:$0xff]  }
   0x8   :  { %377 = vmatprep.subr.bf16.mxu0 %v8017_v5  ;;  %v8050_v20 = vld [vmem:[%s11134_s1 + $0x9c] ss:$24 sps:$4 sm:$0xff]   ;;  %v8048_v23 = vld [vmem:[%s11134_s1 + $0x98] ss:$24 sps:$4 sm:$0xff]   ;;  %v8054_v24 = vld [vmem:[%s11134_s1 + $0xcc] ss:$24 sps:$4 sm:$0xff]  }
   0x9   :  { %v8034_v25 = vld [vmem:[%s11134_s1 + $0x150] ss:$24 sps:$4 sm:$0xff]   ;;  %v8733_v26 = vld [vmem:[%s11135_s0] sm:$0xff]   ;;  %v8058_v28 = vld [vmem:[%s11134_s1 + $0xfc] ss:$24 sps:$4 sm:$0xff]   ;;  %s8622_s27 = smov 32  }
   0xa   :  { %7936 = vmatpush1.bf16.msra.mxu1 %v8040_v15  ;;  %v8052_v27 = vld [vmem:[%s11134_s1 + $0xc8] ss:$24 sps:$4 sm:$0xff]   ;;  %v8056_v29 = vld [vmem:[%s11134_s1 + $0xf8] ss:$24 sps:$4 sm:$0xff]   ;;  %v8062_v30 = vld [vmem:[%s11134_s1 + $0x12c] ss:$24 sps:$4 sm:$0xff]  }
   0xb   :  { %378 = vmatpush1.bf16.msra.mxu0 %v8019_v6  ;;  %7929 = vmatprep.subr.bf16.mxu1 %v8046_v16  ;;  %v8752_v31 = vld [vmem:[%s11135_s0 + $0x8] sm:$0xff]   ;;  %v8066_v33 = vld [vmem:[%s11134_s1 + $0x15c] ss:$24 sps:$4 sm:$0xff]   ;;  %v8064_v34 = vld [vmem:[%s11134_s1 + $0x158] ss:$24 sps:$4 sm:$0xff]   ;;  %vm1803_vm3 = vcmask 785920  }
   0xc   :  { %379 = vmatprep.subr.bf16.mxu0 %v8020_v7  ;;  %v8060_v32 = vld [vmem:[%s11134_s1 + $0x128] ss:$24 sps:$4 sm:$0xff]   ;;  %v8773_v36 = vld [vmem:[%s11135_s0 + $0x10] sm:$0xff]   ;;  %v8787_v38 = vld [vmem:[%s11135_s0 + $0x18] sm:$0xff]   ;;  %vm2155_vm4 = vcmask 1048320  }
   0xd   :  { %v8768_v35 = vld [vmem:[%s11135_s0 + $0x20] sm:$0xff]   ;;  %v8782_v37 = vld [vmem:[%s11135_s0 + $0x28] sm:$0xff]   ;;  %v8796_v39 = vld [vmem:[%s11135_s0 + $0x30] sm:$0xff]  }
   0xe   :  { %7937 = vmatpush1.bf16.msra.mxu1 %v8044_v19  ;;  %v8805_v40 = vld [vmem:[%s11135_s0 + $0x38] sm:$0xff]  }
   0xf   :  { %380 = vmatpush1.bf16.msra.mxu0 %v8022_v8  ;;  %7930 = vmatprep.subr.bf16.mxu1 %v8050_v20 }
  0x10   :  { %381 = vmatprep.subr.bf16.mxu0 %v8023_v9 }
  0x12   :  { %7938 = vmatpush1.bf16.msra.mxu1 %v8048_v23 }
  0x13   :  { %382 = vmatpush1.bf16.msra.mxu0 %v8025_v12  ;;  %7931 = vmatprep.subr.bf16.mxu1 %v8054_v24 }
  0x14   :  { %383 = vmatprep.subr.bf16.mxu0 %v8026_v14 }
  0x16   :  { %7939 = vmatpush1.bf16.msra.mxu1 %v8052_v27 }
  0x17   :  { %384 = vmatpush1.bf16.msra.mxu0 %v8028_v17  ;;  %7932 = vmatprep.subr.bf16.mxu1 %v8058_v28 }
  0x18   :  { %385 = vmatprep.subr.bf16.mxu0 %v8029_v18 }
  0x1a   :  { %7940 = vmatpush1.bf16.msra.mxu1 %v8056_v29 }
  0x1b   :  { %386 = vmatpush1.bf16.msra.mxu0 %v8031_v21  ;;  %7933 = vmatprep.subr.bf16.mxu1 %v8062_v30 }
  0x1c   :  { %387 = vmatprep.subr.bf16.mxu0 %v8032_v22 }
  0x1e   :  { %7941 = vmatpush1.bf16.msra.mxu1 %v8060_v32 }
  0x1f   :  { %388 = vmatpush1.bf16.msra.mxu0 %v8034_v25  ;;  %7934 = vmatprep.subr.bf16.mxu1 %v8066_v33 }
  0x20   :  { %486 = vmatprep.subr.bf16.mxu0 %v8038_v10 }
  0x22   :  { %406 = vmatmul.mubr.bf16.vlgmr.msra.gmra.mrb[0].mxu0 %v8733_v26  ;;  %7942 = vmatpush1.bf16.msra.mxu1 %v8064_v34 }
  0x23   :  { %487 = vmatpush1.bf16.msra.mxu0 %v8036_v11  ;;  %415 = vmatprep.mubr.bf16.mxu0 %v8619_v1 }
  0x24   :  { %488 = vmatprep.subr.bf16.mxu0 %v8042_v13 }
  0x25   :  { %559 = vmatmul.mubr.bf16.vlgmr.msra.gmra.mrb[0].mxu1 %v8768_v35 }
  0x26   :  { %568 = vmatprep.mubr.bf16.mxu1 %v8619_v1 }
  0x27   :  { %489 = vmatpush1.bf16.msra.mxu0 %v8040_v15 }
  0x28   :  { %490 = vmatprep.subr.bf16.mxu0 %v8046_v16 }
  0x2a   :  { %416 = vmatmul.mubr.bf16.gmra.mrb[4].mxu0 %v8752_v31 }
  0x2b   :  { %425 = vmatprep.mubr.bf16.mxu0 %v8619_v1  ;;  %491 = vmatpush1.bf16.msra.mxu0 %v8044_v19 }
  0x2c   :  { %492 = vmatprep.subr.bf16.mxu0 %v8050_v20 }
  0x2d   :  { %569 = vmatmul.mubr.bf16.gmra.mrb[4].mxu1 %v8782_v37 }
  0x2e   :  { %578 = vmatprep.mubr.bf16.mxu1 %v8619_v1 }
  0x2f   :  { %493 = vmatpush1.bf16.msra.mxu0 %v8048_v23 }
  0x30   :  { %494 = vmatprep.subr.bf16.mxu0 %v8054_v24 }
  0x32   :  { %426 = vmatmul.mubr.bf16.gmra.mrb[8].mxu0 %v8773_v36 }
  0x33   :  { %435 = vmatprep.mubr.bf16.mxu0 %v8619_v1  ;;  %495 = vmatpush1.bf16.msra.mxu0 %v8052_v27 }
  0x34   :  { %496 = vmatprep.subr.bf16.mxu0 %v8058_v28 }
  0x35   :  { %579 = vmatmul.mubr.bf16.gmra.mrb[8].mxu1 %v8796_v39 }
  0x36   :  { %588 = vmatprep.mubr.bf16.mxu1 %v8619_v1 }
  0x37   :  { %497 = vmatpush1.bf16.msra.mxu0 %v8056_v29 }
  0x38   :  { %498 = vmatprep.subr.bf16.mxu0 %v8062_v30 }
  0x3a   :  { %436 = vmatmul.mubr.bf16.gmra.mrb[12].mxu0 %v8787_v38 }
  0x3b   :  { %445 = vmatprep.mubr.bf16.mxu0 %v8619_v1  ;;  %499 = vmatpush1.bf16.msra.mxu0 %v8060_v32 }
  0x3c   :  { %500 = vmatprep.subr.bf16.mxu0 %v8066_v33 }
  0x3d   :  { %589 = vmatmul.mubr.bf16.gmra.mrb[12].mxu1 %v8805_v40 }
  0x3f   :  { %501 = vmatpush1.bf16.msra.mxu0 %v8064_v34 }
  0x42   :  { %446 = vmatmul.mubr.bf16.gmra.mrb[16].mxu0 %v8768_v35 }
  0x43   :  { %455 = vmatprep.mubr.bf16.mxu0 %v8619_v1 }
  0x4a   :  { %456 = vmatmul.mubr.bf16.gmra.mrb[20].mxu0 %v8782_v37 }
  0x4b   :  { %465 = vmatprep.mubr.bf16.mxu0 %v8619_v1 }
  0x52   :  { %466 = vmatmul.mubr.bf16.gmra.mrb[24].mxu0 %v8796_v39 }
  0x53   :  { %475 = vmatprep.mubr.bf16.mxu0 %v8619_v1 }
  0x5a   :  { %476 = vmatmul.mubr.bf16.gmra.mrb[28].mxu0 %v8805_v40 }
  0x5b   :  { %518 = vmatprep.mubr.bf16.mxu0 %v8619_v1 }
  0x62   :  { %519 = vmatmul.mubr.bf16.vlgmr.msra.gmra.mrb[32].mxu0 %v8733_v26 }
  0x63   :  { %528 = vmatprep.mubr.bf16.mxu0 %v8619_v1 }
  0x6a   :  { %529 = vmatmul.mubr.bf16.gmra.mrb[36].mxu0 %v8752_v31 }
  0x6b   :  { %538 = vmatprep.mubr.bf16.mxu0 %v8619_v1 }
  0x72   :  { %539 = vmatmul.mubr.bf16.gmra.mrb[40].mxu0 %v8773_v36 }
  0x73   :  { %548 = vmatprep.mubr.bf16.mxu0 %v8619_v1 }
  0x7a   :  { %549 = vmatmul.mubr.bf16.gmra.mrb[44].mxu0 %v8787_v38 }
  0x7b   :  { %631 = vmatprep.mubr.bf16.mxu0 %v8619_v1 }
  0xf5   :  { %v407_v41 = vpop.f32.mrb[0].mxu0 }
  0xf6   :  { %v409_v42 = vpop.f32.mrb[1].mxu0 }
  0xf7   :  { %v411_v43 = vpop.f32.mrb[2].mxu0 }
  0xf8   :  { %v8822_v44 = vpack.c.bf16 %v411_v43, %v407_v41  ;;  %v413_v45 = vpop.f32.mrb[3].mxu0  ;;  %v560_v53 = vpop.f32.mrb[0].mxu1 }
  0xf9   :  { %v8824_v46 = vpack.c.bf16 %v413_v45, %v409_v42  ;;  %v562_v54 = vpop.f32.mrb[1].mxu1 }
  0xfa   :  { %7423 = vmatprep.mubr.msk.bf16.mxu1 %vm836_vm0, %v8822_v44  ;;  %v564_v55 = vpop.f32.mrb[2].mxu1 }
  0xfb   :  { %v8832_v57 = vpack.c.bf16 %v564_v55, %v560_v53  ;;  %v566_v58 = vpop.f32.mrb[3].mxu1 }
  0xfc   :  { %v8834_v60 = vpack.c.bf16 %v566_v58, %v562_v54 }
  0xfd   :  { %v417_v47 = vpop.f32.mrb[4].mxu0 }
  0xfe   :  { %v419_v48 = vpop.f32.mrb[5].mxu0  ;;  %11202 = vst [vmem:[#allocation4_spill] sm:$0xff] %v8834_v60 }
  0xff   :  { %v421_v49 = vpop.f32.mrb[6].mxu0 }
 0x100   :  { %v8828_v50 = vpack.c.bf16 %v421_v49, %v417_v47  ;;  %v423_v51 = vpop.f32.mrb[7].mxu0  ;;  %v570_v2 = vpop.f32.mrb[4].mxu1 }
 0x101   :  { %v8830_v52 = vpack.c.bf16 %v423_v51, %v419_v48  ;;  %v572_v3 = vpop.f32.mrb[5].mxu1 }
 0x102   :  { %v574_v4 = vpop.f32.mrb[6].mxu1 }
 0x103   :  { %v8840_v6 = vpack.c.bf16 %v574_v4, %v570_v2  ;;  %v576_v7 = vpop.f32.mrb[7].mxu1 }
 0x104   :  { %v8842_v9 = vpack.c.bf16 %v576_v7, %v572_v3 }
 0x105   :  { %v427_v56 = vpop.f32.mrb[8].mxu0 }
 0x106   :  { %v429_v59 = vpop.f32.mrb[9].mxu0  ;;  %11203 = vst [vmem:[#allocation5_spill] sm:$0xff] %v8842_v9 }
 0x107   :  { %v431_v61 = vpop.f32.mrb[10].mxu0 }
 0x108   :  { %v8836_v62 = vpack.c.bf16 %v431_v61, %v427_v56  ;;  %v433_v63 = vpop.f32.mrb[11].mxu0  ;;  %v580_v14 = vpop.f32.mrb[8].mxu1 }
 0x109   :  { %v8838_v0 = vpack.c.bf16 %v433_v63, %v429_v59  ;;  %v582_v15 = vpop.f32.mrb[9].mxu1 }
 0x10a   :  { %v584_v16 = vpop.f32.mrb[10].mxu1 }
 0x10b   :  { %v8848_v18 = vpack.c.bf16 %v584_v16, %v580_v14  ;;  %v586_v19 = vpop.f32.mrb[11].mxu1 }
 0x10c   :  { %v8850_v21 = vpack.c.bf16 %v586_v19, %v582_v15 }
 0x10d   :  { %v437_v5 = vpop.f32.mrb[12].mxu0 }
 0x10e   :  { %v439_v8 = vpop.f32.mrb[13].mxu0  ;;  %11204 = vst [vmem:[#allocation6_spill] sm:$0xff] %v8850_v21 }
 0x10f   :  { %v441_v10 = vpop.f32.mrb[14].mxu0 }
 0x110   :  { %v8844_v11 = vpack.c.bf16 %v441_v10, %v437_v5  ;;  %v443_v12 = vpop.f32.mrb[15].mxu0  ;;  %v590_v27 = vpop.f32.mrb[12].mxu1 }
 0x111   :  { %v8846_v13 = vpack.c.bf16 %v443_v12, %v439_v8  ;;  %v592_v28 = vpop.f32.mrb[13].mxu1 }
 0x112   :  { %v594_v29 = vpop.f32.mrb[14].mxu1 }
 0x113   :  { %v8856_v32 = vpack.c.bf16 %v594_v29, %v590_v27  ;;  %v596_v33 = vpop.f32.mrb[15].mxu1 }
 0x114   :  { %v8858_v41 = vpack.c.bf16 %v596_v33, %v592_v28 }
 0x115   :  { %v447_v17 = vpop.f32.mrb[16].mxu0 }
 0x116   :  { %v449_v20 = vpop.f32.mrb[17].mxu0  ;;  %11206 = vst [vmem:[#allocation8_spill] sm:$0xff] %v8858_v41 }
 0x117   :  { %v451_v22 = vpop.f32.mrb[18].mxu0 }
 0x118   :  { %v8852_v23 = vpack.c.bf16 %v451_v22, %v447_v17  ;;  %v453_v24 = vpop.f32.mrb[19].mxu0 }
 0x119   :  { %v8854_v25 = vpack.c.bf16 %v453_v24, %v449_v20 }
 0x11b   :  { %11205 = vst [vmem:[#allocation7_spill] sm:$0xff] %v8854_v25 }
 0x11d   :  { %v457_v30 = vpop.f32.mrb[20].mxu0 }
 0x11e   :  { %v459_v34 = vpop.f32.mrb[21].mxu0 }
 0x11f   :  { %v461_v42 = vpop.f32.mrb[22].mxu0 }
 0x120   :  { %v8860_v43 = vpack.c.bf16 %v461_v42, %v457_v30  ;;  %v463_v45 = vpop.f32.mrb[23].mxu0 }
 0x121   :  { %v8862_v47 = vpack.c.bf16 %v463_v45, %v459_v34 }
 0x123   :  { %11207 = vst [vmem:[#allocation9_spill] sm:$0xff] %v8862_v47 }
 0x125   :  { %v467_v48 = vpop.f32.mrb[24].mxu0 }
 0x126   :  { %v469_v49 = vpop.f32.mrb[25].mxu0 }
 0x127   :  { %v471_v51 = vpop.f32.mrb[26].mxu0 }
 0x128   :  { %v8864_v53 = vpack.c.bf16 %v471_v51, %v467_v48  ;;  %v473_v54 = vpop.f32.mrb[27].mxu0 }
 0x129   :  { %v8866_v55 = vpack.c.bf16 %v473_v54, %v469_v49 }
 0x12b   :  { %11208 = vst [vmem:[#allocation10_spill] sm:$0xff] %v8866_v55 }
 0x12d   :  { %v477_v56 = vpop.f32.mrb[28].mxu0 }
 0x12e   :  { %v479_v58 = vpop.f32.mrb[29].mxu0 }
 0x12f   :  { %v481_v59 = vpop.f32.mrb[30].mxu0 }
 0x130   :  { %v8868_v61 = vpack.c.bf16 %v481_v59, %v477_v56  ;;  %v483_v63 = vpop.f32.mrb[31].mxu0  ;;  %v8069_v59 = vld [vmem:[%s11134_s1 + $0x14] ss:$24 sps:$4 sm:$0xff]  }
 0x131   :  { %v8870_v2 = vpack.c.bf16 %v483_v63, %v479_v58  ;;  %v8067_v58 = vld [vmem:[%s11134_s1 + $0x10] ss:$24 sps:$4 sm:$0xff]   ;;  %v8072_v63 = vld [vmem:[%s11134_s1 + $0x44] ss:$24 sps:$4 sm:$0xff]   ;;  %599 = vmatprep.subr.bf16.mxu0 %v8069_v59 }
 0x132   :  { %11209 = vst [vmem:[#allocation11_spill] sm:$0xff] %v8868_v61  ;;  %600 = vmatpush1.bf16.msra.mxu0 %v8067_v58  ;;  %v7035_v59 = vld [vmem:[%s11136_s2 + $0x18] sm:$0xff]  }
 0x133   :  { %11210 = vst [vmem:[#allocation12_spill] sm:$0xff] %v8870_v2  ;;  %601 = vmatprep.subr.bf16.mxu0 %v8072_v63 }
 0x135   :  { %v520_v3 = vpop.f32.mrb[32].mxu0 }
 0x136   :  { %v522_v4 = vpop.f32.mrb[33].mxu0 }
 0x137   :  { %v524_v5 = vpop.f32.mrb[34].mxu0 }
 0x138   :  { %v8872_v7 = vpack.c.bf16 %v524_v5, %v520_v3  ;;  %v526_v8 = vpop.f32.mrb[35].mxu0  ;;  %v8070_v3 = vld [vmem:[%s11134_s1 + $0x40] ss:$24 sps:$4 sm:$0xff]   ;;  %v8073_v5 = vld [vmem:[%s11134_s1 + $0x70] ss:$24 sps:$4 sm:$0xff]  }
 0x139   :  { %v8874_v10 = vpack.c.bf16 %v526_v8, %v522_v4  ;;  %v8075_v4 = vld [vmem:[%s11134_s1 + $0x74] ss:$24 sps:$4 sm:$0xff]   ;;  %602 = vmatpush1.bf16.msra.mxu0 %v8070_v3  ;;  %v8078_v8 = vld [vmem:[%s11134_s1 + $0xa4] ss:$24 sps:$4 sm:$0xff]  }
 0x13a   :  { %7943 = vmatprep.subr.msk.bf16.mxu1 %vm836_vm0, %v8872_v7  ;;  %v850_v12 = vsel %vm836_vm0, %v8872_v7, 0  ;;  %603 = vmatprep.subr.bf16.mxu0 %v8075_v4  ;;  %v6791_v4 = vunpack.c.l.bf16 %v7035_v59 }
 0x13b   :  { %7416 = vmatpush3.bf16.xpose.msra.mxu1 %v850_v12  ;;  %v8076_v12 = vld [vmem:[%s11134_s1 + $0xa0] ss:$24 sps:$4 sm:$0xff]  }
 0x13d   :  { %v530_v14 = vpop.f32.mrb[36].mxu0  ;;  %604 = vmatpush1.bf16.msra.mxu0 %v8073_v5 }
 0x13e   :  { %v532_v15 = vpop.f32.mrb[37].mxu0  ;;  %605 = vmatprep.subr.bf16.mxu0 %v8078_v8 }
 0x13f   :  { %v534_v16 = vpop.f32.mrb[38].mxu0 }
 0x140   :  { %v8880_v17 = vpack.c.bf16 %v534_v16, %v530_v14  ;;  %v536_v19 = vpop.f32.mrb[39].mxu0  ;;  %v8081_v14 = vld [vmem:[%s11134_s1 + $0xd4] ss:$24 sps:$4 sm:$0xff]   ;;  %v8084_v16 = vld [vmem:[%s11134_s1 + $0x104] ss:$24 sps:$4 sm:$0xff]  }
 0x141   :  { %v8882_v20 = vpack.c.bf16 %v536_v19, %v532_v15  ;;  %606 = vmatpush1.bf16.msra.mxu0 %v8076_v12  ;;  %v8079_v15 = vld [vmem:[%s11134_s1 + $0xd0] ss:$24 sps:$4 sm:$0xff]   ;;  %v8082_v19 = vld [vmem:[%s11134_s1 + $0x100] ss:$24 sps:$4 sm:$0xff]  }
 0x142   :  { %7944 = vmatprep.subr.msk.bf16.mxu1 %vm836_vm0, %v8880_v17  ;;  %v853_v22 = vsel %vm836_vm0, %v8880_v17, 0  ;;  %607 = vmatprep.subr.bf16.mxu0 %v8081_v14 }
 0x143   :  { %7418 = vmatpush3.bf16.xpose.msra.mxu1 %v853_v22  ;;  %v8087_v22 = vld [vmem:[%s11134_s1 + $0x134] ss:$24 sps:$4 sm:$0xff]  }
 0x145   :  { %v540_v24 = vpop.f32.mrb[40].mxu0  ;;  %608 = vmatpush1.bf16.msra.mxu0 %v8079_v15 }
 0x146   :  { %v542_v27 = vpop.f32.mrb[41].mxu0  ;;  %609 = vmatprep.subr.bf16.mxu0 %v8084_v16  ;;  %v6792_v16 = vunpack.c.h.bf16 %v7035_v59 }
 0x147   :  { %v544_v28 = vpop.f32.mrb[42].mxu0 }
 0x148   :  { %v8888_v29 = vpack.c.bf16 %v544_v28, %v540_v24  ;;  %v546_v30 = vpop.f32.mrb[43].mxu0  ;;  %v8085_v24 = vld [vmem:[%s11134_s1 + $0x130] ss:$24 sps:$4 sm:$0xff]   ;;  %v8088_v28 = vld [vmem:[%s11134_s1 + $0x160] ss:$24 sps:$4 sm:$0xff]  }
 0x149   :  { %v8890_v33 = vpack.c.bf16 %v546_v30, %v542_v27  ;;  %610 = vmatpush1.bf16.msra.mxu0 %v8082_v19  ;;  %v8090_v27 = vld [vmem:[%s11134_s1 + $0x164] ss:$24 sps:$4 sm:$0xff]  }
 0x14a   :  { %7945 = vmatprep.subr.msk.bf16.mxu1 %vm836_vm0, %v8888_v29  ;;  %v856_v34 = vsel %vm836_vm0, %v8888_v29, 0  ;;  %611 = vmatprep.subr.bf16.mxu0 %v8087_v22 }
 0x14b   :  { %7420 = vmatpush3.bf16.xpose.msra.mxu1 %v856_v34 }
 0x14d   :  { %v550_v42 = vpop.f32.mrb[44].mxu0  ;;  %612 = vmatpush1.bf16.msra.mxu0 %v8085_v24 }
 0x14e   :  { %v552_v45 = vpop.f32.mrb[45].mxu0  ;;  %613 = vmatprep.subr.bf16.mxu0 %v8090_v27 }
 0x14f   :  { %v554_v48 = vpop.f32.mrb[46].mxu0 }
 0x150   :  { %v8896_v49 = vpack.c.bf16 %v554_v48, %v550_v42  ;;  %v556_v51 = vpop.f32.mrb[47].mxu0 }
 0x151   :  { %v8898_v54 = vpack.c.bf16 %v556_v51, %v552_v45  ;;  %614 = vmatpush1.bf16.msra.mxu0 %v8088_v28  ;;  %v7034_v51 = vld [vmem:[%s11136_s2 + $0x10] sm:$0xff]  }
 0x152   :  { %7946 = vmatprep.subr.msk.bf16.mxu1 %vm836_vm0, %v8896_v49  ;;  %v859_v56 = vsel %vm836_vm0, %v8896_v49, 0  ;;  %v6787_v63 = vunpack.c.l.bf16 %v7034_v51  ;;  %v6788_v12 = vunpack.c.h.bf16 %v7034_v51 }
 0x153   :  { %7422 = vmatpush3.bf16.xpose.msra.mxu1 %v859_v56 }
 0x154   :  { %632 = vmatmul.mubr.bf16.vlgmr.msra.gmra.mrb[48].mxu0 %v8733_v26  ;;  %v7033_v26 = vld [vmem:[%s11136_s2 + $0x8] sm:$0xff]  }
 0x155   :  { %641 = vmatprep.mubr.bf16.mxu0 %v8619_v1 }
 0x15a   :  { %7424 = vmatmul.mubr.msk.bf16.vlgmr.msra.gmra.mrb[16].mxu1 %vm836_vm0, %v8828_v50 }
 0x15b   :  { %7427 = vmatprep.mubr.msk.bf16.mxu1 %vm836_vm0, %v8836_v62 }
 0x15c   :  { %642 = vmatmul.mubr.bf16.gmra.mrb[52].mxu0 %v8752_v31  ;;  %v6778_v31 = vld [vmem:[%s11136_s2] sm:$0xff]  }
 0x15d   :  { %651 = vmatprep.mubr.bf16.mxu0 %v8619_v1  ;;  %v6780_v30 = vunpack.c.h.bf16 %v6778_v31 }
 0x162   :  { %7428 = vmatmul.mubr.msk.bf16.gmra.mrb[20].mxu1 %vm836_vm0, %v8844_v11 }
 0x164   :  { %652 = vmatmul.mubr.bf16.gmra.mrb[56].mxu0 %v8773_v36  ;;  %v6779_v36 = vunpack.c.l.bf16 %v6778_v31 }
 0x165   :  { %661 = vmatprep.mubr.bf16.mxu0 %v8619_v1 }
 0x16c   :  { %662 = vmatmul.mubr.bf16.gmra.mrb[60].mxu0 %v8787_v38  ;;  %v6784_v38 = vunpack.c.h.bf16 %v7033_v26 }
 0x16d   :  { %671 = vmatprep.mubr.bf16.mxu0 %v8619_v1 }
 0x174   :  { %672 = vmatmul.mubr.bf16.gmra.mrb[64].mxu0 %v8768_v35  ;;  %v6783_v35 = vunpack.c.l.bf16 %v7033_v26 }
 0x175   :  { %681 = vmatprep.mubr.bf16.mxu0 %v8619_v1 }
 0x17c   :  { %682 = vmatmul.mubr.bf16.gmra.mrb[68].mxu0 %v8782_v37 }
 0x17d   :  { %691 = vmatprep.mubr.bf16.mxu0 %v8619_v1 }
 0x184   :  { %692 = vmatmul.mubr.bf16.gmra.mrb[72].mxu0 %v8796_v39 }
 0x185   :  { %701 = vmatprep.mubr.bf16.mxu0 %v8619_v1 }
 0x18c   :  { %702 = vmatmul.mubr.bf16.gmra.mrb[76].mxu0 %v8805_v40 }
 0x22d   :  { %v7425_v37 = vpop.f32.mrb[16].mxu1 }
 0x22e   :  { %v904_v34 = vadd.f32 %v7425_v37, %v6783_v35  ;;  %v895_v39 = vpop.f32.mrb[17].mxu1 }
 0x22f   :  { %v896_v42 = vadd.f32 %v6779_v36, %v895_v39  ;;  %v7426_v1 = vpop.f32.mrb[18].mxu1 }
 0x230   :  { %v907_v45 = vadd.f32 %v7426_v1, %v6784_v38  ;;  %v898_v40 = vpop.f32.mrb[19].mxu1  ;;  %v933_v48 = vsel %vm926_vm1, %v904_v34, -inf  ;;  %v633_v38 = vpop.f32.mrb[48].mxu0 }
 0x231   :  { %v899_v56 = vadd.f32 %v6780_v30, %v898_v40  ;;  %934 = vmax.xlane.f32.xlu1 %v933_v48  ;;  %v927_v58 = vsel %vm926_vm1, %v896_v42, -inf  ;;  %v635_v30 = vpop.f32.mrb[49].mxu0 }
 0x232   :  { %928 = vmax.xlane.f32.xlu0 %v927_v58  ;;  %v936_v3 = vsel %vm926_vm1, %v907_v45, -inf }
 0x233   :  { %v930_v8 = vsel %vm926_vm1, %v899_v56, -inf }
 0x235   :  { %937 = vmax.xlane.f32.xlu1 %v936_v3  ;;  %v7429_v5 = vpop.f32.mrb[20].mxu1 }
 0x236   :  { %v911_v14 = vpop.f32.mrb[21].mxu1  ;;  %931 = vmax.xlane.f32.xlu0 %v930_v8  ;;  %v920_v24 = vadd.f32 %v7429_v5, %v6791_v4 }
 0x237   :  { %v912_v15 = vadd.f32 %v6787_v63, %v911_v14  ;;  %v7430_v19 = vpop.f32.mrb[22].mxu1 }
 0x238   :  { %v914_v22 = vpop.f32.mrb[23].mxu1  ;;  %v8992_v26 = vadd.f32 %v7430_v19, %v6792_v16  ;;  %v945_v35 = vsel %vm926_vm1, %v920_v24, -inf }
 0x239   :  { %v8989_v27 = vadd.f32 %v6788_v12, %v914_v22  ;;  %v939_v28 = vsel %vm926_vm1, %v912_v15, -inf }
 0x23a   :  { %940 = vmax.xlane.f32.xlu0 %v939_v28  ;;  %v948_v36 = vsel %vm926_vm1, %v8992_v26, -inf }
 0x23b   :  { %v942_v31 = vsel %vm926_vm1, %v8989_v27, -inf }
 0x23c   :  { %943 = vmax.xlane.f32.xlu1 %v942_v31 }
 0x23e   :  { %946 = vmax.xlane.f32.xlu0 %v945_v35 }
 0x240   :  { %949 = vmax.xlane.f32.xlu1 %v948_v36 }
 0x2be   :  { %v935_v37 = vpop.xlane.xlu1 %934 }
 0x2bf   :  { %v953_v39 = vsub.f32 %v904_v34, %v935_v37  ;;  %v929_v1 = vpop.xlane.xlu0 %928 }
 0x2c0   :  { %v951_v40 = vsub.f32 %v896_v42, %v929_v1 }
 0x2c1   :  { %v963_v48 = vmul.f32 1.442695, %v953_v39  ;;  %v637_v39 = vpop.f32.mrb[50].mxu0 }
 0x2c2   :  { %v959_v51 = vmul.f32 1.442695, %v951_v40  ;;  %v938_v58 = vpop.xlane.xlu1 %937  ;;  %v9021_v1 = vpack.c.bf16 %v637_v39, %v633_v38  ;;  %v639_v40 = vpop.f32.mrb[51].mxu0 }
 0x2c3   :  { %8107 = vpow2.f32 %v963_v48  ;;  %v954_v59 = vsub.f32 %v907_v45, %v938_v58  ;;  %v932_v63 = vpop.xlane.xlu0 %931  ;;  %v643_v48 = vpop.f32.mrb[52].mxu0 }
 0x2c4   :  { %v952_v3 = vsub.f32 %v899_v56, %v932_v63  ;;  %8109 = vpow2.f32 %v959_v51  ;;  %v645_v58 = vpop.f32.mrb[53].mxu0  ;;  %7431 = vmatprep.subr.bf16.mxu1 %v9021_v1 }
 0x2c5   :  { %v965_v4 = vmul.f32 1.442695, %v954_v59  ;;  %7432 = vmatpush3.bf16.msra.mxu1 %v9021_v1  ;;  %v647_v59 = vpop.f32.mrb[54].mxu0 }
 0x2c6   :  { %v961_v5 = vmul.f32 1.442695, %v952_v3  ;;  %v9027_v63 = vpack.c.bf16 %v647_v59, %v643_v48  ;;  %v649_v3 = vpop.f32.mrb[55].mxu0 }
 0x2c7   :  { %8111 = vpow2.f32 %v965_v4  ;;  %v941_v8 = vpop.xlane.xlu0 %940  ;;  %v653_v4 = vpop.f32.mrb[56].mxu0 }
 0x2c8   :  { %8113 = vpow2.f32 %v961_v5  ;;  %v955_v12 = vsub.f32 %v912_v15, %v941_v8  ;;  %v655_v5 = vpop.f32.mrb[57].mxu0  ;;  %7433 = vmatprep.subr.bf16.mxu1 %v9027_v63 }
 0x2c9   :  { %v657_v38 = vpop.f32.mrb[58].mxu0  ;;  %7434 = vmatpush3.bf16.msra.mxu1 %v9027_v63 }
 0x2ca   :  { %v967_v34 = vmul.f32 1.442695, %v955_v12  ;;  %v9031_v8 = vpack.c.bf16 %v657_v38, %v653_v4  ;;  %v659_v12 = vpop.f32.mrb[59].mxu0 }
 0x2cb   :  { %v947_v14 = vpop.xlane.xlu0 %946 }
 0x2cc   :  { %v957_v16 = vsub.f32 %v920_v24, %v947_v14  ;;  %v663_v14 = vpop.f32.mrb[60].mxu0  ;;  %7435 = vmatprep.subr.bf16.mxu1 %v9031_v8 }
 0x2cd   :  { %v8999_v19 = vpop.eup %8107  ;;  %7436 = vmatpush3.bf16.msra.mxu1 %v9031_v8 }
 0x2ce   :  { %v971_v42 = vmul.f32 1.442695, %v957_v16  ;;  %v981_v22 = vsel %vm926_vm1, %v8999_v19, 0.0  ;;  %v9003_v28 = vpop.eup %8109  ;;  %v9035_v16 = vpack.c.bf16 %v639_v40, %v635_v30  ;;  %v944_v30 = vpop.xlane.xlu1 %943 }
 0x2cf   :  { %982 = vadd.xlane.f32.xlu0 %v981_v22  ;;  %v975_v15 = vsel %vm926_vm1, %v9003_v28, 0.0  ;;  %v956_v39 = vsub.f32 %v8989_v27, %v944_v30 }
 0x2d0   :  { %8115 = vpow2.f32 %v971_v42 }
 0x2d1   :  { %v9005_v45 = vpop.eup %8111  ;;  %8117 = vpow2.f32 %v967_v34  ;;  %v665_v34 = vpop.f32.mrb[61].mxu0  ;;  %v969_v48 = vmul.f32 1.442695, %v956_v39 }
 0x2d2   :  { %v984_v56 = vsel %vm926_vm1, %v9005_v45, 0.0  ;;  %v9011_v24 = vpop.eup %8113  ;;  %v667_v42 = vpop.f32.mrb[62].mxu0 }
 0x2d3   :  { %985 = vadd.xlane.f32.xlu1 %v984_v56  ;;  %976 = vadd.xlane.f32.xlu0 %v975_v15  ;;  %v978_v31 = vsel %vm926_vm1, %v9011_v24, 0.0  ;;  %v9039_v22 = vpack.c.bf16 %v667_v42, %v663_v14  ;;  %v9045_v56 = vpack.c.bf16 %v649_v3, %v645_v58  ;;  %v9047_v15 = vpack.c.bf16 %v659_v12, %v655_v5 }
 0x2d5   :  { %7437 = vmatprep.subr.bf16.mxu1 %v9039_v22 }
 0x2d6   :  { %7438 = vmatpush3.bf16.msra.mxu1 %v9039_v22 }
 0x2d7   :  { %979 = vadd.xlane.f32.xlu1 %v978_v31  ;;  %v950_v31 = vpop.xlane.xlu1 %949 }
 0x2da   :  { %v9015_v35 = vpop.eup %8115 }
 0x2db   :  { %v993_v36 = vsel %vm926_vm1, %v9015_v35, 0.0  ;;  %v9019_v37 = vpop.eup %8117 }
 0x2dc   :  { %994 = vadd.xlane.f32.xlu0 %v993_v36  ;;  %v987_v51 = vsel %vm926_vm1, %v9019_v37, 0.0  ;;  %v958_v36 = vsub.f32 %v8992_v26, %v950_v31  ;;  %v669_v26 = vpop.f32.mrb[63].mxu0 }
 0x2de   :  { %v973_v40 = vmul.f32 1.442695, %v958_v36 }
 0x2e0   :  { %988 = vadd.xlane.f32.xlu0 %v987_v51  ;;  %8119 = vpow2.f32 %v973_v40  ;;  %v9063_v51 = vpack.c.bf16 %v669_v26, %v665_v34 }
 0x2e1   :  { %8121 = vpow2.f32 %v969_v48 }
 0x2e8   :  { %1151 = vrot.lane.b32.xlu1 %v8880_v17, %s8620_s10 }
 0x2ea   :  { %v9065_v27 = vpop.eup %8119 }
 0x2eb   :  { %v996_v58 = vsel %vm926_vm1, %v9065_v27, 0.0  ;;  %v9071_v59 = vpop.eup %8121 }
 0x2ec   :  { %1153 = vrot.lane.b32.xlu1 %v8888_v29, %s8620_s10  ;;  %v990_v3 = vsel %vm926_vm1, %v9071_v59, 0.0 }
 0x2f6   :  { %1149 = vrot.lane.b32.xlu0 %v8872_v7, %s8620_s10 }
 0x2fa   :  { %1137 = vrot.lane.b32.xlu0 %v8822_v44, %s8620_s10 }
 0x2fe   :  { %1139 = vrot.lane.b32.xlu0 %v8828_v50, %s8620_s10 }
 0x302   :  { %1505 = vrot.lane.b32.xlu0 %v8888_v29, %s8621_s11 }
 0x306   :  { %1143 = vrot.lane.b32.xlu0 %v8844_v11, %s8620_s10 }
 0x30a   :  { %1489 = vrot.lane.b32.xlu0 %v8822_v44, %s8621_s11 }
 0x30e   :  { %1493 = vrot.lane.b32.xlu0 %v8836_v62, %s8621_s11 }
 0x310   :  { %997 = vadd.xlane.f32.xlu1 %v996_v58 }
 0x312   :  { %1342 = vrot.lane.b32.xlu0 %v9021_v1, %s8620_s10 }
 0x314   :  { %991 = vadd.xlane.f32.xlu1 %v990_v3 }
 0x316   :  { %1346 = vrot.lane.b32.xlu0 %v9031_v8, %s8620_s10 }
 0x325   :  { %1155 = vrot.lane.b32.xlu1 %v8896_v49, %s8620_s10 }
 0x329   :  { %1501 = vrot.lane.b32.xlu1 %v8872_v7, %s8621_s11 }
 0x32d   :  { %1503 = vrot.lane.b32.xlu1 %v8880_v17, %s8621_s11 }
 0x331   :  { %1141 = vrot.lane.b32.xlu1 %v8836_v62, %s8620_s10 }
 0x335   :  { %1507 = vrot.lane.b32.xlu1 %v8896_v49, %s8621_s11 }
 0x339   :  { %1491 = vrot.lane.b32.xlu1 %v8828_v50, %s8621_s11 }
 0x33d   :  { %1495 = vrot.lane.b32.xlu1 %v8844_v11, %s8621_s11 }
 0x341   :  { %1344 = vrot.lane.b32.xlu1 %v9027_v63, %s8620_s10 }
 0x345   :  { %1348 = vrot.lane.b32.xlu1 %v9039_v22, %s8620_s10 }
 0x35c   :  { %v983_v4 = vpop.xlane.xlu0 %982 }
 0x360   :  { %v986_v5 = vpop.xlane.xlu1 %985  ;;  %v977_v38 = vpop.xlane.xlu0 %976 }
 0x361   :  { %8123 = vrcp.f32 %v986_v5 }
 0x362   :  { %8125 = vrcp.f32 %v977_v38 }
 0x363   :  { %8127 = vrcp.f32 %v983_v4 }
 0x364   :  { %v980_v12 = vpop.xlane.xlu1 %979 }
 0x365   :  { %8129 = vrcp.f32 %v980_v12 }
 0x368   :  { %v1152_v12 = vpop.permute.xlu1 %1151 }
 0x369   :  { %v995_v14 = vpop.xlane.xlu0 %994 }
 0x36b   :  { %v8124_v34 = vpop.eup %8123 }
 0x36c   :  { %v8126_v42 = vpop.eup %8125  ;;  %v1010_v39 = vmul.f32 %v8124_v34, %v9005_v45 }
 0x36d   :  { %v989_v30 = vpop.xlane.xlu0 %988  ;;  %v8128_v31 = vpop.eup %8127  ;;  %v1007_v40 = vmul.f32 %v8126_v42, %v9003_v28 }
 0x36e   :  { %v1009_v26 = vmul.f32 %v8128_v31, %v8999_v19  ;;  %v1173_v19 = vsel %vm836_vm0, %v1152_v12, 0 }
 0x36f   :  { %v8130_v36 = vpop.eup %8129 }
 0x370   :  { %v1008_v48 = vmul.f32 %v8130_v36, %v9011_v24  ;;  %v1016_v4 = vpack.c.bf16 %v1010_v39, %v1009_v26  ;;  %v1154_v24 = vpop.permute.xlu1 %1153 }
 0x371   :  { %v1150_v58 = vpop.permute.xlu0 %1149  ;;  %v1176_v31 = vsel %vm836_vm0, %v1154_v24, 0 }
 0x372   :  { %7947 = vmatprep.subr.msk.bf16.mxu1 %vm836_vm0, %v1150_v58  ;;  %v1015_v3 = vpack.c.bf16 %v1008_v48, %v1007_v40  ;;  %v1170_v38 = vsel %vm836_vm0, %v1150_v58, 0 }
 0x374   :  { %7439 = vmatprep.mubr.msk.bf16.mxu1 %vm926_vm1, %v1015_v3 }
 0x375   :  { %v1138_v5 = vpop.permute.xlu0 %1137  ;;  %7440 = vmatmul.mubr.msk.bf16.vlgmr.msra.gmra.mrb[24].mxu1 %vm926_vm1, %v1016_v4 }
 0x376   :  { %7448 = vmatpush3.bf16.xpose.msra.mxu1 %v1170_v38 }
 0x377   :  { %7948 = vmatprep.subr.msk.bf16.mxu1 %vm836_vm0, %v1152_v12 }
 0x379   :  { %v1140_v28 = vpop.permute.xlu0 %1139 }
 0x37d   :  { %v1506_v45 = vpop.permute.xlu0 %1505 }
 0x37e   :  { %7450 = vmatpush3.bf16.xpose.msra.mxu1 %v1173_v19 }
 0x37f   :  { %7949 = vmatprep.subr.msk.bf16.mxu1 %vm836_vm0, %v1154_v24 }
 0x381   :  { %v1144_v34 = vpop.permute.xlu0 %1143 }
 0x385   :  { %v1490_v42 = vpop.permute.xlu0 %1489 }
 0x386   :  { %7452 = vmatpush3.bf16.xpose.msra.mxu1 %v1176_v31 }
 0x389   :  { %v1494_v36 = vpop.permute.xlu0 %1493 }
 0x38d   :  { %v1343_v39 = vpop.permute.xlu0 %1342 }
 0x38e   :  { %7463 = vmatprep.subr.bf16.mxu0 %v1343_v39 }
 0x38f   :  { %7464 = vmatpush3.bf16.msra.mxu0 %v1343_v39 }
 0x39d   :  { %v998_v40 = vpop.xlane.xlu1 %997 }
 0x39e   :  { %8131 = vrcp.f32 %v998_v40 }
 0x39f   :  { %8133 = vrcp.f32 %v989_v30 }
 0x3a0   :  { %8135 = vrcp.f32 %v995_v14 }
 0x3a1   :  { %v992_v48 = vpop.xlane.xlu1 %991 }
 0x3a2   :  { %8137 = vrcp.f32 %v992_v48 }
 0x3a5   :  { %v1156_v26 = vpop.permute.xlu1 %1155 }
 0x3a6   :  { %7950 = vmatprep.subr.msk.bf16.mxu1 %vm836_vm0, %v1156_v26  ;;  %v1179_v58 = vsel %vm836_vm0, %v1156_v26, 0 }
 0x3a7   :  { %7454 = vmatpush3.bf16.xpose.msra.mxu1 %v1179_v58 }
 0x3a8   :  { %v8132_v3 = vpop.eup %8131 }
 0x3a9   :  { %v1502_v4 = vpop.permute.xlu1 %1501  ;;  %v8134_v38 = vpop.eup %8133  ;;  %v1014_v24 = vmul.f32 %v8132_v3, %v9065_v27 }
 0x3aa   :  { %7951 = vmatprep.subr.msk.bf16.mxu1 %vm836_vm0, %v1502_v4  ;;  %v8136_v12 = vpop.eup %8135  ;;  %v1011_v14 = vmul.f32 %v8134_v38, %v9019_v37  ;;  %v1522_v27 = vsel %vm836_vm0, %v1502_v4, 0  ;;  %v1347_v3 = vpop.permute.xlu0 %1346 }
 0x3ab   :  { %v1013_v39 = vmul.f32 %v8136_v12, %v9015_v35 }
 0x3ac   :  { %v8138_v19 = vpop.eup %8137 }
 0x3ad   :  { %v1504_v31 = vpop.permute.xlu1 %1503  ;;  %v1012_v30 = vmul.f32 %v8138_v19, %v9071_v59  ;;  %v1018_v48 = vpack.c.bf16 %v1014_v24, %v1013_v39 }
 0x3ae   :  { %v1525_v59 = vsel %vm836_vm0, %v1504_v31, 0 }
 0x3af   :  { %v1017_v40 = vpack.c.bf16 %v1012_v30, %v1011_v14 }
 0x3b1   :  { %v1142_v26 = vpop.permute.xlu1 %1141  ;;  %7443 = vmatprep.mubr.msk.bf16.mxu1 %vm926_vm1, %v1017_v40  ;;  %v7036_v40 = vld [vmem:[%s11136_s2 + $0x20] sm:$0xff]  }
 0x3b2   :  { %7444 = vmatmul.mubr.msk.bf16.gmra.mrb[28].mxu1 %vm926_vm1, %v1018_v48 }
 0x3b3   :  { %7455 = vmatprep.mubr.msk.bf16.mxu1 %vm836_vm0, %v1138_v5 }
 0x3b5   :  { %v1508_v58 = vpop.permute.xlu1 %1507 }
 0x3b9   :  { %v1492_v2 = vpop.permute.xlu1 %1491 }
 0x3ba   :  { %7456 = vmatmul.mubr.msk.bf16.vlgmr.msra.gmra.mrb[32].mxu1 %vm836_vm0, %v1140_v28  ;;  %v1528_v28 = vsel %vm836_vm0, %v1506_v45, 0 }
 0x3bb   :  { %7480 = vmatpush3.bf16.xpose.msra.mxu1 %v1522_v27  ;;  %7459 = vmatprep.mubr.msk.bf16.mxu1 %vm836_vm0, %v1142_v26  ;;  %v6795_v26 = vunpack.c.l.bf16 %v7036_v40  ;;  %v6796_v27 = vunpack.c.h.bf16 %v7036_v40 }
 0x3bc   :  { %7952 = vmatprep.subr.msk.bf16.mxu1 %vm836_vm0, %v1504_v31 }
 0x3bd   :  { %v1496_v35 = vpop.permute.xlu1 %1495 }
 0x3c1   :  { %v1345_v37 = vpop.permute.xlu1 %1344 }
 0x3c2   :  { %7460 = vmatmul.mubr.msk.bf16.gmra.mrb[36].mxu1 %vm836_vm0, %v1144_v34  ;;  %7465 = vmatprep.subr.bf16.mxu0 %v1345_v37  ;;  %v1531_v34 = vsel %vm836_vm0, %v1508_v58, 0 }
 0x3c3   :  { %7482 = vmatpush3.bf16.xpose.msra.mxu1 %v1525_v59  ;;  %7487 = vmatprep.mubr.msk.bf16.mxu1 %vm836_vm0, %v1490_v42 }
 0x3c4   :  { %7953 = vmatprep.subr.msk.bf16.mxu1 %vm836_vm0, %v1506_v45  ;;  %7466 = vmatpush3.bf16.msra.mxu0 %v1345_v37 }
 0x3c5   :  { %7467 = vmatprep.subr.bf16.mxu0 %v1347_v3  ;;  %v1349_v5 = vpop.permute.xlu1 %1348 }
 0x3c8   :  { %7468 = vmatpush3.bf16.msra.mxu0 %v1347_v3 }
 0x3c9   :  { %7469 = vmatprep.subr.bf16.mxu0 %v1349_v5 }
 0x3cb   :  { %7484 = vmatpush3.bf16.xpose.msra.mxu1 %v1528_v28 }
 0x3cc   :  { %7954 = vmatprep.subr.msk.bf16.mxu1 %vm836_vm0, %v1508_v58  ;;  %7470 = vmatpush3.bf16.msra.mxu0 %v1349_v5 }
 0x3d3   :  { %7486 = vmatpush3.bf16.xpose.msra.mxu1 %v1531_v34 }
 0x3da   :  { %7488 = vmatmul.mubr.msk.bf16.vlgmr.msra.gmra.mrb[40].mxu1 %vm836_vm0, %v1492_v2  ;;  %v7037_v2 = vld [vmem:[%s11136_s2 + $0x28] sm:$0xff]  }
 0x3db   :  { %7491 = vmatprep.mubr.msk.bf16.mxu1 %vm836_vm0, %v1494_v36  ;;  %v6799_v48 = vunpack.c.l.bf16 %v7037_v2  ;;  %v6800_v5 = vunpack.c.h.bf16 %v7037_v2 }
 0x3e2   :  { %7492 = vmatmul.mubr.msk.bf16.gmra.mrb[44].mxu1 %vm836_vm0, %v1496_v35 }
 0x448   :  { %v7441_v42 = vpop.f32.mrb[24].mxu1 }
 0x449   :  { %v1065_v4 = vpop.f32.mrb[25].mxu1 }
 0x44a   :  { %v7442_v38 = vpop.f32.mrb[26].mxu1 }
 0x44b   :  { %v1097_v12 = vpack.c.bf16 %v7442_v38, %v7441_v42  ;;  %v1068_v19 = vpop.f32.mrb[27].mxu1 }
 0x44c   :  { %v1096_v24 = vpack.c.bf16 %v1068_v19, %v1065_v4  ;;  %v7039_v4 = vld [vmem:[%s11136_s2 + $0x38] sm:$0xff]  }
 0x44d   :  { %1101 = vst.msk [vmem:[#allocation3 + $0x10] sm:$0xff] %vm836_vm0, %v1097_v12  ;;  %v6807_v19 = vunpack.c.l.bf16 %v7039_v4 }
 0x44e   :  { %1100 = vst.msk [vmem:[#allocation3] sm:$0xff] %vm836_vm0, %v1096_v24 }
 0x485   :  { %v7445_v45 = vpop.f32.mrb[28].mxu1 }
 0x486   :  { %v1081_v31 = vpop.f32.mrb[29].mxu1 }
 0x487   :  { %v7446_v14 = vpop.f32.mrb[30].mxu1 }
 0x488   :  { %v1099_v36 = vpack.c.bf16 %v7446_v14, %v7445_v45  ;;  %v1084_v30 = vpop.f32.mrb[31].mxu1  ;;  %v6808_v45 = vunpack.c.h.bf16 %v7039_v4  ;;  %v7038_v14 = vld [vmem:[%s11136_s2 + $0x30] sm:$0xff]   ;;  %v7041_v4 = vld [vmem:[%s11136_s2 + $0x48] sm:$0xff]  }
 0x489   :  { %v1098_v39 = vpack.c.bf16 %v1084_v30, %v1081_v31  ;;  %v6803_v40 = vunpack.c.l.bf16 %v7038_v14 }
 0x48a   :  { %1103 = vst.msk [vmem:[#allocation3 + $0x30] sm:$0xff] %vm836_vm0, %v1099_v36  ;;  %v6804_v36 = vunpack.c.h.bf16 %v7038_v14 }
 0x48b   :  { %1102 = vst.msk [vmem:[#allocation3 + $0x20] sm:$0xff] %vm836_vm0, %v1098_v39 }
 0x48d   :  { %v7457_v58 = vpop.f32.mrb[32].mxu1 }
 0x48e   :  { %v9143_v35 = vadd.f32 %v7457_v58, %v6799_v48  ;;  %v1215_v37 = vpop.f32.mrb[33].mxu1 }
 0x48f   :  { %v7458_v59 = vpop.f32.mrb[34].mxu1  ;;  %v9145_v3 = vadd.f32 %v6795_v26, %v1215_v37 }
 0x490   :  { %v1218_v28 = vpop.f32.mrb[35].mxu1  ;;  %v1252_v34 = vsel %vm926_vm1, %v9143_v35, -inf  ;;  %v9156_v12 = vadd.f32 %v7458_v59, %v6800_v5 }
 0x491   :  { %v9149_v42 = vadd.f32 %v6796_v27, %v1218_v28  ;;  %1253 = vmax.xlane.f32.xlu0 %v1252_v34  ;;  %v1246_v24 = vsel %vm926_vm1, %v9145_v3, -inf }
 0x492   :  { %v1255_v58 = vsel %vm926_vm1, %v9156_v12, -inf }
 0x493   :  { %v1249_v38 = vsel %vm926_vm1, %v9149_v42, -inf }
 0x494   :  { %1250 = vmax.xlane.f32.xlu1 %v1249_v38  ;;  %v7040_v38 = vld [vmem:[%s11136_s2 + $0x40] sm:$0xff]  }
 0x495   :  { %v7461_v31 = vpop.f32.mrb[36].mxu1  ;;  %1247 = vmax.xlane.f32.xlu0 %v1246_v24  ;;  %v6811_v24 = vunpack.c.l.bf16 %v7040_v38 }
 0x496   :  { %v1231_v2 = vpop.f32.mrb[37].mxu1  ;;  %v9163_v39 = vadd.f32 %v7461_v31, %v6807_v19  ;;  %v6815_v19 = vunpack.c.l.bf16 %v7041_v4 }
 0x497   :  { %v7462_v30 = vpop.f32.mrb[38].mxu1  ;;  %v9173_v59 = vadd.f32 %v6803_v40, %v1231_v2  ;;  %v7043_v40 = vld [vmem:[%s11136_s2 + $0x58] sm:$0xff]  }
 0x498   :  { %v9165_v48 = vadd.f32 %v7462_v30, %v6808_v45  ;;  %v1234_v26 = vpop.f32.mrb[39].mxu1  ;;  %v1264_v5 = vsel %vm926_vm1, %v9163_v39, -inf  ;;  %v6816_v45 = vunpack.c.h.bf16 %v7041_v4 }
 0x499   :  { %1256 = vmax.xlane.f32.xlu0 %v1255_v58  ;;  %v9169_v27 = vadd.f32 %v6804_v36, %v1234_v26  ;;  %v1258_v34 = vsel %vm926_vm1, %v9173_v59, -inf  ;;  %v6812_v36 = vunpack.c.h.bf16 %v7040_v38  ;;  %v6823_v38 = vunpack.c.l.bf16 %v7043_v40 }
 0x49a   :  { %v1267_v37 = vsel %vm926_vm1, %v9165_v48, -inf }
 0x49b   :  { %1268 = vmax.xlane.f32.xlu1 %v1267_v37  ;;  %v1261_v28 = vsel %vm926_vm1, %v9169_v27, -inf }
 0x49d   :  { %1265 = vmax.xlane.f32.xlu0 %v1264_v5 }
 0x49f   :  { %1262 = vmax.xlane.f32.xlu1 %v1261_v28  ;;  %v7042_v28 = vld [vmem:[%s11136_s2 + $0x50] sm:$0xff]  }
 0x4a1   :  { %1259 = vmax.xlane.f32.xlu0 %v1258_v34 }
 0x4ad   :  { %v7489_v31 = vpop.f32.mrb[40].mxu1 }
 0x4ae   :  { %v9187_v14 = vadd.f32 %v7489_v31, %v6815_v19  ;;  %v1567_v2 = vpop.f32.mrb[41].mxu1 }
 0x4af   :  { %v7490_v30 = vpop.f32.mrb[42].mxu1  ;;  %v9192_v26 = vadd.f32 %v6811_v24, %v1567_v2  ;;  %v6819_v24 = vunpack.c.l.bf16 %v7042_v28 }
 0x4b0   :  { %v9194_v58 = vadd.f32 %v7490_v30, %v6816_v45  ;;  %v1570_v37 = vpop.f32.mrb[43].mxu1  ;;  %v1604_v5 = vsel %vm926_vm1, %v9187_v14, -inf }
 0x4b1   :  { %1605 = vmax.xlane.f32.xlu0 %v1604_v5  ;;  %v9201_v34 = vadd.f32 %v6812_v36, %v1570_v37  ;;  %v1598_v19 = vsel %vm926_vm1, %v9192_v26, -inf }
 0x4b2   :  { %v1607_v4 = vsel %vm926_vm1, %v9194_v58, -inf }
 0x4b3   :  { %1608 = vmax.xlane.f32.xlu1 %v1607_v4  ;;  %v1601_v30 = vsel %vm926_vm1, %v9201_v34, -inf }
 0x4b5   :  { %v7493_v45 = vpop.f32.mrb[44].mxu1  ;;  %1599 = vmax.xlane.f32.xlu0 %v1598_v19 }
 0x4b6   :  { %v9207_v31 = vadd.f32 %v7493_v45, %v6823_v38  ;;  %v1583_v2 = vpop.f32.mrb[45].mxu1  ;;  %v6824_v38 = vunpack.c.h.bf16 %v7043_v40 }
 0x4b7   :  { %v7494_v5 = vpop.f32.mrb[46].mxu1  ;;  %1602 = vmax.xlane.f32.xlu1 %v1601_v30  ;;  %v9211_v36 = vadd.f32 %v6819_v24, %v1583_v2  ;;  %v6820_v24 = vunpack.c.h.bf16 %v7042_v28 }
 0x4b8   :  { %v1586_v37 = vpop.f32.mrb[47].mxu1  ;;  %v1616_v4 = vsel %vm926_vm1, %v9207_v31, -inf  ;;  %v9223_v19 = vadd.f32 %v7494_v5, %v6824_v38 }
 0x4b9   :  { %1617 = vmax.xlane.f32.xlu0 %v1616_v4  ;;  %v1610_v55 = vsel %vm926_vm1, %v9211_v36, -inf  ;;  %v9225_v45 = vadd.f32 %v6820_v24, %v1586_v37 }
 0x4ba   :  { %v1619_v2 = vsel %vm926_vm1, %v9223_v19, -inf }
 0x4bd   :  { %1611 = vmax.xlane.f32.xlu0 %v1610_v55  ;;  %v1613_v55 = vsel %vm926_vm1, %v9225_v45, -inf }
 0x4c8   :  { %1696 = vrot.lane.b32.xlu1 %v9027_v63, %s8621_s11 }
 0x4cc   :  { %1698 = vrot.lane.b32.xlu1 %v9031_v8, %s8621_s11 }
 0x4d3   :  { %1694 = vrot.lane.b32.xlu0 %v9021_v1, %s8621_s11 }
 0x4f0   :  { %1620 = vmax.xlane.f32.xlu1 %v1619_v2 }
 0x4f4   :  { %1614 = vmax.xlane.f32.xlu1 %v1613_v55 }
 0x505   :  { %1700 = vrot.lane.b32.xlu1 %v9039_v22, %s8621_s11 }
 0x51e   :  { %v1254_v30 = vpop.xlane.xlu0 %1253 }
 0x51f   :  { %v1272_v4 = vsub.f32 %v9143_v35, %v1254_v30 }
 0x521   :  { %v1282_v40 = vmul.f32 1.442695, %v1272_v4  ;;  %v1251_v5 = vpop.xlane.xlu1 %1250 }
 0x522   :  { %v1248_v38 = vpop.xlane.xlu0 %1247  ;;  %v1271_v37 = vsub.f32 %v9149_v42, %v1251_v5 }
 0x523   :  { %8139 = vpow2.f32 %v1282_v40  ;;  %v1270_v28 = vsub.f32 %v9145_v3, %v1248_v38 }
 0x524   :  { %v1280_v25 = vmul.f32 1.442695, %v1271_v37 }
 0x525   :  { %v1278_v24 = vmul.f32 1.442695, %v1270_v28 }
 0x526   :  { %v1257_v2 = vpop.xlane.xlu0 %1256 }
 0x527   :  { %8141 = vpow2.f32 %v1278_v24  ;;  %v1273_v47 = vsub.f32 %v9156_v12, %v1257_v2 }
 0x528   :  { %v1269_v55 = vpop.xlane.xlu1 %1268 }
 0x529   :  { %v1284_v41 = vmul.f32 1.442695, %v1273_v47  ;;  %v1277_v4 = vsub.f32 %v9165_v48, %v1269_v55 }
 0x52a   :  { %v1266_v21 = vpop.xlane.xlu0 %1265 }
 0x52b   :  { %8143 = vpow2.f32 %v1284_v41  ;;  %v1276_v35 = vsub.f32 %v9163_v39, %v1266_v21  ;;  %v1292_v47 = vmul.f32 1.442695, %v1277_v4 }
 0x52c   :  { %8145 = vpow2.f32 %v1280_v25  ;;  %v1263_v40 = vpop.xlane.xlu1 %1262 }
 0x52d   :  { %v9238_v30 = vpop.eup %8139  ;;  %v1290_v3 = vmul.f32 1.442695, %v1276_v35  ;;  %v1275_v21 = vsub.f32 %v9169_v27, %v1263_v40 }
 0x52e   :  { %v1260_v42 = vpop.xlane.xlu0 %1259  ;;  %v1300_v5 = vsel %vm926_vm1, %v9238_v30, 0.0 }
 0x52f   :  { %v1274_v12 = vsub.f32 %v9173_v59, %v1260_v42  ;;  %1301 = vadd.xlane.f32.xlu0 %v1300_v5  ;;  %8147 = vpow2.f32 %v1290_v3  ;;  %v1288_v48 = vmul.f32 1.442695, %v1275_v21 }
 0x531   :  { %v9244_v38 = vpop.eup %8141  ;;  %v1286_v41 = vmul.f32 1.442695, %v1274_v12 }
 0x532   :  { %v1294_v25 = vsel %vm926_vm1, %v9244_v38, 0.0 }
 0x533   :  { %8149 = vpow2.f32 %v1286_v41  ;;  %1295 = vadd.xlane.f32.xlu0 %v1294_v25 }
 0x534   :  { %8151 = vpow2.f32 %v1292_v47 }
 0x535   :  { %v9249_v39 = vpop.eup %8143  ;;  %8153 = vpow2.f32 %v1288_v48 }
 0x536   :  { %v1303_v59 = vsel %vm926_vm1, %v9249_v39, 0.0  ;;  %v9253_v28 = vpop.eup %8145 }
 0x537   :  { %1304 = vadd.xlane.f32.xlu1 %v1303_v59  ;;  %v1297_v27 = vsel %vm926_vm1, %v9253_v28, 0.0 }
 0x539   :  { %v9257_v37 = vpop.eup %8147 }
 0x53a   :  { %v1312_v55 = vsel %vm926_vm1, %v9257_v37, 0.0 }
 0x53b   :  { %1298 = vadd.xlane.f32.xlu1 %v1297_v27 }
 0x53d   :  { %v9259_v24 = vpop.eup %8149 }
 0x53e   :  { %v1606_v2 = vpop.xlane.xlu0 %1605  ;;  %v1306_v35 = vsel %vm926_vm1, %v9259_v24, 0.0  ;;  %v9265_v4 = vpop.eup %8151 }
 0x53f   :  { %v1624_v3 = vsub.f32 %v9187_v14, %v1606_v2  ;;  %1313 = vadd.xlane.f32.xlu1 %v1312_v55  ;;  %1307 = vadd.xlane.f32.xlu0 %v1306_v35  ;;  %v1315_v47 = vsel %vm926_vm1, %v9265_v4, 0.0  ;;  %v9271_v21 = vpop.eup %8153 }
 0x540   :  { %v1609_v40 = vpop.xlane.xlu1 %1608 }
 0x541   :  { %v1634_v42 = vmul.f32 1.442695, %v1624_v3  ;;  %v1625_v5 = vsub.f32 %v9194_v58, %v1609_v40  ;;  %v1309_v58 = vsel %vm926_vm1, %v9271_v21, 0.0 }
 0x542   :  { %v1600_v12 = vpop.xlane.xlu0 %1599 }
 0x543   :  { %8155 = vpow2.f32 %v1634_v42  ;;  %v1636_v41 = vmul.f32 1.442695, %v1625_v5  ;;  %v1622_v25 = vsub.f32 %v9192_v26, %v1600_v12  ;;  %1316 = vadd.xlane.f32.xlu1 %v1315_v47 }
 0x544   :  { %v1603_v48 = vpop.xlane.xlu1 %1602 }
 0x545   :  { %8157 = vpow2.f32 %v1636_v41  ;;  %v1630_v14 = vmul.f32 1.442695, %v1622_v25  ;;  %v1623_v59 = vsub.f32 %v9201_v34, %v1603_v48 }
 0x546   :  { %v1618_v27 = vpop.xlane.xlu0 %1617 }
 0x547   :  { %8159 = vpow2.f32 %v1630_v14  ;;  %v1632_v2 = vmul.f32 1.442695, %v1623_v59  ;;  %v1628_v55 = vsub.f32 %v9207_v31, %v1618_v27  ;;  %1310 = vadd.xlane.f32.xlu1 %v1309_v58 }
 0x548   :  { %v9310_v58 = vpop.permute.xlu1 %1696 }
 0x549   :  { %8161 = vpow2.f32 %v1632_v2  ;;  %v1642_v35 = vmul.f32 1.442695, %v1628_v55 }
 0x54a   :  { %v1612_v3 = vpop.xlane.xlu0 %1611 }
 0x54b   :  { %v1626_v26 = vsub.f32 %v9211_v36, %v1612_v3  ;;  %8163 = vpow2.f32 %v1642_v35 }
 0x54c   :  { %v9312_v2 = vpop.permute.xlu1 %1698 }
 0x54d   :  { %v9279_v40 = vpop.eup %8155  ;;  %v1638_v42 = vmul.f32 1.442695, %v1626_v26 }
 0x54e   :  { %v9281_v5 = vpop.permute.xlu0 %1694  ;;  %v1652_v34 = vsel %vm926_vm1, %v9279_v40, 0.0 }
 0x54f   :  { %v9285_v12 = vpop.eup %8157  ;;  %1653 = vadd.xlane.f32.xlu0 %v1652_v34  ;;  %7495 = vmatprep.subr.bf16.mxu0 %v9281_v5  ;;  %8165 = vpow2.f32 %v1638_v42 }
 0x550   :  { %v1655_v36 = vsel %vm926_vm1, %v9285_v12, 0.0 }
 0x551   :  { %v9288_v31 = vpop.eup %8159 }
 0x552   :  { %v1646_v47 = vsel %vm926_vm1, %v9288_v31, 0.0 }
 0x553   :  { %v9294_v41 = vpop.eup %8161  ;;  %1656 = vadd.xlane.f32.xlu0 %v1655_v36  ;;  %1647 = vadd.xlane.f32.xlu1 %v1646_v47 }
 0x554   :  { %v1649_v25 = vsel %vm926_vm1, %v9294_v41, 0.0 }
 0x555   :  { %v9298_v48 = vpop.eup %8163 }
 0x556   :  { %v1664_v14 = vsel %vm926_vm1, %v9298_v48, 0.0 }
 0x557   :  { %1650 = vadd.xlane.f32.xlu0 %v1649_v25 }
 0x559   :  { %v9302_v59 = vpop.eup %8165 }
 0x55a   :  { %v1658_v27 = vsel %vm926_vm1, %v9302_v59, 0.0 }
 0x55b   :  { %1665 = vadd.xlane.f32.xlu0 %v1664_v14  ;;  %v673_v14 = vpop.f32.mrb[64].mxu0 }
 0x55f   :  { %1659 = vadd.xlane.f32.xlu0 %v1658_v27  ;;  %v675_v27 = vpop.f32.mrb[65].mxu0 }
 0x564   :  { %1855 = vrot.lane.b32.xlu1 %v8880_v17, %s8622_s27 }
 0x568   :  { %1857 = vrot.lane.b32.xlu1 %v8888_v29, %s8622_s27 }
 0x57d   :  { %v1621_v55 = vpop.xlane.xlu1 %1620 }
 0x57e   :  { %v1629_v35 = vsub.f32 %v9223_v19, %v1621_v55  ;;  %v677_v55 = vpop.f32.mrb[66].mxu0 }
 0x580   :  { %v1644_v3 = vmul.f32 1.442695, %v1629_v35 }
 0x581   :  { %v1615_v26 = vpop.xlane.xlu1 %1614 }
 0x582   :  { %8167 = vpow2.f32 %v1644_v3  ;;  %v1627_v42 = vsub.f32 %v9225_v45, %v1615_v26  ;;  %v9338_v3 = vpack.c.bf16 %v677_v55, %v673_v14 }
 0x584   :  { %v1640_v34 = vmul.f32 1.442695, %v1627_v42 }
 0x585   :  { %v9336_v45 = vpop.permute.xlu1 %1700 }
 0x586   :  { %8169 = vpow2.f32 %v1640_v34 }
 0x58c   :  { %v9316_v36 = vpop.eup %8167 }
 0x58d   :  { %v1667_v17 = vsel %vm926_vm1, %v9316_v36, 0.0 }
 0x58e   :  { %1668 = vadd.xlane.f32.xlu0 %v1667_v17 }
 0x590   :  { %v9320_v29 = vpop.eup %8169 }
 0x591   :  { %v1661_v47 = vsel %vm926_vm1, %v9320_v29, 0.0 }
 0x592   :  { %1662 = vadd.xlane.f32.xlu1 %v1661_v47 }
 0x5a3   :  { %1859 = vrot.lane.b32.xlu1 %v8896_v49, %s8622_s27 }
 0x5a4   :  { %1853 = vrot.lane.b32.xlu0 %v8872_v7, %s8622_s27 }
 0x5a7   :  { %1843 = vrot.lane.b32.xlu1 %v8828_v50, %s8622_s27 }
 0x5a8   :  { %1841 = vrot.lane.b32.xlu0 %v8822_v44, %s8622_s27 }
 0x5ab   :  { %1847 = vrot.lane.b32.xlu1 %v8844_v11, %s8622_s27 }
 0x5ac   :  { %1845 = vrot.lane.b32.xlu0 %v8836_v62, %s8622_s27  ;;  %v679_v62 = vpop.f32.mrb[67].mxu0 }
 0x5ad   :  { %v9340_v42 = vpack.c.bf16 %v679_v62, %v675_v27  ;;  %v683_v34 = vpop.f32.mrb[68].mxu0 }
 0x5ae   :  { %v685_v47 = vpop.f32.mrb[69].mxu0 }
 0x5af   :  { %11211 = vst [vmem:[#allocation13_spill] sm:$0xff] %v9340_v42 }
 0x5bc   :  { %v1302_v19 = vpop.xlane.xlu0 %1301 }
 0x5c0   :  { %v1296_v25 = vpop.xlane.xlu0 %1295 }
 0x5c4   :  { %v1305_v49 = vpop.xlane.xlu1 %1304 }
 0x5c5   :  { %8171 = vrcp.f32 %v1305_v49  ;;  %v687_v49 = vpop.f32.mrb[70].mxu0 }
 0x5c6   :  { %8173 = vrcp.f32 %v1296_v25  ;;  %v9345_v55 = vpack.c.bf16 %v687_v49, %v683_v34  ;;  %v689_v60 = vpop.f32.mrb[71].mxu0 }
 0x5c7   :  { %8175 = vrcp.f32 %v1302_v19  ;;  %v9348_v62 = vpack.c.bf16 %v689_v60, %v685_v47 }
 0x5c8   :  { %v1299_v7 = vpop.xlane.xlu1 %1298 }
 0x5c9   :  { %8177 = vrcp.f32 %v1299_v7 }
 0x5cc   :  { %v1314_v50 = vpop.xlane.xlu1 %1313  ;;  %v1308_v44 = vpop.xlane.xlu0 %1307 }
 0x5cf   :  { %v8172_v35 = vpop.eup %8171 }
 0x5d0   :  { %v1317_v11 = vpop.xlane.xlu1 %1316  ;;  %v8174_v26 = vpop.eup %8173  ;;  %v1329_v25 = vmul.f32 %v8172_v35, %v9249_v39 }
 0x5d1   :  { %v8176_v17 = vpop.eup %8175  ;;  %8179 = vrcp.f32 %v1317_v11  ;;  %v1326_v9 = vmul.f32 %v8174_v26, %v9244_v38  ;;  %v693_v11 = vpop.f32.mrb[72].mxu0 }
 0x5d2   :  { %8181 = vrcp.f32 %v1308_v44  ;;  %v1328_v27 = vmul.f32 %v8176_v17, %v9238_v30  ;;  %v695_v61 = vpop.f32.mrb[73].mxu0 }
 0x5d3   :  { %v8178_v19 = vpop.eup %8177  ;;  %8183 = vrcp.f32 %v1314_v50  ;;  %v697_v44 = vpop.f32.mrb[74].mxu0 }
 0x5d4   :  { %v1311_v7 = vpop.xlane.xlu1 %1310  ;;  %v1327_v14 = vmul.f32 %v8178_v19, %v9253_v28  ;;  %v1335_v39 = vpack.c.bf16 %v1329_v25, %v1328_v27  ;;  %v9351_v50 = vpack.c.bf16 %v697_v44, %v693_v11  ;;  %v699_v38 = vpop.f32.mrb[75].mxu0 }
 0x5d5   :  { %8185 = vrcp.f32 %v1311_v7  ;;  %v9354_v28 = vpack.c.bf16 %v699_v38, %v695_v61  ;;  %v703_v35 = vpop.f32.mrb[76].mxu0 }
 0x5d6   :  { %v1334_v42 = vpack.c.bf16 %v1327_v14, %v1326_v9  ;;  %v705_v30 = vpop.f32.mrb[77].mxu0 }
 0x5d7   :  { %v707_v60 = vpop.f32.mrb[78].mxu0 }
 0x5d8   :  { %7471 = vmatprep.mubr.msk.bf16.mxu0 %vm926_vm1, %v1334_v42  ;;  %v9358_v34 = vpack.c.bf16 %v707_v60, %v703_v35  ;;  %v709_v17 = vpop.f32.mrb[79].mxu0 }
 0x5d9   :  { %7472 = vmatmul.mubr.msk.bf16.vlgmr.msra.gmra.mrb[80].mxu0 %vm926_vm1, %v1335_v39  ;;  %v9360_v47 = vpack.c.bf16 %v709_v17, %v705_v30 }
 0x5da   :  { %7496 = vmatpush3.bf16.msra.mxu0 %v9281_v5 }
 0x5db   :  { %7497 = vmatprep.subr.bf16.mxu0 %v9310_v58  ;;  %v8180_v9 = vpop.eup %8179 }
 0x5dc   :  { %v1654_v26 = vpop.xlane.xlu0 %1653  ;;  %v8182_v42 = vpop.eup %8181  ;;  %v1333_v5 = vmul.f32 %v8180_v9, %v9265_v4 }
 0x5dd   :  { %v8184_v19 = vpop.eup %8183  ;;  %v1330_v7 = vmul.f32 %v8182_v42, %v9259_v24 }
 0x5de   :  { %7498 = vmatpush3.bf16.msra.mxu0 %v9310_v58  ;;  %v1332_v27 = vmul.f32 %v8184_v19, %v9257_v37 }
 0x5df   :  { %v8186_v61 = vpop.eup %8185  ;;  %7499 = vmatprep.subr.bf16.mxu0 %v9312_v2 }
 0x5e0   :  { %v1648_v25 = vpop.xlane.xlu1 %1647  ;;  %v1657_v49 = vpop.xlane.xlu0 %1656  ;;  %v1331_v14 = vmul.f32 %v8186_v61, %v9271_v21  ;;  %v1337_v58 = vpack.c.bf16 %v1333_v5, %v1332_v27 }
 0x5e1   :  { %8187 = vrcp.f32 %v1657_v49 }
 0x5e2   :  { %7500 = vmatpush3.bf16.msra.mxu0 %v9312_v2  ;;  %v1336_v11 = vpack.c.bf16 %v1331_v14, %v1330_v7  ;;  %8189 = vrcp.f32 %v1648_v25 }
 0x5e3   :  { %7501 = vmatprep.subr.bf16.mxu0 %v9336_v45  ;;  %8191 = vrcp.f32 %v1654_v26 }
 0x5e4   :  { %v1651_v39 = vpop.xlane.xlu0 %1650  ;;  %7475 = vmatprep.mubr.msk.bf16.mxu0 %vm926_vm1, %v1336_v11 }
 0x5e5   :  { %8193 = vrcp.f32 %v1651_v39  ;;  %7476 = vmatmul.mubr.msk.bf16.gmra.mrb[84].mxu0 %vm926_vm1, %v1337_v58 }
 0x5e6   :  { %7502 = vmatpush3.bf16.msra.mxu0 %v9336_v45  ;;  %v1856_v45 = vpop.permute.xlu1 %1855 }
 0x5e7   :  { %v1877_v61 = vsel %vm836_vm0, %v1856_v45, 0 }
 0x5e8   :  { %v1666_v9 = vpop.xlane.xlu0 %1665 }
 0x5ea   :  { %v1858_v17 = vpop.permute.xlu1 %1857 }
 0x5eb   :  { %v8188_v24 = vpop.eup %8187 }
 0x5ec   :  { %v8190_v4 = vpop.eup %8189  ;;  %v1681_v2 = vmul.f32 %v8188_v24, %v9285_v12  ;;  %v1660_v26 = vpop.xlane.xlu0 %1659  ;;  %v1880_v24 = vsel %vm836_vm0, %v1858_v17, 0 }
 0x5ed   :  { %v8192_v37 = vpop.eup %8191  ;;  %v1678_v44 = vmul.f32 %v8190_v4, %v9288_v31 }
 0x5ee   :  { %v1680_v35 = vmul.f32 %v8192_v37, %v9279_v40 }
 0x5ef   :  { %v8194_v21 = vpop.eup %8193 }
 0x5f0   :  { %v1679_v38 = vmul.f32 %v8194_v21, %v9294_v41  ;;  %v1687_v60 = vpack.c.bf16 %v1681_v2, %v1680_v35 }
 0x5f2   :  { %v1686_v30 = vpack.c.bf16 %v1679_v38, %v1678_v44 }
 0x5f4   :  { %7503 = vmatprep.mubr.msk.bf16.mxu0 %vm926_vm1, %v1686_v30 }
 0x5f5   :  { %7504 = vmatmul.mubr.msk.bf16.vlgmr.msra.gmra.mrb[88].mxu0 %vm926_vm1, %v1687_v60 }
 0x61b   :  { %v1669_v42 = vpop.xlane.xlu0 %1668 }
 0x61c   :  { %8195 = vrcp.f32 %v1669_v42 }
 0x61d   :  { %8197 = vrcp.f32 %v1660_v26 }
 0x61e   :  { %8199 = vrcp.f32 %v1666_v9 }
 0x61f   :  { %v1663_v12 = vpop.xlane.xlu1 %1662  ;;  %v1854_v31 = vpop.permute.xlu0 %1853 }
 0x620   :  { %8201 = vrcp.f32 %v1663_v12  ;;  %7955 = vmatprep.subr.msk.bf16.mxu0 %vm836_vm0, %v1854_v31  ;;  %v1874_v40 = vsel %vm836_vm0, %v1854_v31, 0 }
 0x621   :  { %7512 = vmatpush3.bf16.xpose.msra.mxu0 %v1874_v40  ;;  %v7046_v40 = vld [vmem:[%s11136_s2 + $0x70] sm:$0xff]  }
 0x622   :  { %7956 = vmatprep.subr.msk.bf16.mxu0 %vm836_vm0, %v1856_v45 }
 0x623   :  { %v1842_v39 = vpop.permute.xlu0 %1841  ;;  %v1860_v4 = vpop.permute.xlu1 %1859 }
 0x626   :  { %v8196_v41 = vpop.eup %8195 }
 0x627   :  { %v8198_v19 = vpop.eup %8197  ;;  %v1685_v49 = vmul.f32 %v8196_v41, %v9316_v36  ;;  %v1846_v36 = vpop.permute.xlu0 %1845 }
 0x628   :  { %v8200_v5 = vpop.eup %8199  ;;  %v1682_v7 = vmul.f32 %v8198_v19, %v9302_v59  ;;  %v1883_v59 = vsel %vm836_vm0, %v1860_v4, 0 }
 0x629   :  { %7514 = vmatpush3.bf16.xpose.msra.mxu0 %v1877_v61  ;;  %v1684_v27 = vmul.f32 %v8200_v5, %v9298_v48  ;;  %v1844_v48 = vpop.permute.xlu1 %1843 }
 0x62a   :  { %v8202_v25 = vpop.eup %8201  ;;  %7957 = vmatprep.subr.msk.bf16.mxu0 %vm836_vm0, %v1858_v17 }
 0x62b   :  { %v1683_v14 = vmul.f32 %v8202_v25, %v9320_v29  ;;  %v1689_v58 = vpack.c.bf16 %v1685_v49, %v1684_v27  ;;  %v7045_v27 = vld [vmem:[%s11136_s2 + $0x68] sm:$0xff]  }
 0x62c   :  { %v6832_v49 = vunpack.c.h.bf16 %v7045_v27 }
 0x62d   :  { %v1688_v11 = vpack.c.bf16 %v1683_v14, %v1682_v7  ;;  %v1848_v29 = vpop.permute.xlu1 %1847 }
 0x62f   :  { %7507 = vmatprep.mubr.msk.bf16.mxu0 %vm926_vm1, %v1688_v11  ;;  %v7044_v11 = vld [vmem:[%s11136_s2 + $0x60] sm:$0xff]  }
 0x630   :  { %7508 = vmatmul.mubr.msk.bf16.gmra.mrb[92].mxu0 %vm926_vm1, %v1689_v58  ;;  %v6831_v58 = vunpack.c.l.bf16 %v7045_v27  ;;  %v6835_v27 = vunpack.c.l.bf16 %v7046_v40 }
 0x631   :  { %7516 = vmatpush3.bf16.xpose.msra.mxu0 %v1880_v24  ;;  %7519 = vmatprep.mubr.msk.bf16.mxu0 %vm836_vm0, %v1842_v39  ;;  %v6827_v39 = vunpack.c.l.bf16 %v7044_v11 }
 0x632   :  { %7958 = vmatprep.subr.msk.bf16.mxu0 %vm836_vm0, %v1860_v4  ;;  %v6828_v4 = vunpack.c.h.bf16 %v7044_v11  ;;  %v7047_v11 = vld [vmem:[%s11136_s2 + $0x78] sm:$0xff]  }
 0x633   :  { %v6839_v19 = vunpack.c.l.bf16 %v7047_v11 }
 0x639   :  { %7518 = vmatpush3.bf16.xpose.msra.mxu0 %v1883_v59 }
 0x63a   :  { %7559 = vmatprep.subr.bf16.mxu0 %v9035_v16 }
 0x640   :  { %7520 = vmatmul.mubr.msk.bf16.vlgmr.msra.gmra.mrb[96].mxu0 %vm836_vm0, %v1844_v48 }
 0x641   :  { %7523 = vmatprep.mubr.msk.bf16.mxu0 %vm836_vm0, %v1846_v36  ;;  %7560 = vmatpush3.bf16.msra.mxu0 %v9035_v16 }
 0x642   :  { %7561 = vmatprep.subr.bf16.mxu0 %v9045_v56 }
 0x645   :  { %7562 = vmatpush3.bf16.msra.mxu0 %v9045_v56 }
 0x646   :  { %7563 = vmatprep.subr.bf16.mxu0 %v9047_v15 }
 0x648   :  { %7524 = vmatmul.mubr.msk.bf16.gmra.mrb[100].mxu0 %vm836_vm0, %v1848_v29 }
 0x649   :  { %7564 = vmatpush3.bf16.msra.mxu0 %v9047_v15 }
 0x64a   :  { %7565 = vmatprep.subr.bf16.mxu0 %v9063_v51 }
 0x64d   :  { %7566 = vmatpush3.bf16.msra.mxu0 %v9063_v51 }
 0x6ac   :  { %v9405_v37 = vpop.f32.mrb[80].mxu0 }
 0x6ad   :  { %v9407_v21 = vpop.f32.mrb[81].mxu0 }
 0x6ae   :  { %v9409_v2 = vpop.f32.mrb[82].mxu0 }
 0x6af   :  { %v9413_v38 = vpop.f32.mrb[83].mxu0 }
 0x6b8   :  { %v9417_v30 = vpop.f32.mrb[84].mxu0 }
 0x6b9   :  { %11212 = vst [vmem:[#allocation14_spill] sm:$0xff] %v9417_v30  ;;  %v9419_v60 = vpop.f32.mrb[85].mxu0 }
 0x6ba   :  { %11213 = vst [vmem:[#allocation15_spill] sm:$0xff] %v9419_v60  ;;  %v9421_v9 = vpop.f32.mrb[86].mxu0 }
 0x6bb   :  { %11214 = vst [vmem:[#allocation16_spill] sm:$0xff] %v9421_v9  ;;  %v9425_v26 = vpop.f32.mrb[87].mxu0 }
 0x6bc   :  { %11215 = vst [vmem:[#allocation17_spill] sm:$0xff] %v9425_v26 }
 0x6c8   :  { %v9429_v42 = vpop.f32.mrb[88].mxu0 }
 0x6c9   :  { %11216 = vst [vmem:[#allocation18_spill] sm:$0xff] %v9429_v42  ;;  %v9431_v12 = vpop.f32.mrb[89].mxu0 }
 0x6ca   :  { %v9433_v31 = vpop.f32.mrb[90].mxu0 }
 0x6cb   :  { %11217 = vst [vmem:[#allocation19_spill] sm:$0xff] %v9433_v31  ;;  %v9437_v41 = vpop.f32.mrb[91].mxu0 }
 0x703   :  { %v9441_v61 = vpop.f32.mrb[92].mxu0 }
 0x704   :  { %11218 = vst [vmem:[#allocation20_spill] sm:$0xff] %v9441_v61  ;;  %v9443_v5 = vpop.f32.mrb[93].mxu0 }
 0x705   :  { %11219 = vst [vmem:[#allocation21_spill] sm:$0xff] %v9443_v5  ;;  %v9445_v25 = vpop.f32.mrb[94].mxu0 }
 0x706   :  { %11220 = vst [vmem:[#allocation22_spill] sm:$0xff] %v9445_v25  ;;  %v9449_v7 = vpop.f32.mrb[95].mxu0 }
 0x707   :  { %11221 = vst [vmem:[#allocation23_spill] sm:$0xff] %v9449_v7 }
 0x713   :  { %v7521_v24 = vpop.f32.mrb[96].mxu0 }
 0x714   :  { %v1928_v59 = vadd.f32 %v7521_v24, %v6831_v58  ;;  %v1919_v48 = vpop.f32.mrb[97].mxu0  ;;  %v6840_v24 = vunpack.c.h.bf16 %v7047_v11 }
 0x715   :  { %v7522_v36 = vpop.f32.mrb[98].mxu0  ;;  %v1920_v29 = vadd.f32 %v6827_v39, %v1919_v48 }
 0x716   :  { %v1922_v45 = vpop.f32.mrb[99].mxu0  ;;  %v1956_v14 = vsel %vm926_vm1, %v1928_v59, -inf  ;;  %v1931_v58 = vadd.f32 %v7522_v36, %v6832_v49 }
 0x717   :  { %v1923_v17 = vadd.f32 %v6828_v4, %v1922_v45  ;;  %1957 = vmax.xlane.f32.xlu0 %v1956_v14  ;;  %v1950_v39 = vsel %vm926_vm1, %v1920_v29, -inf  ;;  %v6836_v14 = vunpack.c.h.bf16 %v7046_v40 }
 0x718   :  { %v1959_v30 = vsel %vm926_vm1, %v1931_v58, -inf }
 0x719   :  { %v1953_v44 = vsel %vm926_vm1, %v1923_v17, -inf }
 0x71a   :  { %1954 = vmax.xlane.f32.xlu1 %v1953_v44 }
 0x71b   :  { %v7525_v48 = vpop.f32.mrb[100].mxu0  ;;  %1951 = vmax.xlane.f32.xlu0 %v1950_v39 }
 0x71c   :  { %v1935_v45 = vpop.f32.mrb[101].mxu0  ;;  %v1944_v44 = vadd.f32 %v7525_v48, %v6839_v19 }
 0x71d   :  { %v7526_v4 = vpop.f32.mrb[102].mxu0  ;;  %v1936_v35 = vadd.f32 %v6835_v27, %v1935_v45 }
 0x71e   :  { %v1947_v61 = vadd.f32 %v7526_v4, %v6840_v24  ;;  %v1938_v25 = vpop.f32.mrb[103].mxu0  ;;  %v1968_v40 = vsel %vm926_vm1, %v1944_v44, -inf }
 0x71f   :  { %1960 = vmax.xlane.f32.xlu0 %v1959_v30  ;;  %v1939_v9 = vadd.f32 %v6836_v14, %v1938_v25  ;;  %v1962_v36 = vsel %vm926_vm1, %v1936_v35, -inf }
 0x720   :  { %v1971_v49 = vsel %vm926_vm1, %v1947_v61, -inf }
 0x721   :  { %1972 = vmax.xlane.f32.xlu1 %v1971_v49  ;;  %v1965_v39 = vsel %vm926_vm1, %v1939_v9, -inf }
 0x723   :  { %1963 = vmax.xlane.f32.xlu0 %v1962_v36 }
 0x725   :  { %1966 = vmax.xlane.f32.xlu1 %v1965_v39 }
 0x727   :  { %1969 = vmax.xlane.f32.xlu0 %v1968_v40 }
 0x736   :  { %2048 = vrot.lane.b32.xlu1 %v9027_v63, %s8622_s27 }
 0x73a   :  { %2050 = vrot.lane.b32.xlu1 %v9031_v8, %s8622_s27 }
 0x7a4   :  { %v1958_v30 = vpop.xlane.xlu0 %1957 }
 0x7a5   :  { %v1976_v25 = vsub.f32 %v1928_v59, %v1958_v30 }
 0x7a7   :  { %v1986_v11 = vmul.f32 1.442695, %v1976_v25  ;;  %v1955_v27 = vpop.xlane.xlu1 %1954 }
 0x7a8   :  { %v1952_v19 = vpop.xlane.xlu0 %1951  ;;  %v1975_v48 = vsub.f32 %v1923_v17, %v1955_v27 }
 0x7a9   :  { %8203 = vpow2.f32 %v1986_v11  ;;  %v1974_v24 = vsub.f32 %v1920_v29, %v1952_v19 }
 0x7aa   :  { %v1984_v49 = vmul.f32 1.442695, %v1975_v48 }
 0x7ab   :  { %v1982_v45 = vmul.f32 1.442695, %v1974_v24 }
 0x7ac   :  { %v1961_v14 = vpop.xlane.xlu0 %1960 }
 0x7ad   :  { %8205 = vpow2.f32 %v1982_v45  ;;  %v1977_v4 = vsub.f32 %v1931_v58, %v1961_v14 }
 0x7ae   :  { %v1973_v25 = vpop.xlane.xlu1 %1972 }
 0x7af   :  { %v1988_v36 = vmul.f32 1.442695, %v1977_v4  ;;  %v1981_v45 = vsub.f32 %v1947_v61, %v1973_v25 }
 0x7b0   :  { %v1964_v30 = vpop.xlane.xlu0 %1963 }
 0x7b1   :  { %8207 = vpow2.f32 %v1988_v36  ;;  %v1978_v11 = vsub.f32 %v1936_v35, %v1964_v30 }
 0x7b2   :  { %8209 = vpow2.f32 %v1984_v49  ;;  %v1967_v48 = vpop.xlane.xlu1 %1966  ;;  %v1996_v49 = vmul.f32 1.442695, %v1981_v45 }
 0x7b3   :  { %v9477_v39 = vpop.eup %8203  ;;  %v1990_v19 = vmul.f32 1.442695, %v1978_v11  ;;  %v1979_v14 = vsub.f32 %v1939_v9, %v1967_v48 }
 0x7b4   :  { %v2004_v63 = vsel %vm926_vm1, %v9477_v39, 0.0  ;;  %v1970_v27 = vpop.xlane.xlu0 %1969 }
 0x7b5   :  { %2005 = vadd.xlane.f32.xlu0 %v2004_v63  ;;  %v1980_v24 = vsub.f32 %v1944_v44, %v1970_v27  ;;  %8211 = vpow2.f32 %v1990_v19  ;;  %v1992_v36 = vmul.f32 1.442695, %v1979_v14 }
 0x7b7   :  { %v9481_v8 = vpop.eup %8205  ;;  %v1994_v4 = vmul.f32 1.442695, %v1980_v24 }
 0x7b8   :  { %v1998_v59 = vsel %vm926_vm1, %v9481_v8, 0.0 }
 0x7b9   :  { %1999 = vadd.xlane.f32.xlu0 %v1998_v59  ;;  %8213 = vpow2.f32 %v1994_v4 }
 0x7ba   :  { %8215 = vpow2.f32 %v1996_v49 }
 0x7bb   :  { %v8208_v17 = vpop.eup %8207  ;;  %8217 = vpow2.f32 %v1992_v36 }
 0x7bc   :  { %v2007_v29 = vsel %vm926_vm1, %v8208_v17, 0.0  ;;  %v8210_v58 = vpop.eup %8209 }
 0x7bd   :  { %2008 = vadd.xlane.f32.xlu1 %v2007_v29  ;;  %v2001_v40 = vsel %vm926_vm1, %v8210_v58, 0.0  ;;  %v2049_v29 = vpop.permute.xlu1 %2048 }
 0x7c1   :  { %2002 = vadd.xlane.f32.xlu1 %v2001_v40  ;;  %v2051_v30 = vpop.permute.xlu1 %2050 }
 0x7cf   :  { %2046 = vrot.lane.b32.xlu0 %v9021_v1, %s8622_s27  ;;  %v9491_v1 = vpop.eup %8211 }
 0x7d0   :  { %v9495_v63 = vpop.eup %8213 }
 0x7d1   :  { %v9497_v35 = vpop.eup %8215  ;;  %v2016_v61 = vsel %vm926_vm1, %v9495_v63, 0.0 }
 0x7d2   :  { %2052 = vrot.lane.b32.xlu1 %v9039_v22, %s8622_s27  ;;  %v2010_v22 = vsel %vm926_vm1, %v9491_v1, 0.0  ;;  %v9501_v9 = vpop.eup %8217  ;;  %v2019_v59 = vsel %vm926_vm1, %v9497_v35, 0.0 }
 0x7d3   :  { %v2013_v44 = vsel %vm926_vm1, %v9501_v9, 0.0 }
 0x7ee   :  { %2011 = vadd.xlane.f32.xlu0 %v2010_v22 }
 0x7f2   :  { %2017 = vadd.xlane.f32.xlu0 %v2016_v61 }
 0x7f6   :  { %2014 = vadd.xlane.f32.xlu1 %v2013_v44  ;;  %2020 = vadd.xlane.f32.xlu0 %v2019_v59 }
 0x842   :  { %v2006_v40 = vpop.xlane.xlu0 %2005 }
 0x846   :  { %v2000_v25 = vpop.xlane.xlu0 %1999 }
 0x84a   :  { %v2009_v11 = vpop.xlane.xlu1 %2008  ;;  %v2047_v27 = vpop.permute.xlu0 %2046 }
 0x84b   :  { %7527 = vmatprep.subr.bf16.mxu1 %v2047_v27  ;;  %8219 = vrcp.f32 %v2009_v11 }
 0x84c   :  { %7528 = vmatpush3.bf16.msra.mxu1 %v2047_v27  ;;  %8221 = vrcp.f32 %v2000_v25 }
 0x84d   :  { %7529 = vmatprep.subr.bf16.mxu1 %v2049_v29  ;;  %8223 = vrcp.f32 %v2006_v40 }
 0x84e   :  { %v2003_v19 = vpop.xlane.xlu1 %2002 }
 0x84f   :  { %8225 = vrcp.f32 %v2003_v19 }
 0x850   :  { %7530 = vmatpush3.bf16.msra.mxu1 %v2049_v29  ;;  %v2202_v29 = vsel %vm836_vm0, %v8874_v10, 0 }
 0x851   :  { %7531 = vmatprep.subr.bf16.mxu1 %v2051_v30 }
 0x852   :  { %v2053_v24 = vpop.permute.xlu1 %2052 }
 0x854   :  { %7532 = vmatpush3.bf16.msra.mxu1 %v2051_v30 }
 0x855   :  { %7533 = vmatprep.subr.bf16.mxu1 %v2053_v24  ;;  %v8220_v48 = vpop.eup %8219 }
 0x856   :  { %v8222_v45 = vpop.eup %8221  ;;  %v2033_v49 = vmul.f32 %v8220_v48, %v8208_v17  ;;  %v2205_v17 = vsel %vm836_vm0, %v8882_v20, 0 }
 0x857   :  { %v8224_v14 = vpop.eup %8223  ;;  %v2030_v36 = vmul.f32 %v8222_v45, %v9481_v8  ;;  %v2211_v8 = vsel %vm836_vm0, %v8898_v54, 0 }
 0x858   :  { %7534 = vmatpush3.bf16.msra.mxu1 %v2053_v24  ;;  %v2032_v61 = vmul.f32 %v8224_v14, %v9477_v39  ;;  %v2208_v39 = vsel %vm836_vm0, %v8890_v33, 0 }
 0x859   :  { %v8226_v4 = vpop.eup %8225  ;;  %7959 = vmatprep.subr.msk.bf16.mxu1 %vm836_vm0, %v8874_v10 }
 0x85a   :  { %v2031_v22 = vmul.f32 %v8226_v4, %v8210_v58  ;;  %v2039_v59 = vpack.c.bf16 %v2033_v49, %v2032_v61 }
 0x85c   :  { %v2038_v44 = vpack.c.bf16 %v2031_v22, %v2030_v36 }
 0x85e   :  { %7535 = vmatprep.mubr.msk.bf16.mxu1 %vm926_vm1, %v2038_v44 }
 0x85f   :  { %7536 = vmatmul.mubr.msk.bf16.vlgmr.msra.gmra.mrb[48].mxu1 %vm926_vm1, %v2039_v59 }
 0x861   :  { %7544 = vmatpush3.bf16.xpose.msra.mxu1 %v2202_v29 }
 0x862   :  { %7960 = vmatprep.subr.msk.bf16.mxu1 %vm836_vm0, %v8882_v20 }
 0x869   :  { %7546 = vmatpush3.bf16.xpose.msra.mxu1 %v2205_v17 }
 0x86a   :  { %7961 = vmatprep.subr.msk.bf16.mxu1 %vm836_vm0, %v8890_v33 }
 0x871   :  { %7548 = vmatpush3.bf16.xpose.msra.mxu1 %v2208_v39 }
 0x872   :  { %7962 = vmatprep.subr.msk.bf16.mxu1 %vm836_vm0, %v8898_v54 }
 0x879   :  { %7550 = vmatpush3.bf16.xpose.msra.mxu1 %v2211_v8  ;;  %v7048_v8 = vld [vmem:[%s11136_s2 + $0x80] sm:$0xff]  }
 0x87b   :  { %v2012_v58 = vpop.xlane.xlu0 %2011 }
 0x87c   :  { %8227 = vrcp.f32 %v2012_v58  ;;  %v7051_v58 = vld [vmem:[%s11136_s2 + $0x98] sm:$0xff]  }
 0x87f   :  { %v2018_v40 = vpop.xlane.xlu0 %2017 }
 0x880   :  { %8229 = vrcp.f32 %v2018_v40  ;;  %v7049_v40 = vld [vmem:[%s11136_s2 + $0x88] sm:$0xff]  }
 0x883   :  { %v2015_v30 = vpop.xlane.xlu1 %2014  ;;  %v2021_v25 = vpop.xlane.xlu0 %2020 }
 0x884   :  { %8231 = vrcp.f32 %v2015_v30  ;;  %v6843_v30 = vunpack.c.l.bf16 %v7048_v8 }
 0x885   :  { %8233 = vrcp.f32 %v2021_v25  ;;  %v6847_v25 = vunpack.c.l.bf16 %v7049_v40 }
 0x886   :  { %v8228_v11 = vpop.eup %8227 }
 0x887   :  { %v2034_v48 = vmul.f32 %v8228_v11, %v9491_v1 }
 0x88a   :  { %v8230_v27 = vpop.eup %8229 }
 0x88b   :  { %v2036_v14 = vmul.f32 %v8230_v27, %v9495_v63  ;;  %v6844_v27 = vunpack.c.h.bf16 %v7048_v8 }
 0x88e   :  { %v8232_v19 = vpop.eup %8231 }
 0x88f   :  { %v8234_v24 = vpop.eup %8233  ;;  %v2035_v45 = vmul.f32 %v8232_v19, %v9501_v9 }
 0x890   :  { %v2037_v4 = vmul.f32 %v8234_v24, %v9497_v35 }
 0x891   :  { %v2040_v49 = vpack.c.bf16 %v2035_v45, %v2034_v48  ;;  %v6848_v48 = vunpack.c.h.bf16 %v7049_v40  ;;  %v6855_v40 = vunpack.c.l.bf16 %v7051_v58 }
 0x892   :  { %v2041_v36 = vpack.c.bf16 %v2037_v4, %v2036_v14  ;;  %v7050_v4 = vld [vmem:[%s11136_s2 + $0x90] sm:$0xff]  }
 0x893   :  { %7539 = vmatprep.mubr.msk.bf16.mxu1 %vm926_vm1, %v2040_v49 }
 0x894   :  { %7540 = vmatmul.mubr.msk.bf16.gmra.mrb[52].mxu1 %vm926_vm1, %v2041_v36 }
 0x895   :  { %7551 = vmatprep.mubr.msk.bf16.mxu1 %vm836_vm0, %v8824_v46 }
 0x89c   :  { %7552 = vmatmul.mubr.msk.bf16.vlgmr.msra.gmra.mrb[56].mxu1 %vm836_vm0, %v8830_v52 }
 0x89d   :  { %7555 = vmatprep.mubr.msk.bf16.mxu1 %vm836_vm0, %v8838_v0 }
 0x8a4   :  { %7556 = vmatmul.mubr.msk.bf16.gmra.mrb[60].mxu1 %vm836_vm0, %v8846_v13 }
 0x932   :  { %v9541_v1 = vpop.f32.mrb[48].mxu1 }
 0x933   :  { %11222 = vst [vmem:[#allocation24_spill] sm:$0xff] %v9541_v1  ;;  %v9543_v63 = vpop.f32.mrb[49].mxu1 }
 0x934   :  { %v9545_v35 = vpop.f32.mrb[50].mxu1 }
 0x935   :  { %11223 = vst [vmem:[#allocation25_spill] sm:$0xff] %v9545_v35  ;;  %v9549_v22 = vpop.f32.mrb[51].mxu1 }
 0x967   :  { %v9553_v44 = vpop.f32.mrb[52].mxu1 }
 0x968   :  { %11224 = vst [vmem:[#allocation26_spill] sm:$0xff] %v9553_v44  ;;  %v9555_v59 = vpop.f32.mrb[53].mxu1  ;;  %v6852_v44 = vunpack.c.h.bf16 %v7050_v4 }
 0x969   :  { %11225 = vst [vmem:[#allocation27_spill] sm:$0xff] %v9555_v59  ;;  %v9557_v29 = vpop.f32.mrb[54].mxu1 }
 0x96a   :  { %11226 = vst [vmem:[#allocation28_spill] sm:$0xff] %v9557_v29  ;;  %v9561_v39 = vpop.f32.mrb[55].mxu1 }
 0x96b   :  { %11227 = vst [vmem:[#allocation29_spill] sm:$0xff] %v9561_v39 }
 0x96f   :  { %v7553_v11 = vpop.f32.mrb[56].mxu1 }
 0x970   :  { %v2247_v19 = vpop.f32.mrb[57].mxu1  ;;  %v2256_v49 = vadd.f32 %v7553_v11, %v6847_v25  ;;  %v6856_v11 = vunpack.c.h.bf16 %v7051_v58 }
 0x971   :  { %v2248_v24 = vadd.f32 %v6843_v30, %v2247_v19  ;;  %v7554_v45 = vpop.f32.mrb[58].mxu1  ;;  %v6851_v30 = vunpack.c.l.bf16 %v7050_v4 }
 0x972   :  { %v2250_v14 = vpop.f32.mrb[59].mxu1  ;;  %v2259_v9 = vadd.f32 %v7554_v45, %v6848_v48  ;;  %v2284_v61 = vsel %vm926_vm1, %v2256_v49, -inf }
 0x973   :  { %v2251_v36 = vadd.f32 %v6844_v27, %v2250_v14  ;;  %v2278_v17 = vsel %vm926_vm1, %v2248_v24, -inf }
 0x974   :  { %2279 = vmax.xlane.f32.xlu0 %v2278_v17  ;;  %v2287_v17 = vsel %vm926_vm1, %v2259_v9, -inf }
 0x975   :  { %v2281_v8 = vsel %vm926_vm1, %v2251_v36, -inf }
 0x976   :  { %2282 = vmax.xlane.f32.xlu1 %v2281_v8 }
 0x977   :  { %v7557_v19 = vpop.f32.mrb[60].mxu1 }
 0x978   :  { %v2263_v29 = vpop.f32.mrb[61].mxu1  ;;  %2285 = vmax.xlane.f32.xlu0 %v2284_v61  ;;  %v2272_v59 = vadd.f32 %v7557_v19, %v6855_v40 }
 0x979   :  { %v2264_v25 = vadd.f32 %v6851_v30, %v2263_v29  ;;  %v7558_v27 = vpop.f32.mrb[62].mxu1 }
 0x97a   :  { %v2266_v14 = vpop.f32.mrb[63].mxu1  ;;  %2288 = vmax.xlane.f32.xlu1 %v2287_v17  ;;  %v2275_v8 = vadd.f32 %v7558_v27, %v6856_v11  ;;  %v2296_v4 = vsel %vm926_vm1, %v2272_v59, -inf }
 0x97b   :  { %v2267_v48 = vadd.f32 %v6852_v44, %v2266_v14  ;;  %v2290_v45 = vsel %vm926_vm1, %v2264_v25, -inf }
 0x97c   :  { %2291 = vmax.xlane.f32.xlu0 %v2290_v45  ;;  %v2299_v61 = vsel %vm926_vm1, %v2275_v8, -inf }
 0x97d   :  { %v2293_v39 = vsel %vm926_vm1, %v2267_v48, -inf }
 0x97e   :  { %2294 = vmax.xlane.f32.xlu1 %v2293_v39 }
 0x980   :  { %2297 = vmax.xlane.f32.xlu0 %v2296_v4 }
 0x982   :  { %2300 = vmax.xlane.f32.xlu1 %v2299_v61 }
 0xa01   :  { %v2280_v29 = vpop.xlane.xlu0 %2279 }
 0xa02   :  { %v2302_v58 = vsub.f32 %v2248_v24, %v2280_v29 }
 0xa03   :  { %v2283_v30 = vpop.xlane.xlu1 %2282 }
 0xa04   :  { %v2303_v17 = vsub.f32 %v2251_v36, %v2283_v30  ;;  %v2310_v44 = vmul.f32 1.442695, %v2302_v58 }
 0xa05   :  { %v2286_v5 = vpop.xlane.xlu0 %2285 }
 0xa06   :  { %v2304_v40 = vsub.f32 %v2256_v49, %v2286_v5  ;;  %v2312_v27 = vmul.f32 1.442695, %v2303_v17 }
 0xa07   :  { %v2289_v19 = vpop.xlane.xlu1 %2288 }
 0xa08   :  { %v2314_v14 = vmul.f32 1.442695, %v2304_v40  ;;  %v2305_v45 = vsub.f32 %v2259_v9, %v2289_v19 }
 0xa09   :  { %v2292_v11 = vpop.xlane.xlu0 %2291 }
 0xa0a   :  { %8235 = vpow2.f32 %v2314_v14  ;;  %v2316_v39 = vmul.f32 1.442695, %v2305_v45  ;;  %v2306_v4 = vsub.f32 %v2264_v25, %v2292_v11 }
 0xa0b   :  { %8237 = vpow2.f32 %v2310_v44  ;;  %v2295_v40 = vpop.xlane.xlu1 %2294 }
 0xa0c   :  { %8239 = vpow2.f32 %v2316_v39  ;;  %v2318_v60 = vmul.f32 1.442695, %v2306_v4  ;;  %v2307_v14 = vsub.f32 %v2267_v48, %v2295_v40 }
 0xa0d   :  { %v2298_v7 = vpop.xlane.xlu0 %2297  ;;  %8241 = vpow2.f32 %v2312_v27 }
 0xa0e   :  { %v2308_v61 = vsub.f32 %v2272_v59, %v2298_v7  ;;  %v2320_v11 = vmul.f32 1.442695, %v2307_v14 }
 0xa0f   :  { %v2301_v44 = vpop.xlane.xlu1 %2300 }
 0xa10   :  { %v2322_v24 = vmul.f32 1.442695, %v2308_v61  ;;  %v2309_v19 = vsub.f32 %v2275_v8, %v2301_v44 }
 0xa12   :  { %8243 = vpow2.f32 %v2322_v24  ;;  %v2324_v45 = vmul.f32 1.442695, %v2309_v19 }
 0xa13   :  { %8245 = vpow2.f32 %v2318_v60 }
 0xa14   :  { %v8236_v29 = vpop.eup %8235  ;;  %8247 = vpow2.f32 %v2324_v45 }
 0xa15   :  { %v8238_v5 = vpop.eup %8237  ;;  %v2332_v49 = vsel %vm926_vm1, %v8236_v29, 0.0  ;;  %8249 = vpow2.f32 %v2320_v11 }
 0xa16   :  { %v8240_v36 = vpop.eup %8239  ;;  %2333 = vadd.xlane.f32.xlu0 %v2332_v49  ;;  %v2326_v30 = vsel %vm926_vm1, %v8238_v5, 0.0 }
 0xa17   :  { %v2335_v9 = vsel %vm926_vm1, %v8240_v36, 0.0  ;;  %v8242_v58 = vpop.eup %8241 }
 0xa18   :  { %2336 = vadd.xlane.f32.xlu1 %v2335_v9  ;;  %v2329_v25 = vsel %vm926_vm1, %v8242_v58, 0.0 }
 0xa1a   :  { %2327 = vadd.xlane.f32.xlu0 %v2326_v30 }
 0xa1c   :  { %v9589_v7 = vpop.eup %8243  ;;  %2330 = vadd.xlane.f32.xlu1 %v2329_v25 }
 0xa1d   :  { %v2344_v60 = vsel %vm926_vm1, %v9589_v7, 0.0  ;;  %v9593_v59 = vpop.eup %8245 }
 0xa1e   :  { %2345 = vadd.xlane.f32.xlu0 %v2344_v60  ;;  %v2338_v17 = vsel %vm926_vm1, %v9593_v59, 0.0  ;;  %v8248_v27 = vpop.eup %8247 }
 0xa1f   :  { %v2347_v39 = vsel %vm926_vm1, %v8248_v27, 0.0  ;;  %v8250_v4 = vpop.eup %8249 }
 0xa20   :  { %v2341_v61 = vsel %vm926_vm1, %v8250_v4, 0.0 }
 0xa22   :  { %2339 = vadd.xlane.f32.xlu0 %v2338_v17 }
 0xa2d   :  { %2502 = vrot.lane.b32.xlu1 %v8882_v20, %s8620_s10 }
 0xa31   :  { %2504 = vrot.lane.b32.xlu1 %v8890_v33, %s8620_s10 }
 0xa38   :  { %2500 = vrot.lane.b32.xlu0 %v8874_v10, %s8620_s10 }
 0xa3c   :  { %2488 = vrot.lane.b32.xlu0 %v8824_v46, %s8620_s10 }
 0xa40   :  { %2492 = vrot.lane.b32.xlu0 %v8838_v0, %s8620_s10 }
 0xa55   :  { %2348 = vadd.xlane.f32.xlu1 %v2347_v39 }
 0xa59   :  { %2342 = vadd.xlane.f32.xlu1 %v2341_v61 }
 0xa6a   :  { %2506 = vrot.lane.b32.xlu1 %v8898_v54, %s8620_s10 }
 0xa6e   :  { %2490 = vrot.lane.b32.xlu1 %v8830_v52, %s8620_s10 }
 0xa72   :  { %2494 = vrot.lane.b32.xlu1 %v8846_v13, %s8620_s10 }
 0xaa3   :  { %v2334_v48 = vpop.xlane.xlu0 %2333 }
 0xaa5   :  { %v2337_v8 = vpop.xlane.xlu1 %2336 }
 0xaa6   :  { %8251 = vrcp.f32 %v2337_v8 }
 0xaa7   :  { %v2328_v24 = vpop.xlane.xlu0 %2327 }
 0xaa8   :  { %8253 = vrcp.f32 %v2328_v24 }
 0xaa9   :  { %8255 = vrcp.f32 %v2334_v48  ;;  %v2331_v49 = vpop.xlane.xlu1 %2330 }
 0xaaa   :  { %8257 = vrcp.f32 %v2331_v49 }
 0xaab   :  { %v2346_v9 = vpop.xlane.xlu0 %2345 }
 0xaad   :  { %v2503_v8 = vpop.permute.xlu1 %2502 }
 0xaae   :  { %v2524_v24 = vsel %vm836_vm0, %v2503_v8, 0 }
 0xaaf   :  { %v2340_v30 = vpop.xlane.xlu0 %2339 }
 0xab0   :  { %v8252_v25 = vpop.eup %8251 }
 0xab1   :  { %v2361_v19 = vmul.f32 %v8252_v25, %v8240_v36  ;;  %v2505_v36 = vpop.permute.xlu1 %2504 }
 0xab2   :  { %v8254_v60 = vpop.eup %8253 }
 0xab3   :  { %v8256_v17 = vpop.eup %8255  ;;  %v2501_v40 = vpop.permute.xlu0 %2500  ;;  %v2358_v14 = vmul.f32 %v8254_v60, %v8238_v5 }
 0xab4   :  { %v8258_v44 = vpop.eup %8257  ;;  %7963 = vmatprep.subr.msk.bf16.mxu0 %vm836_vm0, %v2501_v40  ;;  %v2360_v11 = vmul.f32 %v8256_v17, %v8236_v29  ;;  %v2521_v48 = vsel %vm836_vm0, %v2501_v40, 0  ;;  %v2527_v29 = vsel %vm836_vm0, %v2505_v36, 0 }
 0xab5   :  { %v2359_v45 = vmul.f32 %v8258_v44, %v8242_v58 }
 0xab6   :  { %v2367_v61 = vpack.c.bf16 %v2361_v19, %v2360_v11 }
 0xab7   :  { %v2366_v39 = vpack.c.bf16 %v2359_v45, %v2358_v14 }
 0xab9   :  { %7567 = vmatprep.mubr.msk.bf16.mxu0 %vm926_vm1, %v2366_v39  ;;  %v2489_v39 = vpop.permute.xlu0 %2488 }
 0xaba   :  { %7568 = vmatmul.mubr.msk.bf16.vlgmr.msra.gmra.mrb[104].mxu0 %vm926_vm1, %v2367_v61 }
 0xabb   :  { %7576 = vmatpush3.bf16.xpose.msra.mxu0 %v2521_v48 }
 0xabc   :  { %7964 = vmatprep.subr.msk.bf16.mxu0 %vm836_vm0, %v2503_v8 }
 0xabd   :  { %v2493_v48 = vpop.permute.xlu0 %2492 }
 0xac3   :  { %7578 = vmatpush3.bf16.xpose.msra.mxu0 %v2524_v24 }
 0xac4   :  { %7965 = vmatprep.subr.msk.bf16.mxu0 %vm836_vm0, %v2505_v36 }
 0xacb   :  { %7580 = vmatpush3.bf16.xpose.msra.mxu0 %v2527_v29 }
 0xae2   :  { %v2349_v5 = vpop.xlane.xlu1 %2348 }
 0xae3   :  { %8259 = vrcp.f32 %v2349_v5 }
 0xae4   :  { %8261 = vrcp.f32 %v2340_v30 }
 0xae5   :  { %8263 = vrcp.f32 %v2346_v9 }
 0xae6   :  { %v2343_v58 = vpop.xlane.xlu1 %2342 }
 0xae7   :  { %8265 = vrcp.f32 %v2343_v58 }
 0xaea   :  { %v2507_v49 = vpop.permute.xlu1 %2506 }
 0xaeb   :  { %7966 = vmatprep.subr.msk.bf16.mxu0 %vm836_vm0, %v2507_v49  ;;  %v2530_v25 = vsel %vm836_vm0, %v2507_v49, 0  ;;  %v7053_v49 = vld [vmem:[%s11136_s2 + $0xa8] sm:$0xff]  }
 0xaec   :  { %7582 = vmatpush3.bf16.xpose.msra.mxu0 %v2530_v25 }
 0xaed   :  { %v8260_v60 = vpop.eup %8259 }
 0xaee   :  { %v8262_v17 = vpop.eup %8261  ;;  %v2365_v19 = vmul.f32 %v8260_v60, %v8248_v27  ;;  %v2491_v61 = vpop.permute.xlu1 %2490 }
 0xaef   :  { %v8264_v40 = vpop.eup %8263  ;;  %v2362_v14 = vmul.f32 %v8262_v17, %v9593_v59 }
 0xaf0   :  { %v2364_v11 = vmul.f32 %v8264_v40, %v9589_v7  ;;  %v7052_v40 = vld [vmem:[%s11136_s2 + $0xa0] sm:$0xff]  }
 0xaf1   :  { %v8266_v44 = vpop.eup %8265 }
 0xaf2   :  { %v2363_v45 = vmul.f32 %v8266_v44, %v8250_v4  ;;  %v2369_v9 = vpack.c.bf16 %v2365_v19, %v2364_v11  ;;  %v2495_v27 = vpop.permute.xlu1 %2494  ;;  %v6863_v44 = vunpack.c.l.bf16 %v7053_v49  ;;  %v6859_v19 = vunpack.c.l.bf16 %v7052_v40 }
 0xaf4   :  { %v2368_v30 = vpack.c.bf16 %v2363_v45, %v2362_v14  ;;  %v6860_v45 = vunpack.c.h.bf16 %v7052_v40 }
 0xaf6   :  { %7571 = vmatprep.mubr.msk.bf16.mxu0 %vm926_vm1, %v2368_v30 }
 0xaf7   :  { %7572 = vmatmul.mubr.msk.bf16.gmra.mrb[108].mxu0 %vm926_vm1, %v2369_v9 }
 0xaf8   :  { %7583 = vmatprep.mubr.msk.bf16.mxu0 %vm836_vm0, %v2489_v39 }
 0xaff   :  { %7584 = vmatmul.mubr.msk.bf16.vlgmr.msra.gmra.mrb[112].mxu0 %vm836_vm0, %v2491_v61  ;;  %v6864_v61 = vunpack.c.h.bf16 %v7053_v49 }
 0xb00   :  { %7587 = vmatprep.mubr.msk.bf16.mxu0 %vm836_vm0, %v2493_v48 }
 0xb07   :  { %7588 = vmatmul.mubr.msk.bf16.gmra.mrb[116].mxu0 %vm836_vm0, %v2495_v27 }
 0xb8d   :  { %v7569_v59 = vpop.f32.mrb[104].mxu0 }
 0xb8e   :  { %v2416_v7 = vpop.f32.mrb[105].mxu0 }
 0xb8f   :  { %v7570_v4 = vpop.f32.mrb[106].mxu0 }
 0xb90   :  { %v2448_v8 = vpack.c.bf16 %v7570_v4, %v7569_v59  ;;  %v2419_v24 = vpop.f32.mrb[107].mxu0 }
 0xb91   :  { %v2447_v36 = vpack.c.bf16 %v2419_v24, %v2416_v7  ;;  %v7055_v7 = vld [vmem:[%s11136_s2 + $0xb8] sm:$0xff]  }
 0xb92   :  { %2452 = vst.msk [vmem:[#allocation3 + $0x18] sm:$0xff] %vm836_vm0, %v2448_v8 }
 0xb93   :  { %2451 = vst.msk [vmem:[#allocation3 + $0x8] sm:$0xff] %vm836_vm0, %v2447_v36  ;;  %v6871_v36 = vunpack.c.l.bf16 %v7055_v7 }
 0xbca   :  { %v7573_v29 = vpop.f32.mrb[108].mxu0 }
 0xbcb   :  { %v2432_v5 = vpop.f32.mrb[109].mxu0 }
 0xbcc   :  { %v7574_v58 = vpop.f32.mrb[110].mxu0 }
 0xbcd   :  { %v2450_v25 = vpack.c.bf16 %v7574_v58, %v7573_v29  ;;  %v2435_v60 = vpop.f32.mrb[111].mxu0 }
 0xbce   :  { %v2449_v17 = vpack.c.bf16 %v2435_v60, %v2432_v5  ;;  %v7054_v5 = vld [vmem:[%s11136_s2 + $0xb0] sm:$0xff]  }
 0xbcf   :  { %2454 = vst.msk [vmem:[#allocation3 + $0x38] sm:$0xff] %vm836_vm0, %v2450_v25  ;;  %v6867_v60 = vunpack.c.l.bf16 %v7054_v5 }
 0xbd0   :  { %2453 = vst.msk [vmem:[#allocation3 + $0x28] sm:$0xff] %vm836_vm0, %v2449_v17 }
 0xbd2   :  { %v7585_v14 = vpop.f32.mrb[112].mxu0 }
 0xbd3   :  { %v2575_v11 = vadd.f32 %v7585_v14, %v6863_v44  ;;  %v2566_v30 = vpop.f32.mrb[113].mxu0 }
 0xbd4   :  { %v7586_v9 = vpop.f32.mrb[114].mxu0  ;;  %v2567_v39 = vadd.f32 %v6859_v19, %v2566_v30 }
 0xbd5   :  { %v2569_v48 = vpop.f32.mrb[115].mxu0  ;;  %v2603_v27 = vsel %vm926_vm1, %v2575_v11, -inf  ;;  %v2578_v8 = vadd.f32 %v7586_v9, %v6864_v61  ;;  %v6868_v9 = vunpack.c.h.bf16 %v7054_v5 }
 0xbd6   :  { %v2570_v59 = vadd.f32 %v6860_v45, %v2569_v48  ;;  %2604 = vmax.xlane.f32.xlu0 %v2603_v27  ;;  %v2597_v24 = vsel %vm926_vm1, %v2567_v39, -inf  ;;  %v6872_v45 = vunpack.c.h.bf16 %v7055_v7 }
 0xbd7   :  { %v2606_v40 = vsel %vm926_vm1, %v2578_v8, -inf }
 0xbd8   :  { %v2600_v4 = vsel %vm926_vm1, %v2570_v59, -inf }
 0xbd9   :  { %2601 = vmax.xlane.f32.xlu1 %v2600_v4 }
 0xbda   :  { %2598 = vmax.xlane.f32.xlu0 %v2597_v24  ;;  %v7589_v29 = vpop.f32.mrb[116].mxu0 }
 0xbdb   :  { %v2582_v58 = vpop.f32.mrb[117].mxu0  ;;  %v2591_v25 = vadd.f32 %v7589_v29, %v6871_v36 }
 0xbdc   :  { %v7590_v49 = vpop.f32.mrb[118].mxu0  ;;  %v2583_v44 = vadd.f32 %v6867_v60, %v2582_v58 }
 0xbdd   :  { %v2585_v17 = vpop.f32.mrb[119].mxu0  ;;  %v2615_v19 = vsel %vm926_vm1, %v2591_v25, -inf  ;;  %v9661_v30 = vadd.f32 %v7590_v49, %v6872_v45 }
 0xbde   :  { %2607 = vmax.xlane.f32.xlu0 %v2606_v40  ;;  %v2609_v14 = vsel %vm926_vm1, %v2583_v44, -inf  ;;  %v9663_v61 = vadd.f32 %v6868_v9, %v2585_v17 }
 0xbdf   :  { %v2618_v48 = vsel %vm926_vm1, %v9661_v30, -inf }
 0xbe0   :  { %v2612_v27 = vsel %vm926_vm1, %v9663_v61, -inf }
 0xbe2   :  { %2616 = vmax.xlane.f32.xlu0 %v2615_v19 }
 0xbe6   :  { %2610 = vmax.xlane.f32.xlu0 %v2609_v14 }
 0xbea   :  { %2695 = vrot.lane.b32.xlu1 %v9045_v56, %s8620_s10 }
 0xbee   :  { %2697 = vrot.lane.b32.xlu1 %v9047_v15, %s8620_s10 }
 0xbfc   :  { %2693 = vrot.lane.b32.xlu0 %v9035_v16, %s8620_s10 }
 0xc12   :  { %2619 = vmax.xlane.f32.xlu1 %v2618_v48 }
 0xc16   :  { %2613 = vmax.xlane.f32.xlu1 %v2612_v27 }
 0xc27   :  { %2699 = vrot.lane.b32.xlu1 %v9063_v51, %s8620_s10 }
 0xc63   :  { %v2605_v4 = vpop.xlane.xlu0 %2604 }
 0xc64   :  { %v2623_v24 = vsub.f32 %v2575_v11, %v2605_v4 }
 0xc66   :  { %v2633_v36 = vmul.f32 1.442695, %v2623_v24  ;;  %v2602_v7 = vpop.xlane.xlu1 %2601 }
 0xc67   :  { %v2599_v29 = vpop.xlane.xlu0 %2598  ;;  %v2622_v58 = vsub.f32 %v2570_v59, %v2602_v7 }
 0xc68   :  { %8267 = vpow2.f32 %v2633_v36  ;;  %v2621_v5 = vsub.f32 %v2567_v39, %v2599_v29 }
 0xc69   :  { %v2631_v40 = vmul.f32 1.442695, %v2622_v58 }
 0xc6a   :  { %v2629_v49 = vmul.f32 1.442695, %v2621_v5 }
 0xc6b   :  { %v2608_v60 = vpop.xlane.xlu0 %2607 }
 0xc6c   :  { %8269 = vpow2.f32 %v2629_v49  ;;  %v2624_v17 = vsub.f32 %v2578_v8, %v2608_v60  ;;  %v2696_v8 = vpop.permute.xlu1 %2695 }
 0xc6e   :  { %v2635_v19 = vmul.f32 1.442695, %v2624_v17 }
 0xc6f   :  { %v2617_v14 = vpop.xlane.xlu0 %2616 }
 0xc70   :  { %8271 = vpow2.f32 %v2635_v19  ;;  %v2627_v45 = vsub.f32 %v2591_v25, %v2617_v14 }
 0xc71   :  { %8273 = vpow2.f32 %v2631_v40 }
 0xc72   :  { %v9671_v9 = vpop.eup %8267  ;;  %v2641_v48 = vmul.f32 1.442695, %v2627_v45 }
 0xc73   :  { %v2611_v11 = vpop.xlane.xlu0 %2610  ;;  %v2651_v27 = vsel %vm926_vm1, %v9671_v9, 0.0 }
 0xc74   :  { %8275 = vpow2.f32 %v2641_v48  ;;  %v2625_v39 = vsub.f32 %v2583_v44, %v2611_v11  ;;  %2652 = vadd.xlane.f32.xlu0 %v2651_v27  ;;  %v2698_v44 = vpop.permute.xlu1 %2697 }
 0xc76   :  { %v9675_v59 = vpop.eup %8269  ;;  %v2637_v4 = vmul.f32 1.442695, %v2625_v39 }
 0xc77   :  { %v2694_v24 = vpop.permute.xlu0 %2693  ;;  %v2645_v36 = vsel %vm926_vm1, %v9675_v59, 0.0 }
 0xc78   :  { %8277 = vpow2.f32 %v2637_v4  ;;  %2646 = vadd.xlane.f32.xlu0 %v2645_v36  ;;  %7591 = vmatprep.subr.bf16.mxu1 %v2694_v24 }
 0xc79   :  { %7592 = vmatpush3.bf16.msra.mxu1 %v2694_v24 }
 0xc7a   :  { %v8272_v25 = vpop.eup %8271  ;;  %7593 = vmatprep.subr.bf16.mxu1 %v2696_v8 }
 0xc7b   :  { %v2654_v7 = vsel %vm926_vm1, %v8272_v25, 0.0  ;;  %v8274_v29 = vpop.eup %8273 }
 0xc7c   :  { %2655 = vadd.xlane.f32.xlu1 %v2654_v7  ;;  %v2648_v58 = vsel %vm926_vm1, %v8274_v29, 0.0 }
 0xc7d   :  { %7594 = vmatpush3.bf16.msra.mxu1 %v2696_v8 }
 0xc7e   :  { %v9680_v5 = vpop.eup %8275  ;;  %7595 = vmatprep.subr.bf16.mxu1 %v2698_v44 }
 0xc7f   :  { %v2663_v49 = vsel %vm926_vm1, %v9680_v5, 0.0 }
 0xc80   :  { %2649 = vadd.xlane.f32.xlu1 %v2648_v58  ;;  %2664 = vadd.xlane.f32.xlu0 %v2663_v49 }
 0xc81   :  { %7596 = vmatpush3.bf16.msra.mxu1 %v2698_v44 }
 0xc82   :  { %v9685_v60 = vpop.eup %8277 }
 0xc83   :  { %v2657_v17 = vsel %vm926_vm1, %v9685_v60, 0.0 }
 0xc84   :  { %2658 = vadd.xlane.f32.xlu0 %v2657_v17 }
 0xc91   :  { %2853 = vrot.lane.b32.xlu1 %v8882_v20, %s8621_s11 }
 0xc95   :  { %2855 = vrot.lane.b32.xlu1 %v8890_v33, %s8621_s11 }
 0xc9f   :  { %v2620_v40 = vpop.xlane.xlu1 %2619 }
 0xca0   :  { %v2628_v19 = vsub.f32 %v9661_v30, %v2620_v40 }
 0xca2   :  { %v2643_v14 = vmul.f32 1.442695, %v2628_v19 }
 0xca3   :  { %v2614_v45 = vpop.xlane.xlu1 %2613 }
 0xca4   :  { %8279 = vpow2.f32 %v2643_v14  ;;  %v2626_v48 = vsub.f32 %v9663_v61, %v2614_v45 }
 0xca6   :  { %v2639_v11 = vmul.f32 1.442695, %v2626_v48 }
 0xca7   :  { %v2700_v27 = vpop.permute.xlu1 %2699 }
 0xca8   :  { %7597 = vmatprep.subr.bf16.mxu1 %v2700_v27  ;;  %8281 = vpow2.f32 %v2639_v11 }
 0xca9   :  { %7598 = vmatpush3.bf16.msra.mxu1 %v2700_v27 }
 0xcae   :  { %v8280_v39 = vpop.eup %8279 }
 0xcaf   :  { %v2666_v4 = vsel %vm926_vm1, %v8280_v39, 0.0 }
 0xcb0   :  { %2667 = vadd.xlane.f32.xlu0 %v2666_v4 }
 0xcb2   :  { %v8282_v8 = vpop.eup %8281 }
 0xcb3   :  { %v2660_v24 = vsel %vm926_vm1, %v8282_v8, 0.0 }
 0xcb9   :  { %2661 = vadd.xlane.f32.xlu1 %v2660_v24 }
 0xcc6   :  { %2851 = vrot.lane.b32.xlu0 %v8874_v10, %s8621_s11 }
 0xcca   :  { %2857 = vrot.lane.b32.xlu1 %v8898_v54, %s8621_s11  ;;  %2839 = vrot.lane.b32.xlu0 %v8824_v46, %s8621_s11 }
 0xcce   :  { %2841 = vrot.lane.b32.xlu1 %v8830_v52, %s8621_s11  ;;  %2843 = vrot.lane.b32.xlu0 %v8838_v0, %s8621_s11 }
 0xcd2   :  { %2845 = vrot.lane.b32.xlu1 %v8846_v13, %s8621_s11 }
 0xd01   :  { %v2653_v30 = vpop.xlane.xlu0 %2652 }
 0xd05   :  { %v2647_v61 = vpop.xlane.xlu0 %2646 }
 0xd09   :  { %v2656_v36 = vpop.xlane.xlu1 %2655 }
 0xd0a   :  { %8283 = vrcp.f32 %v2656_v36 }
 0xd0b   :  { %8285 = vrcp.f32 %v2647_v61 }
 0xd0c   :  { %8287 = vrcp.f32 %v2653_v30 }
 0xd0d   :  { %v2650_v7 = vpop.xlane.xlu1 %2649  ;;  %v2665_v27 = vpop.xlane.xlu0 %2664 }
 0xd0e   :  { %8289 = vrcp.f32 %v2650_v7 }
 0xd11   :  { %v2659_v4 = vpop.xlane.xlu0 %2658  ;;  %v2854_v24 = vpop.permute.xlu1 %2853 }
 0xd14   :  { %v8284_v44 = vpop.eup %8283 }
 0xd15   :  { %v8286_v58 = vpop.eup %8285  ;;  %v2680_v40 = vmul.f32 %v8284_v44, %v8272_v25  ;;  %v2856_v36 = vpop.permute.xlu1 %2855 }
 0xd16   :  { %v8288_v49 = vpop.eup %8287  ;;  %v2677_v19 = vmul.f32 %v8286_v58, %v9675_v59  ;;  %v2875_v59 = vsel %vm836_vm0, %v2854_v24, 0 }
 0xd17   :  { %v2679_v45 = vmul.f32 %v8288_v49, %v9671_v9 }
 0xd18   :  { %v8290_v17 = vpop.eup %8289 }
 0xd19   :  { %v2678_v14 = vmul.f32 %v8290_v17, %v8274_v29  ;;  %v2686_v11 = vpack.c.bf16 %v2680_v40, %v2679_v45  ;;  %v2878_v17 = vsel %vm836_vm0, %v2856_v36, 0 }
 0xd1b   :  { %v2685_v48 = vpack.c.bf16 %v2678_v14, %v2677_v19 }
 0xd1d   :  { %7599 = vmatprep.mubr.msk.bf16.mxu1 %vm926_vm1, %v2685_v48 }
 0xd1e   :  { %7600 = vmatmul.mubr.msk.bf16.vlgmr.msra.gmra.mrb[64].mxu1 %vm926_vm1, %v2686_v11 }
 0xd3d   :  { %v2668_v30 = vpop.xlane.xlu0 %2667 }
 0xd3e   :  { %8291 = vrcp.f32 %v2668_v30 }
 0xd3f   :  { %8293 = vrcp.f32 %v2659_v4 }
 0xd40   :  { %8295 = vrcp.f32 %v2665_v27 }
 0xd41   :  { %v2852_v61 = vpop.permute.xlu0 %2851 }
 0xd42   :  { %7967 = vmatprep.subr.msk.bf16.mxu1 %vm836_vm0, %v2852_v61  ;;  %v2872_v25 = vsel %vm836_vm0, %v2852_v61, 0 }
 0xd43   :  { %7608 = vmatpush3.bf16.xpose.msra.mxu1 %v2872_v25 }
 0xd44   :  { %7968 = vmatprep.subr.msk.bf16.mxu1 %vm836_vm0, %v2854_v24 }
 0xd45   :  { %v2840_v27 = vpop.permute.xlu0 %2839 }
 0xd46   :  { %v2662_v9 = vpop.xlane.xlu1 %2661 }
 0xd47   :  { %8297 = vrcp.f32 %v2662_v9 }
 0xd48   :  { %v8292_v29 = vpop.eup %8291 }
 0xd49   :  { %v8294_v7 = vpop.eup %8293  ;;  %v2684_v49 = vmul.f32 %v8292_v29, %v8280_v39 }
 0xd4a   :  { %v8296_v44 = vpop.eup %8295  ;;  %v2681_v40 = vmul.f32 %v8294_v7, %v9685_v60  ;;  %v2858_v14 = vpop.permute.xlu1 %2857 }
 0xd4b   :  { %7610 = vmatpush3.bf16.xpose.msra.mxu1 %v2875_v59  ;;  %v2683_v45 = vmul.f32 %v8296_v44, %v9680_v5  ;;  %v2881_v39 = vsel %vm836_vm0, %v2858_v14, 0 }
 0xd4c   :  { %7969 = vmatprep.subr.msk.bf16.mxu1 %vm836_vm0, %v2856_v36 }
 0xd4d   :  { %v2688_v11 = vpack.c.bf16 %v2684_v49, %v2683_v45  ;;  %v7057_v49 = vld [vmem:[%s11136_s2 + $0xc8] sm:$0xff]  }
 0xd4e   :  { %v2842_v60 = vpop.permute.xlu1 %2841 }
 0xd51   :  { %v8298_v58 = vpop.eup %8297 }
 0xd52   :  { %v2682_v19 = vmul.f32 %v8298_v58, %v8282_v8  ;;  %v2844_v8 = vpop.permute.xlu0 %2843  ;;  %v2846_v5 = vpop.permute.xlu1 %2845  ;;  %v7059_v58 = vld [vmem:[%s11136_s2 + $0xd8] sm:$0xff]  }
 0xd53   :  { %7612 = vmatpush3.bf16.xpose.msra.mxu1 %v2878_v17  ;;  %v7056_v17 = vld [vmem:[%s11136_s2 + $0xc0] sm:$0xff]  }
 0xd54   :  { %7970 = vmatprep.subr.msk.bf16.mxu1 %vm836_vm0, %v2858_v14  ;;  %v2687_v48 = vpack.c.bf16 %v2682_v19, %v2681_v40  ;;  %v6879_v40 = vunpack.c.l.bf16 %v7057_v49  ;;  %v6875_v19 = vunpack.c.l.bf16 %v7056_v17  ;;  %v6876_v45 = vunpack.c.h.bf16 %v7056_v17 }
 0xd56   :  { %7603 = vmatprep.mubr.msk.bf16.mxu1 %vm926_vm1, %v2687_v48 }
 0xd57   :  { %7604 = vmatmul.mubr.msk.bf16.gmra.mrb[68].mxu1 %vm926_vm1, %v2688_v11 }
 0xd58   :  { %7615 = vmatprep.mubr.msk.bf16.mxu1 %vm836_vm0, %v2840_v27 }
 0xd5b   :  { %7614 = vmatpush3.bf16.xpose.msra.mxu1 %v2881_v39 }
 0xd62   :  { %7616 = vmatmul.mubr.msk.bf16.vlgmr.msra.gmra.mrb[72].mxu1 %vm836_vm0, %v2842_v60  ;;  %v6880_v60 = vunpack.c.h.bf16 %v7057_v49  ;;  %v7058_v49 = vld [vmem:[%s11136_s2 + $0xd0] sm:$0xff]  }
 0xd63   :  { %7619 = vmatprep.mubr.msk.bf16.mxu1 %vm836_vm0, %v2844_v8 }
 0xd6a   :  { %7620 = vmatmul.mubr.msk.bf16.gmra.mrb[76].mxu1 %vm836_vm0, %v2846_v5 }
 0xdf1   :  { %v9729_v4 = vpop.f32.mrb[64].mxu1 }
 0xdf2   :  { %v9731_v24 = vpop.f32.mrb[65].mxu1 }
 0xdf3   :  { %v9733_v30 = vpop.f32.mrb[66].mxu1 }
 0xdf4   :  { %v9737_v36 = vpop.f32.mrb[67].mxu1 }
 0xe2a   :  { %v9741_v9 = vpop.f32.mrb[68].mxu1 }
 0xe2b   :  { %11228 = vst [vmem:[#allocation30_spill] sm:$0xff] %v9741_v9  ;;  %v9743_v59 = vpop.f32.mrb[69].mxu1 }
 0xe2c   :  { %v9745_v29 = vpop.f32.mrb[70].mxu1 }
 0xe2d   :  { %11229 = vst [vmem:[#allocation31_spill] sm:$0xff] %v9745_v29  ;;  %v9749_v44 = vpop.f32.mrb[71].mxu1 }
 0xe35   :  { %v7617_v14 = vpop.f32.mrb[72].mxu1 }
 0xe36   :  { %v2926_v48 = vadd.f32 %v7617_v14, %v6879_v40  ;;  %v2917_v11 = vpop.f32.mrb[73].mxu1  ;;  %v6887_v40 = vunpack.c.l.bf16 %v7059_v58 }
 0xe37   :  { %v7618_v27 = vpop.f32.mrb[74].mxu1  ;;  %v2918_v39 = vadd.f32 %v6875_v19, %v2917_v11 }
 0xe38   :  { %v2920_v8 = vpop.f32.mrb[75].mxu1  ;;  %v2954_v5 = vsel %vm926_vm1, %v2926_v48, -inf  ;;  %v2929_v25 = vadd.f32 %v7618_v27, %v6880_v60  ;;  %v6888_v60 = vunpack.c.h.bf16 %v7059_v58 }
 0xe39   :  { %v2921_v7 = vadd.f32 %v6876_v45, %v2920_v8  ;;  %2955 = vmax.xlane.f32.xlu0 %v2954_v5  ;;  %v2948_v17 = vsel %vm926_vm1, %v2918_v39, -inf  ;;  %v6883_v8 = vunpack.c.l.bf16 %v7058_v49 }
 0xe3a   :  { %v2957_v9 = vsel %vm926_vm1, %v2929_v25, -inf }
 0xe3b   :  { %v2951_v61 = vsel %vm926_vm1, %v2921_v7, -inf }
 0xe3c   :  { %2952 = vmax.xlane.f32.xlu1 %v2951_v61 }
 0xe3d   :  { %2949 = vmax.xlane.f32.xlu0 %v2948_v17  ;;  %v7621_v14 = vpop.f32.mrb[76].mxu1 }
 0xe3e   :  { %v2933_v19 = vpop.f32.mrb[77].mxu1  ;;  %v2942_v11 = vadd.f32 %v7621_v14, %v6887_v40 }
 0xe3f   :  { %v7622_v45 = vpop.f32.mrb[78].mxu1  ;;  %v2934_v29 = vadd.f32 %v6883_v8, %v2933_v19 }
 0xe40   :  { %v2936_v5 = vpop.f32.mrb[79].mxu1  ;;  %v2966_v61 = vsel %vm926_vm1, %v2942_v11, -inf  ;;  %v9777_v17 = vadd.f32 %v7622_v45, %v6888_v60 }
 0xe41   :  { %2958 = vmax.xlane.f32.xlu0 %v2957_v9  ;;  %v2960_v27 = vsel %vm926_vm1, %v2934_v29, -inf  ;;  %v6884_v9 = vunpack.c.h.bf16 %v7058_v49 }
 0xe42   :  { %v2969_v14 = vsel %vm926_vm1, %v9777_v17, -inf }
 0xe43   :  { %v9779_v40 = vadd.f32 %v6884_v9, %v2936_v5 }
 0xe45   :  { %2967 = vmax.xlane.f32.xlu0 %v2966_v61  ;;  %v2963_v19 = vsel %vm926_vm1, %v9779_v40, -inf }
 0xe49   :  { %2961 = vmax.xlane.f32.xlu0 %v2960_v27 }
 0xe4d   :  { %3046 = vrot.lane.b32.xlu1 %v9045_v56, %s8621_s11 }
 0xe51   :  { %3048 = vrot.lane.b32.xlu1 %v9047_v15, %s8621_s11 }
 0xe5f   :  { %3044 = vrot.lane.b32.xlu0 %v9035_v16, %s8621_s11 }
 0xe75   :  { %2970 = vmax.xlane.f32.xlu1 %v2969_v14 }
 0xe79   :  { %2964 = vmax.xlane.f32.xlu1 %v2963_v19 }
 0xe8a   :  { %3050 = vrot.lane.b32.xlu1 %v9063_v51, %s8621_s11 }
 0xec6   :  { %v2956_v8 = vpop.xlane.xlu0 %2955 }
 0xec7   :  { %v2974_v61 = vsub.f32 %v2926_v48, %v2956_v8 }
 0xec9   :  { %v2984_v27 = vmul.f32 1.442695, %v2974_v61  ;;  %v2953_v58 = vpop.xlane.xlu1 %2952 }
 0xeca   :  { %v2950_v45 = vpop.xlane.xlu0 %2949  ;;  %v2973_v5 = vsub.f32 %v2921_v7, %v2953_v58 }
 0xecb   :  { %8299 = vpow2.f32 %v2984_v27  ;;  %v2972_v49 = vsub.f32 %v2918_v39, %v2950_v45 }
 0xecc   :  { %v2982_v14 = vmul.f32 1.442695, %v2973_v5 }
 0xecd   :  { %v2980_v60 = vmul.f32 1.442695, %v2972_v49 }
 0xece   :  { %v2959_v9 = vpop.xlane.xlu0 %2958 }
 0xecf   :  { %8301 = vpow2.f32 %v2980_v60  ;;  %v2975_v26 = vsub.f32 %v2929_v25, %v2959_v9  ;;  %v3047_v25 = vpop.permute.xlu1 %3046 }
 0xed1   :  { %v2986_v1 = vmul.f32 1.442695, %v2975_v26 }
 0xed2   :  { %v2968_v35 = vpop.xlane.xlu0 %2967 }
 0xed3   :  { %8303 = vpow2.f32 %v2986_v1  ;;  %v2978_v19 = vsub.f32 %v2942_v11, %v2968_v35 }
 0xed4   :  { %8305 = vpow2.f32 %v2982_v14 }
 0xed5   :  { %v9787_v42 = vpop.eup %8299  ;;  %v2992_v31 = vmul.f32 1.442695, %v2978_v19 }
 0xed6   :  { %v2962_v48 = vpop.xlane.xlu0 %2961  ;;  %v3002_v8 = vsel %vm926_vm1, %v9787_v42, 0.0 }
 0xed7   :  { %8307 = vpow2.f32 %v2992_v31  ;;  %v2976_v39 = vsub.f32 %v2934_v29, %v2962_v48  ;;  %3003 = vadd.xlane.f32.xlu0 %v3002_v8  ;;  %v3049_v31 = vpop.permute.xlu1 %3048 }
 0xed9   :  { %v9791_v7 = vpop.eup %8301  ;;  %v2988_v61 = vmul.f32 1.442695, %v2976_v39 }
 0xeda   :  { %v3045_v27 = vpop.permute.xlu0 %3044  ;;  %v2996_v26 = vsel %vm926_vm1, %v9791_v7, 0.0 }
 0xedb   :  { %8309 = vpow2.f32 %v2988_v61  ;;  %2997 = vadd.xlane.f32.xlu0 %v2996_v26  ;;  %7623 = vmatprep.subr.bf16.mxu0 %v3045_v27 }
 0xedc   :  { %7624 = vmatpush3.bf16.msra.mxu0 %v3045_v27 }
 0xedd   :  { %v8304_v1 = vpop.eup %8303  ;;  %7625 = vmatprep.subr.bf16.mxu0 %v3047_v25 }
 0xede   :  { %v3005_v35 = vsel %vm926_vm1, %v8304_v1, 0.0  ;;  %v8306_v11 = vpop.eup %8305 }
 0xedf   :  { %3006 = vadd.xlane.f32.xlu1 %v3005_v35  ;;  %v2999_v58 = vsel %vm926_vm1, %v8306_v11, 0.0 }
 0xee0   :  { %7626 = vmatpush3.bf16.msra.mxu0 %v3047_v25 }
 0xee1   :  { %v9796_v29 = vpop.eup %8307  ;;  %7627 = vmatprep.subr.bf16.mxu0 %v3049_v31 }
 0xee2   :  { %v3014_v45 = vsel %vm926_vm1, %v9796_v29, 0.0 }
 0xee3   :  { %3000 = vadd.xlane.f32.xlu1 %v2999_v58  ;;  %3015 = vadd.xlane.f32.xlu0 %v3014_v45 }
 0xee4   :  { %7628 = vmatpush3.bf16.msra.mxu0 %v3049_v31 }
 0xee5   :  { %v9801_v49 = vpop.eup %8309 }
 0xee6   :  { %v3008_v5 = vsel %vm926_vm1, %v9801_v49, 0.0 }
 0xee7   :  { %3009 = vadd.xlane.f32.xlu0 %v3008_v5 }
 0xef4   :  { %3204 = vrot.lane.b32.xlu1 %v8882_v20, %s8622_s27 }
 0xef8   :  { %3206 = vrot.lane.b32.xlu1 %v8890_v33, %s8622_s27 }
 0xf02   :  { %v2971_v60 = vpop.xlane.xlu1 %2970 }
 0xf03   :  { %v2979_v9 = vsub.f32 %v9777_v17, %v2971_v60 }
 0xf05   :  { %v2994_v14 = vmul.f32 1.442695, %v2979_v9 }
 0xf06   :  { %v2965_v19 = vpop.xlane.xlu1 %2964 }
 0xf07   :  { %8311 = vpow2.f32 %v2994_v14  ;;  %v2977_v48 = vsub.f32 %v9779_v40, %v2965_v19 }
 0xf09   :  { %v2990_v8 = vmul.f32 1.442695, %v2977_v48 }
 0xf0a   :  { %v3051_v39 = vpop.permute.xlu1 %3050 }
 0xf0b   :  { %7629 = vmatprep.subr.bf16.mxu0 %v3051_v39  ;;  %8313 = vpow2.f32 %v2990_v8 }
 0xf0c   :  { %7630 = vmatpush3.bf16.msra.mxu0 %v3051_v39 }
 0xf11   :  { %v8312_v61 = vpop.eup %8311 }
 0xf12   :  { %v3017_v25 = vsel %vm926_vm1, %v8312_v61, 0.0 }
 0xf13   :  { %3018 = vadd.xlane.f32.xlu0 %v3017_v25 }
 0xf15   :  { %v8314_v20 = vpop.eup %8313 }
 0xf16   :  { %v3011_v33 = vsel %vm926_vm1, %v8314_v20, 0.0 }
 0xf1c   :  { %3012 = vadd.xlane.f32.xlu1 %v3011_v33 }
 0xf29   :  { %3202 = vrot.lane.b32.xlu0 %v8874_v10, %s8622_s27 }
 0xf2d   :  { %3208 = vrot.lane.b32.xlu1 %v8898_v54, %s8622_s27  ;;  %3190 = vrot.lane.b32.xlu0 %v8824_v46, %s8622_s27 }
 0xf31   :  { %3192 = vrot.lane.b32.xlu1 %v8830_v52, %s8622_s27  ;;  %3194 = vrot.lane.b32.xlu0 %v8838_v0, %s8622_s27 }
 0xf35   :  { %3196 = vrot.lane.b32.xlu1 %v8846_v13, %s8622_s27 }
 0xf64   :  { %v3004_v17 = vpop.xlane.xlu0 %3003 }
 0xf68   :  { %v2998_v40 = vpop.xlane.xlu0 %2997 }
 0xf6c   :  { %v3007_v27 = vpop.xlane.xlu1 %3006 }
 0xf6d   :  { %8315 = vrcp.f32 %v3007_v27 }
 0xf6e   :  { %8317 = vrcp.f32 %v2998_v40 }
 0xf6f   :  { %8319 = vrcp.f32 %v3004_v17 }
 0xf70   :  { %v3001_v10 = vpop.xlane.xlu1 %3000  ;;  %v3016_v5 = vpop.xlane.xlu0 %3015 }
 0xf71   :  { %8321 = vrcp.f32 %v3001_v10 }
 0xf74   :  { %v3010_v60 = vpop.xlane.xlu0 %3009  ;;  %v3205_v9 = vpop.permute.xlu1 %3204 }
 0xf77   :  { %v8316_v54 = vpop.eup %8315 }
 0xf78   :  { %v8318_v26 = vpop.eup %8317  ;;  %v3031_v31 = vmul.f32 %v8316_v54, %v8304_v1  ;;  %v3207_v48 = vpop.permute.xlu1 %3206 }
 0xf79   :  { %v8320_v46 = vpop.eup %8319  ;;  %v3028_v52 = vmul.f32 %v8318_v26, %v9791_v7  ;;  %v3226_v7 = vsel %vm836_vm0, %v3205_v9, 0  ;;  %v3229_v17 = vsel %vm836_vm0, %v3207_v48, 0 }
 0xf7a   :  { %v3030_v0 = vmul.f32 %v8320_v46, %v9787_v42 }
 0xf7b   :  { %v8322_v35 = vpop.eup %8321 }
 0xf7c   :  { %v3029_v58 = vmul.f32 %v8322_v35, %v8306_v11  ;;  %v3037_v13 = vpack.c.bf16 %v3031_v31, %v3030_v0 }
 0xf7e   :  { %v3036_v45 = vpack.c.bf16 %v3029_v58, %v3028_v52 }
 0xf80   :  { %7631 = vmatprep.mubr.msk.bf16.mxu0 %vm926_vm1, %v3036_v45 }
 0xf81   :  { %7632 = vmatmul.mubr.msk.bf16.vlgmr.msra.gmra.mrb[120].mxu0 %vm926_vm1, %v3037_v13 }
 0xfa0   :  { %v3019_v14 = vpop.xlane.xlu0 %3018 }
 0xfa1   :  { %8323 = vrcp.f32 %v3019_v14 }
 0xfa2   :  { %8325 = vrcp.f32 %v3010_v60 }
 0xfa3   :  { %8327 = vrcp.f32 %v3016_v5 }
 0xfa4   :  { %v3203_v19 = vpop.permute.xlu0 %3202 }
 0xfa5   :  { %7971 = vmatprep.subr.msk.bf16.mxu0 %vm836_vm0, %v3203_v19  ;;  %v3223_v1 = vsel %vm836_vm0, %v3203_v19, 0 }
 0xfa6   :  { %7640 = vmatpush3.bf16.xpose.msra.mxu0 %v3223_v1  ;;  %v7061_v1 = vld [vmem:[%s11136_s2 + $0xe8] sm:$0xff]  }
 0xfa7   :  { %7972 = vmatprep.subr.msk.bf16.mxu0 %vm836_vm0, %v3205_v9 }
 0xfa8   :  { %v3191_v35 = vpop.permute.xlu0 %3190 }
 0xfa9   :  { %v3013_v42 = vpop.xlane.xlu1 %3012 }
 0xfaa   :  { %8329 = vrcp.f32 %v3013_v42  ;;  %v7060_v42 = vld [vmem:[%s11136_s2 + $0xe0] sm:$0xff]  }
 0xfab   :  { %v8324_v11 = vpop.eup %8323 }
 0xfac   :  { %v8326_v8 = vpop.eup %8325  ;;  %v3035_v33 = vmul.f32 %v8324_v11, %v8312_v61  ;;  %v6891_v11 = vunpack.c.l.bf16 %v7060_v42 }
 0xfad   :  { %v8328_v39 = vpop.eup %8327  ;;  %v3032_v40 = vmul.f32 %v8326_v8, %v9801_v49  ;;  %v3209_v10 = vpop.permute.xlu1 %3208 }
 0xfae   :  { %7642 = vmatpush3.bf16.xpose.msra.mxu0 %v3226_v7  ;;  %v3034_v54 = vmul.f32 %v8328_v39, %v9796_v29  ;;  %v3232_v61 = vsel %vm836_vm0, %v3209_v10, 0  ;;  %v6895_v7 = vunpack.c.l.bf16 %v7061_v1  ;;  %v6892_v39 = vunpack.c.h.bf16 %v7060_v42 }
 0xfaf   :  { %7973 = vmatprep.subr.msk.bf16.mxu0 %vm836_vm0, %v3207_v48 }
 0xfb0   :  { %v3039_v46 = vpack.c.bf16 %v3035_v33, %v3034_v54 }
 0xfb1   :  { %v3193_v49 = vpop.permute.xlu1 %3192 }
 0xfb4   :  { %v8330_v25 = vpop.eup %8329 }
 0xfb5   :  { %v3033_v27 = vmul.f32 %v8330_v25, %v8314_v20  ;;  %v3195_v20 = vpop.permute.xlu0 %3194  ;;  %v3197_v29 = vpop.permute.xlu1 %3196 }
 0xfb6   :  { %7644 = vmatpush3.bf16.xpose.msra.mxu0 %v3229_v17 }
 0xfb7   :  { %7974 = vmatprep.subr.msk.bf16.mxu0 %vm836_vm0, %v3209_v10  ;;  %v3038_v26 = vpack.c.bf16 %v3033_v27, %v3032_v40  ;;  %v6896_v27 = vunpack.c.h.bf16 %v7061_v1 }
 0xfb9   :  { %7635 = vmatprep.mubr.msk.bf16.mxu0 %vm926_vm1, %v3038_v26 }
 0xfba   :  { %7636 = vmatmul.mubr.msk.bf16.gmra.mrb[124].mxu0 %vm926_vm1, %v3039_v46  ;;  %v7062_v46 = vld [vmem:[%s11136_s2 + $0xf0] sm:$0xff]  }
 0xfbb   :  { %7647 = vmatprep.mubr.msk.bf16.mxu0 %vm836_vm0, %v3191_v35 }
 0xfbe   :  { %7646 = vmatpush3.bf16.xpose.msra.mxu0 %v3232_v61  ;;  %v7063_v61 = vld [vmem:[%s11136_s2 + $0xf8] sm:$0xff]  }
 0xfbf   :  { %7687 = vmatprep.subr.bf16.mxu0 %v9338_v3  ;;  %v6904_v1 = vunpack.c.h.bf16 %v7063_v61 }
 0xfc5   :  { %7648 = vmatmul.mubr.msk.bf16.vlgmr.msra.gmra.mrb[128].mxu0 %vm836_vm0, %v3193_v49 }
 0xfc6   :  { %7651 = vmatprep.mubr.msk.bf16.mxu0 %vm836_vm0, %v3195_v20  ;;  %7688 = vmatpush3.bf16.msra.mxu0 %v9338_v3 }
 0xfc7   :  { %7689 = vmatprep.subr.bf16.mxu0 %v9345_v55 }
 0xfca   :  { %7690 = vmatpush3.bf16.msra.mxu0 %v9345_v55 }
 0xfcb   :  { %7691 = vmatprep.subr.bf16.mxu0 %v9351_v50 }
 0xfcd   :  { %7652 = vmatmul.mubr.msk.bf16.gmra.mrb[132].mxu0 %vm836_vm0, %v3197_v29  ;;  %v6899_v29 = vunpack.c.l.bf16 %v7062_v46 }
 0xfce   :  { %7692 = vmatpush3.bf16.msra.mxu0 %v9351_v50 }
 0xfcf   :  { %7693 = vmatprep.subr.bf16.mxu0 %v9358_v34 }
 0xfd2   :  { %7694 = vmatpush3.bf16.msra.mxu0 %v9358_v34 }
0x1054   :  { %v9853_v31 = vpop.f32.mrb[120].mxu0 }
0x1055   :  { %v9855_v52 = vpop.f32.mrb[121].mxu0 }
0x1056   :  { %v9857_v58 = vpop.f32.mrb[122].mxu0 }
0x1057   :  { %v9861_v45 = vpop.f32.mrb[123].mxu0 }
0x108d   :  { %v9865_v5 = vpop.f32.mrb[124].mxu0 }
0x108e   :  { %11230 = vst [vmem:[#allocation32_spill] sm:$0xff] %v9865_v5  ;;  %v9867_v60 = vpop.f32.mrb[125].mxu0 }
0x108f   :  { %v9869_v9 = vpop.f32.mrb[126].mxu0 }
0x1090   :  { %11231 = vst [vmem:[#allocation33_spill] sm:$0xff] %v9869_v9  ;;  %v9873_v19 = vpop.f32.mrb[127].mxu0 }
0x1098   :  { %v7649_v8 = vpop.f32.mrb[128].mxu0 }
0x1099   :  { %v3277_v25 = vadd.f32 %v7649_v8, %v6895_v7  ;;  %v3268_v33 = vpop.f32.mrb[129].mxu0 }
0x109a   :  { %v7650_v17 = vpop.f32.mrb[130].mxu0  ;;  %v3269_v40 = vadd.f32 %v6891_v11, %v3268_v33  ;;  %v6900_v11 = vunpack.c.h.bf16 %v7062_v46 }
0x109b   :  { %v3271_v10 = vpop.f32.mrb[131].mxu0  ;;  %v3305_v54 = vsel %vm926_vm1, %v3277_v25, -inf  ;;  %v3280_v49 = vadd.f32 %v7650_v17, %v6896_v27 }
0x109c   :  { %v3272_v26 = vadd.f32 %v6892_v39, %v3271_v10  ;;  %3306 = vmax.xlane.f32.xlu0 %v3305_v54  ;;  %v3299_v20 = vsel %vm926_vm1, %v3269_v40, -inf  ;;  %v6903_v39 = vunpack.c.l.bf16 %v7063_v61 }
0x109d   :  { %v3308_v14 = vsel %vm926_vm1, %v3280_v49, -inf }
0x109e   :  { %v3302_v35 = vsel %vm926_vm1, %v3272_v26, -inf }
0x109f   :  { %3303 = vmax.xlane.f32.xlu1 %v3302_v35 }
0x10a0   :  { %3300 = vmax.xlane.f32.xlu0 %v3299_v20  ;;  %v7653_v42 = vpop.f32.mrb[132].mxu0 }
0x10a1   :  { %v3284_v7 = vpop.f32.mrb[133].mxu0  ;;  %v3293_v27 = vadd.f32 %v7653_v42, %v6903_v39 }
0x10a2   :  { %v7654_v8 = vpop.f32.mrb[134].mxu0  ;;  %v3285_v33 = vadd.f32 %v6899_v29, %v3284_v7 }
0x10a3   :  { %v3296_v10 = vadd.f32 %v7654_v8, %v6904_v1  ;;  %v3287_v54 = vpop.f32.mrb[135].mxu0  ;;  %v3317_v46 = vsel %vm926_vm1, %v3293_v27, -inf }
0x10a4   :  { %3309 = vmax.xlane.f32.xlu0 %v3308_v14  ;;  %v3288_v48 = vadd.f32 %v6900_v11, %v3287_v54  ;;  %v3311_v35 = vsel %vm926_vm1, %v3285_v33, -inf }
0x10a5   :  { %v3320_v17 = vsel %vm926_vm1, %v3296_v10, -inf }
0x10a6   :  { %3321 = vmax.xlane.f32.xlu1 %v3320_v17  ;;  %v3314_v20 = vsel %vm926_vm1, %v3288_v48, -inf }
0x10a8   :  { %3312 = vmax.xlane.f32.xlu0 %v3311_v35 }
0x10aa   :  { %3315 = vmax.xlane.f32.xlu1 %v3314_v20 }
0x10ac   :  { %3318 = vmax.xlane.f32.xlu0 %v3317_v46 }
0x10bb   :  { %3397 = vrot.lane.b32.xlu1 %v9045_v56, %s8622_s27 }
0x10bf   :  { %3399 = vrot.lane.b32.xlu1 %v9047_v15, %s8622_s27 }
0x1129   :  { %v3307_v14 = vpop.xlane.xlu0 %3306 }
0x112a   :  { %v3325_v61 = vsub.f32 %v3277_v25, %v3307_v14 }
0x112c   :  { %v3335_v29 = vmul.f32 1.442695, %v3325_v61  ;;  %v3304_v1 = vpop.xlane.xlu1 %3303 }
0x112d   :  { %v3301_v42 = vpop.xlane.xlu0 %3300  ;;  %v3324_v11 = vsub.f32 %v3272_v26, %v3304_v1 }
0x112e   :  { %8331 = vpow2.f32 %v3335_v29  ;;  %v3323_v7 = vsub.f32 %v3269_v40, %v3301_v42 }
0x112f   :  { %v3333_v17 = vmul.f32 1.442695, %v3324_v11 }
0x1130   :  { %v3331_v8 = vmul.f32 1.442695, %v3323_v7 }
0x1131   :  { %v3310_v39 = vpop.xlane.xlu0 %3309 }
0x1132   :  { %8333 = vpow2.f32 %v3331_v8  ;;  %v3326_v54 = vsub.f32 %v3280_v49, %v3310_v39 }
0x1133   :  { %v3322_v61 = vpop.xlane.xlu1 %3321 }
0x1134   :  { %v3337_v35 = vmul.f32 1.442695, %v3326_v54  ;;  %v3330_v8 = vsub.f32 %v3296_v10, %v3322_v61 }
0x1135   :  { %v3313_v14 = vpop.xlane.xlu0 %3312 }
0x1136   :  { %8335 = vpow2.f32 %v3337_v35  ;;  %v3327_v29 = vsub.f32 %v3285_v33, %v3313_v14 }
0x1137   :  { %8337 = vpow2.f32 %v3333_v17  ;;  %v3316_v11 = vpop.xlane.xlu1 %3315  ;;  %v3345_v17 = vmul.f32 1.442695, %v3330_v8 }
0x1138   :  { %v9901_v20 = vpop.eup %8331  ;;  %v3339_v42 = vmul.f32 1.442695, %v3327_v29  ;;  %v3328_v39 = vsub.f32 %v3288_v48, %v3316_v11 }
0x1139   :  { %v3353_v56 = vsel %vm926_vm1, %v9901_v20, 0.0  ;;  %v3319_v1 = vpop.xlane.xlu0 %3318 }
0x113a   :  { %3354 = vadd.xlane.f32.xlu0 %v3353_v56  ;;  %v3329_v7 = vsub.f32 %v3293_v27, %v3319_v1  ;;  %8339 = vpow2.f32 %v3339_v42  ;;  %v3341_v35 = vmul.f32 1.442695, %v3328_v39 }
0x113c   :  { %v9905_v15 = vpop.eup %8333  ;;  %v3343_v54 = vmul.f32 1.442695, %v3329_v7 }
0x113d   :  { %v3347_v25 = vsel %vm926_vm1, %v9905_v15, 0.0 }
0x113e   :  { %3348 = vadd.xlane.f32.xlu0 %v3347_v25  ;;  %8341 = vpow2.f32 %v3343_v54 }
0x113f   :  { %8343 = vpow2.f32 %v3345_v17 }
0x1140   :  { %v8336_v40 = vpop.eup %8335  ;;  %8345 = vpow2.f32 %v3341_v35 }
0x1141   :  { %v3356_v26 = vsel %vm926_vm1, %v8336_v40, 0.0  ;;  %v8338_v49 = vpop.eup %8337 }
0x1142   :  { %3357 = vadd.xlane.f32.xlu1 %v3356_v26  ;;  %v3350_v46 = vsel %vm926_vm1, %v8338_v49, 0.0  ;;  %v3398_v26 = vpop.permute.xlu1 %3397 }
0x1146   :  { %3351 = vadd.xlane.f32.xlu1 %v3350_v46  ;;  %v3400_v14 = vpop.permute.xlu1 %3399 }
0x1154   :  { %3395 = vrot.lane.b32.xlu0 %v9035_v16, %s8622_s27  ;;  %v9915_v16 = vpop.eup %8339 }
0x1155   :  { %v9919_v56 = vpop.eup %8341 }
0x1156   :  { %v9921_v33 = vpop.eup %8343  ;;  %v3365_v10 = vsel %vm926_vm1, %v9919_v56, 0.0 }
0x1157   :  { %3401 = vrot.lane.b32.xlu1 %v9063_v51, %s8622_s27  ;;  %v3359_v51 = vsel %vm926_vm1, %v9915_v16, 0.0  ;;  %v9925_v48 = vpop.eup %8345  ;;  %v3368_v25 = vsel %vm926_vm1, %v9921_v33, 0.0 }
0x1158   :  { %v3362_v27 = vsel %vm926_vm1, %v9925_v48, 0.0 }
0x1173   :  { %3360 = vadd.xlane.f32.xlu0 %v3359_v51 }
0x1177   :  { %3366 = vadd.xlane.f32.xlu0 %v3365_v10 }
0x117b   :  { %3363 = vadd.xlane.f32.xlu1 %v3362_v27  ;;  %3369 = vadd.xlane.f32.xlu0 %v3368_v25 }
0x11c7   :  { %v3355_v46 = vpop.xlane.xlu0 %3354 }
0x11cb   :  { %v3349_v61 = vpop.xlane.xlu0 %3348 }
0x11cf   :  { %v3358_v29 = vpop.xlane.xlu1 %3357  ;;  %v3396_v1 = vpop.permute.xlu0 %3395 }
0x11d0   :  { %7655 = vmatprep.subr.bf16.mxu1 %v3396_v1  ;;  %8347 = vrcp.f32 %v3358_v29 }
0x11d1   :  { %7656 = vmatpush3.bf16.msra.mxu1 %v3396_v1  ;;  %8349 = vrcp.f32 %v3349_v61 }
0x11d2   :  { %7657 = vmatprep.subr.bf16.mxu1 %v3398_v26  ;;  %8351 = vrcp.f32 %v3355_v46 }
0x11d3   :  { %v3352_v42 = vpop.xlane.xlu1 %3351 }
0x11d4   :  { %8353 = vrcp.f32 %v3352_v42 }
0x11d5   :  { %7658 = vmatpush3.bf16.msra.mxu1 %v3398_v26  ;;  %v3549_v26 = vsel %vm836_vm0, %v8832_v57, 0 }
0x11d6   :  { %7659 = vmatprep.subr.bf16.mxu1 %v3400_v14 }
0x11d7   :  { %v3402_v7 = vpop.permute.xlu1 %3401 }
0x11d9   :  { %7660 = vmatpush3.bf16.msra.mxu1 %v3400_v14 }
0x11da   :  { %7661 = vmatprep.subr.bf16.mxu1 %v3402_v7  ;;  %v8348_v11 = vpop.eup %8347 }
0x11db   :  { %v8350_v8 = vpop.eup %8349  ;;  %v3382_v17 = vmul.f32 %v8348_v11, %v8336_v40  ;;  %v3552_v40 = vsel %vm836_vm0, %v8840_v6, 0 }
0x11dc   :  { %v8352_v39 = vpop.eup %8351  ;;  %v3379_v35 = vmul.f32 %v8350_v8, %v9905_v15  ;;  %v3558_v15 = vsel %vm836_vm0, %v8856_v32, 0 }
0x11dd   :  { %7662 = vmatpush3.bf16.msra.mxu1 %v3402_v7  ;;  %v3381_v10 = vmul.f32 %v8352_v39, %v9901_v20  ;;  %v3555_v20 = vsel %vm836_vm0, %v8848_v18, 0 }
0x11de   :  { %v8354_v54 = vpop.eup %8353  ;;  %7975 = vmatprep.subr.msk.bf16.mxu1 %vm836_vm0, %v8832_v57 }
0x11df   :  { %v3380_v51 = vmul.f32 %v8354_v54, %v8338_v49  ;;  %v3388_v25 = vpack.c.bf16 %v3382_v17, %v3381_v10 }
0x11e1   :  { %v3387_v27 = vpack.c.bf16 %v3380_v51, %v3379_v35  ;;  %v7066_v51 = vld [vmem:[%s11136_s2 + $0x18] sm:$0xff]  }
0x11e3   :  { %7663 = vmatprep.mubr.msk.bf16.mxu1 %vm926_vm1, %v3387_v27 }
0x11e4   :  { %7664 = vmatmul.mubr.msk.bf16.vlgmr.msra.gmra.mrb[80].mxu1 %vm926_vm1, %v3388_v25 }
0x11e6   :  { %7672 = vmatpush3.bf16.xpose.msra.mxu1 %v3549_v26 }
0x11e7   :  { %7976 = vmatprep.subr.msk.bf16.mxu1 %vm836_vm0, %v8840_v6 }
0x11ee   :  { %7674 = vmatpush3.bf16.xpose.msra.mxu1 %v3552_v40 }
0x11ef   :  { %7977 = vmatprep.subr.msk.bf16.mxu1 %vm836_vm0, %v8848_v18 }
0x11f6   :  { %7676 = vmatpush3.bf16.xpose.msra.mxu1 %v3555_v20 }
0x11f7   :  { %7978 = vmatprep.subr.msk.bf16.mxu1 %vm836_vm0, %v8856_v32 }
0x11fe   :  { %7678 = vmatpush3.bf16.xpose.msra.mxu1 %v3558_v15 }
0x1200   :  { %v3361_v49 = vpop.xlane.xlu0 %3360 }
0x1201   :  { %8355 = vrcp.f32 %v3361_v49  ;;  %v6906_v49 = vld [vmem:[%s11136_s2] sm:$0xff]  }
0x1204   :  { %v3367_v46 = vpop.xlane.xlu0 %3366 }
0x1205   :  { %8357 = vrcp.f32 %v3367_v46 }
0x1208   :  { %v3364_v14 = vpop.xlane.xlu1 %3363  ;;  %v3370_v61 = vpop.xlane.xlu0 %3369 }
0x1209   :  { %8359 = vrcp.f32 %v3364_v14  ;;  %v7064_v14 = vld [vmem:[%s11136_s2 + $0x8] sm:$0xff]  }
0x120a   :  { %8361 = vrcp.f32 %v3370_v61  ;;  %v6907_v61 = vunpack.c.l.bf16 %v6906_v49 }
0x120b   :  { %v8356_v29 = vpop.eup %8355 }
0x120c   :  { %v3383_v11 = vmul.f32 %v8356_v29, %v9915_v16  ;;  %v11232_v16 = vld [vmem:[#allocation11_spill] sm:$0xff]  ;;  %v6911_v29 = vunpack.c.l.bf16 %v7064_v14 }
0x120f   :  { %v8358_v1 = vpop.eup %8357 }
0x1210   :  { %v3385_v39 = vmul.f32 %v8358_v1, %v9919_v56 }
0x1213   :  { %v8360_v42 = vpop.eup %8359 }
0x1214   :  { %v8362_v7 = vpop.eup %8361  ;;  %v3384_v8 = vmul.f32 %v8360_v42, %v9925_v48  ;;  %v6908_v42 = vunpack.c.h.bf16 %v6906_v49 }
0x1215   :  { %v3386_v54 = vmul.f32 %v8362_v7, %v9921_v33 }
0x1216   :  { %v3389_v17 = vpack.c.bf16 %v3384_v8, %v3383_v11  ;;  %v6912_v8 = vunpack.c.h.bf16 %v7064_v14  ;;  %v6919_v14 = vunpack.c.l.bf16 %v7066_v51 }
0x1217   :  { %v3390_v35 = vpack.c.bf16 %v3386_v54, %v3385_v39 }
0x1218   :  { %7667 = vmatprep.mubr.msk.bf16.mxu1 %vm926_vm1, %v3389_v17  ;;  %v7065_v17 = vld [vmem:[%s11136_s2 + $0x10] sm:$0xff]  }
0x1219   :  { %7668 = vmatmul.mubr.msk.bf16.gmra.mrb[84].mxu1 %vm926_vm1, %v3390_v35  ;;  %v6916_v13 = vunpack.c.h.bf16 %v7065_v17 }
0x121a   :  { %7679 = vmatprep.mubr.msk.bf16.mxu1 %vm836_vm0, %v8852_v23 }
0x1221   :  { %7680 = vmatmul.mubr.msk.bf16.vlgmr.msra.gmra.mrb[88].mxu1 %vm836_vm0, %v8860_v43 }
0x1222   :  { %7683 = vmatprep.mubr.msk.bf16.mxu1 %vm836_vm0, %v8864_v53 }
0x1229   :  { %7684 = vmatmul.mubr.msk.bf16.gmra.mrb[92].mxu1 %vm836_vm0, %v11232_v16 }
0x12b7   :  { %v9965_v56 = vpop.f32.mrb[80].mxu1 }
0x12b8   :  { %v9967_v33 = vpop.f32.mrb[81].mxu1 }
0x12b9   :  { %v9969_v48 = vpop.f32.mrb[82].mxu1 }
0x12ba   :  { %v9973_v10 = vpop.f32.mrb[83].mxu1 }
0x12ec   :  { %v9977_v25 = vpop.f32.mrb[84].mxu1 }
0x12ed   :  { %11233 = vst [vmem:[#allocation11_spill] sm:$0xff] %v9977_v25  ;;  %v9979_v26 = vpop.f32.mrb[85].mxu1 }
0x12ee   :  { %11234 = vst [vmem:[#allocation34_spill] sm:$0xff] %v9979_v26  ;;  %v9981_v40 = vpop.f32.mrb[86].mxu1 }
0x12ef   :  { %11235 = vst [vmem:[#allocation35_spill] sm:$0xff] %v9981_v40  ;;  %v9985_v15 = vpop.f32.mrb[87].mxu1 }
0x12f0   :  { %11236 = vst [vmem:[#allocation36_spill] sm:$0xff] %v9985_v15 }
0x12f4   :  { %v7681_v1 = vpop.f32.mrb[88].mxu1 }
0x12f5   :  { %v3594_v7 = vpop.f32.mrb[89].mxu1  ;;  %v3603_v35 = vadd.f32 %v7681_v1, %v6911_v29  ;;  %v6920_v1 = vunpack.c.h.bf16 %v7066_v51 }
0x12f6   :  { %v3595_v11 = vadd.f32 %v6907_v61, %v3594_v7  ;;  %v7682_v39 = vpop.f32.mrb[90].mxu1  ;;  %v6915_v61 = vunpack.c.l.bf16 %v7065_v17 }
0x12f7   :  { %v3597_v54 = vpop.f32.mrb[91].mxu1  ;;  %v3606_v0 = vadd.f32 %v7682_v39, %v6912_v8  ;;  %v3631_v27 = vsel %vm926_vm1, %v3603_v35, -inf }
0x12f8   :  { %v3598_v20 = vadd.f32 %v6908_v42, %v3597_v54  ;;  %v3625_v46 = vsel %vm926_vm1, %v3595_v11, -inf }
0x12f9   :  { %3626 = vmax.xlane.f32.xlu0 %v3625_v46  ;;  %v3634_v46 = vsel %vm926_vm1, %v3606_v0, -inf }
0x12fa   :  { %v3628_v49 = vsel %vm926_vm1, %v3598_v20, -inf }
0x12fb   :  { %3629 = vmax.xlane.f32.xlu1 %v3628_v49 }
0x12fc   :  { %v7685_v7 = vpop.f32.mrb[92].mxu1 }
0x12fd   :  { %v3610_v25 = vpop.f32.mrb[93].mxu1  ;;  %3632 = vmax.xlane.f32.xlu0 %v3631_v27  ;;  %v3619_v40 = vadd.f32 %v7685_v7, %v6919_v14 }
0x12fe   :  { %v3611_v29 = vadd.f32 %v6915_v61, %v3610_v25  ;;  %v7686_v42 = vpop.f32.mrb[94].mxu1 }
0x12ff   :  { %v3613_v54 = vpop.f32.mrb[95].mxu1  ;;  %3635 = vmax.xlane.f32.xlu1 %v3634_v46  ;;  %v3622_v49 = vadd.f32 %v7686_v42, %v6920_v1  ;;  %v3643_v17 = vsel %vm926_vm1, %v3619_v40, -inf }
0x1300   :  { %v3614_v8 = vadd.f32 %v6916_v13, %v3613_v54  ;;  %v3637_v39 = vsel %vm926_vm1, %v3611_v29, -inf }
0x1301   :  { %3638 = vmax.xlane.f32.xlu0 %v3637_v39  ;;  %v3646_v27 = vsel %vm926_vm1, %v3622_v49, -inf }
0x1302   :  { %v3640_v5 = vsel %vm926_vm1, %v3614_v8, -inf }
0x1303   :  { %3641 = vmax.xlane.f32.xlu1 %v3640_v5 }
0x1305   :  { %3644 = vmax.xlane.f32.xlu0 %v3643_v17 }
0x1307   :  { %3647 = vmax.xlane.f32.xlu1 %v3646_v27 }
0x1386   :  { %v3627_v51 = vpop.xlane.xlu0 %3626 }
0x1387   :  { %v3649_v25 = vsub.f32 %v3595_v11, %v3627_v51 }
0x1388   :  { %v3630_v61 = vpop.xlane.xlu1 %3629 }
0x1389   :  { %v3650_v46 = vsub.f32 %v3598_v20, %v3630_v61  ;;  %v3657_v13 = vmul.f32 1.442695, %v3649_v25 }
0x138a   :  { %v3633_v9 = vpop.xlane.xlu0 %3632 }
0x138b   :  { %v3651_v14 = vsub.f32 %v3603_v35, %v3633_v9  ;;  %v3659_v42 = vmul.f32 1.442695, %v3650_v46 }
0x138c   :  { %v3636_v7 = vpop.xlane.xlu1 %3635 }
0x138d   :  { %v3661_v54 = vmul.f32 1.442695, %v3651_v14  ;;  %v3652_v39 = vsub.f32 %v3606_v0, %v3636_v7 }
0x138e   :  { %v3639_v1 = vpop.xlane.xlu0 %3638 }
0x138f   :  { %8363 = vpow2.f32 %v3661_v54  ;;  %v3663_v5 = vmul.f32 1.442695, %v3652_v39  ;;  %v3653_v17 = vsub.f32 %v3611_v29, %v3639_v1 }
0x1390   :  { %8365 = vpow2.f32 %v3657_v13  ;;  %v3642_v14 = vpop.xlane.xlu1 %3641 }
0x1391   :  { %8367 = vpow2.f32 %v3663_v5  ;;  %v3665_v15 = vmul.f32 1.442695, %v3653_v17  ;;  %v3654_v54 = vsub.f32 %v3614_v8, %v3642_v14 }
0x1392   :  { %v3645_v26 = vpop.xlane.xlu0 %3644  ;;  %8369 = vpow2.f32 %v3659_v42 }
0x1393   :  { %v3655_v27 = vsub.f32 %v3619_v40, %v3645_v26  ;;  %v3667_v1 = vmul.f32 1.442695, %v3654_v54 }
0x1394   :  { %v3648_v13 = vpop.xlane.xlu1 %3647 }
0x1395   :  { %v3669_v11 = vmul.f32 1.442695, %v3655_v27  ;;  %v3656_v7 = vsub.f32 %v3622_v49, %v3648_v13 }
0x1397   :  { %8371 = vpow2.f32 %v3669_v11  ;;  %v3671_v39 = vmul.f32 1.442695, %v3656_v7 }
0x1398   :  { %8373 = vpow2.f32 %v3665_v15 }
0x1399   :  { %v8364_v51 = vpop.eup %8363  ;;  %8375 = vpow2.f32 %v3671_v39 }
0x139a   :  { %v8366_v9 = vpop.eup %8365  ;;  %v3679_v20 = vsel %vm926_vm1, %v8364_v51, 0.0  ;;  %8377 = vpow2.f32 %v3667_v1 }
0x139b   :  { %v8368_v35 = vpop.eup %8367  ;;  %3680 = vadd.xlane.f32.xlu0 %v3679_v20  ;;  %v3673_v61 = vsel %vm926_vm1, %v8366_v9, 0.0 }
0x139c   :  { %v3682_v0 = vsel %vm926_vm1, %v8368_v35, 0.0  ;;  %v8370_v25 = vpop.eup %8369 }
0x139d   :  { %3683 = vadd.xlane.f32.xlu1 %v3682_v0  ;;  %v3676_v29 = vsel %vm926_vm1, %v8370_v25, 0.0 }
0x139f   :  { %3674 = vadd.xlane.f32.xlu0 %v3673_v61 }
0x13a1   :  { %v10013_v26 = vpop.eup %8371  ;;  %3677 = vadd.xlane.f32.xlu1 %v3676_v29 }
0x13a2   :  { %v3691_v40 = vsel %vm926_vm1, %v10013_v26, 0.0  ;;  %v10017_v15 = vpop.eup %8373 }
0x13a3   :  { %3692 = vadd.xlane.f32.xlu0 %v3691_v40  ;;  %v3685_v46 = vsel %vm926_vm1, %v10017_v15, 0.0  ;;  %v8376_v42 = vpop.eup %8375 }
0x13a4   :  { %v3694_v5 = vsel %vm926_vm1, %v8376_v42, 0.0  ;;  %v8378_v17 = vpop.eup %8377 }
0x13a5   :  { %v3688_v27 = vsel %vm926_vm1, %v8378_v17, 0.0 }
0x13a7   :  { %3686 = vadd.xlane.f32.xlu0 %v3685_v46 }
0x13b2   :  { %3848 = vrot.lane.b32.xlu1 %v8840_v6, %s8620_s10 }
0x13b6   :  { %3850 = vrot.lane.b32.xlu1 %v8848_v18, %s8620_s10 }
0x13bd   :  { %3846 = vrot.lane.b32.xlu0 %v8832_v57, %s8620_s10 }
0x13c1   :  { %3834 = vrot.lane.b32.xlu0 %v8852_v23, %s8620_s10 }
0x13c5   :  { %3838 = vrot.lane.b32.xlu0 %v8864_v53, %s8620_s10 }
0x13da   :  { %3695 = vadd.xlane.f32.xlu1 %v3694_v5 }
0x13de   :  { %3689 = vadd.xlane.f32.xlu1 %v3688_v27 }
0x13ef   :  { %3852 = vrot.lane.b32.xlu1 %v8856_v32, %s8620_s10 }
0x13f3   :  { %3836 = vrot.lane.b32.xlu1 %v8860_v43, %s8620_s10 }
0x13f7   :  { %3840 = vrot.lane.b32.xlu1 %v11232_v16, %s8620_s10 }
0x1428   :  { %v3681_v8 = vpop.xlane.xlu0 %3680 }
0x142a   :  { %v3684_v49 = vpop.xlane.xlu1 %3683 }
0x142b   :  { %8379 = vrcp.f32 %v3684_v49 }
0x142c   :  { %v3675_v11 = vpop.xlane.xlu0 %3674 }
0x142d   :  { %8381 = vrcp.f32 %v3675_v11 }
0x142e   :  { %8383 = vrcp.f32 %v3681_v8  ;;  %v3678_v20 = vpop.xlane.xlu1 %3677 }
0x142f   :  { %8385 = vrcp.f32 %v3678_v20 }
0x1430   :  { %v3693_v0 = vpop.xlane.xlu0 %3692 }
0x1432   :  { %v3849_v49 = vpop.permute.xlu1 %3848 }
0x1433   :  { %v3870_v11 = vsel %vm836_vm0, %v3849_v49, 0 }
0x1434   :  { %v3687_v61 = vpop.xlane.xlu0 %3686 }
0x1435   :  { %v8380_v29 = vpop.eup %8379 }
0x1436   :  { %v3708_v7 = vmul.f32 %v8380_v29, %v8368_v35  ;;  %v3851_v35 = vpop.permute.xlu1 %3850 }
0x1437   :  { %v8382_v40 = vpop.eup %8381 }
0x1438   :  { %v8384_v46 = vpop.eup %8383  ;;  %v3847_v14 = vpop.permute.xlu0 %3846  ;;  %v3705_v54 = vmul.f32 %v8382_v40, %v8366_v9 }
0x1439   :  { %v8386_v13 = vpop.eup %8385  ;;  %7979 = vmatprep.subr.msk.bf16.mxu0 %vm836_vm0, %v3847_v14  ;;  %v3707_v1 = vmul.f32 %v8384_v46, %v8364_v51  ;;  %v3867_v8 = vsel %vm836_vm0, %v3847_v14, 0  ;;  %v3873_v51 = vsel %vm836_vm0, %v3851_v35, 0 }
0x143a   :  { %v3706_v39 = vmul.f32 %v8386_v13, %v8370_v25 }
0x143b   :  { %v3714_v27 = vpack.c.bf16 %v3708_v7, %v3707_v1 }
0x143c   :  { %v3713_v5 = vpack.c.bf16 %v3706_v39, %v3705_v54 }
0x143e   :  { %7695 = vmatprep.mubr.msk.bf16.mxu0 %vm926_vm1, %v3713_v5  ;;  %v3835_v5 = vpop.permute.xlu0 %3834 }
0x143f   :  { %7696 = vmatmul.mubr.msk.bf16.vlgmr.msra.gmra.mrb[136].mxu0 %vm926_vm1, %v3714_v27 }
0x1440   :  { %7704 = vmatpush3.bf16.xpose.msra.mxu0 %v3867_v8 }
0x1441   :  { %7980 = vmatprep.subr.msk.bf16.mxu0 %vm836_vm0, %v3849_v49 }
0x1442   :  { %v3839_v8 = vpop.permute.xlu0 %3838 }
0x1448   :  { %7706 = vmatpush3.bf16.xpose.msra.mxu0 %v3870_v11 }
0x1449   :  { %7981 = vmatprep.subr.msk.bf16.mxu0 %vm836_vm0, %v3851_v35 }
0x1450   :  { %7708 = vmatpush3.bf16.xpose.msra.mxu0 %v3873_v51 }
0x1467   :  { %v3696_v9 = vpop.xlane.xlu1 %3695 }
0x1468   :  { %8387 = vrcp.f32 %v3696_v9 }
0x1469   :  { %8389 = vrcp.f32 %v3687_v61 }
0x146a   :  { %8391 = vrcp.f32 %v3693_v0 }
0x146b   :  { %v3690_v25 = vpop.xlane.xlu1 %3689 }
0x146c   :  { %8393 = vrcp.f32 %v3690_v25 }
0x146f   :  { %v3853_v20 = vpop.permute.xlu1 %3852 }
0x1470   :  { %7982 = vmatprep.subr.msk.bf16.mxu0 %vm836_vm0, %v3853_v20  ;;  %v3876_v29 = vsel %vm836_vm0, %v3853_v20, 0  ;;  %v7068_v20 = vld [vmem:[%s11136_s2 + $0x28] sm:$0xff]  }
0x1471   :  { %7710 = vmatpush3.bf16.xpose.msra.mxu0 %v3876_v29 }
0x1472   :  { %v8388_v40 = vpop.eup %8387 }
0x1473   :  { %v8390_v46 = vpop.eup %8389  ;;  %v3712_v7 = vmul.f32 %v8388_v40, %v8376_v42  ;;  %v3837_v27 = vpop.permute.xlu1 %3836 }
0x1474   :  { %v8392_v14 = vpop.eup %8391  ;;  %v3709_v54 = vmul.f32 %v8390_v46, %v10017_v15 }
0x1475   :  { %v3711_v1 = vmul.f32 %v8392_v14, %v10013_v26  ;;  %v7067_v14 = vld [vmem:[%s11136_s2 + $0x20] sm:$0xff]  }
0x1476   :  { %v8394_v13 = vpop.eup %8393 }
0x1477   :  { %v3710_v39 = vmul.f32 %v8394_v13, %v8378_v17  ;;  %v3716_v0 = vpack.c.bf16 %v3712_v7, %v3711_v1  ;;  %v3841_v42 = vpop.permute.xlu1 %3840  ;;  %v6927_v13 = vunpack.c.l.bf16 %v7068_v20  ;;  %v6923_v7 = vunpack.c.l.bf16 %v7067_v14 }
0x1479   :  { %v3715_v61 = vpack.c.bf16 %v3710_v39, %v3709_v54  ;;  %v6924_v39 = vunpack.c.h.bf16 %v7067_v14 }
0x147b   :  { %7699 = vmatprep.mubr.msk.bf16.mxu0 %vm926_vm1, %v3715_v61 }
0x147c   :  { %7700 = vmatmul.mubr.msk.bf16.gmra.mrb[140].mxu0 %vm926_vm1, %v3716_v0 }
0x147d   :  { %7711 = vmatprep.mubr.msk.bf16.mxu0 %vm836_vm0, %v3835_v5 }
0x1484   :  { %7712 = vmatmul.mubr.msk.bf16.vlgmr.msra.gmra.mrb[144].mxu0 %vm836_vm0, %v3837_v27  ;;  %v6928_v27 = vunpack.c.h.bf16 %v7068_v20 }
0x1485   :  { %7715 = vmatprep.mubr.msk.bf16.mxu0 %vm836_vm0, %v3839_v8 }
0x148c   :  { %7716 = vmatmul.mubr.msk.bf16.gmra.mrb[148].mxu0 %vm836_vm0, %v3841_v42 }
0x1512   :  { %v7697_v15 = vpop.f32.mrb[136].mxu0 }
0x1513   :  { %v3763_v26 = vpop.f32.mrb[137].mxu0 }
0x1514   :  { %v7698_v17 = vpop.f32.mrb[138].mxu0 }
0x1515   :  { %v3795_v49 = vpack.c.bf16 %v7698_v17, %v7697_v15  ;;  %v3766_v11 = vpop.f32.mrb[139].mxu0 }
0x1516   :  { %v3794_v35 = vpack.c.bf16 %v3766_v11, %v3763_v26  ;;  %v7070_v26 = vld [vmem:[%s11136_s2 + $0x38] sm:$0xff]  }
0x1517   :  { %3799 = vst.msk [vmem:[#allocation3 + $0x50] sm:$0xff] %vm836_vm0, %v3795_v49 }
0x1518   :  { %3798 = vst.msk [vmem:[#allocation3 + $0x40] sm:$0xff] %vm836_vm0, %v3794_v35  ;;  %v6935_v35 = vunpack.c.l.bf16 %v7070_v26 }
0x154f   :  { %v7701_v51 = vpop.f32.mrb[140].mxu0 }
0x1550   :  { %v3779_v9 = vpop.f32.mrb[141].mxu0 }
0x1551   :  { %v7702_v25 = vpop.f32.mrb[142].mxu0 }
0x1552   :  { %v3797_v29 = vpack.c.bf16 %v7702_v25, %v7701_v51  ;;  %v3782_v40 = vpop.f32.mrb[143].mxu0 }
0x1553   :  { %v3796_v46 = vpack.c.bf16 %v3782_v40, %v3779_v9  ;;  %v7069_v9 = vld [vmem:[%s11136_s2 + $0x30] sm:$0xff]  }
0x1554   :  { %3801 = vst.msk [vmem:[#allocation3 + $0x70] sm:$0xff] %vm836_vm0, %v3797_v29  ;;  %v6931_v40 = vunpack.c.l.bf16 %v7069_v9 }
0x1555   :  { %3800 = vst.msk [vmem:[#allocation3 + $0x60] sm:$0xff] %vm836_vm0, %v3796_v46 }
0x1557   :  { %v7713_v54 = vpop.f32.mrb[144].mxu0 }
0x1558   :  { %v3921_v1 = vadd.f32 %v7713_v54, %v6927_v13  ;;  %v3912_v61 = vpop.f32.mrb[145].mxu0 }
0x1559   :  { %v7714_v0 = vpop.f32.mrb[146].mxu0  ;;  %v3913_v5 = vadd.f32 %v6923_v7, %v3912_v61 }
0x155a   :  { %v3915_v8 = vpop.f32.mrb[147].mxu0  ;;  %v3949_v42 = vsel %vm926_vm1, %v3921_v1, -inf  ;;  %v3924_v49 = vadd.f32 %v7714_v0, %v6928_v27  ;;  %v6932_v0 = vunpack.c.h.bf16 %v7069_v9 }
0x155b   :  { %v3916_v15 = vadd.f32 %v6924_v39, %v3915_v8  ;;  %3950 = vmax.xlane.f32.xlu0 %v3949_v42  ;;  %v3943_v11 = vsel %vm926_vm1, %v3913_v5, -inf  ;;  %v6936_v39 = vunpack.c.h.bf16 %v7070_v26 }
0x155c   :  { %v3952_v14 = vsel %vm926_vm1, %v3924_v49, -inf }
0x155d   :  { %v3946_v17 = vsel %vm926_vm1, %v3916_v15, -inf }
0x155e   :  { %3947 = vmax.xlane.f32.xlu1 %v3946_v17 }
0x155f   :  { %3944 = vmax.xlane.f32.xlu0 %v3943_v11  ;;  %v7717_v51 = vpop.f32.mrb[148].mxu0 }
0x1560   :  { %v3928_v25 = vpop.f32.mrb[149].mxu0  ;;  %v3937_v29 = vadd.f32 %v7717_v51, %v6935_v35 }
0x1561   :  { %v7718_v20 = vpop.f32.mrb[150].mxu0  ;;  %v3929_v13 = vadd.f32 %v6931_v40, %v3928_v25 }
0x1562   :  { %v3931_v46 = vpop.f32.mrb[151].mxu0  ;;  %v3961_v7 = vsel %vm926_vm1, %v3937_v29, -inf  ;;  %v10085_v61 = vadd.f32 %v7718_v20, %v6936_v39 }
0x1563   :  { %3953 = vmax.xlane.f32.xlu0 %v3952_v14  ;;  %v3955_v54 = vsel %vm926_vm1, %v3929_v13, -inf  ;;  %v10087_v27 = vadd.f32 %v6932_v0, %v3931_v46 }
0x1564   :  { %v3964_v8 = vsel %vm926_vm1, %v10085_v61, -inf }
0x1565   :  { %v3958_v42 = vsel %vm926_vm1, %v10087_v27, -inf }
0x1567   :  { %3962 = vmax.xlane.f32.xlu0 %v3961_v7 }
0x156b   :  { %3956 = vmax.xlane.f32.xlu0 %v3955_v54 }
0x156f   :  { %4041 = vrot.lane.b32.xlu1 %v9345_v55, %s8620_s10 }
0x1573   :  { %4043 = vrot.lane.b32.xlu1 %v9351_v50, %s8620_s10 }
0x1581   :  { %4039 = vrot.lane.b32.xlu0 %v9338_v3, %s8620_s10 }
0x1597   :  { %3965 = vmax.xlane.f32.xlu1 %v3964_v8 }
0x159b   :  { %3959 = vmax.xlane.f32.xlu1 %v3958_v42 }
0x15ac   :  { %4045 = vrot.lane.b32.xlu1 %v9358_v34, %s8620_s10 }
0x15e8   :  { %v3951_v17 = vpop.xlane.xlu0 %3950 }
0x15e9   :  { %v3969_v11 = vsub.f32 %v3921_v1, %v3951_v17 }
0x15eb   :  { %v3979_v35 = vmul.f32 1.442695, %v3969_v11  ;;  %v3948_v26 = vpop.xlane.xlu1 %3947 }
0x15ec   :  { %v3945_v51 = vpop.xlane.xlu0 %3944  ;;  %v3968_v25 = vsub.f32 %v3916_v15, %v3948_v26 }
0x15ed   :  { %8395 = vpow2.f32 %v3979_v35  ;;  %v3967_v9 = vsub.f32 %v3913_v5, %v3945_v51 }
0x15ee   :  { %v3977_v14 = vmul.f32 1.442695, %v3968_v25 }
0x15ef   :  { %v3975_v20 = vmul.f32 1.442695, %v3967_v9 }
0x15f0   :  { %v3954_v40 = vpop.xlane.xlu0 %3953 }
0x15f1   :  { %8397 = vpow2.f32 %v3975_v20  ;;  %v3970_v46 = vsub.f32 %v3924_v49, %v3954_v40  ;;  %v4042_v49 = vpop.permute.xlu1 %4041 }
0x15f3   :  { %v3981_v7 = vmul.f32 1.442695, %v3970_v46 }
0x15f4   :  { %v3963_v54 = vpop.xlane.xlu0 %3962 }
0x15f5   :  { %8399 = vpow2.f32 %v3981_v7  ;;  %v3973_v39 = vsub.f32 %v3937_v29, %v3963_v54 }
0x15f6   :  { %8401 = vpow2.f32 %v3977_v14 }
0x15f7   :  { %v10095_v0 = vpop.eup %8395  ;;  %v3987_v8 = vmul.f32 1.442695, %v3973_v39 }
0x15f8   :  { %v3957_v1 = vpop.xlane.xlu0 %3956  ;;  %v3997_v42 = vsel %vm926_vm1, %v10095_v0, 0.0 }
0x15f9   :  { %8403 = vpow2.f32 %v3987_v8  ;;  %v3971_v5 = vsub.f32 %v3929_v13, %v3957_v1  ;;  %3998 = vadd.xlane.f32.xlu0 %v3997_v42  ;;  %v4044_v13 = vpop.permute.xlu1 %4043 }
0x15fb   :  { %v10099_v15 = vpop.eup %8397  ;;  %v3983_v17 = vmul.f32 1.442695, %v3971_v5 }
0x15fc   :  { %v4040_v11 = vpop.permute.xlu0 %4039  ;;  %v3991_v35 = vsel %vm926_vm1, %v10099_v15, 0.0 }
0x15fd   :  { %8405 = vpow2.f32 %v3983_v17  ;;  %3992 = vadd.xlane.f32.xlu0 %v3991_v35  ;;  %7719 = vmatprep.subr.bf16.mxu1 %v4040_v11 }
0x15fe   :  { %7720 = vmatpush3.bf16.msra.mxu1 %v4040_v11 }
0x15ff   :  { %v8400_v29 = vpop.eup %8399  ;;  %7721 = vmatprep.subr.bf16.mxu1 %v4042_v49 }
0x1600   :  { %v4000_v26 = vsel %vm926_vm1, %v8400_v29, 0.0  ;;  %v8402_v51 = vpop.eup %8401 }
0x1601   :  { %4001 = vadd.xlane.f32.xlu1 %v4000_v26  ;;  %v3994_v25 = vsel %vm926_vm1, %v8402_v51, 0.0 }
0x1602   :  { %7722 = vmatpush3.bf16.msra.mxu1 %v4042_v49 }
0x1603   :  { %v10104_v9 = vpop.eup %8403  ;;  %7723 = vmatprep.subr.bf16.mxu1 %v4044_v13 }
0x1604   :  { %v4009_v20 = vsel %vm926_vm1, %v10104_v9, 0.0 }
0x1605   :  { %3995 = vadd.xlane.f32.xlu1 %v3994_v25  ;;  %4010 = vadd.xlane.f32.xlu0 %v4009_v20 }
0x1606   :  { %7724 = vmatpush3.bf16.msra.mxu1 %v4044_v13 }
0x1607   :  { %v10109_v40 = vpop.eup %8405 }
0x1608   :  { %v4003_v46 = vsel %vm926_vm1, %v10109_v40, 0.0 }
0x1609   :  { %4004 = vadd.xlane.f32.xlu0 %v4003_v46 }
0x1616   :  { %4198 = vrot.lane.b32.xlu1 %v8840_v6, %s8621_s11 }
0x161a   :  { %4200 = vrot.lane.b32.xlu1 %v8848_v18, %s8621_s11 }
0x1624   :  { %v3966_v14 = vpop.xlane.xlu1 %3965 }
0x1625   :  { %v3974_v7 = vsub.f32 %v10085_v61, %v3966_v14 }
0x1627   :  { %v3989_v54 = vmul.f32 1.442695, %v3974_v7 }
0x1628   :  { %v3960_v39 = vpop.xlane.xlu1 %3959 }
0x1629   :  { %8407 = vpow2.f32 %v3989_v54  ;;  %v3972_v8 = vsub.f32 %v10087_v27, %v3960_v39 }
0x162b   :  { %v3985_v1 = vmul.f32 1.442695, %v3972_v8 }
0x162c   :  { %v4046_v42 = vpop.permute.xlu1 %4045 }
0x162d   :  { %7725 = vmatprep.subr.bf16.mxu1 %v4046_v42  ;;  %8409 = vpow2.f32 %v3985_v1 }
0x162e   :  { %7726 = vmatpush3.bf16.msra.mxu1 %v4046_v42 }
0x1633   :  { %v8408_v5 = vpop.eup %8407 }
0x1634   :  { %v4012_v17 = vsel %vm926_vm1, %v8408_v5, 0.0 }
0x1635   :  { %4013 = vadd.xlane.f32.xlu0 %v4012_v17 }
0x1637   :  { %v8410_v49 = vpop.eup %8409 }
0x1638   :  { %v4006_v11 = vsel %vm926_vm1, %v8410_v49, 0.0 }
0x163e   :  { %4007 = vadd.xlane.f32.xlu1 %v4006_v11 }
0x164b   :  { %4196 = vrot.lane.b32.xlu0 %v8832_v57, %s8621_s11 }
0x164f   :  { %4202 = vrot.lane.b32.xlu1 %v8856_v32, %s8621_s11  ;;  %4184 = vrot.lane.b32.xlu0 %v8852_v23, %s8621_s11 }
0x1653   :  { %4186 = vrot.lane.b32.xlu1 %v8860_v43, %s8621_s11  ;;  %4188 = vrot.lane.b32.xlu0 %v8864_v53, %s8621_s11 }
0x1657   :  { %4190 = vrot.lane.b32.xlu1 %v11232_v16, %s8621_s11 }
0x1686   :  { %v3999_v61 = vpop.xlane.xlu0 %3998 }
0x168a   :  { %v3993_v27 = vpop.xlane.xlu0 %3992 }
0x168e   :  { %v4002_v35 = vpop.xlane.xlu1 %4001 }
0x168f   :  { %8411 = vrcp.f32 %v4002_v35 }
0x1690   :  { %8413 = vrcp.f32 %v3993_v27 }
0x1691   :  { %8415 = vrcp.f32 %v3999_v61 }
0x1692   :  { %v3996_v26 = vpop.xlane.xlu1 %3995  ;;  %v4011_v42 = vpop.xlane.xlu0 %4010 }
0x1693   :  { %8417 = vrcp.f32 %v3996_v26 }
0x1696   :  { %v4005_v17 = vpop.xlane.xlu0 %4004  ;;  %v4199_v11 = vpop.permute.xlu1 %4198 }
0x1699   :  { %v8412_v13 = vpop.eup %8411 }
0x169a   :  { %v8414_v25 = vpop.eup %8413  ;;  %v4026_v14 = vmul.f32 %v8412_v13, %v8400_v29  ;;  %v4201_v35 = vpop.permute.xlu1 %4200 }
0x169b   :  { %v8416_v20 = vpop.eup %8415  ;;  %v4023_v7 = vmul.f32 %v8414_v25, %v10099_v15  ;;  %v4220_v15 = vsel %vm836_vm0, %v4199_v11, 0 }
0x169c   :  { %v4025_v39 = vmul.f32 %v8416_v20, %v10095_v0 }
0x169d   :  { %v8418_v46 = vpop.eup %8417 }
0x169e   :  { %v4024_v54 = vmul.f32 %v8418_v46, %v8402_v51  ;;  %v4032_v1 = vpack.c.bf16 %v4026_v14, %v4025_v39  ;;  %v4223_v46 = vsel %vm836_vm0, %v4201_v35, 0 }
0x16a0   :  { %v4031_v8 = vpack.c.bf16 %v4024_v54, %v4023_v7 }
0x16a2   :  { %7727 = vmatprep.mubr.msk.bf16.mxu1 %vm926_vm1, %v4031_v8 }
0x16a3   :  { %7728 = vmatmul.mubr.msk.bf16.vlgmr.msra.gmra.mrb[96].mxu1 %vm926_vm1, %v4032_v1 }
0x16c2   :  { %v4014_v61 = vpop.xlane.xlu0 %4013 }
0x16c3   :  { %8419 = vrcp.f32 %v4014_v61 }
0x16c4   :  { %8421 = vrcp.f32 %v4005_v17 }
0x16c5   :  { %8423 = vrcp.f32 %v4011_v42 }
0x16c6   :  { %v4197_v27 = vpop.permute.xlu0 %4196 }
0x16c7   :  { %7983 = vmatprep.subr.msk.bf16.mxu1 %vm836_vm0, %v4197_v27  ;;  %v4217_v29 = vsel %vm836_vm0, %v4197_v27, 0 }
0x16c8   :  { %7736 = vmatpush3.bf16.xpose.msra.mxu1 %v4217_v29 }
0x16c9   :  { %7984 = vmatprep.subr.msk.bf16.mxu1 %vm836_vm0, %v4199_v11 }
0x16ca   :  { %v4185_v42 = vpop.permute.xlu0 %4184 }
0x16cb   :  { %v4008_v0 = vpop.xlane.xlu1 %4007 }
0x16cc   :  { %8425 = vrcp.f32 %v4008_v0 }
0x16cd   :  { %v8420_v51 = vpop.eup %8419 }
0x16ce   :  { %v8422_v26 = vpop.eup %8421  ;;  %v4030_v20 = vmul.f32 %v8420_v51, %v8408_v5 }
0x16cf   :  { %v8424_v13 = vpop.eup %8423  ;;  %v4027_v14 = vmul.f32 %v8422_v26, %v10109_v40  ;;  %v4203_v54 = vpop.permute.xlu1 %4202 }
0x16d0   :  { %7738 = vmatpush3.bf16.xpose.msra.mxu1 %v4220_v15  ;;  %v4029_v39 = vmul.f32 %v8424_v13, %v10104_v9  ;;  %v4226_v5 = vsel %vm836_vm0, %v4203_v54, 0 }
0x16d1   :  { %7985 = vmatprep.subr.msk.bf16.mxu1 %vm836_vm0, %v4201_v35 }
0x16d2   :  { %v4034_v1 = vpack.c.bf16 %v4030_v20, %v4029_v39  ;;  %v7072_v20 = vld [vmem:[%s11136_s2 + $0x48] sm:$0xff]  }
0x16d3   :  { %v4187_v40 = vpop.permute.xlu1 %4186 }
0x16d6   :  { %v8426_v25 = vpop.eup %8425 }
0x16d7   :  { %v4028_v7 = vmul.f32 %v8426_v25, %v8410_v49  ;;  %v4189_v49 = vpop.permute.xlu0 %4188  ;;  %v4191_v9 = vpop.permute.xlu1 %4190  ;;  %v7074_v25 = vld [vmem:[%s11136_s2 + $0x58] sm:$0xff]  }
0x16d8   :  { %7740 = vmatpush3.bf16.xpose.msra.mxu1 %v4223_v46  ;;  %v7071_v46 = vld [vmem:[%s11136_s2 + $0x40] sm:$0xff]  }
0x16d9   :  { %7986 = vmatprep.subr.msk.bf16.mxu1 %vm836_vm0, %v4203_v54  ;;  %v4033_v8 = vpack.c.bf16 %v4028_v7, %v4027_v14  ;;  %v6943_v14 = vunpack.c.l.bf16 %v7072_v20  ;;  %v6939_v7 = vunpack.c.l.bf16 %v7071_v46  ;;  %v6940_v39 = vunpack.c.h.bf16 %v7071_v46 }
0x16db   :  { %7731 = vmatprep.mubr.msk.bf16.mxu1 %vm926_vm1, %v4033_v8 }
0x16dc   :  { %7732 = vmatmul.mubr.msk.bf16.gmra.mrb[100].mxu1 %vm926_vm1, %v4034_v1 }
0x16dd   :  { %7743 = vmatprep.mubr.msk.bf16.mxu1 %vm836_vm0, %v4185_v42 }
0x16e0   :  { %7742 = vmatpush3.bf16.xpose.msra.mxu1 %v4226_v5 }
0x16e7   :  { %7744 = vmatmul.mubr.msk.bf16.vlgmr.msra.gmra.mrb[104].mxu1 %vm836_vm0, %v4187_v40  ;;  %v6944_v40 = vunpack.c.h.bf16 %v7072_v20  ;;  %v7073_v20 = vld [vmem:[%s11136_s2 + $0x50] sm:$0xff]  }
0x16e8   :  { %7747 = vmatprep.mubr.msk.bf16.mxu1 %vm836_vm0, %v4189_v49 }
0x16ef   :  { %7748 = vmatmul.mubr.msk.bf16.gmra.mrb[108].mxu1 %vm836_vm0, %v4191_v9 }
0x1776   :  { %v10153_v17 = vpop.f32.mrb[96].mxu1 }
0x1777   :  { %11237 = vst [vmem:[#allocation37_spill] sm:$0xff] %v10153_v17  ;;  %v10155_v11 = vpop.f32.mrb[97].mxu1 }
0x1778   :  { %11238 = vst [vmem:[#allocation38_spill] sm:$0xff] %v10155_v11  ;;  %v10157_v61 = vpop.f32.mrb[98].mxu1 }
0x1779   :  { %11239 = vst [vmem:[#allocation39_spill] sm:$0xff] %v10157_v61  ;;  %v10161_v35 = vpop.f32.mrb[99].mxu1 }
0x177a   :  { %11240 = vst [vmem:[#allocation40_spill] sm:$0xff] %v10161_v35 }
0x17af   :  { %v10165_v0 = vpop.f32.mrb[100].mxu1 }
0x17b0   :  { %11241 = vst [vmem:[#allocation41_spill] sm:$0xff] %v10165_v0  ;;  %v10167_v15 = vpop.f32.mrb[101].mxu1 }
0x17b1   :  { %11242 = vst [vmem:[#allocation42_spill] sm:$0xff] %v10167_v15  ;;  %v10169_v51 = vpop.f32.mrb[102].mxu1 }
0x17b2   :  { %11243 = vst [vmem:[#allocation43_spill] sm:$0xff] %v10169_v51  ;;  %v10173_v13 = vpop.f32.mrb[103].mxu1 }
0x17b3   :  { %11244 = vst [vmem:[#allocation44_spill] sm:$0xff] %v10173_v13 }
0x17ba   :  { %v7745_v54 = vpop.f32.mrb[104].mxu1 }
0x17bb   :  { %v4271_v8 = vadd.f32 %v7745_v54, %v6943_v14  ;;  %v4262_v1 = vpop.f32.mrb[105].mxu1  ;;  %v6951_v14 = vunpack.c.l.bf16 %v7074_v25 }
0x17bc   :  { %v7746_v42 = vpop.f32.mrb[106].mxu1  ;;  %v4263_v5 = vadd.f32 %v6939_v7, %v4262_v1 }
0x17bd   :  { %v4265_v49 = vpop.f32.mrb[107].mxu1  ;;  %v4299_v9 = vsel %vm926_vm1, %v4271_v8, -inf  ;;  %v4274_v29 = vadd.f32 %v7746_v42, %v6944_v40  ;;  %v6952_v40 = vunpack.c.h.bf16 %v7074_v25 }
0x17be   :  { %v4266_v26 = vadd.f32 %v6940_v39, %v4265_v49  ;;  %4300 = vmax.xlane.f32.xlu0 %v4299_v9  ;;  %v4293_v46 = vsel %vm926_vm1, %v4263_v5, -inf  ;;  %v6947_v49 = vunpack.c.l.bf16 %v7073_v20 }
0x17bf   :  { %v4302_v0 = vsel %vm926_vm1, %v4274_v29, -inf }
0x17c0   :  { %v4296_v27 = vsel %vm926_vm1, %v4266_v26, -inf }
0x17c1   :  { %4297 = vmax.xlane.f32.xlu1 %v4296_v27 }
0x17c2   :  { %4294 = vmax.xlane.f32.xlu0 %v4293_v46  ;;  %v7749_v54 = vpop.f32.mrb[108].mxu1 }
0x17c3   :  { %v4278_v7 = vpop.f32.mrb[109].mxu1  ;;  %v4287_v1 = vadd.f32 %v7749_v54, %v6951_v14 }
0x17c4   :  { %v7750_v39 = vpop.f32.mrb[110].mxu1  ;;  %v4279_v51 = vadd.f32 %v6947_v49, %v4278_v7 }
0x17c5   :  { %v4281_v9 = vpop.f32.mrb[111].mxu1  ;;  %v4311_v27 = vsel %vm926_vm1, %v4287_v1, -inf  ;;  %v10201_v46 = vadd.f32 %v7750_v39, %v6952_v40 }
0x17c6   :  { %4303 = vmax.xlane.f32.xlu0 %v4302_v0  ;;  %v4305_v42 = vsel %vm926_vm1, %v4279_v51, -inf  ;;  %v6948_v0 = vunpack.c.h.bf16 %v7073_v20 }
0x17c7   :  { %v4314_v54 = vsel %vm926_vm1, %v10201_v46, -inf }
0x17c8   :  { %v10203_v14 = vadd.f32 %v6948_v0, %v4281_v9 }
0x17ca   :  { %4312 = vmax.xlane.f32.xlu0 %v4311_v27  ;;  %v4308_v7 = vsel %vm926_vm1, %v10203_v14, -inf }
0x17ce   :  { %4306 = vmax.xlane.f32.xlu0 %v4305_v42 }
0x17d2   :  { %4391 = vrot.lane.b32.xlu1 %v9345_v55, %s8621_s11 }
0x17d6   :  { %4393 = vrot.lane.b32.xlu1 %v9351_v50, %s8621_s11 }
0x17e4   :  { %4389 = vrot.lane.b32.xlu0 %v9338_v3, %s8621_s11 }
0x17fa   :  { %4315 = vmax.xlane.f32.xlu1 %v4314_v54 }
0x17fe   :  { %4309 = vmax.xlane.f32.xlu1 %v4308_v7 }
0x180f   :  { %4395 = vrot.lane.b32.xlu1 %v9358_v34, %s8621_s11 }
0x184b   :  { %v4301_v49 = vpop.xlane.xlu0 %4300 }
0x184c   :  { %v4319_v27 = vsub.f32 %v4271_v8, %v4301_v49 }
0x184e   :  { %v4329_v42 = vmul.f32 1.442695, %v4319_v27  ;;  %v4298_v25 = vpop.xlane.xlu1 %4297 }
0x184f   :  { %v4295_v39 = vpop.xlane.xlu0 %4294  ;;  %v4318_v9 = vsub.f32 %v4266_v26, %v4298_v25 }
0x1850   :  { %8427 = vpow2.f32 %v4329_v42  ;;  %v4317_v20 = vsub.f32 %v4263_v5, %v4295_v39 }
0x1851   :  { %v4327_v54 = vmul.f32 1.442695, %v4318_v9 }
0x1852   :  { %v4325_v40 = vmul.f32 1.442695, %v4317_v20 }
0x1853   :  { %v4304_v0 = vpop.xlane.xlu0 %4303 }
0x1854   :  { %8429 = vpow2.f32 %v4325_v40  ;;  %v4320_v15 = vsub.f32 %v4274_v29, %v4304_v0  ;;  %v4392_v29 = vpop.permute.xlu1 %4391 }
0x1856   :  { %v4331_v13 = vmul.f32 1.442695, %v4320_v15 }
0x1857   :  { %v4313_v17 = vpop.xlane.xlu0 %4312 }
0x1858   :  { %8431 = vpow2.f32 %v4331_v13  ;;  %v4323_v7 = vsub.f32 %v4287_v1, %v4313_v17 }
0x1859   :  { %8433 = vpow2.f32 %v4327_v54 }
0x185a   :  { %v10211_v61 = vpop.eup %8427  ;;  %v4337_v11 = vmul.f32 1.442695, %v4323_v7 }
0x185b   :  { %v4307_v8 = vpop.xlane.xlu0 %4306  ;;  %v4347_v49 = vsel %vm926_vm1, %v10211_v61, 0.0 }
0x185c   :  { %8435 = vpow2.f32 %v4337_v11  ;;  %v4321_v5 = vsub.f32 %v4279_v51, %v4307_v8  ;;  %4348 = vadd.xlane.f32.xlu0 %v4347_v49  ;;  %v4394_v11 = vpop.permute.xlu1 %4393 }
0x185e   :  { %v10215_v26 = vpop.eup %8429  ;;  %v4333_v27 = vmul.f32 1.442695, %v4321_v5 }
0x185f   :  { %v4390_v42 = vpop.permute.xlu0 %4389  ;;  %v4341_v15 = vsel %vm926_vm1, %v10215_v26, 0.0 }
0x1860   :  { %8437 = vpow2.f32 %v4333_v27  ;;  %4342 = vadd.xlane.f32.xlu0 %v4341_v15  ;;  %7751 = vmatprep.subr.bf16.mxu0 %v4390_v42 }
0x1861   :  { %7752 = vmatpush3.bf16.msra.mxu0 %v4390_v42 }
0x1862   :  { %v8432_v17 = vpop.eup %8431  ;;  %7753 = vmatprep.subr.bf16.mxu0 %v4392_v29 }
0x1863   :  { %v4350_v13 = vsel %vm926_vm1, %v8432_v17, 0.0  ;;  %v8434_v1 = vpop.eup %8433 }
0x1864   :  { %4351 = vadd.xlane.f32.xlu1 %v4350_v13  ;;  %v4344_v25 = vsel %vm926_vm1, %v8434_v1, 0.0 }
0x1865   :  { %7754 = vmatpush3.bf16.msra.mxu0 %v4392_v29 }
0x1866   :  { %v10220_v51 = vpop.eup %8435  ;;  %7755 = vmatprep.subr.bf16.mxu0 %v4394_v11 }
0x1867   :  { %v4359_v39 = vsel %vm926_vm1, %v10220_v51, 0.0 }
0x1868   :  { %4345 = vadd.xlane.f32.xlu1 %v4344_v25  ;;  %4360 = vadd.xlane.f32.xlu0 %v4359_v39 }
0x1869   :  { %7756 = vmatpush3.bf16.msra.mxu0 %v4394_v11 }
0x186a   :  { %v10225_v20 = vpop.eup %8437 }
0x186b   :  { %v4353_v9 = vsel %vm926_vm1, %v10225_v20, 0.0 }
0x186c   :  { %4354 = vadd.xlane.f32.xlu0 %v4353_v9 }
0x1879   :  { %4548 = vrot.lane.b32.xlu1 %v8840_v6, %s8622_s27 }
0x187d   :  { %4550 = vrot.lane.b32.xlu1 %v8848_v18, %s8622_s27 }
0x1887   :  { %v4316_v40 = vpop.xlane.xlu1 %4315 }
0x1888   :  { %v4324_v0 = vsub.f32 %v10201_v46, %v4316_v40 }
0x188a   :  { %v4339_v54 = vmul.f32 1.442695, %v4324_v0 }
0x188b   :  { %v4310_v7 = vpop.xlane.xlu1 %4309 }
0x188c   :  { %8439 = vpow2.f32 %v4339_v54  ;;  %v4322_v8 = vsub.f32 %v10203_v14, %v4310_v7 }
0x188e   :  { %v4335_v49 = vmul.f32 1.442695, %v4322_v8 }
0x188f   :  { %v4396_v5 = vpop.permute.xlu1 %4395 }
0x1890   :  { %7757 = vmatprep.subr.bf16.mxu0 %v4396_v5  ;;  %8441 = vpow2.f32 %v4335_v49 }
0x1891   :  { %7758 = vmatpush3.bf16.msra.mxu0 %v4396_v5 }
0x1896   :  { %v8440_v27 = vpop.eup %8439 }
0x1897   :  { %v4362_v29 = vsel %vm926_vm1, %v8440_v27, 0.0 }
0x1898   :  { %4363 = vadd.xlane.f32.xlu0 %v4362_v29 }
0x189a   :  { %v8442_v6 = vpop.eup %8441 }
0x189b   :  { %v4356_v18 = vsel %vm926_vm1, %v8442_v6, 0.0 }
0x18a1   :  { %4357 = vadd.xlane.f32.xlu1 %v4356_v18 }
0x18ae   :  { %4546 = vrot.lane.b32.xlu0 %v8832_v57, %s8622_s27 }
0x18b2   :  { %4552 = vrot.lane.b32.xlu1 %v8856_v32, %s8622_s27  ;;  %4534 = vrot.lane.b32.xlu0 %v8852_v23, %s8622_s27 }
0x18b6   :  { %4536 = vrot.lane.b32.xlu1 %v8860_v43, %s8622_s27  ;;  %4538 = vrot.lane.b32.xlu0 %v8864_v53, %s8622_s27 }
0x18ba   :  { %4540 = vrot.lane.b32.xlu1 %v11232_v16, %s8622_s27 }
0x18e9   :  { %v4349_v46 = vpop.xlane.xlu0 %4348 }
0x18ed   :  { %v4343_v14 = vpop.xlane.xlu0 %4342 }
0x18f1   :  { %v4352_v42 = vpop.xlane.xlu1 %4351 }
0x18f2   :  { %8443 = vrcp.f32 %v4352_v42 }
0x18f3   :  { %8445 = vrcp.f32 %v4343_v14 }
0x18f4   :  { %8447 = vrcp.f32 %v4349_v46 }
0x18f5   :  { %v4346_v57 = vpop.xlane.xlu1 %4345  ;;  %v4361_v9 = vpop.xlane.xlu0 %4360 }
0x18f6   :  { %8449 = vrcp.f32 %v4346_v57 }
0x18f9   :  { %v4355_v40 = vpop.xlane.xlu0 %4354  ;;  %v4549_v0 = vpop.permute.xlu1 %4548 }
0x18fc   :  { %v8444_v32 = vpop.eup %8443 }
0x18fd   :  { %v8446_v15 = vpop.eup %8445  ;;  %v4376_v11 = vmul.f32 %v8444_v32, %v8432_v17  ;;  %v4551_v8 = vpop.permute.xlu1 %4550 }
0x18fe   :  { %v8448_v23 = vpop.eup %8447  ;;  %v4373_v43 = vmul.f32 %v8446_v15, %v10215_v26  ;;  %v4570_v26 = vsel %vm836_vm0, %v4549_v0, 0  ;;  %v4573_v46 = vsel %vm836_vm0, %v4551_v8, 0 }
0x18ff   :  { %v4375_v53 = vmul.f32 %v8448_v23, %v10211_v61 }
0x1900   :  { %v8450_v13 = vpop.eup %8449 }
0x1901   :  { %v4374_v25 = vmul.f32 %v8450_v13, %v8434_v1  ;;  %v4382_v16 = vpack.c.bf16 %v4376_v11, %v4375_v53 }
0x1903   :  { %v4381_v39 = vpack.c.bf16 %v4374_v25, %v4373_v43 }
0x1905   :  { %7759 = vmatprep.mubr.msk.bf16.mxu0 %vm926_vm1, %v4381_v39 }
0x1906   :  { %7760 = vmatmul.mubr.msk.bf16.vlgmr.msra.gmra.mrb[152].mxu0 %vm926_vm1, %v4382_v16 }
0x1925   :  { %v4364_v54 = vpop.xlane.xlu0 %4363 }
0x1926   :  { %8451 = vrcp.f32 %v4364_v54 }
0x1927   :  { %8453 = vrcp.f32 %v4355_v40 }
0x1928   :  { %8455 = vrcp.f32 %v4361_v9 }
0x1929   :  { %v4547_v7 = vpop.permute.xlu0 %4546 }
0x192a   :  { %7987 = vmatprep.subr.msk.bf16.mxu0 %vm836_vm0, %v4547_v7  ;;  %v4567_v17 = vsel %vm836_vm0, %v4547_v7, 0 }
0x192b   :  { %7768 = vmatpush3.bf16.xpose.msra.mxu0 %v4567_v17 }
0x192c   :  { %7988 = vmatprep.subr.msk.bf16.mxu0 %vm836_vm0, %v4549_v0 }
0x192d   :  { %v4535_v13 = vpop.permute.xlu0 %4534 }
0x192e   :  { %v4358_v61 = vpop.xlane.xlu1 %4357 }
0x192f   :  { %8457 = vrcp.f32 %v4358_v61  ;;  %v7076_v61 = vld [vmem:[%s11136_s2 + $0x68] sm:$0xff]  }
0x1930   :  { %v8452_v1 = vpop.eup %8451 }
0x1931   :  { %v8454_v49 = vpop.eup %8453  ;;  %v4380_v18 = vmul.f32 %v8452_v1, %v8440_v27  ;;  %v4539_v11 = vpop.permute.xlu0 %4538  ;;  %v6959_v1 = vunpack.c.l.bf16 %v7076_v61 }
0x1932   :  { %v8456_v5 = vpop.eup %8455  ;;  %v4377_v14 = vmul.f32 %v8454_v49, %v10225_v20  ;;  %v4553_v57 = vpop.permute.xlu1 %4552  ;;  %v11245_v20 = vld [vmem:[#allocation13_spill] sm:$0xff] }
0x1933   :  { %7770 = vmatpush3.bf16.xpose.msra.mxu0 %v4570_v26  ;;  %v4379_v32 = vmul.f32 %v8456_v5, %v10220_v51  ;;  %v4576_v27 = vsel %vm836_vm0, %v4553_v57, 0  ;;  %v7075_v26 = vld [vmem:[%s11136_s2 + $0x60] sm:$0xff]  }
0x1934   :  { %7989 = vmatprep.subr.msk.bf16.mxu0 %vm836_vm0, %v4551_v8  ;;  %v6955_v49 = vunpack.c.l.bf16 %v7075_v26 }
0x1935   :  { %v4384_v23 = vpack.c.bf16 %v4380_v18, %v4379_v32 }
0x1939   :  { %v8458_v29 = vpop.eup %8457 }
0x193a   :  { %v4378_v42 = vmul.f32 %v8458_v29, %v8442_v6  ;;  %v4537_v6 = vpop.permute.xlu1 %4536  ;;  %v6956_v29 = vunpack.c.h.bf16 %v7075_v26 }
0x193b   :  { %7772 = vmatpush3.bf16.xpose.msra.mxu0 %v4573_v46 }
0x193c   :  { %7990 = vmatprep.subr.msk.bf16.mxu0 %vm836_vm0, %v4553_v57  ;;  %v4383_v15 = vpack.c.bf16 %v4378_v42, %v4377_v14  ;;  %v6960_v57 = vunpack.c.h.bf16 %v7076_v61 }
0x193e   :  { %7763 = vmatprep.mubr.msk.bf16.mxu0 %vm926_vm1, %v4383_v15  ;;  %v4541_v51 = vpop.permute.xlu1 %4540 }
0x193f   :  { %7764 = vmatmul.mubr.msk.bf16.gmra.mrb[156].mxu0 %vm926_vm1, %v4384_v23 }
0x1940   :  { %7775 = vmatprep.mubr.msk.bf16.mxu0 %vm836_vm0, %v4535_v13  ;;  %v7077_v13 = vld [vmem:[%s11136_s2 + $0x70] sm:$0xff]  }
0x1941   :  { %v6963_v61 = vunpack.c.l.bf16 %v7077_v13 }
0x1943   :  { %7774 = vmatpush3.bf16.xpose.msra.mxu0 %v4576_v27 }
0x1944   :  { %7815 = vmatprep.subr.bf16.mxu0 %v11245_v20 }
0x194a   :  { %7776 = vmatmul.mubr.msk.bf16.vlgmr.msra.gmra.mrb[160].mxu0 %vm836_vm0, %v4537_v6  ;;  %v7078_v6 = vld [vmem:[%s11136_s2 + $0x78] sm:$0xff]  }
0x194b   :  { %7779 = vmatprep.mubr.msk.bf16.mxu0 %vm836_vm0, %v4539_v11  ;;  %7816 = vmatpush3.bf16.msra.mxu0 %v11245_v20  ;;  %v6968_v26 = vunpack.c.h.bf16 %v7078_v6 }
0x194c   :  { %7817 = vmatprep.subr.bf16.mxu0 %v9348_v62 }
0x194f   :  { %7818 = vmatpush3.bf16.msra.mxu0 %v9348_v62 }
0x1950   :  { %7819 = vmatprep.subr.bf16.mxu0 %v9354_v28 }
0x1952   :  { %7780 = vmatmul.mubr.msk.bf16.gmra.mrb[164].mxu0 %vm836_vm0, %v4541_v51 }
0x1953   :  { %7820 = vmatpush3.bf16.msra.mxu0 %v9354_v28 }
0x1954   :  { %7821 = vmatprep.subr.bf16.mxu0 %v9360_v47 }
0x1957   :  { %7822 = vmatpush3.bf16.msra.mxu0 %v9360_v47 }
0x19d9   :  { %v10277_v43 = vpop.f32.mrb[152].mxu0 }
0x19da   :  { %11246 = vst [vmem:[#allocation13_spill] sm:$0xff] %v10277_v43  ;;  %v10279_v25 = vpop.f32.mrb[153].mxu0 }
0x19db   :  { %11247 = vst [vmem:[#allocation45_spill] sm:$0xff] %v10279_v25  ;;  %v10281_v53 = vpop.f32.mrb[154].mxu0 }
0x19dc   :  { %11248 = vst [vmem:[#allocation46_spill] sm:$0xff] %v10281_v53  ;;  %v10285_v16 = vpop.f32.mrb[155].mxu0 }
0x19dd   :  { %11249 = vst [vmem:[#allocation47_spill] sm:$0xff] %v10285_v16 }
0x1a12   :  { %v10289_v40 = vpop.f32.mrb[156].mxu0 }
0x1a13   :  { %11250 = vst [vmem:[#allocation48_spill] sm:$0xff] %v10289_v40  ;;  %v10291_v0 = vpop.f32.mrb[157].mxu0 }
0x1a14   :  { %11251 = vst [vmem:[#allocation49_spill] sm:$0xff] %v10291_v0  ;;  %v10293_v54 = vpop.f32.mrb[158].mxu0 }
0x1a15   :  { %11252 = vst [vmem:[#allocation50_spill] sm:$0xff] %v10293_v54  ;;  %v10297_v8 = vpop.f32.mrb[159].mxu0 }
0x1a16   :  { %11253 = vst [vmem:[#allocation51_spill] sm:$0xff] %v10297_v8 }
0x1a1d   :  { %v7777_v5 = vpop.f32.mrb[160].mxu0 }
0x1a1e   :  { %v4621_v18 = vadd.f32 %v7777_v5, %v6959_v1  ;;  %v4612_v46 = vpop.f32.mrb[161].mxu0  ;;  %v6964_v5 = vunpack.c.h.bf16 %v7077_v13 }
0x1a1f   :  { %v7778_v14 = vpop.f32.mrb[162].mxu0  ;;  %v4613_v42 = vadd.f32 %v6955_v49, %v4612_v46  ;;  %v6967_v46 = vunpack.c.l.bf16 %v7078_v6 }
0x1a20   :  { %v4615_v32 = vpop.f32.mrb[163].mxu0  ;;  %v4649_v15 = vsel %vm926_vm1, %v4621_v18, -inf  ;;  %v4624_v11 = vadd.f32 %v7778_v14, %v6960_v57 }
0x1a21   :  { %v4616_v23 = vadd.f32 %v6956_v29, %v4615_v32  ;;  %4650 = vmax.xlane.f32.xlu0 %v4649_v15  ;;  %v4643_v51 = vsel %vm926_vm1, %v4613_v42, -inf }
0x1a22   :  { %v4652_v17 = vsel %vm926_vm1, %v4624_v11, -inf }
0x1a23   :  { %v4646_v27 = vsel %vm926_vm1, %v4616_v23, -inf }
0x1a24   :  { %4647 = vmax.xlane.f32.xlu1 %v4646_v27 }
0x1a25   :  { %4644 = vmax.xlane.f32.xlu0 %v4643_v51  ;;  %v7781_v1 = vpop.f32.mrb[164].mxu0 }
0x1a26   :  { %v4628_v49 = vpop.f32.mrb[165].mxu0  ;;  %v4637_v57 = vadd.f32 %v7781_v1, %v6967_v46 }
0x1a27   :  { %v7782_v29 = vpop.f32.mrb[166].mxu0  ;;  %v4629_v32 = vadd.f32 %v6963_v61, %v4628_v49 }
0x1a28   :  { %v4640_v15 = vadd.f32 %v7782_v29, %v6968_v26  ;;  %v4631_v7 = vpop.f32.mrb[167].mxu0  ;;  %v4661_v13 = vsel %vm926_vm1, %v4637_v57, -inf }
0x1a29   :  { %4653 = vmax.xlane.f32.xlu0 %v4652_v17  ;;  %v4632_v39 = vadd.f32 %v6964_v5, %v4631_v7  ;;  %v4655_v27 = vsel %vm926_vm1, %v4629_v32, -inf }
0x1a2a   :  { %v4664_v14 = vsel %vm926_vm1, %v4640_v15, -inf }
0x1a2b   :  { %4665 = vmax.xlane.f32.xlu1 %v4664_v14  ;;  %v4658_v51 = vsel %vm926_vm1, %v4632_v39, -inf }
0x1a2d   :  { %4656 = vmax.xlane.f32.xlu0 %v4655_v27 }
0x1a2f   :  { %4659 = vmax.xlane.f32.xlu1 %v4658_v51 }
0x1a31   :  { %4662 = vmax.xlane.f32.xlu0 %v4661_v13 }
0x1a40   :  { %4741 = vrot.lane.b32.xlu1 %v9345_v55, %s8622_s27 }
0x1a44   :  { %4743 = vrot.lane.b32.xlu1 %v9351_v50, %s8622_s27 }
0x1aae   :  { %v4651_v7 = vpop.xlane.xlu0 %4650 }
0x1aaf   :  { %v4669_v17 = vsub.f32 %v4621_v18, %v4651_v7 }
0x1ab1   :  { %v4679_v6 = vmul.f32 1.442695, %v4669_v17  ;;  %v4648_v61 = vpop.xlane.xlu1 %4647 }
0x1ab2   :  { %v4645_v26 = vpop.xlane.xlu0 %4644  ;;  %v4668_v49 = vsub.f32 %v4616_v23, %v4648_v61 }
0x1ab3   :  { %8459 = vpow2.f32 %v4679_v6  ;;  %v4667_v1 = vsub.f32 %v4613_v42, %v4645_v26 }
0x1ab4   :  { %v4677_v14 = vmul.f32 1.442695, %v4668_v49 }
0x1ab5   :  { %v4675_v5 = vmul.f32 1.442695, %v4667_v1 }
0x1ab6   :  { %v4654_v29 = vpop.xlane.xlu0 %4653 }
0x1ab7   :  { %8461 = vpow2.f32 %v4675_v5  ;;  %v4670_v46 = vsub.f32 %v4624_v11, %v4654_v29 }
0x1ab8   :  { %v4666_v17 = vpop.xlane.xlu1 %4665 }
0x1ab9   :  { %v4681_v27 = vmul.f32 1.442695, %v4670_v46  ;;  %v4674_v5 = vsub.f32 %v4640_v15, %v4666_v17 }
0x1aba   :  { %v4657_v7 = vpop.xlane.xlu0 %4656 }
0x1abb   :  { %8463 = vpow2.f32 %v4681_v27  ;;  %v4671_v6 = vsub.f32 %v4629_v32, %v4657_v7 }
0x1abc   :  { %8465 = vpow2.f32 %v4677_v14  ;;  %v4660_v49 = vpop.xlane.xlu1 %4659  ;;  %v4689_v14 = vmul.f32 1.442695, %v4674_v5 }
0x1abd   :  { %v10325_v51 = vpop.eup %8459  ;;  %v4683_v26 = vmul.f32 1.442695, %v4671_v6  ;;  %v4672_v29 = vsub.f32 %v4632_v39, %v4660_v49 }
0x1abe   :  { %v4697_v55 = vsel %vm926_vm1, %v10325_v51, 0.0  ;;  %v4663_v61 = vpop.xlane.xlu0 %4662 }
0x1abf   :  { %4698 = vadd.xlane.f32.xlu0 %v4697_v55  ;;  %v4673_v1 = vsub.f32 %v4637_v57, %v4663_v61  ;;  %8467 = vpow2.f32 %v4683_v26  ;;  %v4685_v27 = vmul.f32 1.442695, %v4672_v29 }
0x1ac1   :  { %v10329_v50 = vpop.eup %8461  ;;  %v4687_v46 = vmul.f32 1.442695, %v4673_v1 }
0x1ac2   :  { %v4691_v18 = vsel %vm926_vm1, %v10329_v50, 0.0 }
0x1ac3   :  { %4692 = vadd.xlane.f32.xlu0 %v4691_v18  ;;  %8469 = vpow2.f32 %v4687_v46 }
0x1ac4   :  { %8471 = vpow2.f32 %v4689_v14 }
0x1ac5   :  { %v8464_v42 = vpop.eup %8463  ;;  %8473 = vpow2.f32 %v4685_v27  ;;  %v11254_v27 = vld [vmem:[#allocation4_spill] sm:$0xff] }
0x1ac6   :  { %v4700_v23 = vsel %vm926_vm1, %v8464_v42, 0.0  ;;  %v8466_v11 = vpop.eup %8465 }
0x1ac7   :  { %4701 = vadd.xlane.f32.xlu1 %v4700_v23  ;;  %v4694_v13 = vsel %vm926_vm1, %v8466_v11, 0.0  ;;  %v4742_v23 = vpop.permute.xlu1 %4741 }
0x1acb   :  { %4695 = vadd.xlane.f32.xlu1 %v4694_v13  ;;  %v4744_v7 = vpop.permute.xlu1 %4743 }
0x1ad9   :  { %4739 = vrot.lane.b32.xlu0 %v9338_v3, %s8622_s27  ;;  %v10339_v3 = vpop.eup %8467 }
0x1ada   :  { %v10343_v55 = vpop.eup %8469 }
0x1adb   :  { %v10345_v32 = vpop.eup %8471  ;;  %v4709_v15 = vsel %vm926_vm1, %v10343_v55, 0.0 }
0x1adc   :  { %4745 = vrot.lane.b32.xlu1 %v9358_v34, %s8622_s27  ;;  %v4703_v34 = vsel %vm926_vm1, %v10339_v3, 0.0  ;;  %v10349_v39 = vpop.eup %8473  ;;  %v4712_v18 = vsel %vm926_vm1, %v10345_v32, 0.0 }
0x1add   :  { %v4706_v57 = vsel %vm926_vm1, %v10349_v39, 0.0 }
0x1af8   :  { %4704 = vadd.xlane.f32.xlu0 %v4703_v34 }
0x1afc   :  { %4710 = vadd.xlane.f32.xlu0 %v4709_v15 }
0x1b00   :  { %4707 = vadd.xlane.f32.xlu1 %v4706_v57  ;;  %4713 = vadd.xlane.f32.xlu0 %v4712_v18 }
0x1b4c   :  { %v4699_v13 = vpop.xlane.xlu0 %4698 }
0x1b50   :  { %v4693_v17 = vpop.xlane.xlu0 %4692 }
0x1b54   :  { %v4702_v6 = vpop.xlane.xlu1 %4701  ;;  %v4740_v61 = vpop.permute.xlu0 %4739 }
0x1b55   :  { %7783 = vmatprep.subr.bf16.mxu1 %v4740_v61  ;;  %8475 = vrcp.f32 %v4702_v6 }
0x1b56   :  { %7784 = vmatpush3.bf16.msra.mxu1 %v4740_v61  ;;  %8477 = vrcp.f32 %v4693_v17 }
0x1b57   :  { %7785 = vmatprep.subr.bf16.mxu1 %v4742_v23  ;;  %8479 = vrcp.f32 %v4699_v13  ;;  %v4893_v13 = vsel %vm836_vm0, %v11254_v27, 0 }
0x1b58   :  { %v4696_v26 = vpop.xlane.xlu1 %4695 }
0x1b59   :  { %8481 = vrcp.f32 %v4696_v26 }
0x1b5a   :  { %7786 = vmatpush3.bf16.msra.mxu1 %v4742_v23 }
0x1b5b   :  { %7787 = vmatprep.subr.bf16.mxu1 %v4744_v7 }
0x1b5c   :  { %v4746_v1 = vpop.permute.xlu1 %4745 }
0x1b5e   :  { %7788 = vmatpush3.bf16.msra.mxu1 %v4744_v7  ;;  %v11255_v7 = vld [vmem:[#allocation5_spill] sm:$0xff] }
0x1b5f   :  { %7789 = vmatprep.subr.bf16.mxu1 %v4746_v1  ;;  %v8476_v49 = vpop.eup %8475 }
0x1b60   :  { %v8478_v5 = vpop.eup %8477  ;;  %v4726_v14 = vmul.f32 %v8476_v49, %v8464_v42  ;;  %v4896_v42 = vsel %vm836_vm0, %v11255_v7, 0 }
0x1b61   :  { %v8480_v29 = vpop.eup %8479  ;;  %v4723_v34 = vmul.f32 %v8478_v5, %v10329_v50  ;;  %v11256_v50 = vld [vmem:[#allocation6_spill] sm:$0xff] }
0x1b62   :  { %7790 = vmatpush3.bf16.msra.mxu1 %v4746_v1  ;;  %v4725_v57 = vmul.f32 %v8480_v29, %v10325_v51  ;;  %v4899_v51 = vsel %vm836_vm0, %v11256_v50, 0 }
0x1b63   :  { %v8482_v46 = vpop.eup %8481  ;;  %7991 = vmatprep.subr.msk.bf16.mxu1 %vm836_vm0, %v11254_v27 }
0x1b64   :  { %v4724_v15 = vmul.f32 %v8482_v46, %v8466_v11  ;;  %v4732_v23 = vpack.c.bf16 %v4726_v14, %v4725_v57  ;;  %v11257_v11 = vld [vmem:[#allocation8_spill] sm:$0xff] }
0x1b65   :  { %v4902_v17 = vsel %vm836_vm0, %v11257_v11, 0 }
0x1b66   :  { %v4731_v18 = vpack.c.bf16 %v4724_v15, %v4723_v34 }
0x1b68   :  { %7791 = vmatprep.mubr.msk.bf16.mxu1 %vm926_vm1, %v4731_v18 }
0x1b69   :  { %7792 = vmatmul.mubr.msk.bf16.vlgmr.msra.gmra.mrb[112].mxu1 %vm926_vm1, %v4732_v23 }
0x1b6b   :  { %7800 = vmatpush3.bf16.xpose.msra.mxu1 %v4893_v13  ;;  %v11258_v13 = vld [vmem:[#allocation7_spill] sm:$0xff] }
0x1b6c   :  { %7992 = vmatprep.subr.msk.bf16.mxu1 %vm836_vm0, %v11255_v7 }
0x1b73   :  { %7802 = vmatpush3.bf16.xpose.msra.mxu1 %v4896_v42  ;;  %v11259_v42 = vld [vmem:[#allocation9_spill] sm:$0xff] }
0x1b74   :  { %7993 = vmatprep.subr.msk.bf16.mxu1 %vm836_vm0, %v11256_v50 }
0x1b7b   :  { %7804 = vmatpush3.bf16.xpose.msra.mxu1 %v4899_v51  ;;  %v11260_v51 = vld [vmem:[#allocation10_spill] sm:$0xff] }
0x1b7c   :  { %7994 = vmatprep.subr.msk.bf16.mxu1 %vm836_vm0, %v11257_v11 }
0x1b83   :  { %7806 = vmatpush3.bf16.xpose.msra.mxu1 %v4902_v17 }
0x1b85   :  { %v4705_v6 = vpop.xlane.xlu0 %4704 }
0x1b86   :  { %8483 = vrcp.f32 %v4705_v6 }
0x1b89   :  { %v4711_v61 = vpop.xlane.xlu0 %4710 }
0x1b8a   :  { %8485 = vrcp.f32 %v4711_v61 }
0x1b8d   :  { %v4708_v26 = vpop.xlane.xlu1 %4707  ;;  %v4714_v1 = vpop.xlane.xlu0 %4713 }
0x1b8e   :  { %8487 = vrcp.f32 %v4708_v26 }
0x1b8f   :  { %8489 = vrcp.f32 %v4714_v1 }
0x1b90   :  { %v8484_v49 = vpop.eup %8483 }
0x1b91   :  { %v4727_v14 = vmul.f32 %v8484_v49, %v10339_v3  ;;  %v11261_v3 = vld [vmem:[#allocation12_spill] sm:$0xff] }
0x1b94   :  { %v8486_v5 = vpop.eup %8485 }
0x1b95   :  { %v4729_v15 = vmul.f32 %v8486_v5, %v10343_v55 }
0x1b98   :  { %v8488_v29 = vpop.eup %8487 }
0x1b99   :  { %v8490_v46 = vpop.eup %8489  ;;  %v4728_v34 = vmul.f32 %v8488_v29, %v10349_v39 }
0x1b9a   :  { %v4730_v57 = vmul.f32 %v8490_v46, %v10345_v32  ;;  %v7079_v46 = vld [vmem:[%s11136_s2 + $0x80] sm:$0xff]  }
0x1b9b   :  { %v4733_v18 = vpack.c.bf16 %v4728_v34, %v4727_v14  ;;  %v7080_v34 = vld [vmem:[%s11136_s2 + $0x88] sm:$0xff]  }
0x1b9c   :  { %v4734_v23 = vpack.c.bf16 %v4730_v57, %v4729_v15  ;;  %v6971_v15 = vunpack.c.l.bf16 %v7079_v46  ;;  %v6975_v57 = vunpack.c.l.bf16 %v7080_v34  ;;  %v6976_v5 = vunpack.c.h.bf16 %v7080_v34 }
0x1b9d   :  { %7795 = vmatprep.mubr.msk.bf16.mxu1 %vm926_vm1, %v4733_v18 }
0x1b9e   :  { %7796 = vmatmul.mubr.msk.bf16.gmra.mrb[116].mxu1 %vm926_vm1, %v4734_v23  ;;  %v6972_v23 = vunpack.c.h.bf16 %v7079_v46 }
0x1b9f   :  { %7807 = vmatprep.mubr.msk.bf16.mxu1 %vm836_vm0, %v11258_v13 }
0x1ba6   :  { %7808 = vmatmul.mubr.msk.bf16.vlgmr.msra.gmra.mrb[120].mxu1 %vm836_vm0, %v11259_v42 }
0x1ba7   :  { %7811 = vmatprep.mubr.msk.bf16.mxu1 %vm836_vm0, %v11260_v51 }
0x1bae   :  { %7812 = vmatmul.mubr.msk.bf16.gmra.mrb[124].mxu1 %vm836_vm0, %v11261_v3 }
0x1c3c   :  { %v10389_v55 = vpop.f32.mrb[112].mxu1 }
0x1c3d   :  { %11262 = vst [vmem:[#allocation4_spill] sm:$0xff] %v10389_v55  ;;  %v10391_v32 = vpop.f32.mrb[113].mxu1 }
0x1c3e   :  { %11263 = vst [vmem:[#allocation5_spill] sm:$0xff] %v10391_v32  ;;  %v10393_v39 = vpop.f32.mrb[114].mxu1 }
0x1c3f   :  { %11264 = vst [vmem:[#allocation6_spill] sm:$0xff] %v10393_v39  ;;  %v10397_v6 = vpop.f32.mrb[115].mxu1 }
0x1c40   :  { %11265 = vst [vmem:[#allocation8_spill] sm:$0xff] %v10397_v6 }
0x1c71   :  { %v10401_v26 = vpop.f32.mrb[116].mxu1 }
0x1c72   :  { %11266 = vst [vmem:[#allocation7_spill] sm:$0xff] %v10401_v26  ;;  %v10403_v1 = vpop.f32.mrb[117].mxu1 }
0x1c73   :  { %11267 = vst [vmem:[#allocation9_spill] sm:$0xff] %v10403_v1  ;;  %v10405_v49 = vpop.f32.mrb[118].mxu1  ;;  %v7082_v1 = vld [vmem:[%s11136_s2 + $0x98] sm:$0xff]  }
0x1c74   :  { %11268 = vst [vmem:[#allocation10_spill] sm:$0xff] %v10405_v49  ;;  %v10409_v29 = vpop.f32.mrb[119].mxu1  ;;  %v7081_v49 = vld [vmem:[%s11136_s2 + $0x90] sm:$0xff]   ;;  %v6983_v34 = vunpack.c.l.bf16 %v7082_v1 }
0x1c75   :  { %11269 = vst [vmem:[#allocation12_spill] sm:$0xff] %v10409_v29  ;;  %v6980_v8 = vunpack.c.h.bf16 %v7081_v49 }
0x1c79   :  { %v7809_v18 = vpop.f32.mrb[120].mxu1 }
0x1c7a   :  { %v4938_v17 = vpop.f32.mrb[121].mxu1  ;;  %v4947_v40 = vadd.f32 %v7809_v18, %v6975_v57  ;;  %v6984_v57 = vunpack.c.h.bf16 %v7082_v1 }
0x1c7b   :  { %v4939_v61 = vadd.f32 %v6971_v15, %v4938_v17  ;;  %v7810_v9 = vpop.f32.mrb[122].mxu1  ;;  %v6979_v17 = vunpack.c.l.bf16 %v7081_v49 }
0x1c7c   :  { %v4941_v26 = vpop.f32.mrb[123].mxu1  ;;  %v4950_v29 = vadd.f32 %v7810_v9, %v6976_v5  ;;  %v4975_v0 = vsel %vm926_vm1, %v4947_v40, -inf }
0x1c7d   :  { %v4942_v54 = vadd.f32 %v6972_v23, %v4941_v26  ;;  %v4969_v14 = vsel %vm926_vm1, %v4939_v61, -inf }
0x1c7e   :  { %4970 = vmax.xlane.f32.xlu0 %v4969_v14  ;;  %v4978_v14 = vsel %vm926_vm1, %v4950_v29, -inf }
0x1c7f   :  { %v4972_v46 = vsel %vm926_vm1, %v4942_v54, -inf }
0x1c80   :  { %4973 = vmax.xlane.f32.xlu1 %v4972_v46 }
0x1c81   :  { %v7813_v15 = vpop.f32.mrb[124].mxu1 }
0x1c82   :  { %v4954_v55 = vpop.f32.mrb[125].mxu1  ;;  %4976 = vmax.xlane.f32.xlu0 %v4975_v0  ;;  %v4963_v39 = vadd.f32 %v7813_v15, %v6983_v34 }
0x1c83   :  { %v4955_v26 = vadd.f32 %v6979_v17, %v4954_v55  ;;  %v7814_v18 = vpop.f32.mrb[126].mxu1 }
0x1c84   :  { %v4957_v23 = vpop.f32.mrb[127].mxu1  ;;  %4979 = vmax.xlane.f32.xlu1 %v4978_v14  ;;  %v4966_v46 = vadd.f32 %v7814_v18, %v6984_v57  ;;  %v4987_v49 = vsel %vm926_vm1, %v4963_v39, -inf }
0x1c85   :  { %v4958_v9 = vadd.f32 %v6980_v8, %v4957_v23  ;;  %v4981_v5 = vsel %vm926_vm1, %v4955_v26, -inf }
0x1c86   :  { %4982 = vmax.xlane.f32.xlu0 %v4981_v5  ;;  %v4990_v0 = vsel %vm926_vm1, %v4966_v46, -inf }
0x1c87   :  { %v4984_v43 = vsel %vm926_vm1, %v4958_v9, -inf }
0x1c88   :  { %4985 = vmax.xlane.f32.xlu1 %v4984_v43 }
0x1c8a   :  { %4988 = vmax.xlane.f32.xlu0 %v4987_v49 }
0x1c8c   :  { %4991 = vmax.xlane.f32.xlu1 %v4990_v0 }
0x1d0b   :  { %v4971_v55 = vpop.xlane.xlu0 %4970 }
0x1d0c   :  { %v4993_v1 = vsub.f32 %v4939_v61, %v4971_v55 }
0x1d0d   :  { %v4974_v17 = vpop.xlane.xlu1 %4973 }
0x1d0e   :  { %v4994_v14 = vsub.f32 %v4942_v54, %v4974_v17  ;;  %v5001_v8 = vmul.f32 1.442695, %v4993_v1 }
0x1d0f   :  { %v4977_v53 = vpop.xlane.xlu0 %4976 }
0x1d10   :  { %v4995_v34 = vsub.f32 %v4947_v40, %v4977_v53  ;;  %v5003_v18 = vmul.f32 1.442695, %v4994_v14 }
0x1d11   :  { %v4980_v15 = vpop.xlane.xlu1 %4979 }
0x1d12   :  { %v5005_v23 = vmul.f32 1.442695, %v4995_v34  ;;  %v4996_v5 = vsub.f32 %v4950_v29, %v4980_v15 }
0x1d13   :  { %v4983_v57 = vpop.xlane.xlu0 %4982 }
0x1d14   :  { %8491 = vpow2.f32 %v5005_v23  ;;  %v5007_v43 = vmul.f32 1.442695, %v4996_v5  ;;  %v4997_v49 = vsub.f32 %v4955_v26, %v4983_v57 }
0x1d15   :  { %8493 = vpow2.f32 %v5001_v8  ;;  %v4986_v34 = vpop.xlane.xlu1 %4985 }
0x1d16   :  { %8495 = vpow2.f32 %v5007_v43  ;;  %v5009_v6 = vmul.f32 1.442695, %v4997_v49  ;;  %v4998_v23 = vsub.f32 %v4958_v9, %v4986_v34 }
0x1d17   :  { %v4989_v32 = vpop.xlane.xlu0 %4988  ;;  %8497 = vpow2.f32 %v5003_v18 }
0x1d18   :  { %v4999_v0 = vsub.f32 %v4963_v39, %v4989_v32  ;;  %v5011_v57 = vmul.f32 1.442695, %v4998_v23 }
0x1d19   :  { %v4992_v8 = vpop.xlane.xlu1 %4991 }
0x1d1a   :  { %v5013_v61 = vmul.f32 1.442695, %v4999_v0  ;;  %v5000_v15 = vsub.f32 %v4966_v46, %v4992_v8 }
0x1d1c   :  { %8499 = vpow2.f32 %v5013_v61  ;;  %v5015_v5 = vmul.f32 1.442695, %v5000_v15 }
0x1d1d   :  { %8501 = vpow2.f32 %v5009_v6 }
0x1d1e   :  { %v8492_v55 = vpop.eup %8491  ;;  %8503 = vpow2.f32 %v5015_v5 }
0x1d1f   :  { %v8494_v53 = vpop.eup %8493  ;;  %v5023_v40 = vsel %vm926_vm1, %v8492_v55, 0.0  ;;  %8505 = vpow2.f32 %v5011_v57 }
0x1d20   :  { %v8496_v54 = vpop.eup %8495  ;;  %5024 = vadd.xlane.f32.xlu0 %v5023_v40  ;;  %v5017_v17 = vsel %vm926_vm1, %v8494_v53, 0.0 }
0x1d21   :  { %v5026_v29 = vsel %vm926_vm1, %v8496_v54, 0.0  ;;  %v8498_v1 = vpop.eup %8497 }
0x1d22   :  { %5027 = vadd.xlane.f32.xlu1 %v5026_v29  ;;  %v5020_v26 = vsel %vm926_vm1, %v8498_v1, 0.0 }
0x1d24   :  { %5018 = vadd.xlane.f32.xlu0 %v5017_v17 }
0x1d26   :  { %v10437_v32 = vpop.eup %8499  ;;  %5021 = vadd.xlane.f32.xlu1 %v5020_v26 }
0x1d27   :  { %v5035_v39 = vsel %vm926_vm1, %v10437_v32, 0.0  ;;  %v10441_v6 = vpop.eup %8501 }
0x1d28   :  { %5036 = vadd.xlane.f32.xlu0 %v5035_v39  ;;  %v5029_v14 = vsel %vm926_vm1, %v10441_v6, 0.0  ;;  %v8504_v18 = vpop.eup %8503 }
0x1d29   :  { %v5038_v43 = vsel %vm926_vm1, %v8504_v18, 0.0  ;;  %v8506_v49 = vpop.eup %8505 }
0x1d2a   :  { %v5032_v0 = vsel %vm926_vm1, %v8506_v49, 0.0 }
0x1d2c   :  { %5030 = vadd.xlane.f32.xlu0 %v5029_v14 }
0x1d37   :  { %5192 = vrot.lane.b32.xlu1 %v11255_v7, %s8620_s10 }
0x1d3b   :  { %5194 = vrot.lane.b32.xlu1 %v11256_v50, %s8620_s10 }
0x1d42   :  { %5190 = vrot.lane.b32.xlu0 %v11254_v27, %s8620_s10 }
0x1d46   :  { %5178 = vrot.lane.b32.xlu0 %v11258_v13, %s8620_s10 }
0x1d4a   :  { %5182 = vrot.lane.b32.xlu0 %v11260_v51, %s8620_s10 }
0x1d5f   :  { %5039 = vadd.xlane.f32.xlu1 %v5038_v43 }
0x1d63   :  { %5033 = vadd.xlane.f32.xlu1 %v5032_v0 }
0x1d74   :  { %5196 = vrot.lane.b32.xlu1 %v11257_v11, %s8620_s10 }
0x1d78   :  { %5180 = vrot.lane.b32.xlu1 %v11259_v42, %s8620_s10 }
0x1d7c   :  { %5184 = vrot.lane.b32.xlu1 %v11261_v3, %s8620_s10 }
0x1dad   :  { %v5025_v9 = vpop.xlane.xlu0 %5024 }
0x1daf   :  { %v5028_v46 = vpop.xlane.xlu1 %5027 }
0x1db0   :  { %8507 = vrcp.f32 %v5028_v46 }
0x1db1   :  { %v5019_v61 = vpop.xlane.xlu0 %5018 }
0x1db2   :  { %8509 = vrcp.f32 %v5019_v61 }
0x1db3   :  { %8511 = vrcp.f32 %v5025_v9  ;;  %v5022_v40 = vpop.xlane.xlu1 %5021 }
0x1db4   :  { %8513 = vrcp.f32 %v5022_v40 }
0x1db5   :  { %v5037_v29 = vpop.xlane.xlu0 %5036 }
0x1db7   :  { %v5193_v46 = vpop.permute.xlu1 %5192 }
0x1db8   :  { %v5214_v61 = vsel %vm836_vm0, %v5193_v46, 0 }
0x1db9   :  { %v5031_v17 = vpop.xlane.xlu0 %5030 }
0x1dba   :  { %v8508_v26 = vpop.eup %8507 }
0x1dbb   :  { %v5052_v15 = vmul.f32 %v8508_v26, %v8496_v54  ;;  %v5195_v54 = vpop.permute.xlu1 %5194 }
0x1dbc   :  { %v8510_v39 = vpop.eup %8509 }
0x1dbd   :  { %v8512_v14 = vpop.eup %8511  ;;  %v5191_v34 = vpop.permute.xlu0 %5190  ;;  %v5049_v23 = vmul.f32 %v8510_v39, %v8494_v53 }
0x1dbe   :  { %v8514_v8 = vpop.eup %8513  ;;  %7995 = vmatprep.subr.msk.bf16.mxu0 %vm836_vm0, %v5191_v34  ;;  %v5051_v57 = vmul.f32 %v8512_v14, %v8492_v55  ;;  %v5211_v9 = vsel %vm836_vm0, %v5191_v34, 0  ;;  %v5217_v55 = vsel %vm836_vm0, %v5195_v54, 0 }
0x1dbf   :  { %v5050_v5 = vmul.f32 %v8514_v8, %v8498_v1 }
0x1dc0   :  { %v5058_v0 = vpack.c.bf16 %v5052_v15, %v5051_v57 }
0x1dc1   :  { %v5057_v43 = vpack.c.bf16 %v5050_v5, %v5049_v23 }
0x1dc3   :  { %7823 = vmatprep.mubr.msk.bf16.mxu0 %vm926_vm1, %v5057_v43  ;;  %v5179_v43 = vpop.permute.xlu0 %5178 }
0x1dc4   :  { %7824 = vmatmul.mubr.msk.bf16.vlgmr.msra.gmra.mrb[168].mxu0 %vm926_vm1, %v5058_v0 }
0x1dc5   :  { %7832 = vmatpush3.bf16.xpose.msra.mxu0 %v5211_v9 }
0x1dc6   :  { %7996 = vmatprep.subr.msk.bf16.mxu0 %vm836_vm0, %v5193_v46 }
0x1dc7   :  { %v5183_v9 = vpop.permute.xlu0 %5182 }
0x1dcd   :  { %7834 = vmatpush3.bf16.xpose.msra.mxu0 %v5214_v61 }
0x1dce   :  { %7997 = vmatprep.subr.msk.bf16.mxu0 %vm836_vm0, %v5195_v54 }
0x1dd5   :  { %7836 = vmatpush3.bf16.xpose.msra.mxu0 %v5217_v55 }
0x1dec   :  { %v5040_v53 = vpop.xlane.xlu1 %5039 }
0x1ded   :  { %8515 = vrcp.f32 %v5040_v53 }
0x1dee   :  { %8517 = vrcp.f32 %v5031_v17 }
0x1def   :  { %8519 = vrcp.f32 %v5037_v29 }
0x1df0   :  { %v5034_v1 = vpop.xlane.xlu1 %5033 }
0x1df1   :  { %8521 = vrcp.f32 %v5034_v1 }
0x1df4   :  { %v5197_v40 = vpop.permute.xlu1 %5196 }
0x1df5   :  { %7998 = vmatprep.subr.msk.bf16.mxu0 %vm836_vm0, %v5197_v40  ;;  %v5220_v26 = vsel %vm836_vm0, %v5197_v40, 0  ;;  %v7084_v40 = vld [vmem:[%s11136_s2 + $0xa8] sm:$0xff]  }
0x1df6   :  { %7838 = vmatpush3.bf16.xpose.msra.mxu0 %v5220_v26 }
0x1df7   :  { %v8516_v39 = vpop.eup %8515 }
0x1df8   :  { %v8518_v14 = vpop.eup %8517  ;;  %v5056_v15 = vmul.f32 %v8516_v39, %v8504_v18  ;;  %v5181_v0 = vpop.permute.xlu1 %5180 }
0x1df9   :  { %v8520_v34 = vpop.eup %8519  ;;  %v5053_v23 = vmul.f32 %v8518_v14, %v10441_v6 }
0x1dfa   :  { %v5055_v57 = vmul.f32 %v8520_v34, %v10437_v32  ;;  %v7083_v34 = vld [vmem:[%s11136_s2 + $0xa0] sm:$0xff]  }
0x1dfb   :  { %v8522_v8 = vpop.eup %8521 }
0x1dfc   :  { %v5054_v5 = vmul.f32 %v8522_v8, %v8506_v49  ;;  %v5060_v29 = vpack.c.bf16 %v5056_v15, %v5055_v57  ;;  %v5185_v18 = vpop.permute.xlu1 %5184  ;;  %v6991_v8 = vunpack.c.l.bf16 %v7084_v40  ;;  %v6987_v15 = vunpack.c.l.bf16 %v7083_v34 }
0x1dfe   :  { %v5059_v17 = vpack.c.bf16 %v5054_v5, %v5053_v23  ;;  %v6988_v5 = vunpack.c.h.bf16 %v7083_v34 }
0x1e00   :  { %7827 = vmatprep.mubr.msk.bf16.mxu0 %vm926_vm1, %v5059_v17 }
0x1e01   :  { %7828 = vmatmul.mubr.msk.bf16.gmra.mrb[172].mxu0 %vm926_vm1, %v5060_v29 }
0x1e02   :  { %7839 = vmatprep.mubr.msk.bf16.mxu0 %vm836_vm0, %v5179_v43 }
0x1e09   :  { %7840 = vmatmul.mubr.msk.bf16.vlgmr.msra.gmra.mrb[176].mxu0 %vm836_vm0, %v5181_v0  ;;  %v6992_v0 = vunpack.c.h.bf16 %v7084_v40 }
0x1e0a   :  { %7843 = vmatprep.mubr.msk.bf16.mxu0 %vm836_vm0, %v5183_v9 }
0x1e11   :  { %7844 = vmatmul.mubr.msk.bf16.gmra.mrb[180].mxu0 %vm836_vm0, %v5185_v18 }
0x1e97   :  { %v7825_v6 = vpop.f32.mrb[168].mxu0 }
0x1e98   :  { %v5107_v32 = vpop.f32.mrb[169].mxu0 }
0x1e99   :  { %v7826_v49 = vpop.f32.mrb[170].mxu0 }
0x1e9a   :  { %v5139_v46 = vpack.c.bf16 %v7826_v49, %v7825_v6  ;;  %v5110_v61 = vpop.f32.mrb[171].mxu0 }
0x1e9b   :  { %v5138_v54 = vpack.c.bf16 %v5110_v61, %v5107_v32  ;;  %v7086_v32 = vld [vmem:[%s11136_s2 + $0xb8] sm:$0xff]  }
0x1e9c   :  { %5143 = vst.msk [vmem:[#allocation3 + $0x58] sm:$0xff] %vm836_vm0, %v5139_v46  ;;  %v6999_v61 = vunpack.c.l.bf16 %v7086_v32 }
0x1e9d   :  { %5142 = vst.msk [vmem:[#allocation3 + $0x48] sm:$0xff] %vm836_vm0, %v5138_v54 }
0x1ed4   :  { %v7829_v55 = vpop.f32.mrb[172].mxu0 }
0x1ed5   :  { %v5123_v53 = vpop.f32.mrb[173].mxu0 }
0x1ed6   :  { %v7830_v1 = vpop.f32.mrb[174].mxu0 }
0x1ed7   :  { %v5141_v26 = vpack.c.bf16 %v7830_v1, %v7829_v55  ;;  %v5126_v39 = vpop.f32.mrb[175].mxu0 }
0x1ed8   :  { %v5140_v14 = vpack.c.bf16 %v5126_v39, %v5123_v53  ;;  %v7085_v53 = vld [vmem:[%s11136_s2 + $0xb0] sm:$0xff]  }
0x1ed9   :  { %5145 = vst.msk [vmem:[#allocation3 + $0x78] sm:$0xff] %vm836_vm0, %v5141_v26  ;;  %v6995_v39 = vunpack.c.l.bf16 %v7085_v53 }
0x1eda   :  { %5144 = vst.msk [vmem:[#allocation3 + $0x68] sm:$0xff] %vm836_vm0, %v5140_v14 }
0x1edc   :  { %v7841_v23 = vpop.f32.mrb[176].mxu0 }
0x1edd   :  { %v5265_v57 = vadd.f32 %v7841_v23, %v6991_v8  ;;  %v5256_v17 = vpop.f32.mrb[177].mxu0 }
0x1ede   :  { %v7842_v29 = vpop.f32.mrb[178].mxu0  ;;  %v5257_v43 = vadd.f32 %v6987_v15, %v5256_v17 }
0x1edf   :  { %v5259_v9 = vpop.f32.mrb[179].mxu0  ;;  %v5293_v18 = vsel %vm926_vm1, %v5265_v57, -inf  ;;  %v5268_v46 = vadd.f32 %v7842_v29, %v6992_v0  ;;  %v6996_v29 = vunpack.c.h.bf16 %v7085_v53 }
0x1ee0   :  { %v5260_v6 = vadd.f32 %v6988_v5, %v5259_v9  ;;  %5294 = vmax.xlane.f32.xlu0 %v5293_v18  ;;  %v5287_v54 = vsel %vm926_vm1, %v5257_v43, -inf  ;;  %v7000_v5 = vunpack.c.h.bf16 %v7086_v32 }
0x1ee1   :  { %v5296_v34 = vsel %vm926_vm1, %v5268_v46, -inf }
0x1ee2   :  { %v5290_v49 = vsel %vm926_vm1, %v5260_v6, -inf }
0x1ee3   :  { %5291 = vmax.xlane.f32.xlu1 %v5290_v49 }
0x1ee4   :  { %v7845_v55 = vpop.f32.mrb[180].mxu0  ;;  %5288 = vmax.xlane.f32.xlu0 %v5287_v54 }
0x1ee5   :  { %v5272_v1 = vpop.f32.mrb[181].mxu0  ;;  %v5281_v26 = vadd.f32 %v7845_v55, %v6999_v61 }
0x1ee6   :  { %v7846_v40 = vpop.f32.mrb[182].mxu0  ;;  %v5273_v8 = vadd.f32 %v6995_v39, %v5272_v1 }
0x1ee7   :  { %v5275_v14 = vpop.f32.mrb[183].mxu0  ;;  %v5305_v15 = vsel %vm926_vm1, %v5281_v26, -inf  ;;  %v10509_v17 = vadd.f32 %v7846_v40, %v7000_v5 }
0x1ee8   :  { %5297 = vmax.xlane.f32.xlu0 %v5296_v34  ;;  %v5299_v23 = vsel %vm926_vm1, %v5273_v8, -inf  ;;  %v10511_v0 = vadd.f32 %v6996_v29, %v5275_v14 }
0x1ee9   :  { %v5308_v9 = vsel %vm926_vm1, %v10509_v17, -inf }
0x1eea   :  { %v5302_v18 = vsel %vm926_vm1, %v10511_v0, -inf }
0x1eec   :  { %5306 = vmax.xlane.f32.xlu0 %v5305_v15 }
0x1ef0   :  { %5300 = vmax.xlane.f32.xlu0 %v5299_v23 }
0x1ef4   :  { %5385 = vrot.lane.b32.xlu1 %v9348_v62, %s8620_s10 }
0x1ef8   :  { %5387 = vrot.lane.b32.xlu1 %v9354_v28, %s8620_s10 }
0x1f06   :  { %5383 = vrot.lane.b32.xlu0 %v11245_v20, %s8620_s10 }
0x1f1c   :  { %5309 = vmax.xlane.f32.xlu1 %v5308_v9 }
0x1f20   :  { %5303 = vmax.xlane.f32.xlu1 %v5302_v18 }
0x1f31   :  { %5389 = vrot.lane.b32.xlu1 %v9360_v47, %s8620_s10 }
0x1f6d   :  { %v5295_v49 = vpop.xlane.xlu0 %5294 }
0x1f6e   :  { %v5313_v61 = vsub.f32 %v5265_v57, %v5295_v49 }
0x1f70   :  { %v5323_v54 = vmul.f32 1.442695, %v5313_v61  ;;  %v5292_v32 = vpop.xlane.xlu1 %5291 }
0x1f71   :  { %v5289_v55 = vpop.xlane.xlu0 %5288  ;;  %v5312_v1 = vsub.f32 %v5260_v6, %v5292_v32 }
0x1f72   :  { %8523 = vpow2.f32 %v5323_v54  ;;  %v5311_v53 = vsub.f32 %v5257_v43, %v5289_v55 }
0x1f73   :  { %v5321_v34 = vmul.f32 1.442695, %v5312_v1 }
0x1f74   :  { %v5319_v40 = vmul.f32 1.442695, %v5311_v53 }
0x1f75   :  { %v5298_v39 = vpop.xlane.xlu0 %5297 }
0x1f76   :  { %8525 = vpow2.f32 %v5319_v40  ;;  %v5314_v14 = vsub.f32 %v5268_v46, %v5298_v39  ;;  %v5386_v46 = vpop.permute.xlu1 %5385 }
0x1f78   :  { %v5325_v15 = vmul.f32 1.442695, %v5314_v14 }
0x1f79   :  { %v5307_v23 = vpop.xlane.xlu0 %5306 }
0x1f7a   :  { %8527 = vpow2.f32 %v5325_v15  ;;  %v5317_v5 = vsub.f32 %v5281_v26, %v5307_v23 }
0x1f7b   :  { %8529 = vpow2.f32 %v5321_v34 }
0x1f7c   :  { %v10519_v29 = vpop.eup %8523  ;;  %v5331_v9 = vmul.f32 1.442695, %v5317_v5 }
0x1f7d   :  { %v5301_v57 = vpop.xlane.xlu0 %5300  ;;  %v5341_v18 = vsel %vm926_vm1, %v10519_v29, 0.0 }
0x1f7e   :  { %8531 = vpow2.f32 %v5331_v9  ;;  %v5315_v43 = vsub.f32 %v5273_v8, %v5301_v57  ;;  %5342 = vadd.xlane.f32.xlu0 %v5341_v18  ;;  %v5388_v8 = vpop.permute.xlu1 %5387 }
0x1f80   :  { %v10523_v6 = vpop.eup %8525  ;;  %v5327_v49 = vmul.f32 1.442695, %v5315_v43 }
0x1f81   :  { %v5384_v61 = vpop.permute.xlu0 %5383  ;;  %v5335_v54 = vsel %vm926_vm1, %v10523_v6, 0.0 }
0x1f82   :  { %8533 = vpow2.f32 %v5327_v49  ;;  %5336 = vadd.xlane.f32.xlu0 %v5335_v54  ;;  %7847 = vmatprep.subr.bf16.mxu1 %v5384_v61 }
0x1f83   :  { %7848 = vmatpush3.bf16.msra.mxu1 %v5384_v61 }
0x1f84   :  { %v8528_v26 = vpop.eup %8527  ;;  %7849 = vmatprep.subr.bf16.mxu1 %v5386_v46 }
0x1f85   :  { %v5344_v32 = vsel %vm926_vm1, %v8528_v26, 0.0  ;;  %v8530_v55 = vpop.eup %8529 }
0x1f86   :  { %5345 = vadd.xlane.f32.xlu1 %v5344_v32  ;;  %v5338_v1 = vsel %vm926_vm1, %v8530_v55, 0.0 }
0x1f87   :  { %7850 = vmatpush3.bf16.msra.mxu1 %v5386_v46 }
0x1f88   :  { %v10528_v53 = vpop.eup %8531  ;;  %7851 = vmatprep.subr.bf16.mxu1 %v5388_v8 }
0x1f89   :  { %v5353_v40 = vsel %vm926_vm1, %v10528_v53, 0.0 }
0x1f8a   :  { %5339 = vadd.xlane.f32.xlu1 %v5338_v1  ;;  %5354 = vadd.xlane.f32.xlu0 %v5353_v40 }
0x1f8b   :  { %7852 = vmatpush3.bf16.msra.mxu1 %v5388_v8 }
0x1f8c   :  { %v10533_v39 = vpop.eup %8533 }
0x1f8d   :  { %v5347_v14 = vsel %vm926_vm1, %v10533_v39, 0.0 }
0x1f8e   :  { %5348 = vadd.xlane.f32.xlu0 %v5347_v14 }
0x1f9b   :  { %5542 = vrot.lane.b32.xlu1 %v11255_v7, %s8621_s11 }
0x1f9f   :  { %5544 = vrot.lane.b32.xlu1 %v11256_v50, %s8621_s11 }
0x1fa9   :  { %v5310_v34 = vpop.xlane.xlu1 %5309 }
0x1faa   :  { %v5318_v15 = vsub.f32 %v10509_v17, %v5310_v34 }
0x1fac   :  { %v5333_v23 = vmul.f32 1.442695, %v5318_v15 }
0x1fad   :  { %v5304_v5 = vpop.xlane.xlu1 %5303 }
0x1fae   :  { %8535 = vpow2.f32 %v5333_v23  ;;  %v5316_v9 = vsub.f32 %v10511_v0, %v5304_v5 }
0x1fb0   :  { %v5329_v57 = vmul.f32 1.442695, %v5316_v9 }
0x1fb1   :  { %v5390_v18 = vpop.permute.xlu1 %5389 }
0x1fb2   :  { %7853 = vmatprep.subr.bf16.mxu1 %v5390_v18  ;;  %8537 = vpow2.f32 %v5329_v57 }
0x1fb3   :  { %7854 = vmatpush3.bf16.msra.mxu1 %v5390_v18 }
0x1fb8   :  { %v8536_v43 = vpop.eup %8535 }
0x1fb9   :  { %v5356_v49 = vsel %vm926_vm1, %v8536_v43, 0.0 }
0x1fba   :  { %5357 = vadd.xlane.f32.xlu0 %v5356_v49 }
0x1fbc   :  { %v8538_v46 = vpop.eup %8537 }
0x1fbd   :  { %v5350_v61 = vsel %vm926_vm1, %v8538_v46, 0.0 }
0x1fc3   :  { %5351 = vadd.xlane.f32.xlu1 %v5350_v61 }
0x1fd0   :  { %5540 = vrot.lane.b32.xlu0 %v11254_v27, %s8621_s11 }
0x1fd4   :  { %5546 = vrot.lane.b32.xlu1 %v11257_v11, %s8621_s11  ;;  %5528 = vrot.lane.b32.xlu0 %v11258_v13, %s8621_s11 }
0x1fd8   :  { %5530 = vrot.lane.b32.xlu1 %v11259_v42, %s8621_s11  ;;  %5532 = vrot.lane.b32.xlu0 %v11260_v51, %s8621_s11 }
0x1fdc   :  { %5534 = vrot.lane.b32.xlu1 %v11261_v3, %s8621_s11 }
0x200b   :  { %v5343_v17 = vpop.xlane.xlu0 %5342 }
0x200f   :  { %v5337_v0 = vpop.xlane.xlu0 %5336 }
0x2013   :  { %v5346_v54 = vpop.xlane.xlu1 %5345 }
0x2014   :  { %8539 = vrcp.f32 %v5346_v54 }
0x2015   :  { %8541 = vrcp.f32 %v5337_v0 }
0x2016   :  { %8543 = vrcp.f32 %v5343_v17 }
0x2017   :  { %v5340_v32 = vpop.xlane.xlu1 %5339  ;;  %v5355_v18 = vpop.xlane.xlu0 %5354 }
0x2018   :  { %8545 = vrcp.f32 %v5340_v32 }
0x201b   :  { %v5349_v49 = vpop.xlane.xlu0 %5348  ;;  %v5543_v61 = vpop.permute.xlu1 %5542 }
0x201e   :  { %v8540_v8 = vpop.eup %8539 }
0x201f   :  { %v8542_v1 = vpop.eup %8541  ;;  %v5370_v34 = vmul.f32 %v8540_v8, %v8528_v26  ;;  %v5545_v54 = vpop.permute.xlu1 %5544 }
0x2020   :  { %v8544_v40 = vpop.eup %8543  ;;  %v5367_v15 = vmul.f32 %v8542_v1, %v10523_v6  ;;  %v5564_v6 = vsel %vm836_vm0, %v5543_v61, 0 }
0x2021   :  { %v5369_v5 = vmul.f32 %v8544_v40, %v10519_v29 }
0x2022   :  { %v8546_v14 = vpop.eup %8545 }
0x2023   :  { %v5368_v23 = vmul.f32 %v8546_v14, %v8530_v55  ;;  %v5376_v57 = vpack.c.bf16 %v5370_v34, %v5369_v5  ;;  %v5567_v14 = vsel %vm836_vm0, %v5545_v54, 0 }
0x2025   :  { %v5375_v9 = vpack.c.bf16 %v5368_v23, %v5367_v15 }
0x2027   :  { %7855 = vmatprep.mubr.msk.bf16.mxu1 %vm926_vm1, %v5375_v9 }
0x2028   :  { %7856 = vmatmul.mubr.msk.bf16.vlgmr.msra.gmra.mrb[128].mxu1 %vm926_vm1, %v5376_v57 }
0x2047   :  { %v5358_v17 = vpop.xlane.xlu0 %5357 }
0x2048   :  { %8547 = vrcp.f32 %v5358_v17 }
0x2049   :  { %8549 = vrcp.f32 %v5349_v49 }
0x204a   :  { %8551 = vrcp.f32 %v5355_v18 }
0x204b   :  { %v5541_v0 = vpop.permute.xlu0 %5540 }
0x204c   :  { %7999 = vmatprep.subr.msk.bf16.mxu1 %vm836_vm0, %v5541_v0  ;;  %v5561_v26 = vsel %vm836_vm0, %v5541_v0, 0 }
0x204d   :  { %7864 = vmatpush3.bf16.xpose.msra.mxu1 %v5561_v26 }
0x204e   :  { %8000 = vmatprep.subr.msk.bf16.mxu1 %vm836_vm0, %v5543_v61 }
0x204f   :  { %v5529_v18 = vpop.permute.xlu0 %5528 }
0x2050   :  { %v5352_v29 = vpop.xlane.xlu1 %5351 }
0x2051   :  { %8553 = vrcp.f32 %v5352_v29 }
0x2052   :  { %v8548_v55 = vpop.eup %8547 }
0x2053   :  { %v8550_v32 = vpop.eup %8549  ;;  %v5374_v40 = vmul.f32 %v8548_v55, %v8536_v43 }
0x2054   :  { %v8552_v8 = vpop.eup %8551  ;;  %v5371_v34 = vmul.f32 %v8550_v32, %v10533_v39  ;;  %v5547_v23 = vpop.permute.xlu1 %5546 }
0x2055   :  { %7866 = vmatpush3.bf16.xpose.msra.mxu1 %v5564_v6  ;;  %v5373_v5 = vmul.f32 %v8552_v8, %v10528_v53  ;;  %v5570_v43 = vsel %vm836_vm0, %v5547_v23, 0 }
0x2056   :  { %8001 = vmatprep.subr.msk.bf16.mxu1 %vm836_vm0, %v5545_v54 }
0x2057   :  { %v5378_v57 = vpack.c.bf16 %v5374_v40, %v5373_v5  ;;  %v7088_v40 = vld [vmem:[%s11136_s2 + $0xc8] sm:$0xff]  }
0x2058   :  { %v5531_v39 = vpop.permute.xlu1 %5530 }
0x205b   :  { %v8554_v1 = vpop.eup %8553 }
0x205c   :  { %v5372_v15 = vmul.f32 %v8554_v1, %v8538_v46  ;;  %v5533_v46 = vpop.permute.xlu0 %5532  ;;  %v5535_v53 = vpop.permute.xlu1 %5534  ;;  %v7090_v1 = vld [vmem:[%s11136_s2 + $0xd8] sm:$0xff]  }
0x205d   :  { %7868 = vmatpush3.bf16.xpose.msra.mxu1 %v5567_v14  ;;  %v7087_v14 = vld [vmem:[%s11136_s2 + $0xc0] sm:$0xff]  }
0x205e   :  { %8002 = vmatprep.subr.msk.bf16.mxu1 %vm836_vm0, %v5547_v23  ;;  %v5377_v9 = vpack.c.bf16 %v5372_v15, %v5371_v34  ;;  %v7007_v34 = vunpack.c.l.bf16 %v7088_v40  ;;  %v7003_v15 = vunpack.c.l.bf16 %v7087_v14  ;;  %v7004_v5 = vunpack.c.h.bf16 %v7087_v14 }
0x2060   :  { %7859 = vmatprep.mubr.msk.bf16.mxu1 %vm926_vm1, %v5377_v9 }
0x2061   :  { %7860 = vmatmul.mubr.msk.bf16.gmra.mrb[132].mxu1 %vm926_vm1, %v5378_v57 }
0x2062   :  { %7871 = vmatprep.mubr.msk.bf16.mxu1 %vm836_vm0, %v5529_v18 }
0x2065   :  { %7870 = vmatpush3.bf16.xpose.msra.mxu1 %v5570_v43 }
0x206c   :  { %7872 = vmatmul.mubr.msk.bf16.vlgmr.msra.gmra.mrb[136].mxu1 %vm836_vm0, %v5531_v39  ;;  %v7008_v39 = vunpack.c.h.bf16 %v7088_v40  ;;  %v7089_v40 = vld [vmem:[%s11136_s2 + $0xd0] sm:$0xff]  }
0x206d   :  { %7875 = vmatprep.mubr.msk.bf16.mxu1 %vm836_vm0, %v5533_v46 }
0x2074   :  { %7876 = vmatmul.mubr.msk.bf16.gmra.mrb[140].mxu1 %vm836_vm0, %v5535_v53 }
0x20fb   :  { %v10577_v49 = vpop.f32.mrb[128].mxu1 }
0x20fc   :  { %v10579_v61 = vpop.f32.mrb[129].mxu1 }
0x20fd   :  { %v10581_v17 = vpop.f32.mrb[130].mxu1 }
0x20fe   :  { %v10585_v54 = vpop.f32.mrb[131].mxu1 }
0x2134   :  { %v10589_v29 = vpop.f32.mrb[132].mxu1 }
0x2135   :  { %11270 = vst [vmem:[#allocation52_spill] sm:$0xff] %v10589_v29  ;;  %v10591_v6 = vpop.f32.mrb[133].mxu1 }
0x2136   :  { %11271 = vst [vmem:[#allocation53_spill] sm:$0xff] %v10591_v6  ;;  %v10593_v55 = vpop.f32.mrb[134].mxu1 }
0x2137   :  { %11272 = vst [vmem:[#allocation54_spill] sm:$0xff] %v10593_v55  ;;  %v10597_v8 = vpop.f32.mrb[135].mxu1 }
0x2138   :  { %11273 = vst [vmem:[#allocation55_spill] sm:$0xff] %v10597_v8 }
0x213f   :  { %v7873_v23 = vpop.f32.mrb[136].mxu1 }
0x2140   :  { %v5615_v9 = vadd.f32 %v7873_v23, %v7007_v34  ;;  %v5606_v57 = vpop.f32.mrb[137].mxu1  ;;  %v7015_v34 = vunpack.c.l.bf16 %v7090_v1 }
0x2141   :  { %v7874_v18 = vpop.f32.mrb[138].mxu1  ;;  %v5607_v43 = vadd.f32 %v7003_v15, %v5606_v57 }
0x2142   :  { %v5609_v46 = vpop.f32.mrb[139].mxu1  ;;  %v5643_v53 = vsel %vm926_vm1, %v5615_v9, -inf  ;;  %v5618_v26 = vadd.f32 %v7874_v18, %v7008_v39  ;;  %v7016_v39 = vunpack.c.h.bf16 %v7090_v1 }
0x2143   :  { %v5610_v32 = vadd.f32 %v7004_v5, %v5609_v46  ;;  %5644 = vmax.xlane.f32.xlu0 %v5643_v53  ;;  %v5637_v14 = vsel %vm926_vm1, %v5607_v43, -inf  ;;  %v7011_v46 = vunpack.c.l.bf16 %v7089_v40 }
0x2144   :  { %v5646_v29 = vsel %vm926_vm1, %v5618_v26, -inf }
0x2145   :  { %v5640_v0 = vsel %vm926_vm1, %v5610_v32, -inf }
0x2146   :  { %5641 = vmax.xlane.f32.xlu1 %v5640_v0 }
0x2147   :  { %5638 = vmax.xlane.f32.xlu0 %v5637_v14  ;;  %v7877_v23 = vpop.f32.mrb[140].mxu1 }
0x2148   :  { %v5622_v15 = vpop.f32.mrb[141].mxu1  ;;  %v5631_v57 = vadd.f32 %v7877_v23, %v7015_v34 }
0x2149   :  { %v7878_v5 = vpop.f32.mrb[142].mxu1  ;;  %v5623_v55 = vadd.f32 %v7011_v46, %v5622_v15 }
0x214a   :  { %v5625_v53 = vpop.f32.mrb[143].mxu1  ;;  %v5655_v0 = vsel %vm926_vm1, %v5631_v57, -inf  ;;  %v10625_v14 = vadd.f32 %v7878_v5, %v7016_v39 }
0x214b   :  { %5647 = vmax.xlane.f32.xlu0 %v5646_v29  ;;  %v5649_v18 = vsel %vm926_vm1, %v5623_v55, -inf  ;;  %v7012_v29 = vunpack.c.h.bf16 %v7089_v40 }
0x214c   :  { %v5658_v23 = vsel %vm926_vm1, %v10625_v14, -inf }
0x214d   :  { %v10627_v34 = vadd.f32 %v7012_v29, %v5625_v53 }
0x214f   :  { %5656 = vmax.xlane.f32.xlu0 %v5655_v0  ;;  %v5652_v15 = vsel %vm926_vm1, %v10627_v34, -inf }
0x2153   :  { %5650 = vmax.xlane.f32.xlu0 %v5649_v18 }
0x2157   :  { %5735 = vrot.lane.b32.xlu1 %v9348_v62, %s8621_s11 }
0x215b   :  { %5737 = vrot.lane.b32.xlu1 %v9354_v28, %s8621_s11 }
0x2169   :  { %5733 = vrot.lane.b32.xlu0 %v11245_v20, %s8621_s11 }
0x217f   :  { %5659 = vmax.xlane.f32.xlu1 %v5658_v23 }
0x2183   :  { %5653 = vmax.xlane.f32.xlu1 %v5652_v15 }
0x2194   :  { %5739 = vrot.lane.b32.xlu1 %v9360_v47, %s8621_s11 }
0x21d0   :  { %v5645_v46 = vpop.xlane.xlu0 %5644 }
0x21d1   :  { %v5663_v0 = vsub.f32 %v5615_v9, %v5645_v46 }
0x21d3   :  { %v5673_v18 = vmul.f32 1.442695, %v5663_v0  ;;  %v5642_v1 = vpop.xlane.xlu1 %5641 }
0x21d4   :  { %v5639_v5 = vpop.xlane.xlu0 %5638  ;;  %v5662_v53 = vsub.f32 %v5610_v32, %v5642_v1 }
0x21d5   :  { %8555 = vpow2.f32 %v5673_v18  ;;  %v5661_v40 = vsub.f32 %v5607_v43, %v5639_v5 }
0x21d6   :  { %v5671_v23 = vmul.f32 1.442695, %v5662_v53 }
0x21d7   :  { %v5669_v39 = vmul.f32 1.442695, %v5661_v40 }
0x21d8   :  { %v5648_v29 = vpop.xlane.xlu0 %5647 }
0x21d9   :  { %8557 = vpow2.f32 %v5669_v39  ;;  %v5664_v6 = vsub.f32 %v5618_v26, %v5648_v29  ;;  %v5736_v26 = vpop.permute.xlu1 %5735 }
0x21db   :  { %v5675_v8 = vmul.f32 1.442695, %v5664_v6 }
0x21dc   :  { %v5657_v25 = vpop.xlane.xlu0 %5656 }
0x21dd   :  { %8559 = vpow2.f32 %v5675_v8  ;;  %v5667_v15 = vsub.f32 %v5631_v57, %v5657_v25 }
0x21de   :  { %8561 = vpow2.f32 %v5671_v23 }
0x21df   :  { %v10635_v16 = vpop.eup %8555  ;;  %v5681_v35 = vmul.f32 1.442695, %v5667_v15 }
0x21e0   :  { %v5651_v9 = vpop.xlane.xlu0 %5650  ;;  %v5691_v46 = vsel %vm926_vm1, %v10635_v16, 0.0 }
0x21e1   :  { %8563 = vpow2.f32 %v5681_v35  ;;  %v5665_v43 = vsub.f32 %v5623_v55, %v5651_v9  ;;  %5692 = vadd.xlane.f32.xlu0 %v5691_v46  ;;  %v5738_v35 = vpop.permute.xlu1 %5737 }
0x21e3   :  { %v10639_v32 = vpop.eup %8557  ;;  %v5677_v0 = vmul.f32 1.442695, %v5665_v43 }
0x21e4   :  { %v5734_v18 = vpop.permute.xlu0 %5733  ;;  %v5685_v6 = vsel %vm926_vm1, %v10639_v32, 0.0 }
0x21e5   :  { %8565 = vpow2.f32 %v5677_v0  ;;  %5686 = vadd.xlane.f32.xlu0 %v5685_v6  ;;  %7879 = vmatprep.subr.bf16.mxu0 %v5734_v18 }
0x21e6   :  { %7880 = vmatpush3.bf16.msra.mxu0 %v5734_v18 }
0x21e7   :  { %v8560_v25 = vpop.eup %8559  ;;  %7881 = vmatprep.subr.bf16.mxu0 %v5736_v26 }
0x21e8   :  { %v5694_v8 = vsel %vm926_vm1, %v8560_v25, 0.0  ;;  %v8562_v57 = vpop.eup %8561 }
0x21e9   :  { %5695 = vadd.xlane.f32.xlu1 %v5694_v8  ;;  %v5688_v1 = vsel %vm926_vm1, %v8562_v57, 0.0 }
0x21ea   :  { %7882 = vmatpush3.bf16.msra.mxu0 %v5736_v26 }
0x21eb   :  { %v10644_v55 = vpop.eup %8563  ;;  %7883 = vmatprep.subr.bf16.mxu0 %v5738_v35 }
0x21ec   :  { %v5703_v5 = vsel %vm926_vm1, %v10644_v55, 0.0 }
0x21ed   :  { %5689 = vadd.xlane.f32.xlu1 %v5688_v1  ;;  %5704 = vadd.xlane.f32.xlu0 %v5703_v5 }
0x21ee   :  { %7884 = vmatpush3.bf16.msra.mxu0 %v5738_v35 }
0x21ef   :  { %v10649_v40 = vpop.eup %8565 }
0x21f0   :  { %v5697_v53 = vsel %vm926_vm1, %v10649_v40, 0.0 }
0x21f1   :  { %5698 = vadd.xlane.f32.xlu0 %v5697_v53 }
0x21fe   :  { %5892 = vrot.lane.b32.xlu1 %v11255_v7, %s8622_s27 }
0x2202   :  { %5894 = vrot.lane.b32.xlu1 %v11256_v50, %s8622_s27 }
0x220c   :  { %v5660_v39 = vpop.xlane.xlu1 %5659 }
0x220d   :  { %v5668_v29 = vsub.f32 %v10625_v14, %v5660_v39 }
0x220f   :  { %v5683_v23 = vmul.f32 1.442695, %v5668_v29 }
0x2210   :  { %v5654_v15 = vpop.xlane.xlu1 %5653 }
0x2211   :  { %8567 = vpow2.f32 %v5683_v23  ;;  %v5666_v9 = vsub.f32 %v10627_v34, %v5654_v15 }
0x2213   :  { %v5679_v46 = vmul.f32 1.442695, %v5666_v9 }
0x2214   :  { %v5740_v43 = vpop.permute.xlu1 %5739 }
0x2215   :  { %7885 = vmatprep.subr.bf16.mxu0 %v5740_v43  ;;  %8569 = vpow2.f32 %v5679_v46 }
0x2216   :  { %7886 = vmatpush3.bf16.msra.mxu0 %v5740_v43 }
0x221b   :  { %v8568_v0 = vpop.eup %8567 }
0x221c   :  { %v5706_v26 = vsel %vm926_vm1, %v8568_v0, 0.0 }
0x221d   :  { %5707 = vadd.xlane.f32.xlu0 %v5706_v26 }
0x221f   :  { %v8570_v7 = vpop.eup %8569 }
0x2220   :  { %v5700_v50 = vsel %vm926_vm1, %v8570_v7, 0.0 }
0x2226   :  { %5701 = vadd.xlane.f32.xlu1 %v5700_v50 }
0x2233   :  { %5890 = vrot.lane.b32.xlu0 %v11254_v27, %s8622_s27 }
0x2237   :  { %5896 = vrot.lane.b32.xlu1 %v11257_v11, %s8622_s27  ;;  %5878 = vrot.lane.b32.xlu0 %v11258_v13, %s8622_s27 }
0x223b   :  { %5880 = vrot.lane.b32.xlu1 %v11259_v42, %s8622_s27  ;;  %5882 = vrot.lane.b32.xlu0 %v11260_v51, %s8622_s27 }
0x223f   :  { %5884 = vrot.lane.b32.xlu1 %v11261_v3, %s8622_s27 }
0x226e   :  { %v5693_v14 = vpop.xlane.xlu0 %5692 }
0x2272   :  { %v5687_v34 = vpop.xlane.xlu0 %5686 }
0x2276   :  { %v5696_v18 = vpop.xlane.xlu1 %5695 }
0x2277   :  { %8571 = vrcp.f32 %v5696_v18 }
0x2278   :  { %8573 = vrcp.f32 %v5687_v34 }
0x2279   :  { %8575 = vrcp.f32 %v5693_v14 }
0x227a   :  { %v5690_v27 = vpop.xlane.xlu1 %5689  ;;  %v5705_v53 = vpop.xlane.xlu0 %5704 }
0x227b   :  { %8577 = vrcp.f32 %v5690_v27 }
0x227e   :  { %v5699_v39 = vpop.xlane.xlu0 %5698  ;;  %v5893_v29 = vpop.permute.xlu1 %5892 }
0x2281   :  { %v8572_v11 = vpop.eup %8571 }
0x2282   :  { %v8574_v6 = vpop.eup %8573  ;;  %v5720_v35 = vmul.f32 %v8572_v11, %v8560_v25  ;;  %v5895_v9 = vpop.permute.xlu1 %5894 }
0x2283   :  { %v8576_v13 = vpop.eup %8575  ;;  %v5717_v42 = vmul.f32 %v8574_v6, %v10639_v32  ;;  %v5914_v32 = vsel %vm836_vm0, %v5893_v29, 0  ;;  %v5917_v14 = vsel %vm836_vm0, %v5895_v9, 0 }
0x2284   :  { %v5719_v51 = vmul.f32 %v8576_v13, %v10635_v16 }
0x2285   :  { %v8578_v8 = vpop.eup %8577 }
0x2286   :  { %v5718_v1 = vmul.f32 %v8578_v8, %v8562_v57  ;;  %v5726_v3 = vpack.c.bf16 %v5720_v35, %v5719_v51 }
0x2288   :  { %v5725_v5 = vpack.c.bf16 %v5718_v1, %v5717_v42 }
0x228a   :  { %7887 = vmatprep.mubr.msk.bf16.mxu0 %vm926_vm1, %v5725_v5 }
0x228b   :  { %7888 = vmatmul.mubr.msk.bf16.vlgmr.msra.gmra.mrb[184].mxu0 %vm926_vm1, %v5726_v3 }
0x22aa   :  { %v5708_v23 = vpop.xlane.xlu0 %5707 }
0x22ab   :  { %8579 = vrcp.f32 %v5708_v23 }
0x22ac   :  { %8581 = vrcp.f32 %v5699_v39 }
0x22ad   :  { %8583 = vrcp.f32 %v5705_v53 }
0x22ae   :  { %v5891_v15 = vpop.permute.xlu0 %5890 }
0x22af   :  { %v5911_v46 = vsel %vm836_vm0, %v5891_v15, 0  ;;  %8003 = vmatprep.subr.msk.bf16.mxu0 %vm836_vm0, %v5891_v15 }
0x22b0   :  { %7896 = vmatpush3.bf16.xpose.msra.mxu0 %v5911_v46  ;;  %v7091_v46 = vld [vmem:[%s11136_s2 + $0xe0] sm:$0xff]  }
0x22b1   :  { %8004 = vmatprep.subr.msk.bf16.mxu0 %vm836_vm0, %v5893_v29 }
0x22b2   :  { %v5879_v8 = vpop.permute.xlu0 %5878 }
0x22b3   :  { %v5702_v16 = vpop.xlane.xlu1 %5701 }
0x22b4   :  { %8585 = vrcp.f32 %v5702_v16  ;;  %v7092_v16 = vld [vmem:[%s11136_s2 + $0xe8] sm:$0xff]  }
0x22b5   :  { %v8580_v25 = vpop.eup %8579 }
0x22b6   :  { %v8582_v57 = vpop.eup %8581  ;;  %v5724_v50 = vmul.f32 %v8580_v25, %v8568_v0  ;;  %v7023_v25 = vunpack.c.l.bf16 %v7092_v16 }
0x22b7   :  { %v8584_v43 = vpop.eup %8583  ;;  %v5721_v34 = vmul.f32 %v8582_v57, %v10649_v40  ;;  %v5897_v27 = vpop.permute.xlu1 %5896 }
0x22b8   :  { %7898 = vmatpush3.bf16.xpose.msra.mxu0 %v5914_v32  ;;  %v5723_v11 = vmul.f32 %v8584_v43, %v10644_v55  ;;  %v5920_v0 = vsel %vm836_vm0, %v5897_v27, 0  ;;  %v7019_v32 = vunpack.c.l.bf16 %v7091_v46  ;;  %v7020_v43 = vunpack.c.h.bf16 %v7091_v46 }
0x22b9   :  { %8005 = vmatprep.subr.msk.bf16.mxu0 %vm836_vm0, %v5895_v9 }
0x22ba   :  { %v5728_v13 = vpack.c.bf16 %v5724_v50, %v5723_v11 }
0x22bb   :  { %v5881_v40 = vpop.permute.xlu1 %5880 }
0x22be   :  { %v8586_v26 = vpop.eup %8585 }
0x22bf   :  { %v5722_v18 = vmul.f32 %v8586_v26, %v8570_v7  ;;  %v5883_v7 = vpop.permute.xlu0 %5882  ;;  %v5885_v55 = vpop.permute.xlu1 %5884 }
0x22c0   :  { %7900 = vmatpush3.bf16.xpose.msra.mxu0 %v5917_v14 }
0x22c1   :  { %8006 = vmatprep.subr.msk.bf16.mxu0 %vm836_vm0, %v5897_v27  ;;  %v5727_v6 = vpack.c.bf16 %v5722_v18, %v5721_v34  ;;  %v7024_v27 = vunpack.c.h.bf16 %v7092_v16  ;;  %v7094_v16 = vld [vmem:[%s11136_s2 + $0xf8] sm:$0xff]  }
0x22c3   :  { %7891 = vmatprep.mubr.msk.bf16.mxu0 %vm926_vm1, %v5727_v6 }
0x22c4   :  { %7892 = vmatmul.mubr.msk.bf16.gmra.mrb[188].mxu0 %vm926_vm1, %v5728_v13  ;;  %v7093_v13 = vld [vmem:[%s11136_s2 + $0xf0] sm:$0xff]  }
0x22c5   :  { %7903 = vmatprep.mubr.msk.bf16.mxu0 %vm836_vm0, %v5879_v8  ;;  %v7028_v46 = vunpack.c.h.bf16 %v7093_v13 }
0x22c8   :  { %7902 = vmatpush3.bf16.xpose.msra.mxu0 %v5920_v0 }
0x22cf   :  { %7904 = vmatmul.mubr.msk.bf16.vlgmr.msra.gmra.mrb[192].mxu0 %vm836_vm0, %v5881_v40 }
0x22d0   :  { %7907 = vmatprep.mubr.msk.bf16.mxu0 %vm836_vm0, %v5883_v7 }
0x22d7   :  { %7908 = vmatmul.mubr.msk.bf16.gmra.mrb[196].mxu0 %vm836_vm0, %v5885_v55  ;;  %v7027_v55 = vunpack.c.l.bf16 %v7093_v13 }
0x235e   :  { %v10693_v35 = vpop.f32.mrb[184].mxu0 }
0x235f   :  { %v10695_v42 = vpop.f32.mrb[185].mxu0 }
0x2360   :  { %v10697_v1 = vpop.f32.mrb[186].mxu0 }
0x2361   :  { %v10701_v5 = vpop.f32.mrb[187].mxu0 }
0x2397   :  { %v10705_v53 = vpop.f32.mrb[188].mxu0 }
0x2398   :  { %v10707_v39 = vpop.f32.mrb[189].mxu0 }
0x2399   :  { %v10709_v29 = vpop.f32.mrb[190].mxu0 }
0x239a   :  { %v10713_v15 = vpop.f32.mrb[191].mxu0 }
0x23a2   :  { %v7905_v57 = vpop.f32.mrb[192].mxu0 }
0x23a3   :  { %v5956_v26 = vpop.f32.mrb[193].mxu0  ;;  %v5965_v18 = vadd.f32 %v7905_v57, %v7023_v25  ;;  %v7032_v25 = vunpack.c.h.bf16 %v7094_v16 }
0x23a4   :  { %v5957_v50 = vadd.f32 %v7019_v32, %v5956_v26  ;;  %v7906_v14 = vpop.f32.mrb[194].mxu0  ;;  %v7031_v26 = vunpack.c.l.bf16 %v7094_v16 }
0x23a5   :  { %v5959_v34 = vpop.f32.mrb[195].mxu0  ;;  %v5968_v0 = vadd.f32 %v7906_v14, %v7024_v27  ;;  %v5993_v7 = vsel %vm926_vm1, %v5965_v18, -inf }
0x23a6   :  { %v5960_v11 = vadd.f32 %v7020_v43, %v5959_v34  ;;  %v5987_v6 = vsel %vm926_vm1, %v5957_v50, -inf }
0x23a7   :  { %5988 = vmax.xlane.f32.xlu0 %v5987_v6 }
0x23a8   :  { %v5990_v8 = vsel %vm926_vm1, %v5960_v11, -inf }
0x23a9   :  { %5991 = vmax.xlane.f32.xlu1 %v5990_v8  ;;  %v5996_v8 = vsel %vm926_vm1, %v5968_v0, -inf }
0x23aa   :  { %v7909_v40 = vpop.f32.mrb[196].mxu0 }
0x23ab   :  { %5994 = vmax.xlane.f32.xlu0 %v5993_v7  ;;  %v5972_v32 = vpop.f32.mrb[197].mxu0  ;;  %v5981_v13 = vadd.f32 %v7909_v40, %v7031_v26 }
0x23ac   :  { %v7910_v57 = vpop.f32.mrb[198].mxu0  ;;  %v5973_v34 = vadd.f32 %v7027_v55, %v5972_v32 }
0x23ad   :  { %v5975_v43 = vpop.f32.mrb[199].mxu0  ;;  %v5984_v14 = vadd.f32 %v7910_v57, %v7032_v25  ;;  %v6005_v9 = vsel %vm926_vm1, %v5981_v13, -inf }
0x23ae   :  { %v5976_v6 = vadd.f32 %v7028_v46, %v5975_v43  ;;  %v5999_v23 = vsel %vm926_vm1, %v5973_v34, -inf }
0x23af   :  { %5997 = vmax.xlane.f32.xlu0 %v5996_v8  ;;  %v6008_v7 = vsel %vm926_vm1, %v5984_v14, -inf }
0x23b0   :  { %v6002_v27 = vsel %vm926_vm1, %v5976_v6, -inf }
0x23b1   :  { %6003 = vmax.xlane.f32.xlu1 %v6002_v27 }
0x23b3   :  { %6000 = vmax.xlane.f32.xlu0 %v5999_v23 }
0x23b5   :  { %6009 = vmax.xlane.f32.xlu1 %v6008_v7 }
0x23b7   :  { %6006 = vmax.xlane.f32.xlu0 %v6005_v9 }
0x23cd   :  { %6083 = vrot.lane.b32.xlu0 %v11245_v20, %s8622_s27 }
0x2434   :  { %v5989_v55 = vpop.xlane.xlu0 %5988 }
0x2435   :  { %v6011_v46 = vsub.f32 %v5957_v50, %v5989_v55 }
0x2436   :  { %v5992_v16 = vpop.xlane.xlu1 %5991 }
0x2437   :  { %v6019_v57 = vmul.f32 1.442695, %v6011_v46  ;;  %v6012_v43 = vsub.f32 %v5960_v11, %v5992_v16 }
0x2438   :  { %v5995_v32 = vpop.xlane.xlu0 %5994 }
0x2439   :  { %v6013_v25 = vsub.f32 %v5965_v18, %v5995_v32  ;;  %v6021_v27 = vmul.f32 1.442695, %v6012_v43 }
0x243b   :  { %v6023_v40 = vmul.f32 1.442695, %v6013_v25 }
0x243c   :  { %v5998_v26 = vpop.xlane.xlu0 %5997 }
0x243d   :  { %8587 = vpow2.f32 %v6023_v40  ;;  %v6014_v23 = vsub.f32 %v5968_v0, %v5998_v26 }
0x243e   :  { %v6004_v8 = vpop.xlane.xlu1 %6003  ;;  %8589 = vpow2.f32 %v6019_v57 }
0x243f   :  { %v6025_v7 = vmul.f32 1.442695, %v6014_v23 }
0x2440   :  { %v6001_v51 = vpop.xlane.xlu0 %6000 }
0x2441   :  { %8591 = vpow2.f32 %v6025_v7  ;;  %v6015_v9 = vsub.f32 %v5973_v34, %v6001_v51  ;;  %v6016_v51 = vsub.f32 %v5976_v6, %v6004_v8 }
0x2442   :  { %8593 = vpow2.f32 %v6021_v27  ;;  %v6010_v20 = vpop.xlane.xlu1 %6009 }
0x2443   :  { %v6027_v18 = vmul.f32 1.442695, %v6015_v9  ;;  %v6018_v46 = vsub.f32 %v5984_v14, %v6010_v20  ;;  %v6029_v57 = vmul.f32 1.442695, %v6016_v51  ;;  %v11274_v20 = vpack.c.bf16 %v9737_v36, %v9731_v24  ;;  %v11308_v51 = vld [vmem:[#allocation27_spill] sm:$0xff] }
0x2444   :  { %v6007_v3 = vpop.xlane.xlu0 %6006  ;;  %v11278_v24 = vpack.c.bf16 %v9733_v30, %v9729_v4  ;;  %v11279_v36 = vpack.c.bf16 %v9437_v41, %v9431_v12  ;;  %v11283_v12 = vpack.c.bf16 %v9409_v2, %v9405_v37  ;;  %v11284_v41 = vpack.c.bf16 %v9749_v44, %v9743_v59  ;;  %v11285_v4 = vld [vmem:[#allocation19_spill] sm:$0xff]  ;;  %v11286_v30 = vld [vmem:[#allocation18_spill] sm:$0xff]  ;;  %v11292_v2 = vld [vmem:[#allocation36_spill] sm:$0xff] }
0x2445   :  { %v6017_v50 = vsub.f32 %v5981_v13, %v6007_v3  ;;  %v6033_v3 = vmul.f32 1.442695, %v6018_v46  ;;  %v11295_v44 = vld [vmem:[#allocation17_spill] sm:$0xff] }
0x2446   :  { %v11304_v46 = vld [vmem:[#allocation33_spill] sm:$0xff] }
0x2447   :  { %v10739_v55 = vpop.eup %8587  ;;  %v6031_v11 = vmul.f32 1.442695, %v6017_v50  ;;  %v11275_v50 = vpack.c.bf16 %v9861_v45, %v9855_v52  ;;  %v11290_v52 = vld [vmem:[#allocation24_spill] sm:$0xff]  ;;  %v11296_v45 = vld [vmem:[#allocation15_spill] sm:$0xff] }
0x2448   :  { %v6084_v16 = vpop.permute.xlu0 %6083  ;;  %v6041_v0 = vsel %vm926_vm1, %v10739_v55, 0.0  ;;  %v10743_v32 = vpop.eup %8589 }
0x2449   :  { %8595 = vpow2.f32 %v6031_v11  ;;  %6042 = vadd.xlane.f32.xlu0 %v6041_v0  ;;  %7911 = vmatprep.subr.bf16.mxu1 %v6084_v16  ;;  %v6035_v34 = vsel %vm926_vm1, %v10743_v32, 0.0  ;;  %v11305_v11 = vld [vmem:[#allocation32_spill] sm:$0xff]  ;;  %v11307_v0 = vld [vmem:[#allocation29_spill] sm:$0xff] }
0x244a   :  { %7912 = vmatpush3.bf16.msra.mxu1 %v6084_v16  ;;  %8597 = vpow2.f32 %v6027_v18  ;;  %v11306_v16 = vpack.c.bf16 %v11304_v46, %v11305_v11  ;;  %v11356_v46 = vld [vmem:[#allocation50_spill] sm:$0xff]  ;;  %v11357_v11 = vld [vmem:[#allocation48_spill] sm:$0xff] }
0x244b   :  { %v10745_v25 = vpop.eup %8591  ;;  %8599 = vpow2.f32 %v6033_v3  ;;  %v11309_v3 = vpack.c.bf16 %v11307_v0, %v11308_v51  ;;  %v11359_v0 = vld [vmem:[#allocation10_spill] sm:$0xff]  ;;  %v11360_v51 = vld [vmem:[#allocation7_spill] sm:$0xff] }
0x244c   :  { %v6044_v14 = vsel %vm926_vm1, %v10745_v25, 0.0  ;;  %v10751_v13 = vpop.eup %8593  ;;  %8601 = vpow2.f32 %v6029_v57 }
0x244d   :  { %6036 = vadd.xlane.f32.xlu0 %v6035_v34  ;;  %6045 = vadd.xlane.f32.xlu1 %v6044_v14  ;;  %v6038_v43 = vsel %vm926_vm1, %v10751_v13, 0.0  ;;  %v11310_v34 = vld [vmem:[#allocation35_spill] sm:$0xff] }
0x244e   :  { %v11311_v14 = vld [vmem:[#allocation11_spill] sm:$0xff] }
0x244f   :  { %v11312_v57 = vpack.c.bf16 %v11310_v34, %v11311_v14 }
0x2451   :  { %6039 = vadd.xlane.f32.xlu1 %v6038_v43  ;;  %v11313_v43 = vld [vmem:[#allocation16_spill] sm:$0xff] }
0x2453   :  { %v10755_v40 = vpop.eup %8595 }
0x2454   :  { %v6053_v6 = vsel %vm926_vm1, %v10755_v40, 0.0  ;;  %v10759_v26 = vpop.eup %8597 }
0x2455   :  { %6054 = vadd.xlane.f32.xlu1 %v6053_v6  ;;  %v6047_v23 = vsel %vm926_vm1, %v10759_v26, 0.0  ;;  %v10763_v8 = vpop.eup %8599  ;;  %v11314_v6 = vld [vmem:[#allocation14_spill] sm:$0xff] }
0x2456   :  { %v6056_v27 = vsel %vm926_vm1, %v10763_v8, 0.0  ;;  %v10767_v7 = vpop.eup %8601 }
0x2457   :  { %v6050_v9 = vsel %vm926_vm1, %v10767_v7, 0.0 }
0x2459   :  { %6048 = vadd.xlane.f32.xlu1 %v6047_v23  ;;  %v11315_v23 = vpack.c.bf16 %v11313_v43, %v11314_v6 }
0x245d   :  { %6057 = vadd.xlane.f32.xlu1 %v6056_v27  ;;  %v11316_v27 = vpack.c.bf16 %v10585_v54, %v10579_v61  ;;  %v11324_v61 = vpack.c.bf16 %v10581_v17, %v10577_v49  ;;  %v11325_v54 = vld [vmem:[#allocation40_spill] sm:$0xff]  ;;  %v11335_v17 = vld [vmem:[#allocation39_spill] sm:$0xff] }
0x2461   :  { %6051 = vadd.xlane.f32.xlu1 %v6050_v9  ;;  %v11317_v9 = vld [vmem:[#allocation22_spill] sm:$0xff] }
0x2463   :  { %6087 = vrot.lane.b32.xlu0 %v9354_v28, %s8622_s27  ;;  %v11276_v28 = vpack.c.bf16 %v9973_v10, %v9967_v33  ;;  %v11298_v33 = vld [vmem:[#allocation31_spill] sm:$0xff]  ;;  %v11302_v10 = vld [vmem:[#allocation21_spill] sm:$0xff] }
0x2467   :  { %6089 = vrot.lane.b32.xlu0 %v9360_v47, %s8622_s27  ;;  %v11277_v47 = vpack.c.bf16 %v9413_v38, %v9407_v21  ;;  %v11281_v21 = vpack.c.bf16 %v9549_v22, %v9543_v63  ;;  %v11282_v38 = vpack.c.bf16 %v9969_v48, %v9965_v56  ;;  %v11287_v63 = vpack.c.bf16 %v11285_v4, %v11286_v30  ;;  %v11299_v48 = vld [vmem:[#allocation30_spill] sm:$0xff]  ;;  %v11333_v4 = vld [vmem:[#allocation5_spill] sm:$0xff] }
0x2468   :  { %v11288_v22 = vpack.c.bf16 %v9873_v19, %v9867_v60  ;;  %v11297_v56 = vpack.c.bf16 %v11295_v44, %v11296_v45  ;;  %v11300_v60 = vpack.c.bf16 %v11298_v33, %v11299_v48  ;;  %v11301_v19 = vld [vmem:[#allocation23_spill] sm:$0xff]  ;;  %v11336_v30 = vld [vmem:[#allocation37_spill] sm:$0xff]  ;;  %v11350_v33 = vld [vmem:[#allocation12_spill] sm:$0xff] }
0x2469   :  { %v11303_v18 = vpack.c.bf16 %v11301_v19, %v11302_v10  ;;  %v11347_v44 = vld [vmem:[#allocation51_spill] sm:$0xff]  ;;  %v11348_v45 = vld [vmem:[#allocation49_spill] sm:$0xff] }
0x246a   :  { %v11351_v48 = vld [vmem:[#allocation9_spill] sm:$0xff]  ;;  %v11353_v19 = vld [vmem:[#allocation43_spill] sm:$0xff] }
0x246b   :  { %2790 = vrot.lane.b32.xlu0 %v11274_v20, %s8622_s27  ;;  %v11318_v20 = vld [vmem:[#allocation20_spill] sm:$0xff]  ;;  %v11354_v10 = vld [vmem:[#allocation41_spill] sm:$0xff] }
0x246f   :  { %3141 = vrot.lane.b32.xlu0 %v11275_v50, %s8621_s11  ;;  %v11319_v50 = vpack.c.bf16 %v11317_v9, %v11318_v20 }
0x2472   :  { %6085 = vrot.lane.b32.xlu1 %v9348_v62, %s8622_s27  ;;  %v11280_v62 = vpack.c.bf16 %v9857_v58, %v9853_v31  ;;  %v11289_v31 = vld [vmem:[#allocation25_spill] sm:$0xff]  ;;  %v11293_v58 = vld [vmem:[#allocation34_spill] sm:$0xff] }
0x2473   :  { %3492 = vrot.lane.b32.xlu0 %v11276_v28, %s8620_s10  ;;  %v11291_v37 = vpack.c.bf16 %v11289_v31, %v11290_v52  ;;  %v11294_v59 = vpack.c.bf16 %v11292_v2, %v11293_v58  ;;  %v11320_v28 = vpack.c.bf16 %v10701_v5, %v10695_v42  ;;  %v11328_v42 = vpack.c.bf16 %v10697_v1, %v10693_v35  ;;  %v11329_v5 = vld [vmem:[#allocation47_spill] sm:$0xff]  ;;  %v11339_v31 = vld [vmem:[#allocation13_spill] sm:$0xff]  ;;  %v11341_v1 = vld [vmem:[#allocation6_spill] sm:$0xff] }
0x2474   :  { %v11342_v52 = vld [vmem:[#allocation4_spill] sm:$0xff]  ;;  %v11345_v58 = vld [vmem:[#allocation42_spill] sm:$0xff] }
0x2475   :  { %v11344_v2 = vld [vmem:[#allocation44_spill] sm:$0xff] }
0x2476   :  { %1439 = vrot.lane.b32.xlu1 %v11277_v47, %s8622_s27  ;;  %v11321_v47 = vld [vmem:[#allocation28_spill] sm:$0xff] }
0x2477   :  { %2792 = vrot.lane.b32.xlu0 %v11278_v24, %s8622_s27  ;;  %v11322_v24 = vld [vmem:[#allocation26_spill] sm:$0xff] }
0x247a   :  { %1791 = vrot.lane.b32.xlu1 %v11279_v36, %s8621_s11  ;;  %v11323_v36 = vpack.c.bf16 %v11321_v47, %v11322_v24 }
0x247b   :  { %3143 = vrot.lane.b32.xlu0 %v11280_v62, %s8621_s11  ;;  %v11326_v62 = vld [vmem:[#allocation38_spill] sm:$0xff] }
0x247e   :  { %2143 = vrot.lane.b32.xlu1 %v11281_v21, %s8620_s10  ;;  %v11327_v21 = vpack.c.bf16 %v11325_v54, %v11326_v62 }
0x247f   :  { %3494 = vrot.lane.b32.xlu0 %v11282_v38, %s8620_s10  ;;  %v11330_v38 = vld [vmem:[#allocation45_spill] sm:$0xff] }
0x2482   :  { %1441 = vrot.lane.b32.xlu1 %v11283_v12, %s8622_s27  ;;  %v11331_v12 = vpack.c.bf16 %v11329_v5, %v11330_v38 }
0x2483   :  { %2794 = vrot.lane.b32.xlu0 %v11284_v41, %s8622_s27  ;;  %v11332_v41 = vld [vmem:[#allocation8_spill] sm:$0xff] }
0x2484   :  { %v11334_v49 = vpack.c.bf16 %v11332_v41, %v11333_v4 }
0x2486   :  { %1793 = vrot.lane.b32.xlu1 %v11287_v63, %s8621_s11  ;;  %v11337_v63 = vpack.c.bf16 %v11335_v17, %v11336_v30  ;;  %v8091_v17 = vld [vmem:[%s11137_s3 + $0x40] sm:$0xff]  }
0x2487   :  { %3145 = vrot.lane.b32.xlu0 %v11288_v22, %s8621_s11  ;;  %v11338_v22 = vld [vmem:[#allocation46_spill] sm:$0xff] }
0x2488   :  { %v11340_v35 = vpack.c.bf16 %v11338_v22, %v11339_v31 }
0x248a   :  { %2145 = vrot.lane.b32.xlu1 %v11291_v37, %s8620_s10  ;;  %v11343_v37 = vpack.c.bf16 %v11341_v1, %v11342_v52  ;;  %v8093_v52 = vld [vmem:[%s11137_s3 + $0x48] sm:$0xff]  }
0x248b   :  { %3496 = vrot.lane.b32.xlu0 %v11294_v59, %s8620_s10  ;;  %v11346_v59 = vpack.c.bf16 %v11344_v2, %v11345_v58  ;;  %v8094_v58 = vld [vmem:[%s11137_s3 + $0x8] sm:$0xff]  }
0x248e   :  { %1443 = vrot.lane.b32.xlu1 %v11297_v56, %s8622_s27  ;;  %v11349_v56 = vpack.c.bf16 %v11347_v44, %v11348_v45  ;;  %v8095_v44 = vld [vmem:[%s11137_s3 + $0x50] sm:$0xff]  }
0x248f   :  { %2796 = vrot.lane.b32.xlu0 %v11300_v60, %s8622_s27  ;;  %v11352_v60 = vpack.c.bf16 %v11350_v33, %v11351_v48  ;;  %v8096_v48 = vld [vmem:[%s11137_s3 + $0x10] sm:$0xff]  }
0x2492   :  { %1795 = vrot.lane.b32.xlu1 %v11303_v18, %s8621_s11  ;;  %v11355_v18 = vpack.c.bf16 %v11353_v19, %v11354_v10 }
0x2493   :  { %3147 = vrot.lane.b32.xlu0 %v11306_v16, %s8621_s11  ;;  %v11358_v16 = vpack.c.bf16 %v11356_v46, %v11357_v11  ;;  %v8099_v46 = vld [vmem:[%s11137_s3 + $0x60] sm:$0xff]  }
0x2496   :  { %2147 = vrot.lane.b32.xlu1 %v11309_v3, %s8620_s10  ;;  %v11361_v3 = vpack.c.bf16 %v11359_v0, %v11360_v51  ;;  %v8100_v0 = vld [vmem:[%s11137_s3 + $0x20] sm:$0xff]   ;;  %v8101_v51 = vld [vmem:[%s11137_s3 + $0x68] sm:$0xff]  }
0x2497   :  { %3498 = vrot.lane.b32.xlu0 %v11312_v57, %s8620_s10 }
0x249a   :  { %1445 = vrot.lane.b32.xlu1 %v11315_v23, %s8622_s27 }
0x249b   :  { %5480 = vrot.lane.b32.xlu0 %v11316_v27, %s8622_s27 }
0x249e   :  { %1797 = vrot.lane.b32.xlu1 %v11319_v50, %s8621_s11 }
0x249f   :  { %5830 = vrot.lane.b32.xlu0 %v11320_v28, %s8621_s11 }
0x24a2   :  { %2149 = vrot.lane.b32.xlu1 %v11323_v36, %s8620_s10 }
0x24a3   :  { %5482 = vrot.lane.b32.xlu0 %v11324_v61, %s8622_s27 }
0x24a6   :  { %4136 = vrot.lane.b32.xlu1 %v11327_v21, %s8622_s27 }
0x24a7   :  { %5832 = vrot.lane.b32.xlu0 %v11328_v42, %s8621_s11 }
0x24aa   :  { %4486 = vrot.lane.b32.xlu1 %v11331_v12, %s8621_s11 }
0x24ae   :  { %4836 = vrot.lane.b32.xlu1 %v11334_v49, %s8620_s10 }
0x24b2   :  { %4138 = vrot.lane.b32.xlu1 %v11337_v63, %s8622_s27 }
0x24b6   :  { %4488 = vrot.lane.b32.xlu1 %v11340_v35, %s8621_s11 }
0x24ba   :  { %4838 = vrot.lane.b32.xlu1 %v11343_v37, %s8620_s10 }
0x24be   :  { %4140 = vrot.lane.b32.xlu1 %v11346_v59, %s8622_s27 }
0x24c2   :  { %4490 = vrot.lane.b32.xlu1 %v11349_v56, %s8621_s11 }
0x24c6   :  { %4840 = vrot.lane.b32.xlu1 %v11352_v60, %s8620_s10 }
0x24ca   :  { %4142 = vrot.lane.b32.xlu1 %v11355_v18, %s8622_s27  ;;  %v8098_v18 = vld [vmem:[%s11137_s3 + $0x18] sm:$0xff]  }
0x24ce   :  { %4492 = vrot.lane.b32.xlu1 %v11358_v16, %s8621_s11 }
0x24d2   :  { %4842 = vrot.lane.b32.xlu1 %v11361_v3, %s8620_s10 }
0x24d6   :  { %v6043_v34 = vpop.xlane.xlu0 %6042 }
0x24da   :  { %v6046_v14 = vpop.xlane.xlu1 %6045  ;;  %v6037_v57 = vpop.xlane.xlu0 %6036 }
0x24db   :  { %8603 = vrcp.f32 %v6037_v57  ;;  %v8103_v57 = vld [vmem:[%s11137_s3 + $0x70] sm:$0xff]  }
0x24de   :  { %v6040_v43 = vpop.xlane.xlu1 %6039  ;;  %v6088_v6 = vpop.permute.xlu0 %6087 }
0x24df   :  { %8605 = vrcp.f32 %v6040_v43 }
0x24e0   :  { %8607 = vrcp.f32 %v6046_v14  ;;  %v8102_v14 = vld [vmem:[%s11137_s3 + $0x28] sm:$0xff]  }
0x24e1   :  { %8609 = vrcp.f32 %v6043_v34 }
0x24e2   :  { %v6055_v23 = vpop.xlane.xlu1 %6054  ;;  %v6090_v27 = vpop.permute.xlu0 %6089 }
0x24e5   :  { %v8604_v50 = vpop.eup %8603 }
0x24e6   :  { %v6049_v9 = vpop.xlane.xlu1 %6048  ;;  %v2791_v20 = vpop.permute.xlu0 %2790  ;;  %v6067_v36 = vmul.f32 %v8604_v50, %v10743_v32  ;;  %v8106_v50 = vld [vmem:[%s11137_s3 + $0x38] sm:$0xff]  }
0x24e7   :  { %2802 = vst.msk [vmem:[#allocation3 + $0x8] sm:$0xff] %vm1451_vm2, %v2791_v20  ;;  %8611 = vrcp.f32 %v6049_v9 }
0x24e9   :  { %v8606_v28 = vpop.eup %8605 }
0x24ea   :  { %v6058_v47 = vpop.xlane.xlu1 %6057  ;;  %v3142_v24 = vpop.permute.xlu0 %3141  ;;  %v6068_v61 = vmul.f32 %v8606_v28, %v10751_v13 }
0x24eb   :  { %3153 = vst.msk [vmem:[#allocation3 + $0x8] sm:$0xff] %vm1803_vm3, %v3142_v24  ;;  %v8608_v32 = vpop.eup %8607 }
0x24ec   :  { %v6075_v54 = vpack.c.bf16 %v6068_v61, %v6067_v36  ;;  %v8610_v12 = vpop.eup %8609  ;;  %v6070_v49 = vmul.f32 %v8608_v32, %v10745_v25  ;;  %v8092_v25 = vld [vmem:[%s11137_s3] sm:$0xff]  }
0x24ed   :  { %v6069_v31 = vmul.f32 %v8610_v12, %v10739_v55 }
0x24ee   :  { %v6052_v62 = vpop.xlane.xlu1 %6051  ;;  %7919 = vmatprep.mubr.msk.bf16.mxu1 %vm926_vm1, %v6075_v54  ;;  %v3493_v21 = vpop.permute.xlu0 %3492 }
0x24ef   :  { %8613 = vrcp.f32 %v6052_v62  ;;  %3504 = vst.msk [vmem:[#allocation3 + $0x8] sm:$0xff] %vm2155_vm4, %v3493_v21  ;;  %v6076_v1 = vpack.c.bf16 %v6070_v49, %v6069_v31 }
0x24f0   :  { %8615 = vrcp.f32 %v6058_v47 }
0x24f1   :  { %8617 = vrcp.f32 %v6055_v23  ;;  %v8612_v41 = vpop.eup %8611  ;;  %v8104_v23 = vld [vmem:[%s11137_s3 + $0x30] sm:$0xff]  }
0x24f2   :  { %v6086_v42 = vpop.permute.xlu1 %6085  ;;  %v2793_v5 = vpop.permute.xlu0 %2792  ;;  %v6071_v35 = vmul.f32 %v8612_v41, %v10759_v26 }
0x24f3   :  { %2803 = vst.msk [vmem:[#allocation3 + $0x18] sm:$0xff] %vm1451_vm2, %v2793_v5  ;;  %7913 = vmatprep.subr.bf16.mxu1 %v6086_v42 }
0x24f4   :  { %7914 = vmatpush3.bf16.msra.mxu1 %v6086_v42 }
0x24f5   :  { %7915 = vmatprep.subr.bf16.mxu1 %v6088_v6 }
0x24f6   :  { %v1440_v13 = vpop.permute.xlu1 %1439  ;;  %v3144_v38 = vpop.permute.xlu0 %3143 }
0x24f7   :  { %1452 = vst.msk [vmem:[#allocation3] sm:$0xff] %vm1451_vm2, %v1440_v13 }
0x24f8   :  { %3154 = vst.msk [vmem:[#allocation3 + $0x18] sm:$0xff] %vm1803_vm3, %v3144_v38  ;;  %7916 = vmatpush3.bf16.msra.mxu1 %v6088_v6 }
0x24f9   :  { %v8614_v4 = vpop.eup %8613  ;;  %7917 = vmatprep.subr.bf16.mxu1 %v6090_v27 }
0x24fa   :  { %v1792_v30 = vpop.permute.xlu1 %1791  ;;  %v3495_v63 = vpop.permute.xlu0 %3494  ;;  %v6072_v22 = vmul.f32 %v8614_v4, %v10767_v7 }
0x24fb   :  { %1804 = vst.msk [vmem:[#allocation3] sm:$0xff] %vm1803_vm3, %v1792_v30  ;;  %v8616_v7 = vpop.eup %8615 }
0x24fc   :  { %3505 = vst.msk [vmem:[#allocation3 + $0x18] sm:$0xff] %vm2155_vm4, %v3495_v63  ;;  %7918 = vmatpush3.bf16.msra.mxu1 %v6090_v27  ;;  %v6077_v2 = vpack.c.bf16 %v6072_v22, %v6071_v35  ;;  %v8618_v26 = vpop.eup %8617  ;;  %v6074_v59 = vmul.f32 %v8616_v7, %v10763_v8  ;;  %v8097_v8 = vld [vmem:[%s11137_s3 + $0x58] sm:$0xff]  }
0x24fd   :  { %7351 = vmatprep.subr.bf16.mxu1 %v8091_v17  ;;  %v6073_v33 = vmul.f32 %v8618_v26, %v10755_v40  ;;  %v6197_v40 = vld [vmem:[#allocation3 + $0x8] sm:$0xff]  ;;  %v8105_v27 = vld [vmem:[%s11137_s3 + $0x78] sm:$0xff]  }
0x24fe   :  { %v2144_v37 = vpop.permute.xlu1 %2143  ;;  %v2795_v55 = vpop.permute.xlu0 %2794 }
0x24ff   :  { %2156 = vst.msk [vmem:[#allocation3] sm:$0xff] %vm2155_vm4, %v2144_v37  ;;  %7920 = vmatmul.mubr.msk.bf16.vlgmr.msra.gmra.mrb[144].mxu1 %vm926_vm1, %v6076_v1  ;;  %v6078_v60 = vpack.c.bf16 %v6074_v59, %v6073_v33 }
0x2500   :  { %2804 = vst.msk [vmem:[#allocation3 + $0x28] sm:$0xff] %vm1451_vm2, %v2795_v55  ;;  %7923 = vmatprep.mubr.msk.bf16.mxu1 %vm926_vm1, %v6077_v2  ;;  %7352 = vmatpush3.bf16.msra.mxu1 %v8092_v25 }
0x2501   :  { %7353 = vmatprep.subr.bf16.mxu1 %v8093_v52 }
0x2502   :  { %v1442_v45 = vpop.permute.xlu1 %1441  ;;  %v3146_v56 = vpop.permute.xlu0 %3145 }
0x2503   :  { %1453 = vst.msk [vmem:[#allocation3 + $0x10] sm:$0xff] %vm1451_vm2, %v1442_v45  ;;  %v6199_v54 = vld [vmem:[#allocation3 + $0x18] sm:$0xff] }
0x2504   :  { %3155 = vst.msk [vmem:[#allocation3 + $0x28] sm:$0xff] %vm1803_vm3, %v3146_v56  ;;  %7354 = vmatpush3.bf16.msra.mxu1 %v8094_v58 }
0x2505   :  { %7355 = vmatprep.subr.bf16.mxu1 %v8095_v44 }
0x2506   :  { %v1794_v19 = vpop.permute.xlu1 %1793  ;;  %v3497_v10 = vpop.permute.xlu0 %3496  ;;  %v6196_v61 = vld [vmem:[#allocation3] sm:$0xff] }
0x2507   :  { %1805 = vst.msk [vmem:[#allocation3 + $0x10] sm:$0xff] %vm1803_vm3, %v1794_v19  ;;  %7924 = vmatmul.mubr.msk.bf16.gmra.mrb[148].mxu1 %vm926_vm1, %v6078_v60  ;;  %v11363_v60 = vld [vmem:[#allocation53_spill] sm:$0xff]  ;;  %v11365_v19 = vpack.c.bf16 %v10713_v15, %v10707_v39  ;;  %v11060_v39 = vld [vmem:[%s11138_s4] ss:$0 sm:$0xff] }
0x2508   :  { %3506 = vst.msk [vmem:[#allocation3 + $0x28] sm:$0xff] %vm2155_vm4, %v3497_v10  ;;  %7356 = vmatpush3.bf16.msra.mxu1 %v8096_v48  ;;  %6379 = vmatprep.mubr.bf16.mxu1 %v6197_v40  ;;  %v11362_v48 = vld [vmem:[#allocation55_spill] sm:$0xff]  ;;  %v11366_v10 = vld [vmem:[#allocation54_spill] sm:$0xff]  ;;  %v11367_v40 = vld [vmem:[#allocation52_spill] sm:$0xff] }
0x2509   :  { %7357 = vmatprep.subr.bf16.mxu1 %v8097_v8  ;;  %v11364_v8 = vpack.c.bf16 %v11362_v48, %v11363_v60 }
0x250a   :  { %v2146_v11 = vpop.permute.xlu1 %2145  ;;  %v2797_v16 = vpop.permute.xlu0 %2796 }
0x250b   :  { %2157 = vst.msk [vmem:[#allocation3 + $0x10] sm:$0xff] %vm2155_vm4, %v2146_v11 }
0x250c   :  { %2805 = vst.msk [vmem:[#allocation3 + $0x38] sm:$0xff] %vm1451_vm2, %v2797_v16  ;;  %7358 = vmatpush3.bf16.msra.mxu1 %v8098_v18  ;;  %v11368_v18 = vpack.c.bf16 %v11366_v10, %v11367_v40 }
0x250d   :  { %7359 = vmatprep.subr.bf16.mxu1 %v8099_v46  ;;  %v11369_v46 = vpack.c.bf16 %v10709_v29, %v10705_v53 }
0x250e   :  { %v1444_v3 = vpop.permute.xlu1 %1443  ;;  %v3148_v34 = vpop.permute.xlu0 %3147 }
0x250f   :  { %1454 = vst.msk [vmem:[#allocation3 + $0x20] sm:$0xff] %vm1451_vm2, %v1444_v3  ;;  %v6201_v32 = vld [vmem:[#allocation3 + $0x28] sm:$0xff] }
0x2510   :  { %3156 = vst.msk [vmem:[#allocation3 + $0x38] sm:$0xff] %vm1803_vm3, %v3148_v34  ;;  %7360 = vmatpush3.bf16.msra.mxu1 %v8100_v0 }
0x2511   :  { %7361 = vmatprep.subr.bf16.mxu1 %v8101_v51 }
0x2512   :  { %v1796_v43 = vpop.permute.xlu1 %1795  ;;  %v3499_v6 = vpop.permute.xlu0 %3498  ;;  %v6198_v5 = vld [vmem:[#allocation3 + $0x10] sm:$0xff] }
0x2513   :  { %1806 = vst.msk [vmem:[#allocation3 + $0x20] sm:$0xff] %vm1803_vm3, %v1796_v43 }
0x2514   :  { %3507 = vst.msk [vmem:[#allocation3 + $0x38] sm:$0xff] %vm2155_vm4, %v3499_v6  ;;  %7362 = vmatpush3.bf16.msra.mxu1 %v8102_v14 }
0x2515   :  { %7363 = vmatprep.subr.bf16.mxu1 %v8103_v57 }
0x2516   :  { %v2148_v9 = vpop.permute.xlu1 %2147  ;;  %v5481_v20 = vpop.permute.xlu0 %5480 }
0x2517   :  { %2158 = vst.msk [vmem:[#allocation3 + $0x20] sm:$0xff] %vm2155_vm4, %v2148_v9 }
0x2518   :  { %5492 = vst.msk [vmem:[#allocation3 + $0x48] sm:$0xff] %vm1451_vm2, %v5481_v20  ;;  %7364 = vmatpush3.bf16.msra.mxu1 %v8104_v23 }
0x2519   :  { %7365 = vmatprep.subr.bf16.mxu1 %v8105_v27 }
0x251a   :  { %v1446_v28 = vpop.permute.xlu1 %1445  ;;  %v5831_v47 = vpop.permute.xlu0 %5830 }
0x251b   :  { %1455 = vst.msk [vmem:[#allocation3 + $0x30] sm:$0xff] %vm1451_vm2, %v1446_v28  ;;  %v6203_v41 = vld [vmem:[#allocation3 + $0x38] sm:$0xff] }
0x251c   :  { %5842 = vst.msk [vmem:[#allocation3 + $0x48] sm:$0xff] %vm1803_vm3, %v5831_v47  ;;  %7366 = vmatpush3.bf16.msra.mxu1 %v8106_v50 }
0x251e   :  { %v1798_v24 = vpop.permute.xlu1 %1797  ;;  %v5483_v36 = vpop.permute.xlu0 %5482  ;;  %v6200_v12 = vld [vmem:[#allocation3 + $0x20] sm:$0xff] }
0x251f   :  { %1807 = vst.msk [vmem:[#allocation3 + $0x30] sm:$0xff] %vm1803_vm3, %v1798_v24  ;;  %6380 = vmatmul.mubr.bf16.vlgmr.msra.gmra.mrb[152].mxu1 %v6196_v61 }
0x2520   :  { %5493 = vst.msk [vmem:[#allocation3 + $0x58] sm:$0xff] %vm1451_vm2, %v5483_v36  ;;  %6387 = vmatprep.mubr.bf16.mxu1 %v6199_v54 }
0x2522   :  { %v2150_v62 = vpop.permute.xlu1 %2149  ;;  %v5833_v21 = vpop.permute.xlu0 %5832 }
0x2523   :  { %2159 = vst.msk [vmem:[#allocation3 + $0x30] sm:$0xff] %vm2155_vm4, %v2150_v62 }
0x2524   :  { %5843 = vst.msk [vmem:[#allocation3 + $0x58] sm:$0xff] %vm1803_vm3, %v5833_v21 }
0x2526   :  { %v4137_v42 = vpop.permute.xlu1 %4136 }
0x2527   :  { %4148 = vst.msk [vmem:[#allocation3 + $0x40] sm:$0xff] %vm1451_vm2, %v4137_v42  ;;  %6388 = vmatmul.mubr.bf16.gmra.mrb[156].mxu1 %v6198_v5 }
0x2528   :  { %6395 = vmatprep.mubr.bf16.mxu1 %v6201_v32 }
0x252a   :  { %v4487_v13 = vpop.permute.xlu1 %4486  ;;  %v6202_v17 = vld [vmem:[#allocation3 + $0x30] sm:$0xff] }
0x252b   :  { %4498 = vst.msk [vmem:[#allocation3 + $0x40] sm:$0xff] %vm1803_vm3, %v4487_v13 }
0x252e   :  { %v4837_v38 = vpop.permute.xlu1 %4836 }
0x252f   :  { %4848 = vst.msk [vmem:[#allocation3 + $0x40] sm:$0xff] %vm2155_vm4, %v4837_v38  ;;  %6396 = vmatmul.mubr.bf16.gmra.mrb[160].mxu1 %v6200_v12 }
0x2530   :  { %6403 = vmatprep.mubr.bf16.mxu1 %v6203_v41 }
0x2532   :  { %v4139_v4 = vpop.permute.xlu1 %4138 }
0x2533   :  { %4149 = vst.msk [vmem:[#allocation3 + $0x50] sm:$0xff] %vm1451_vm2, %v4139_v4 }
0x2536   :  { %v4489_v49 = vpop.permute.xlu1 %4488 }
0x2537   :  { %4499 = vst.msk [vmem:[#allocation3 + $0x50] sm:$0xff] %vm1803_vm3, %v4489_v49  ;;  %6404 = vmatmul.mubr.bf16.gmra.mrb[164].mxu1 %v6202_v17 }
0x253a   :  { %v4839_v30 = vpop.permute.xlu1 %4838 }
0x253b   :  { %4849 = vst.msk [vmem:[#allocation3 + $0x50] sm:$0xff] %vm2155_vm4, %v4839_v30 }
0x253e   :  { %v4141_v63 = vpop.permute.xlu1 %4140 }
0x253f   :  { %4150 = vst.msk [vmem:[#allocation3 + $0x60] sm:$0xff] %vm1451_vm2, %v4141_v63  ;;  %v6204_v63 = vld [vmem:[#allocation3 + $0x40] sm:$0xff] }
0x2542   :  { %v4491_v22 = vpop.permute.xlu1 %4490 }
0x2543   :  { %4500 = vst.msk [vmem:[#allocation3 + $0x60] sm:$0xff] %vm1803_vm3, %v4491_v22 }
0x2546   :  { %v4841_v31 = vpop.permute.xlu1 %4840 }
0x2547   :  { %4850 = vst.msk [vmem:[#allocation3 + $0x60] sm:$0xff] %vm2155_vm4, %v4841_v31 }
0x254a   :  { %v4143_v35 = vpop.permute.xlu1 %4142 }
0x254b   :  { %4151 = vst.msk [vmem:[#allocation3 + $0x70] sm:$0xff] %vm1451_vm2, %v4143_v35 }
0x254e   :  { %v4493_v25 = vpop.permute.xlu1 %4492 }
0x254f   :  { %4501 = vst.msk [vmem:[#allocation3 + $0x70] sm:$0xff] %vm1803_vm3, %v4493_v25  ;;  %v6206_v25 = vld [vmem:[#allocation3 + $0x50] sm:$0xff] }
0x2552   :  { %v4843_v1 = vpop.permute.xlu1 %4842 }
0x2553   :  { %4851 = vst.msk [vmem:[#allocation3 + $0x70] sm:$0xff] %vm2155_vm4, %v4843_v1 }
0x25d2   :  { %v7921_v52 = vpop.f32.mrb[144].mxu1 }
0x25d3   :  { %v6141_v7 = vpop.f32.mrb[145].mxu1 }
0x25d4   :  { %v7922_v37 = vpop.f32.mrb[146].mxu1 }
0x25d5   :  { %v6173_v55 = vpack.c.bf16 %v7922_v37, %v7921_v52  ;;  %v6144_v2 = vpop.f32.mrb[147].mxu1  ;;  %v6208_v37 = vld [vmem:[#allocation3 + $0x60] sm:$0xff] }
0x25d6   :  { %v6172_v26 = vpack.c.bf16 %v6144_v2, %v6141_v7  ;;  %v6210_v2 = vld [vmem:[#allocation3 + $0x70] sm:$0xff] }
0x25d7   :  { %6182 = vrot.lane.b32.xlu0 %v6173_v55, %s8620_s10 }
0x25da   :  { %v7925_v58 = vpop.f32.mrb[148].mxu1 }
0x25db   :  { %6180 = vrot.lane.b32.xlu0 %v6172_v26, %s8620_s10  ;;  %v6157_v59 = vpop.f32.mrb[149].mxu1 }
0x25dc   :  { %v7926_v44 = vpop.f32.mrb[150].mxu1 }
0x25dd   :  { %v6175_v45 = vpack.c.bf16 %v7926_v44, %v7925_v58  ;;  %v6160_v56 = vpop.f32.mrb[151].mxu1 }
0x25de   :  { %v6174_v33 = vpack.c.bf16 %v6160_v56, %v6157_v59 }
0x25df   :  { %5484 = vrot.lane.b32.xlu0 %v11364_v8, %s8622_s27 }
0x25e3   :  { %5834 = vrot.lane.b32.xlu0 %v11365_v19, %s8621_s11 }
0x25e7   :  { %5486 = vrot.lane.b32.xlu0 %v11368_v18, %s8622_s27 }
0x25eb   :  { %6184 = vrot.lane.b32.xlu0 %v6174_v33, %s8620_s10 }
0x25ef   :  { %5836 = vrot.lane.b32.xlu0 %v11369_v46, %s8621_s11 }
0x25f2   :  { %v7367_v11 = vpop.f32.mrb[152].mxu1 }
0x25f3   :  { %6186 = vrot.lane.b32.xlu0 %v6175_v45, %s8620_s10  ;;  %v7368_v15 = vpop.f32.mrb[153].mxu1 }
0x25f4   :  { %v7369_v16 = vadd.f32 %v7368_v15, %v7367_v11  ;;  %v7370_v0 = vpop.f32.mrb[154].mxu1 }
0x25f5   :  { %v7371_v51 = vpop.f32.mrb[155].mxu1 }
0x25f6   :  { %v6382_v3 = vadd.f32 %v7369_v16, %v11060_v39  ;;  %v7372_v34 = vadd.f32 %v7371_v51, %v7370_v0 }
0x25f8   :  { %6444 = vst [vmem:[%s11139_s5] sm:$0xff] %v6382_v3  ;;  %v6385_v53 = vadd.f32 %v7372_v34, %v11060_v39 }
0x25fa   :  { %6445 = vst [vmem:[%s11139_s5 + $0x8] sm:$0xff] %v6385_v53  ;;  %v7373_v29 = vpop.f32.mrb[156].mxu1 }
0x25fb   :  { %v7374_v14 = vpop.f32.mrb[157].mxu1 }
0x25fc   :  { %v7375_v57 = vadd.f32 %v7374_v14, %v7373_v29  ;;  %v7376_v43 = vpop.f32.mrb[158].mxu1 }
0x25fd   :  { %v7377_v6 = vpop.f32.mrb[159].mxu1 }
0x25fe   :  { %v6390_v23 = vadd.f32 %v7375_v57, %v11060_v39  ;;  %v7378_v27 = vadd.f32 %v7377_v6, %v7376_v43 }
0x2600   :  { %6446 = vst [vmem:[%s11139_s5 + $0x10] sm:$0xff] %v6390_v23  ;;  %v6393_v9 = vadd.f32 %v7378_v27, %v11060_v39 }
0x2602   :  { %6447 = vst [vmem:[%s11139_s5 + $0x18] sm:$0xff] %v6393_v9  ;;  %v7379_v20 = vpop.f32.mrb[160].mxu1 }
0x2603   :  { %v7380_v50 = vpop.f32.mrb[161].mxu1 }
0x2604   :  { %v7381_v28 = vadd.f32 %v7380_v50, %v7379_v20  ;;  %v7382_v47 = vpop.f32.mrb[162].mxu1 }
0x2605   :  { %v7383_v24 = vpop.f32.mrb[163].mxu1 }
0x2606   :  { %v6398_v36 = vadd.f32 %v7381_v28, %v11060_v39  ;;  %v7384_v61 = vadd.f32 %v7383_v24, %v7382_v47 }
0x2608   :  { %6448 = vst [vmem:[%s11139_s5 + $0x20] sm:$0xff] %v6398_v36  ;;  %v6401_v54 = vadd.f32 %v7384_v61, %v11060_v39 }
0x260a   :  { %6449 = vst [vmem:[%s11139_s5 + $0x28] sm:$0xff] %v6401_v54  ;;  %v7385_v62 = vpop.f32.mrb[164].mxu1 }
0x260b   :  { %v7386_v21 = vpop.f32.mrb[165].mxu1 }
0x260c   :  { %v7387_v42 = vadd.f32 %v7386_v21, %v7385_v62  ;;  %v7388_v5 = vpop.f32.mrb[166].mxu1 }
0x260d   :  { %v7389_v32 = vpop.f32.mrb[167].mxu1 }
0x260e   :  { %v6406_v13 = vadd.f32 %v7387_v42, %v11060_v39  ;;  %v7390_v38 = vadd.f32 %v7389_v32, %v7388_v5 }
0x2610   :  { %6450 = vst [vmem:[%s11139_s5 + $0x30] sm:$0xff] %v6406_v13  ;;  %v6409_v12 = vadd.f32 %v7390_v38, %v11060_v39 }
0x2612   :  { %6451 = vst [vmem:[%s11139_s5 + $0x38] sm:$0xff] %v6409_v12 }
0x2649   :  { %v6183_v41 = vpop.permute.xlu0 %6182 }
0x264a   :  { %6193 = vst.msk [vmem:[#allocation3 + $0x58] sm:$0xff] %vm2155_vm4, %v6183_v41 }
0x264d   :  { %v6181_v4 = vpop.permute.xlu0 %6180 }
0x264e   :  { %6192 = vst.msk [vmem:[#allocation3 + $0x48] sm:$0xff] %vm2155_vm4, %v6181_v4 }
0x2651   :  { %v5485_v49 = vpop.permute.xlu0 %5484  ;;  %v6207_v22 = vld [vmem:[#allocation3 + $0x58] sm:$0xff] }
0x2652   :  { %5494 = vst.msk [vmem:[#allocation3 + $0x68] sm:$0xff] %vm1451_vm2, %v5485_v49 }
0x2655   :  { %v5835_v17 = vpop.permute.xlu0 %5834  ;;  %v6205_v30 = vld [vmem:[#allocation3 + $0x48] sm:$0xff] }
0x2656   :  { %5844 = vst.msk [vmem:[#allocation3 + $0x68] sm:$0xff] %vm1803_vm3, %v5835_v17  ;;  %6411 = vmatprep.mubr.bf16.mxu1 %v6205_v30 }
0x2657   :  { %6412 = vmatmul.mubr.bf16.gmra.mrb[168].mxu1 %v6204_v63 }
0x2658   :  { %6419 = vmatprep.mubr.bf16.mxu1 %v6207_v22 }
0x2659   :  { %v5487_v31 = vpop.permute.xlu0 %5486 }
0x265a   :  { %5495 = vst.msk [vmem:[#allocation3 + $0x78] sm:$0xff] %vm1451_vm2, %v5487_v31 }
0x265d   :  { %v6185_v35 = vpop.permute.xlu0 %6184 }
0x265e   :  { %6194 = vst.msk [vmem:[#allocation3 + $0x68] sm:$0xff] %vm2155_vm4, %v6185_v35 }
0x265f   :  { %6420 = vmatmul.mubr.bf16.gmra.mrb[172].mxu1 %v6206_v25 }
0x2661   :  { %v5837_v1 = vpop.permute.xlu0 %5836 }
0x2662   :  { %5845 = vst.msk [vmem:[#allocation3 + $0x78] sm:$0xff] %vm1803_vm3, %v5837_v1 }
0x2665   :  { %v6187_v52 = vpop.permute.xlu0 %6186  ;;  %v6209_v7 = vld [vmem:[#allocation3 + $0x68] sm:$0xff] }
0x2666   :  { %6195 = vst.msk [vmem:[#allocation3 + $0x78] sm:$0xff] %vm2155_vm4, %v6187_v52  ;;  %6427 = vmatprep.mubr.bf16.mxu1 %v6209_v7 }
0x2667   :  { %6428 = vmatmul.mubr.bf16.gmra.mrb[176].mxu1 %v6208_v37 }
0x266d   :  { %v6211_v55 = vld [vmem:[#allocation3 + $0x78] sm:$0xff] }
0x266e   :  { %6435 = vmatprep.mubr.bf16.mxu1 %v6211_v55 }
0x266f   :  { %6436 = vmatmul.mubr.bf16.gmra.mrb[180].mxu1 %v6210_v2 }
0x272a   :  { %v7391_v26 = vpop.f32.mrb[168].mxu1 }
0x272b   :  { %v7392_v58 = vpop.f32.mrb[169].mxu1 }
0x272c   :  { %v7393_v59 = vadd.f32 %v7392_v58, %v7391_v26  ;;  %v7394_v44 = vpop.f32.mrb[170].mxu1 }
0x272d   :  { %v7395_v45 = vpop.f32.mrb[171].mxu1 }
0x272e   :  { %v6414_v56 = vadd.f32 %v7393_v59, %v11060_v39  ;;  %v7396_v33 = vadd.f32 %v7395_v45, %v7394_v44 }
0x2730   :  { %6452 = vst [vmem:[%s11139_s5 + $0x40] sm:$0xff] %v6414_v56  ;;  %v6417_v48 = vadd.f32 %v7396_v33, %v11060_v39 }
0x2732   :  { %6453 = vst [vmem:[%s11139_s5 + $0x48] sm:$0xff] %v6417_v48  ;;  %v7397_v60 = vpop.f32.mrb[172].mxu1 }
0x2733   :  { %v7398_v8 = vpop.f32.mrb[173].mxu1 }
0x2734   :  { %v7399_v19 = vadd.f32 %v7398_v8, %v7397_v60  ;;  %v7400_v10 = vpop.f32.mrb[174].mxu1 }
0x2735   :  { %v7401_v40 = vpop.f32.mrb[175].mxu1 }
0x2736   :  { %v6422_v18 = vadd.f32 %v7399_v19, %v11060_v39  ;;  %v7402_v46 = vadd.f32 %v7401_v40, %v7400_v10 }
0x2738   :  { %6454 = vst [vmem:[%s11139_s5 + $0x50] sm:$0xff] %v6422_v18  ;;  %v6425_v11 = vadd.f32 %v7402_v46, %v11060_v39 }
0x273a   :  { %6455 = vst [vmem:[%s11139_s5 + $0x58] sm:$0xff] %v6425_v11  ;;  %v7403_v15 = vpop.f32.mrb[176].mxu1 }
0x273b   :  { %v7404_v16 = vpop.f32.mrb[177].mxu1 }
0x273c   :  { %v7405_v0 = vadd.f32 %v7404_v16, %v7403_v15  ;;  %v7406_v51 = vpop.f32.mrb[178].mxu1 }
0x273d   :  { %v7407_v3 = vpop.f32.mrb[179].mxu1 }
0x273e   :  { %v6430_v34 = vadd.f32 %v7405_v0, %v11060_v39  ;;  %v7408_v53 = vadd.f32 %v7407_v3, %v7406_v51 }
0x2740   :  { %6456 = vst [vmem:[%s11139_s5 + $0x60] sm:$0xff] %v6430_v34  ;;  %v6433_v29 = vadd.f32 %v7408_v53, %v11060_v39 }
0x2742   :  { %6457 = vst [vmem:[%s11139_s5 + $0x68] sm:$0xff] %v6433_v29  ;;  %v7409_v14 = vpop.f32.mrb[180].mxu1 }
0x2743   :  { %v7410_v57 = vpop.f32.mrb[181].mxu1 }
0x2744   :  { %v7411_v43 = vadd.f32 %v7410_v57, %v7409_v14  ;;  %v7412_v6 = vpop.f32.mrb[182].mxu1 }
0x2745   :  { %v7413_v23 = vpop.f32.mrb[183].mxu1 }
0x2746   :  { %v6438_v27 = vadd.f32 %v7411_v43, %v11060_v39  ;;  %v7414_v9 = vadd.f32 %v7413_v23, %v7412_v6 }
0x2748   :  { %6458 = vst [vmem:[%s11139_s5 + $0x70] sm:$0xff] %v6438_v27  ;;  %v6441_v20 = vadd.f32 %v7414_v9, %v11060_v39 }
0x274a   :  { %6459 = vst [vmem:[%s11139_s5 + $0x78] sm:$0xff] %v6441_v20 }

</bundles_post_ra>
